<compile_context>
chip_gen: v7x
topology: tpu7x:2x2x1
jax: 0.10.0
libtpu: 0.0.40
codegen_flags: <defaults>
</compile_context>

<pallas_src>
import jax
import jax.numpy as jnp
from jax import lax
from jax.experimental import pallas as pl
from jax.experimental.pallas import tpu as pltpu


# ---------------------------------------------------------------------------
# Fused kernel: ReLU + n_blocks x (conv3x3 + bias + maxpool5 + residual add)
# ---------------------------------------------------------------------------

def _crp_fused_kernel(x_ref, w_ref, b_ref, o_ref, xp_ref, col_ref, ph_ref, pw_ref):
    # x_ref : (1, H, W, C)        one batch element (NHWC)
    # w_ref : (B, 9*C, C)         per-block conv weights, rows ordered (ky, kx, cin)
    # b_ref : (B, 1, C)           per-block bias
    # o_ref : (1, H, W, C)        chained-residual-pooling output
    # xp_ref: (H+2, W+2, C)       zero-padded conv input (VMEM scratch)
    # col_ref:(H*W, 9*C)          im2col patch matrix (VMEM scratch)
    # ph_ref: (H+4, W, C)         -inf padded buffer for H-direction max (scratch)
    # pw_ref: (H, W+4, C)         -inf padded buffer for W-direction max (scratch)
    H = o_ref.shape[1]
    W = o_ref.shape[2]
    C = o_ref.shape[3]
    B = w_ref.shape[0]

    # Halos are written once; per block only the interiors are overwritten.
    xp_ref[...] = jnp.zeros(xp_ref.shape, jnp.float32)
    ph_ref[...] = jnp.full(ph_ref.shape, -jnp.inf, jnp.float32)
    pw_ref[...] = jnp.full(pw_ref.shape, -jnp.inf, jnp.float32)

    # ReLU folded into the fused kernel (no separate HBM pass).
    x = jnp.maximum(x_ref[0], 0.0)          # (H, W, C)
    res = x

    for blk in range(B):                    # static unroll over pooling blocks
        # ---- Conv2d(C, C, 3, padding=1): single K=9C im2col matmul ----
        xp_ref[pl.ds(1, H), pl.ds(1, W), :] = x
        for t in range(9):
            ky, kx = t // 3, t % 3
            col_ref[:, pl.ds(t * C, C)] = (
                xp_ref[pl.ds(ky, H), pl.ds(kx, W), :].reshape(H * W, C)
            )
        # Kernel is HBM/overhead bound at these sizes, so fp32-accurate matmul is
        # free; for large C (MXU-bound) switch to default/bf16 per review and
        # loosen the test tolerance.
        y = jnp.dot(
            col_ref[...],
            w_ref[blk],
            preferred_element_type=jnp.float32,
            precision=lax.Precision.HIGHEST,
        )
        y = (y + b_ref[blk]).reshape(H, W, C)

        # ---- MaxPool2d(5, stride=1, padding=2), separable: H pass then W pass ----
        ph_ref[pl.ds(2, H), :, :] = y
        m = ph_ref[pl.ds(0, H), :, :]
        for d in range(1, 5):
            m = jnp.maximum(m, ph_ref[pl.ds(d, H), :, :])

        pw_ref[:, pl.ds(2, W), :] = m
        p = pw_ref[:, pl.ds(0, W), :]
        for d in range(1, 5):
            p = jnp.maximum(p, pw_ref[:, pl.ds(d, W), :])

        # ---- residual chain ----
        x = p
        res = res + p

    o_ref[...] = res[None]


# ---------------------------------------------------------------------------
# Wrapper (pallas_call glue)
# ---------------------------------------------------------------------------

def chained_residual_pooling_forward(x_nchw, params):
    """Pallas implementation of ChainedResidualPooling.forward.

    x_nchw: (N, C, H, W) float32, PyTorch NCHW convention.
    params: list of (w, b) per pooling block, w: (3, 3, C, C) HWIO, b: (1, C).
    Returns (N, C, H, W).
    """
    N, C, H, W = x_nchw.shape
    B = len(params)
    x = jnp.transpose(x_nchw, (0, 2, 3, 1)).astype(jnp.float32)        # NHWC

    # Stack per-block params: rows of w flattened in (ky, kx, cin) order -> (B, 9C, C).
    w_all = jnp.stack([w.reshape(9 * C, C) for w, _ in params])         # (B, 9C, C)
    b_all = jnp.stack([b.reshape(1, C) for _, b in params])             # (B, 1, C)

    out = pl.pallas_call(
        _crp_fused_kernel,
        out_shape=jax.ShapeDtypeStruct((N, H, W, C), jnp.float32),
        grid=(N,),
        in_specs=[
            pl.BlockSpec((1, H, W, C), lambda n: (n, 0, 0, 0)),
            pl.BlockSpec((B, 9 * C, C), lambda n: (0, 0, 0)),
            pl.BlockSpec((B, 1, C), lambda n: (0, 0, 0)),
        ],
        out_specs=pl.BlockSpec((1, H, W, C), lambda n: (n, 0, 0, 0)),
        scratch_shapes=[
            pltpu.VMEM((H + 2, W + 2, C), jnp.float32),   # zero-padded conv input
            pltpu.VMEM((H * W, 9 * C), jnp.float32),      # im2col patch matrix
            pltpu.VMEM((H + 4, W, C), jnp.float32),       # -inf padded, H-direction max
            pltpu.VMEM((H, W + 4, C), jnp.float32),       # -inf padded, W-direction max
        ],
        compiler_params=pltpu.CompilerParams(dimension_semantics=("parallel",)),
    )(x, w_all, b_all)

    return jnp.transpose(out, (0, 3, 1, 2))                             # back to NCHW


# ---------------------------------------------------------------------------
# Deterministic parameter init (PyTorch Conv2d-style uniform bounds)
# ---------------------------------------------------------------------------

def init_params(key, n_pooling_blocks, n_channels):
    params = []
    bound = 1.0 / float(jnp.sqrt(jnp.float32(n_channels * 9)))
    for _ in range(n_pooling_blocks):
        key, kw, kb = jax.random.split(key, 3)
        # PyTorch weight layout (Cout, Cin, 3, 3) -> kernel layout (3, 3, Cin, Cout)
        w_pt = jax.random.uniform(kw, (n_channels, n_channels, 3, 3),
                                  jnp.float32, -bound, bound)
        b = jax.random.uniform(kb, (n_channels,), jnp.float32, -bound, bound)
        w = jnp.transpose(w_pt, (2, 3, 1, 0))
        params.append((w, b.reshape(1, n_channels)))
    return params


# ---------------------------------------------------------------------------
# Pure-JAX reference (mirrors the PyTorch forward) for validation
# ---------------------------------------------------------------------------

def reference_forward(x_nchw, params):
    x = jax.nn.relu(x_nchw)
    result = x
    for w, b in params:
        y = lax.conv_general_dilated(
            x, w, window_strides=(1, 1), padding=((1, 1), (1, 1)),
            dimension_numbers=("NCHW", "HWIO", "NCHW"),
            precision=lax.Precision.HIGHEST)
        y = y + b.reshape(1, -1, 1, 1)
        y = lax.reduce_window(y, -jnp.inf, lax.max,
                              window_dimensions=(1, 1, 5, 5),
                              window_strides=(1, 1, 1, 1),
                              padding=((0, 0), (0, 0), (2, 2), (2, 2)))
        x = y
        result = result + x
    return result


if __name__ == "__main__":
    key = jax.random.PRNGKey(0)
    kx, kp = jax.random.split(key)

    N, C, H, W = 2, 4, 16, 16
    n_pooling_blocks = 2

    x = jax.random.normal(kx, (N, C, H, W), jnp.float32)
    params = init_params(kp, n_pooling_blocks, C)

    out = chained_residual_pooling_forward(x, params)
    out = jax.block_until_ready(out)

    ref = reference_forward(x, params)
    assert out.shape == (N, C, H, W)
    assert jnp.allclose(out, ref, atol=1e-4, rtol=1e-4), "Pallas output mismatch vs reference"

    print("KERNEL_OK")
</pallas_src>

<mosaic_0001>
module attributes {stable_mosaic.version = 11 : i64} {
  func.func @_crp_fused_kernel(%arg0: i32, %arg1: memref<1x16x16x4xf32, #tpu.memory_space<vmem>>, %arg2: memref<2x36x4xf32, #tpu.memory_space<vmem>>, %arg3: memref<2x1x4xf32, #tpu.memory_space<vmem>>, %arg4: memref<1x16x16x4xf32, #tpu.memory_space<vmem>>, %arg5: memref<18x18x4xf32, #tpu.memory_space<vmem>>, %arg6: memref<256x36xf32, #tpu.memory_space<vmem>>, %arg7: memref<20x16x4xf32, #tpu.memory_space<vmem>>, %arg8: memref<16x20x4xf32, #tpu.memory_space<vmem>>) attributes {dimension_semantics = [#tpu.dimension_semantics<parallel>], iteration_bounds = array<i64: 2>, scalar_prefetch = 0 : i64, scratch_operands = 4 : i64, tpu.core_type = #tpu.core_type<tc>, window_params = [{transform_indices = @transform_0, window_bounds = array<i64: 1, 16, 16, 4>}, {pipeline_mode = #tpu.pipeline_mode<synchronous>, transform_indices = @transform_1, window_bounds = array<i64: 2, 36, 4>}, {pipeline_mode = #tpu.pipeline_mode<synchronous>, transform_indices = @transform_2, window_bounds = array<i64: 2, 1, 4>}, {transform_indices = @transform_3, window_bounds = array<i64: 1, 16, 16, 4>}]} {
    %cst = arith.constant 0.000000e+00 : f32
    %0 = vector.broadcast %cst : f32 to vector<18x18x4xf32>
    %c0 = arith.constant 0 : index
    %c0_0 = arith.constant 0 : index
    %c0_1 = arith.constant 0 : index
    %1 = vector.load %arg5[%c0, %c0_0, %c0_1] : memref<18x18x4xf32, #tpu.memory_space<vmem>>, vector<18x18x4xf32>
    tpu.vector_store %arg5[%c0, %c0_0, %c0_1], %0 {strides = array<i32>} : memref<18x18x4xf32, #tpu.memory_space<vmem>>, vector<18x18x4xf32>,
    %cst_2 = arith.constant 0xFF800000 : f32
    %2 = vector.broadcast %cst_2 : f32 to vector<20x16x4xf32>
    %c0_3 = arith.constant 0 : index
    %c0_4 = arith.constant 0 : index
    %c0_5 = arith.constant 0 : index
    %3 = vector.load %arg7[%c0_3, %c0_4, %c0_5] : memref<20x16x4xf32, #tpu.memory_space<vmem>>, vector<20x16x4xf32>
    tpu.vector_store %arg7[%c0_3, %c0_4, %c0_5], %2 {strides = array<i32>} : memref<20x16x4xf32, #tpu.memory_space<vmem>>, vector<20x16x4xf32>,
    %cst_6 = arith.constant 0xFF800000 : f32
    %4 = vector.broadcast %cst_6 : f32 to vector<16x20x4xf32>
    %c0_7 = arith.constant 0 : index
    %c0_8 = arith.constant 0 : index
    %c0_9 = arith.constant 0 : index
    %5 = vector.load %arg8[%c0_7, %c0_8, %c0_9] : memref<16x20x4xf32, #tpu.memory_space<vmem>>, vector<16x20x4xf32>
    tpu.vector_store %arg8[%c0_7, %c0_8, %c0_9], %4 {strides = array<i32>} : memref<16x20x4xf32, #tpu.memory_space<vmem>>, vector<16x20x4xf32>,
    %c0_10 = arith.constant 0 : index
    %c0_11 = arith.constant 0 : index
    %c0_12 = arith.constant 0 : index
    %c0_13 = arith.constant 0 : index
    %6 = vector.load %arg1[%c0_10, %c0_11, %c0_12, %c0_13] : memref<1x16x16x4xf32, #tpu.memory_space<vmem>>, vector<1x16x16x4xf32>
    %7 = vector.shape_cast %6 : vector<1x16x16x4xf32> to vector<16x16x4xf32>
    %cst_14 = arith.constant 0.000000e+00 : f32
    %8 = vector.broadcast %cst_14 : f32 to vector<16x16x4xf32>
    %9 = arith.maximumf %7, %8 : vector<16x16x4xf32>
    %c1 = arith.constant 1 : index
    %c1_15 = arith.constant 1 : index
    %c0_16 = arith.constant 0 : index
    %10 = vector.load %arg5[%c1, %c1_15, %c0_16] : memref<18x18x4xf32, #tpu.memory_space<vmem>>, vector<16x16x4xf32>
    tpu.vector_store %arg5[%c1, %c1_15, %c0_16], %9 {strides = array<i32>} : memref<18x18x4xf32, #tpu.memory_space<vmem>>, vector<16x16x4xf32>,
    %c0_17 = arith.constant 0 : index
    %c0_18 = arith.constant 0 : index
    %c0_19 = arith.constant 0 : index
    %11 = vector.load %arg5[%c0_17, %c0_18, %c0_19] : memref<18x18x4xf32, #tpu.memory_space<vmem>>, vector<16x16x4xf32>
    %12 = vector.shape_cast %11 : vector<16x16x4xf32> to vector<256x4xf32>
    %c0_20 = arith.constant 0 : index
    %c0_21 = arith.constant 0 : index
    %13 = vector.load %arg6[%c0_20, %c0_21] : memref<256x36xf32, #tpu.memory_space<vmem>>, vector<256x4xf32>
    tpu.vector_store %arg6[%c0_20, %c0_21], %12 {strides = array<i32>} : memref<256x36xf32, #tpu.memory_space<vmem>>, vector<256x4xf32>,
    %c0_22 = arith.constant 0 : index
    %c1_23 = arith.constant 1 : index
    %c0_24 = arith.constant 0 : index
    %14 = vector.load %arg5[%c0_22, %c1_23, %c0_24] : memref<18x18x4xf32, #tpu.memory_space<vmem>>, vector<16x16x4xf32>
    %15 = vector.shape_cast %14 : vector<16x16x4xf32> to vector<256x4xf32>
    %c0_25 = arith.constant 0 : index
    %c4 = arith.constant 4 : index
    %16 = vector.load %arg6[%c0_25, %c4] : memref<256x36xf32, #tpu.memory_space<vmem>>, vector<256x4xf32>
    tpu.vector_store %arg6[%c0_25, %c4], %15 {strides = array<i32>} : memref<256x36xf32, #tpu.memory_space<vmem>>, vector<256x4xf32>,
    %c0_26 = arith.constant 0 : index
    %c2 = arith.constant 2 : index
    %c0_27 = arith.constant 0 : index
    %17 = vector.load %arg5[%c0_26, %c2, %c0_27] : memref<18x18x4xf32, #tpu.memory_space<vmem>>, vector<16x16x4xf32>
    %18 = vector.shape_cast %17 : vector<16x16x4xf32> to vector<256x4xf32>
    %c0_28 = arith.constant 0 : index
    %c8 = arith.constant 8 : index
    %19 = vector.load %arg6[%c0_28, %c8] : memref<256x36xf32, #tpu.memory_space<vmem>>, vector<256x4xf32>
    tpu.vector_store %arg6[%c0_28, %c8], %18 {strides = array<i32>} : memref<256x36xf32, #tpu.memory_space<vmem>>, vector<256x4xf32>,
    %c1_29 = arith.constant 1 : index
    %c0_30 = arith.constant 0 : index
    %c0_31 = arith.constant 0 : index
    %20 = vector.load %arg5[%c1_29, %c0_30, %c0_31] : memref<18x18x4xf32, #tpu.memory_space<vmem>>, vector<16x16x4xf32>
    %21 = vector.shape_cast %20 : vector<16x16x4xf32> to vector<256x4xf32>
    %c0_32 = arith.constant 0 : index
    %c12 = arith.constant 12 : index
    %22 = vector.load %arg6[%c0_32, %c12] : memref<256x36xf32, #tpu.memory_space<vmem>>, vector<256x4xf32>
    tpu.vector_store %arg6[%c0_32, %c12], %21 {strides = array<i32>} : memref<256x36xf32, #tpu.memory_space<vmem>>, vector<256x4xf32>,
    %c1_33 = arith.constant 1 : index
    %c1_34 = arith.constant 1 : index
    %c0_35 = arith.constant 0 : index
    %23 = vector.load %arg5[%c1_33, %c1_34, %c0_35] : memref<18x18x4xf32, #tpu.memory_space<vmem>>, vector<16x16x4xf32>
    %24 = vector.shape_cast %23 : vector<16x16x4xf32> to vector<256x4xf32>
    %c0_36 = arith.constant 0 : index
    %c16 = arith.constant 16 : index
    %25 = vector.load %arg6[%c0_36, %c16] : memref<256x36xf32, #tpu.memory_space<vmem>>, vector<256x4xf32>
    tpu.vector_store %arg6[%c0_36, %c16], %24 {strides = array<i32>} : memref<256x36xf32, #tpu.memory_space<vmem>>, vector<256x4xf32>,
    %c1_37 = arith.constant 1 : index
    %c2_38 = arith.constant 2 : index
    %c0_39 = arith.constant 0 : index
    %26 = vector.load %arg5[%c1_37, %c2_38, %c0_39] : memref<18x18x4xf32, #tpu.memory_space<vmem>>, vector<16x16x4xf32>
    %27 = vector.shape_cast %26 : vector<16x16x4xf32> to vector<256x4xf32>
    %c0_40 = arith.constant 0 : index
    %c20 = arith.constant 20 : index
    %28 = vector.load %arg6[%c0_40, %c20] : memref<256x36xf32, #tpu.memory_space<vmem>>, vector<256x4xf32>
    tpu.vector_store %arg6[%c0_40, %c20], %27 {strides = array<i32>} : memref<256x36xf32, #tpu.memory_space<vmem>>, vector<256x4xf32>,
    %c2_41 = arith.constant 2 : index
    %c0_42 = arith.constant 0 : index
    %c0_43 = arith.constant 0 : index
    %29 = vector.load %arg5[%c2_41, %c0_42, %c0_43] : memref<18x18x4xf32, #tpu.memory_space<vmem>>, vector<16x16x4xf32>
    %30 = vector.shape_cast %29 : vector<16x16x4xf32> to vector<256x4xf32>
    %c0_44 = arith.constant 0 : index
    %c24 = arith.constant 24 : index
    %31 = vector.load %arg6[%c0_44, %c24] : memref<256x36xf32, #tpu.memory_space<vmem>>, vector<256x4xf32>
    tpu.vector_store %arg6[%c0_44, %c24], %30 {strides = array<i32>} : memref<256x36xf32, #tpu.memory_space<vmem>>, vector<256x4xf32>,
    %c2_45 = arith.constant 2 : index
    %c1_46 = arith.constant 1 : index
    %c0_47 = arith.constant 0 : index
    %32 = vector.load %arg5[%c2_45, %c1_46, %c0_47] : memref<18x18x4xf32, #tpu.memory_space<vmem>>, vector<16x16x4xf32>
    %33 = vector.shape_cast %32 : vector<16x16x4xf32> to vector<256x4xf32>
    %c0_48 = arith.constant 0 : index
    %c28 = arith.constant 28 : index
    %34 = vector.load %arg6[%c0_48, %c28] : memref<256x36xf32, #tpu.memory_space<vmem>>, vector<256x4xf32>
    tpu.vector_store %arg6[%c0_48, %c28], %33 {strides = array<i32>} : memref<256x36xf32, #tpu.memory_space<vmem>>, vector<256x4xf32>,
    %c2_49 = arith.constant 2 : index
    %c2_50 = arith.constant 2 : index
    %c0_51 = arith.constant 0 : index
    %35 = vector.load %arg5[%c2_49, %c2_50, %c0_51] : memref<18x18x4xf32, #tpu.memory_space<vmem>>, vector<16x16x4xf32>
    %36 = vector.shape_cast %35 : vector<16x16x4xf32> to vector<256x4xf32>
    %c0_52 = arith.constant 0 : index
    %c32 = arith.constant 32 : index
    %37 = vector.load %arg6[%c0_52, %c32] : memref<256x36xf32, #tpu.memory_space<vmem>>, vector<256x4xf32>
    tpu.vector_store %arg6[%c0_52, %c32], %36 {strides = array<i32>} : memref<256x36xf32, #tpu.memory_space<vmem>>, vector<256x4xf32>,
    %c0_53 = arith.constant 0 : index
    %c0_54 = arith.constant 0 : index
    %38 = vector.load %arg6[%c0_53, %c0_54] : memref<256x36xf32, #tpu.memory_space<vmem>>, vector<256x36xf32>
    %c0_55 = arith.constant 0 : index
    %c0_56 = arith.constant 0 : index
    %c0_57 = arith.constant 0 : index
    %39 = vector.load %arg2[%c0_55, %c0_56, %c0_57] : memref<2x36x4xf32, #tpu.memory_space<vmem>>, vector<1x36x4xf32>
    %40 = vector.shape_cast %39 : vector<1x36x4xf32> to vector<36x4xf32>
    %cst_58 = arith.constant dense<0.000000e+00> : vector<256x4xf32>
    %41 = tpu.matmul %38, %40, %cst_58 {dimension_numbers = #tpu.dot_dimension_numbers<[1], [0], [0], [1], [0, 0, 1, 1], [], []>, precision = #tpu.contract_precision<fp32>} : vector<256x36xf32>, vector<36x4xf32>, vector<256x4xf32> -> vector<256x4xf32>
    %c0_59 = arith.constant 0 : index
    %c0_60 = arith.constant 0 : index
    %c0_61 = arith.constant 0 : index
    %42 = vector.load %arg3[%c0_59, %c0_60, %c0_61] : memref<2x1x4xf32, #tpu.memory_space<vmem>>, vector<1x1x4xf32>
    %43 = vector.shape_cast %42 : vector<1x1x4xf32> to vector<1x4xf32>
    %44 = vector.broadcast %43 : vector<1x4xf32> to vector<256x4xf32>
    %45 = arith.addf %41, %44 : vector<256x4xf32>
    %46 = vector.shape_cast %45 : vector<256x4xf32> to vector<16x16x4xf32>
    %c2_62 = arith.constant 2 : index
    %c0_63 = arith.constant 0 : index
    %c0_64 = arith.constant 0 : index
    %47 = vector.load %arg7[%c2_62, %c0_63, %c0_64] : memref<20x16x4xf32, #tpu.memory_space<vmem>>, vector<16x16x4xf32>
    tpu.vector_store %arg7[%c2_62, %c0_63, %c0_64], %46 {strides = array<i32>} : memref<20x16x4xf32, #tpu.memory_space<vmem>>, vector<16x16x4xf32>,
    %c0_65 = arith.constant 0 : index
    %c0_66 = arith.constant 0 : index
    %c0_67 = arith.constant 0 : index
    %48 = vector.load %arg7[%c0_65, %c0_66, %c0_67] : memref<20x16x4xf32, #tpu.memory_space<vmem>>, vector<16x16x4xf32>
    %c1_68 = arith.constant 1 : index
    %c0_69 = arith.constant 0 : index
    %c0_70 = arith.constant 0 : index
    %49 = vector.load %arg7[%c1_68, %c0_69, %c0_70] : memref<20x16x4xf32, #tpu.memory_space<vmem>>, vector<16x16x4xf32>
    %50 = arith.maximumf %48, %49 : vector<16x16x4xf32>
    %c2_71 = arith.constant 2 : index
    %c0_72 = arith.constant 0 : index
    %c0_73 = arith.constant 0 : index
    %51 = vector.load %arg7[%c2_71, %c0_72, %c0_73] : memref<20x16x4xf32, #tpu.memory_space<vmem>>, vector<16x16x4xf32>
    %52 = arith.maximumf %50, %51 : vector<16x16x4xf32>
    %c3 = arith.constant 3 : index
    %c0_74 = arith.constant 0 : index
    %c0_75 = arith.constant 0 : index
    %53 = vector.load %arg7[%c3, %c0_74, %c0_75] : memref<20x16x4xf32, #tpu.memory_space<vmem>>, vector<16x16x4xf32>
    %54 = arith.maximumf %52, %53 : vector<16x16x4xf32>
    %c4_76 = arith.constant 4 : index
    %c0_77 = arith.constant 0 : index
    %c0_78 = arith.constant 0 : index
    %55 = vector.load %arg7[%c4_76, %c0_77, %c0_78] : memref<20x16x4xf32, #tpu.memory_space<vmem>>, vector<16x16x4xf32>
    %56 = arith.maximumf %54, %55 : vector<16x16x4xf32>
    %c0_79 = arith.constant 0 : index
    %c2_80 = arith.constant 2 : index
    %c0_81 = arith.constant 0 : index
    %57 = vector.load %arg8[%c0_79, %c2_80, %c0_81] : memref<16x20x4xf32, #tpu.memory_space<vmem>>, vector<16x16x4xf32>
    tpu.vector_store %arg8[%c0_79, %c2_80, %c0_81], %56 {strides = array<i32>} : memref<16x20x4xf32, #tpu.memory_space<vmem>>, vector<16x16x4xf32>,
    %c0_82 = arith.constant 0 : index
    %c0_83 = arith.constant 0 : index
    %c0_84 = arith.constant 0 : index
    %58 = vector.load %arg8[%c0_82, %c0_83, %c0_84] : memref<16x20x4xf32, #tpu.memory_space<vmem>>, vector<16x16x4xf32>
    %c0_85 = arith.constant 0 : index
    %c1_86 = arith.constant 1 : index
    %c0_87 = arith.constant 0 : index
    %59 = vector.load %arg8[%c0_85, %c1_86, %c0_87] : memref<16x20x4xf32, #tpu.memory_space<vmem>>, vector<16x16x4xf32>
    %60 = arith.maximumf %58, %59 : vector<16x16x4xf32>
    %c0_88 = arith.constant 0 : index
    %c2_89 = arith.constant 2 : index
    %c0_90 = arith.constant 0 : index
    %61 = vector.load %arg8[%c0_88, %c2_89, %c0_90] : memref<16x20x4xf32, #tpu.memory_space<vmem>>, vector<16x16x4xf32>
    %62 = arith.maximumf %60, %61 : vector<16x16x4xf32>
    %c0_91 = arith.constant 0 : index
    %c3_92 = arith.constant 3 : index
    %c0_93 = arith.constant 0 : index
    %63 = vector.load %arg8[%c0_91, %c3_92, %c0_93] : memref<16x20x4xf32, #tpu.memory_space<vmem>>, vector<16x16x4xf32>
    %64 = arith.maximumf %62, %63 : vector<16x16x4xf32>
    %c0_94 = arith.constant 0 : index
    %c4_95 = arith.constant 4 : index
    %c0_96 = arith.constant 0 : index
    %65 = vector.load %arg8[%c0_94, %c4_95, %c0_96] : memref<16x20x4xf32, #tpu.memory_space<vmem>>, vector<16x16x4xf32>
    %66 = arith.maximumf %64, %65 : vector<16x16x4xf32>
    %67 = arith.addf %9, %66 : vector<16x16x4xf32>
    %c1_97 = arith.constant 1 : index
    %c1_98 = arith.constant 1 : index
    %c0_99 = arith.constant 0 : index
    %68 = vector.load %arg5[%c1_97, %c1_98, %c0_99] : memref<18x18x4xf32, #tpu.memory_space<vmem>>, vector<16x16x4xf32>
    tpu.vector_store %arg5[%c1_97, %c1_98, %c0_99], %66 {strides = array<i32>} : memref<18x18x4xf32, #tpu.memory_space<vmem>>, vector<16x16x4xf32>,
    %c0_100 = arith.constant 0 : index
    %c0_101 = arith.constant 0 : index
    %c0_102 = arith.constant 0 : index
    %69 = vector.load %arg5[%c0_100, %c0_101, %c0_102] : memref<18x18x4xf32, #tpu.memory_space<vmem>>, vector<16x16x4xf32>
    %70 = vector.shape_cast %69 : vector<16x16x4xf32> to vector<256x4xf32>
    %c0_103 = arith.constant 0 : index
    %c0_104 = arith.constant 0 : index
    %71 = vector.load %arg6[%c0_103, %c0_104] : memref<256x36xf32, #tpu.memory_space<vmem>>, vector<256x4xf32>
    tpu.vector_store %arg6[%c0_103, %c0_104], %70 {strides = array<i32>} : memref<256x36xf32, #tpu.memory_space<vmem>>, vector<256x4xf32>,
    %c0_105 = arith.constant 0 : index
    %c1_106 = arith.constant 1 : index
    %c0_107 = arith.constant 0 : index
    %72 = vector.load %arg5[%c0_105, %c1_106, %c0_107] : memref<18x18x4xf32, #tpu.memory_space<vmem>>, vector<16x16x4xf32>
    %73 = vector.shape_cast %72 : vector<16x16x4xf32> to vector<256x4xf32>
    %c0_108 = arith.constant 0 : index
    %c4_109 = arith.constant 4 : index
    %74 = vector.load %arg6[%c0_108, %c4_109] : memref<256x36xf32, #tpu.memory_space<vmem>>, vector<256x4xf32>
    tpu.vector_store %arg6[%c0_108, %c4_109], %73 {strides = array<i32>} : memref<256x36xf32, #tpu.memory_space<vmem>>, vector<256x4xf32>,
    %c0_110 = arith.constant 0 : index
    %c2_111 = arith.constant 2 : index
    %c0_112 = arith.constant 0 : index
    %75 = vector.load %arg5[%c0_110, %c2_111, %c0_112] : memref<18x18x4xf32, #tpu.memory_space<vmem>>, vector<16x16x4xf32>
    %76 = vector.shape_cast %75 : vector<16x16x4xf32> to vector<256x4xf32>
    %c0_113 = arith.constant 0 : index
    %c8_114 = arith.constant 8 : index
    %77 = vector.load %arg6[%c0_113, %c8_114] : memref<256x36xf32, #tpu.memory_space<vmem>>, vector<256x4xf32>
    tpu.vector_store %arg6[%c0_113, %c8_114], %76 {strides = array<i32>} : memref<256x36xf32, #tpu.memory_space<vmem>>, vector<256x4xf32>,
    %c1_115 = arith.constant 1 : index
    %c0_116 = arith.constant 0 : index
    %c0_117 = arith.constant 0 : index
    %78 = vector.load %arg5[%c1_115, %c0_116, %c0_117] : memref<18x18x4xf32, #tpu.memory_space<vmem>>, vector<16x16x4xf32>
    %79 = vector.shape_cast %78 : vector<16x16x4xf32> to vector<256x4xf32>
    %c0_118 = arith.constant 0 : index
    %c12_119 = arith.constant 12 : index
    %80 = vector.load %arg6[%c0_118, %c12_119] : memref<256x36xf32, #tpu.memory_space<vmem>>, vector<256x4xf32>
    tpu.vector_store %arg6[%c0_118, %c12_119], %79 {strides = array<i32>} : memref<256x36xf32, #tpu.memory_space<vmem>>, vector<256x4xf32>,
    %c1_120 = arith.constant 1 : index
    %c1_121 = arith.constant 1 : index
    %c0_122 = arith.constant 0 : index
    %81 = vector.load %arg5[%c1_120, %c1_121, %c0_122] : memref<18x18x4xf32, #tpu.memory_space<vmem>>, vector<16x16x4xf32>
    %82 = vector.shape_cast %81 : vector<16x16x4xf32> to vector<256x4xf32>
    %c0_123 = arith.constant 0 : index
    %c16_124 = arith.constant 16 : index
    %83 = vector.load %arg6[%c0_123, %c16_124] : memref<256x36xf32, #tpu.memory_space<vmem>>, vector<256x4xf32>
    tpu.vector_store %arg6[%c0_123, %c16_124], %82 {strides = array<i32>} : memref<256x36xf32, #tpu.memory_space<vmem>>, vector<256x4xf32>,
    %c1_125 = arith.constant 1 : index
    %c2_126 = arith.constant 2 : index
    %c0_127 = arith.constant 0 : index
    %84 = vector.load %arg5[%c1_125, %c2_126, %c0_127] : memref<18x18x4xf32, #tpu.memory_space<vmem>>, vector<16x16x4xf32>
    %85 = vector.shape_cast %84 : vector<16x16x4xf32> to vector<256x4xf32>
    %c0_128 = arith.constant 0 : index
    %c20_129 = arith.constant 20 : index
    %86 = vector.load %arg6[%c0_128, %c20_129] : memref<256x36xf32, #tpu.memory_space<vmem>>, vector<256x4xf32>
    tpu.vector_store %arg6[%c0_128, %c20_129], %85 {strides = array<i32>} : memref<256x36xf32, #tpu.memory_space<vmem>>, vector<256x4xf32>,
    %c2_130 = arith.constant 2 : index
    %c0_131 = arith.constant 0 : index
    %c0_132 = arith.constant 0 : index
    %87 = vector.load %arg5[%c2_130, %c0_131, %c0_132] : memref<18x18x4xf32, #tpu.memory_space<vmem>>, vector<16x16x4xf32>
    %88 = vector.shape_cast %87 : vector<16x16x4xf32> to vector<256x4xf32>
    %c0_133 = arith.constant 0 : index
    %c24_134 = arith.constant 24 : index
    %89 = vector.load %arg6[%c0_133, %c24_134] : memref<256x36xf32, #tpu.memory_space<vmem>>, vector<256x4xf32>
    tpu.vector_store %arg6[%c0_133, %c24_134], %88 {strides = array<i32>} : memref<256x36xf32, #tpu.memory_space<vmem>>, vector<256x4xf32>,
    %c2_135 = arith.constant 2 : index
    %c1_136 = arith.constant 1 : index
    %c0_137 = arith.constant 0 : index
    %90 = vector.load %arg5[%c2_135, %c1_136, %c0_137] : memref<18x18x4xf32, #tpu.memory_space<vmem>>, vector<16x16x4xf32>
    %91 = vector.shape_cast %90 : vector<16x16x4xf32> to vector<256x4xf32>
    %c0_138 = arith.constant 0 : index
    %c28_139 = arith.constant 28 : index
    %92 = vector.load %arg6[%c0_138, %c28_139] : memref<256x36xf32, #tpu.memory_space<vmem>>, vector<256x4xf32>
    tpu.vector_store %arg6[%c0_138, %c28_139], %91 {strides = array<i32>} : memref<256x36xf32, #tpu.memory_space<vmem>>, vector<256x4xf32>,
    %c2_140 = arith.constant 2 : index
    %c2_141 = arith.constant 2 : index
    %c0_142 = arith.constant 0 : index
    %93 = vector.load %arg5[%c2_140, %c2_141, %c0_142] : memref<18x18x4xf32, #tpu.memory_space<vmem>>, vector<16x16x4xf32>
    %94 = vector.shape_cast %93 : vector<16x16x4xf32> to vector<256x4xf32>
    %c0_143 = arith.constant 0 : index
    %c32_144 = arith.constant 32 : index
    %95 = vector.load %arg6[%c0_143, %c32_144] : memref<256x36xf32, #tpu.memory_space<vmem>>, vector<256x4xf32>
    tpu.vector_store %arg6[%c0_143, %c32_144], %94 {strides = array<i32>} : memref<256x36xf32, #tpu.memory_space<vmem>>, vector<256x4xf32>,
    %c0_145 = arith.constant 0 : index
    %c0_146 = arith.constant 0 : index
    %96 = vector.load %arg6[%c0_145, %c0_146] : memref<256x36xf32, #tpu.memory_space<vmem>>, vector<256x36xf32>
    %c1_147 = arith.constant 1 : index
    %c0_148 = arith.constant 0 : index
    %c0_149 = arith.constant 0 : index
    %97 = vector.load %arg2[%c1_147, %c0_148, %c0_149] : memref<2x36x4xf32, #tpu.memory_space<vmem>>, vector<1x36x4xf32>
    %98 = vector.shape_cast %97 : vector<1x36x4xf32> to vector<36x4xf32>
    %cst_150 = arith.constant dense<0.000000e+00> : vector<256x4xf32>
    %99 = tpu.matmul %96, %98, %cst_150 {dimension_numbers = #tpu.dot_dimension_numbers<[1], [0], [0], [1], [0, 0, 1, 1], [], []>, precision = #tpu.contract_precision<fp32>} : vector<256x36xf32>, vector<36x4xf32>, vector<256x4xf32> -> vector<256x4xf32>
    %c1_151 = arith.constant 1 : index
    %c0_152 = arith.constant 0 : index
    %c0_153 = arith.constant 0 : index
    %100 = vector.load %arg3[%c1_151, %c0_152, %c0_153] : memref<2x1x4xf32, #tpu.memory_space<vmem>>, vector<1x1x4xf32>
    %101 = vector.shape_cast %100 : vector<1x1x4xf32> to vector<1x4xf32>
    %102 = vector.broadcast %101 : vector<1x4xf32> to vector<256x4xf32>
    %103 = arith.addf %99, %102 : vector<256x4xf32>
    %104 = vector.shape_cast %103 : vector<256x4xf32> to vector<16x16x4xf32>
    %c2_154 = arith.constant 2 : index
    %c0_155 = arith.constant 0 : index
    %c0_156 = arith.constant 0 : index
    %105 = vector.load %arg7[%c2_154, %c0_155, %c0_156] : memref<20x16x4xf32, #tpu.memory_space<vmem>>, vector<16x16x4xf32>
    tpu.vector_store %arg7[%c2_154, %c0_155, %c0_156], %104 {strides = array<i32>} : memref<20x16x4xf32, #tpu.memory_space<vmem>>, vector<16x16x4xf32>,
    %c0_157 = arith.constant 0 : index
    %c0_158 = arith.constant 0 : index
    %c0_159 = arith.constant 0 : index
    %106 = vector.load %arg7[%c0_157, %c0_158, %c0_159] : memref<20x16x4xf32, #tpu.memory_space<vmem>>, vector<16x16x4xf32>
    %c1_160 = arith.constant 1 : index
    %c0_161 = arith.constant 0 : index
    %c0_162 = arith.constant 0 : index
    %107 = vector.load %arg7[%c1_160, %c0_161, %c0_162] : memref<20x16x4xf32, #tpu.memory_space<vmem>>, vector<16x16x4xf32>
    %108 = arith.maximumf %106, %107 : vector<16x16x4xf32>
    %c2_163 = arith.constant 2 : index
    %c0_164 = arith.constant 0 : index
    %c0_165 = arith.constant 0 : index
    %109 = vector.load %arg7[%c2_163, %c0_164, %c0_165] : memref<20x16x4xf32, #tpu.memory_space<vmem>>, vector<16x16x4xf32>
    %110 = arith.maximumf %108, %109 : vector<16x16x4xf32>
    %c3_166 = arith.constant 3 : index
    %c0_167 = arith.constant 0 : index
    %c0_168 = arith.constant 0 : index
    %111 = vector.load %arg7[%c3_166, %c0_167, %c0_168] : memref<20x16x4xf32, #tpu.memory_space<vmem>>, vector<16x16x4xf32>
    %112 = arith.maximumf %110, %111 : vector<16x16x4xf32>
    %c4_169 = arith.constant 4 : index
    %c0_170 = arith.constant 0 : index
    %c0_171 = arith.constant 0 : index
    %113 = vector.load %arg7[%c4_169, %c0_170, %c0_171] : memref<20x16x4xf32, #tpu.memory_space<vmem>>, vector<16x16x4xf32>
    %114 = arith.maximumf %112, %113 : vector<16x16x4xf32>
    %c0_172 = arith.constant 0 : index
    %c2_173 = arith.constant 2 : index
    %c0_174 = arith.constant 0 : index
    %115 = vector.load %arg8[%c0_172, %c2_173, %c0_174] : memref<16x20x4xf32, #tpu.memory_space<vmem>>, vector<16x16x4xf32>
    tpu.vector_store %arg8[%c0_172, %c2_173, %c0_174], %114 {strides = array<i32>} : memref<16x20x4xf32, #tpu.memory_space<vmem>>, vector<16x16x4xf32>,
    %c0_175 = arith.constant 0 : index
    %c0_176 = arith.constant 0 : index
    %c0_177 = arith.constant 0 : index
    %116 = vector.load %arg8[%c0_175, %c0_176, %c0_177] : memref<16x20x4xf32, #tpu.memory_space<vmem>>, vector<16x16x4xf32>
    %c0_178 = arith.constant 0 : index
    %c1_179 = arith.constant 1 : index
    %c0_180 = arith.constant 0 : index
    %117 = vector.load %arg8[%c0_178, %c1_179, %c0_180] : memref<16x20x4xf32, #tpu.memory_space<vmem>>, vector<16x16x4xf32>
    %118 = arith.maximumf %116, %117 : vector<16x16x4xf32>
    %c0_181 = arith.constant 0 : index
    %c2_182 = arith.constant 2 : index
    %c0_183 = arith.constant 0 : index
    %119 = vector.load %arg8[%c0_181, %c2_182, %c0_183] : memref<16x20x4xf32, #tpu.memory_space<vmem>>, vector<16x16x4xf32>
    %120 = arith.maximumf %118, %119 : vector<16x16x4xf32>
    %c0_184 = arith.constant 0 : index
    %c3_185 = arith.constant 3 : index
    %c0_186 = arith.constant 0 : index
    %121 = vector.load %arg8[%c0_184, %c3_185, %c0_186] : memref<16x20x4xf32, #tpu.memory_space<vmem>>, vector<16x16x4xf32>
    %122 = arith.maximumf %120, %121 : vector<16x16x4xf32>
    %c0_187 = arith.constant 0 : index
    %c4_188 = arith.constant 4 : index
    %c0_189 = arith.constant 0 : index
    %123 = vector.load %arg8[%c0_187, %c4_188, %c0_189] : memref<16x20x4xf32, #tpu.memory_space<vmem>>, vector<16x16x4xf32>
    %124 = arith.maximumf %122, %123 : vector<16x16x4xf32>
    %125 = arith.addf %67, %124 : vector<16x16x4xf32>
    %126 = vector.shape_cast %125 : vector<16x16x4xf32> to vector<1x16x16x4xf32>
    %c0_190 = arith.constant 0 : index
    %c0_191 = arith.constant 0 : index
    %c0_192 = arith.constant 0 : index
    %c0_193 = arith.constant 0 : index
    %127 = vector.load %arg4[%c0_190, %c0_191, %c0_192, %c0_193] : memref<1x16x16x4xf32, #tpu.memory_space<vmem>>, vector<1x16x16x4xf32>
    tpu.vector_store %arg4[%c0_190, %c0_191, %c0_192, %c0_193], %126 {strides = array<i32>} : memref<1x16x16x4xf32, #tpu.memory_space<vmem>>, vector<1x16x16x4xf32>,
    return
  }
  func.func @transform_0(%arg0: i32) -> (i32, i32, i32, i32) {
    %c0_i32 = arith.constant 0 : i32
    %c0_i32_0 = arith.constant 0 : i32
    %c0_i32_1 = arith.constant 0 : i32
    %c0_i32_2 = arith.constant 0 : i32
    return %arg0, %c0_i32, %c0_i32_0, %c0_i32_1 : i32, i32, i32, i32
  }
  func.func @transform_1(%arg0: i32) -> (i32, i32, i32) {
    %c0_i32 = arith.constant 0 : i32
    %c0_i32_0 = arith.constant 0 : i32
    %c0_i32_1 = arith.constant 0 : i32
    %c0_i32_2 = arith.constant 0 : i32
    return %c0_i32, %c0_i32_0, %c0_i32_1 : i32, i32, i32
  }
  func.func @transform_2(%arg0: i32) -> (i32, i32, i32) {
    %c0_i32 = arith.constant 0 : i32
    %c0_i32_0 = arith.constant 0 : i32
    %c0_i32_1 = arith.constant 0 : i32
    %c0_i32_2 = arith.constant 0 : i32
    return %c0_i32, %c0_i32_0, %c0_i32_1 : i32, i32, i32
  }
  func.func @transform_3(%arg0: i32) -> (i32, i32, i32, i32) {
    %c0_i32 = arith.constant 0 : i32
    %c0_i32_0 = arith.constant 0 : i32
    %c0_i32_1 = arith.constant 0 : i32
    %c0_i32_2 = arith.constant 0 : i32
    return %arg0, %c0_i32, %c0_i32_0, %c0_i32_1 : i32, i32, i32, i32
  }
}

</mosaic_0001>

<bundles_post_ra>
// kernel: tpu_custom_call.1
= control target key start
LH: loop header
LB: loop body
LE: loop exit
PB: predicated region body
PF: predicated region fallthrough
CT: control target
= control target key end

     0   :  { %s10746_s12 = smov 0   ;;  %s14892_s0 = inlined_call_operand.vmem [shape: f32[2,16,16,4], index: 0, kind: input, shape index: {}]   ;;  %s14893_s1 = inlined_call_operand.vmem [shape: f32[2,36,4], index: 1, kind: input, shape index: {}]   ;;  %s14894_s2 = inlined_call_operand.vmem [shape: f32[2,1,4], index: 2, kind: input, shape index: {}]   ;;  %s14895_s3 = inlined_call_operand.vmem [shape: f32[2,16,16,4], index: 3, kind: output, shape index: {}]  }
   0x1 LB: > { %s9041_s13 = sadd.s32 4294967295, %s10714_s12   ;;  %p9045_p0 = scmp.ge.s32.totalorder %s10714_s12, 1  ;;  %s10714_s12 = sphi %s10746_s12, %s13_s12  }
   0x2   : > { %p137_p1 = scmp.lt.s32.totalorder %s10714_s12, 3 }
   0x4   : > { %p138_p2 = pnand %p9045_p0, %p137_p1 }
   0x6   : > { %141 = sbr.rel (%p138_p2) target bundleno = 2450 (0x992), region = 32 }
   0xd   : > { %vm171_vm0 = vcmask 31744   ;;  %vm174_vm1 = vcmask 25600   ;;  %v10716_v0 = vmov 0.0   ;;  %p161_p3 = scmp.lt.s32.totalorder %s9041_s13, 1  ;;  %s10717_s18 = smov 8   ;;  %v10967_v50 = vld [vmem:[%s14893_s1] sm:$0xff] }
   0xe   : > { %172 = vst.msk [vmem:[#allocation2] sm:$0xff] %vm171_vm0, %v10716_v0  ;;  %173 = vst.msk [vmem:[#allocation2 + $0x8] sm:$0xff] %vm171_vm0, %v10716_v0  ;;  %s10718_s19 = smov 4   ;;  %s10719_s20 = smov 12   ;;  %v10974_v51 = vld [vmem:[%s14893_s1 + $0x8] sm:$0xff]  ;;  %v14927_v52 = vand.u32 4294901760, %v10967_v50 }
   0xf   : > { %176 = vst.msk [vmem:[#allocation2 + $0x18] sm:$0xff] %vm171_vm0, %v10716_v0  ;;  %177 = vst.msk [vmem:[#allocation2 + $0x20] sm:$0xff] %vm171_vm0, %v10716_v0  ;;  %s15573_s13 = smov (!%p161_p3, %s9041_s13), 1  ;;  %s10720_s21 = smov 16   ;;  %v14926_v53 = vand.u32 4294901760, %v10974_v51  ;;  %v10987_v55 = vld [vmem:[%s14893_s1 + $0x10] sm:$0xff] }
  0x10   : > { %179 = vst.msk [vmem:[#allocation2 + $0x30] sm:$0xff] %vm171_vm0, %v10716_v0  ;;  %180 = vst.msk [vmem:[#allocation2 + $0x38] sm:$0xff] %vm171_vm0, %v10716_v0  ;;  %s9060_s14 = sshll.u32 %s15573_s13, 8  ;;  %s10721_s22 = smov 20   ;;  %v10992_v56 = vld [vmem:[%s14893_s1 + $0x18] sm:$0xff]  ;;  %v14925_v57 = vand.u32 4294901760, %v10987_v55 }
  0x11   : > { %182 = vst.msk [vmem:[#allocation2 + $0x48] sm:$0xff] %vm171_vm0, %v10716_v0  ;;  %183 = vst.msk [vmem:[#allocation2 + $0x50] sm:$0xff] %vm171_vm0, %v10716_v0  ;;  %s10820_s17 = scalar_lea.vmem %s14892_s0, %s9060_s14  ;;  %s10722_s23 = smov 24   ;;  %v10982_v54 = vpack.c.bf16 %v14926_v53, %v14927_v52  ;;  %v14924_v58 = vand.u32 4294901760, %v10992_v56  ;;  %v2058_v63 = vld [vmem:[%s14893_s1 + $0x20] sm:$0xf] }
  0x12   : > { %185 = vst.msk [vmem:[#allocation2 + $0x60] sm:$0xff] %vm171_vm0, %v10716_v0  ;;  %186 = vst.msk [vmem:[#allocation2 + $0x68] sm:$0xff] %vm171_vm0, %v10716_v0  ;;  %v10823_v1 = vld [vmem:[%s10820_s17] sm:$0xff]  ;;  %v10826_v2 = vld [vmem:[%s10820_s17 + $0x8] sm:$0xff]  ;;  %s10723_s24 = smov 28   ;;  %s10724_s27 = smov 32  }
  0x13   : > { %188 = vst.msk [vmem:[#allocation2 + $0x78] sm:$0xff] %vm171_vm0, %v10716_v0  ;;  %189 = vst.msk [vmem:[#allocation2 + $0x80] sm:$0xff] %vm171_vm0, %v10716_v0  ;;  %v10829_v3 = vld [vmem:[%s10820_s17 + $0x10] sm:$0xff]  ;;  %v14917_v7 = vmax.f32 %v10823_v1, 0.0  ;;  %v14916_v8 = vmax.f32 %v10826_v2, 0.0  ;;  %v10837_v11 = vld [vmem:[%s10820_s17 + $0x18] sm:$0xff]  ;;  %10203 = vmatprep.subr.bf16.mxu0 %v10982_v54  ;;  %v11007_v61 = vpack.c.bf16 %v14924_v58, %v14925_v57 }
  0x14   : > { %191 = vst.msk [vmem:[#allocation2 + $0x90] sm:$0xff] %vm171_vm0, %v10716_v0  ;;  %192 = vst.msk [vmem:[#allocation2 + $0x98] sm:$0xff] %vm171_vm0, %v10716_v0  ;;  %v14915_v9 = vmax.f32 %v10829_v3, 0.0  ;;  %v10840_v12 = vld [vmem:[%s10820_s17 + $0x20] sm:$0xff]  ;;  %v14914_v13 = vmax.f32 %v10837_v11, 0.0  ;;  %v10854_v15 = vld [vmem:[%s10820_s17 + $0x28] sm:$0xff]  ;;  %10205 = vmatpush3.bf16.msra.mxu0 %v10982_v54 }
  0x15   : > { %194 = vst.msk [vmem:[#allocation2 + $0xa8] sm:$0xff] %vm171_vm0, %v10716_v0  ;;  %195 = vst.msk [vmem:[#allocation2 + $0xb0] sm:$0xff] %vm171_vm0, %v10716_v0  ;;  %v670_v4 = vld [vmem:[#allocation2 + $0x2] sm:$0xff]  ;;  %v14913_v14 = vmax.f32 %v10840_v12, 0.0  ;;  %v10857_v16 = vld [vmem:[%s10820_s17 + $0x30] sm:$0xff]  ;;  %v14911_v18 = vmax.f32 %v10854_v15, 0.0  ;;  %10207 = vmatprep.subr.bf16.mxu0 %v11007_v61 }
  0x16   : > { %197 = vst.msk [vmem:[#allocation2 + $0xc0] sm:$0xff] %vm171_vm0, %v10716_v0  ;;  %198 = vst.msk [vmem:[#allocation2 + $0xc8] sm:$0xff] %vm171_vm0, %v10716_v0  ;;  %v477_v5 = vld [vmem:[#allocation2 + $0x1] sm:$0xff]  ;;  %734 = vrot.lane.b32.xlu1 %v670_v4, %s10717_s18  ;;  %v10860_v17 = vld [vmem:[%s10820_s17 + $0x38] sm:$0xff]  ;;  %v14909_v19 = vmax.f32 %v10857_v16, 0.0  ;;  %vm2163_vm2 = vcmask 1043456  }
  0x17   : > { %200 = vst.msk [vmem:[#allocation2 + $0xd8] sm:$0xff] %vm171_vm0, %v10716_v0  ;;  %201 = vst.msk [vmem:[#allocation2 + $0xe0] sm:$0xff] %vm171_vm0, %v10716_v0  ;;  %541 = vrot.lane.b32.xlu0 %v477_v5, %s10718_s19  ;;  %v14908_v20 = vmax.f32 %v10860_v17, 0.0  ;;  %v413_v21 = vld [vmem:[#allocation2] sm:$0xff]  ;;  %v414_v22 = vld [vmem:[#allocation2 + $0x8] sm:$0xff]  ;;  %vm637_vm3 = vcmask 64544  }
  0x18   : > { %203 = vst.msk [vmem:[#allocation2 + $0xf0] sm:$0xff] %vm171_vm0, %v10716_v0  ;;  %204 = vst.msk [vmem:[#allocation2 + $0xf8] sm:$0xff] %vm171_vm0, %v10716_v0  ;;  %v10866_v23 = vld [vmem:[%s10820_s17 + $0x40] sm:$0xff]  ;;  %v10878_v25 = vld [vmem:[%s10820_s17 + $0x48] sm:$0xff]  ;;  %10209 = vmatpush3.bf16.msra.mxu0 %v11007_v61  ;;  %vm830_vm4 = vcmask 97344   ;;  %vm1023_vm5 = vcmask 130144  }
  0x19   : > { %206 = vst.msk [vmem:[#allocation2 + $0x108] sm:$0xff] %vm171_vm0, %v10716_v0  ;;  %207 = vst.msk [vmem:[#allocation2 + $0x110] sm:$0xff] %vm171_vm0, %v10716_v0  ;;  %v14907_v24 = vmax.f32 %v10866_v23, 0.0  ;;  %v14906_v26 = vmax.f32 %v10878_v25, 0.0  ;;  %v10933_v40 = vld [vmem:[%s10820_s17 + $0x50] sm:$0xff]  ;;  %v10942_v43 = vld [vmem:[%s10820_s17 + $0x58] sm:$0xff] }
  0x1a   : > { %209 = vst.msk [vmem:[#allocation2 + $0x120] sm:$0xff] %vm171_vm0, %v10716_v0  ;;  %210 = vst.msk [vmem:[#allocation2 + $0x128] sm:$0xff] %vm171_vm0, %v10716_v0  ;;  %v14905_v41 = vmax.f32 %v10933_v40, 0.0  ;;  %v14904_v44 = vmax.f32 %v10942_v43, 0.0  ;;  %v11000_v60 = vld [vmem:[%s10820_s17 + $0x60] sm:$0xff]  ;;  %v11030_v5 = vld [vmem:[%s10820_s17 + $0x68] sm:$0xff] }
  0x1b   : > { %212 = vst.msk [vmem:[#allocation2 + $0x138] sm:$0xff] %vm171_vm0, %v10716_v0  ;;  %213 = vst.msk [vmem:[#allocation2 + $0x140] sm:$0xff] %vm171_vm0, %v10716_v0  ;;  %v14903_v62 = vmax.f32 %v11000_v60, 0.0  ;;  %vm1216_vm6 = vcmask 162944   ;;  %vm1409_vm7 = vcmask 195744   ;;  %vm1603_vm8 = vcmask 228544  }
  0x1c   : > { %215 = vst.msk [vmem:[#allocation2 + $0x150] sm:$0xff] %vm171_vm0, %v10716_v0  ;;  %216 = vst.msk [vmem:[#allocation2 + $0x158] sm:$0xff] %vm171_vm0, %v10716_v0  ;;  %vm1796_vm9 = vcmask 261344   ;;  %vm1989_vm10 = vcmask 294144   ;;  %vm2066_vm11 = vcmask 293888   ;;  %v11387_v53 = vld [vmem:[%s10820_s17 + $0xc0] sm:$0xff] }
  0x1d   : > { %218 = vst.msk [vmem:[#allocation2 + $0x168] sm:$0xff] %vm171_vm0, %v10716_v0  ;;  %219 = vst.msk [vmem:[#allocation2 + $0x170] sm:$0xff] %vm171_vm0, %v10716_v0  ;;  %vm269_vm12 = vcmask 27648  }
  0x1e   : > { %221 = vst.msk [vmem:[#allocation2 + $0x180] sm:$0xff] %vm171_vm0, %v10716_v0  ;;  %222 = vst.msk [vmem:[#allocation2 + $0x188] sm:$0xff] %vm171_vm0, %v10716_v0 }
  0x1f   : > { %224 = vst.msk [vmem:[#allocation2 + $0x198] sm:$0xff] %vm171_vm0, %v10716_v0  ;;  %225 = vst.msk [vmem:[#allocation2 + $0x1a0] sm:$0xff] %vm171_vm0, %v10716_v0 }
  0x20   : > { %175 = vst.msk [vmem:[#allocation2 + $0x10] sm:$0x3] %vm174_vm1, %v10716_v0  ;;  %178 = vst.msk [vmem:[#allocation2 + $0x28] sm:$0x3] %vm174_vm1, %v10716_v0 }
  0x21   : > { %181 = vst.msk [vmem:[#allocation2 + $0x40] sm:$0x3] %vm174_vm1, %v10716_v0  ;;  %184 = vst.msk [vmem:[#allocation2 + $0x58] sm:$0x3] %vm174_vm1, %v10716_v0 }
  0x22   : > { %187 = vst.msk [vmem:[#allocation2 + $0x70] sm:$0x3] %vm174_vm1, %v10716_v0  ;;  %190 = vst.msk [vmem:[#allocation2 + $0x88] sm:$0x3] %vm174_vm1, %v10716_v0 }
  0x23   : > { %193 = vst.msk [vmem:[#allocation2 + $0xa0] sm:$0x3] %vm174_vm1, %v10716_v0  ;;  %196 = vst.msk [vmem:[#allocation2 + $0xb8] sm:$0x3] %vm174_vm1, %v10716_v0 }
  0x24   : > { %199 = vst.msk [vmem:[#allocation2 + $0xd0] sm:$0x3] %vm174_vm1, %v10716_v0  ;;  %202 = vst.msk [vmem:[#allocation2 + $0xe8] sm:$0x3] %vm174_vm1, %v10716_v0 }
  0x25   : > { %205 = vst.msk [vmem:[#allocation2 + $0x100] sm:$0x3] %vm174_vm1, %v10716_v0  ;;  %208 = vst.msk [vmem:[#allocation2 + $0x118] sm:$0x3] %vm174_vm1, %v10716_v0 }
  0x26   : > { %211 = vst.msk [vmem:[#allocation2 + $0x130] sm:$0x3] %vm174_vm1, %v10716_v0  ;;  %214 = vst.msk [vmem:[#allocation2 + $0x148] sm:$0x3] %vm174_vm1, %v10716_v0 }
  0x27   : > { %217 = vst.msk [vmem:[#allocation2 + $0x160] sm:$0x3] %vm174_vm1, %v10716_v0  ;;  %220 = vst.msk [vmem:[#allocation2 + $0x178] sm:$0x3] %vm174_vm1, %v10716_v0  ;;  %v671_v6 = vld [vmem:[#allocation2 + $0xa] sm:$0xff] }
  0x28   : > { %223 = vst.msk [vmem:[#allocation2 + $0x190] sm:$0x3] %vm174_vm1, %v10716_v0  ;;  %226 = vst.msk [vmem:[#allocation2 + $0x1a8] sm:$0x3] %vm174_vm1, %v10716_v0  ;;  %v478_v10 = vld [vmem:[#allocation2 + $0x9] sm:$0xff]  ;;  %736 = vrot.lane.b32.xlu1 %v671_v6, %s10717_s18  ;;  %v11020_v0 = vsel %vm2163_vm2, %v2058_v63, 0 }
  0x29   : > { %15200 = vst [vmem:[#allocation6_spill] sm:$0xff] %v10823_v1  ;;  %15201 = vst [vmem:[#allocation7_spill] sm:$0xff] %v10826_v2  ;;  %543 = vrot.lane.b32.xlu0 %v478_v10, %s10718_s19  ;;  %v11024_v4 = vand.u32 4294901760, %v11020_v0  ;;  %v14902_v6 = vmax.f32 %v11030_v5, 0.0 }
  0x2a   : > { %15202 = vst [vmem:[#allocation8_spill] sm:$0xff] %v10829_v3  ;;  %15203 = vst [vmem:[#allocation9_spill] sm:$0xff] %v10837_v11 }
  0x2b   : > { %15204 = vst [vmem:[#allocation10_spill] sm:$0xff] %v10840_v12  ;;  %381 = vst.msk [vmem:[#allocation2 + $0x19] sm:$0xff] %vm171_vm0, %v14917_v7  ;;  %9514 = vmatprep.subr.mxu0 %v11024_v4 }
  0x2c   : > { %382 = vst.msk [vmem:[#allocation2 + $0x21] sm:$0xff] %vm171_vm0, %v14916_v8  ;;  %383 = vst.msk [vmem:[#allocation2 + $0x31] sm:$0xff] %vm171_vm0, %v14915_v9  ;;  %9515 = vmatpush3.msra.mxu0 %v11024_v4  ;;  %v11309_v8 = vld [vmem:[%s10820_s17 + $0xb0] sm:$0xff] }
  0x2d   : > { %15205 = vst [vmem:[#allocation11_spill] sm:$0xff] %v10854_v15  ;;  %15206 = vst [vmem:[#allocation12_spill] sm:$0xff] %v10857_v16 }
  0x2e   : > { %15207 = vst [vmem:[#allocation13_spill] sm:$0xff] %v10860_v17  ;;  %15208 = vst [vmem:[#allocation14_spill] sm:$0xff] %v10866_v23 }
  0x2f   : > { %384 = vst.msk [vmem:[#allocation2 + $0x39] sm:$0xff] %vm171_vm0, %v14914_v13  ;;  %385 = vst.msk [vmem:[#allocation2 + $0x49] sm:$0xff] %vm171_vm0, %v14913_v14 }
  0x30   : > { %445 = vst.msk [vmem:[#allocation3] sm:$0xff] %vm171_vm0, %v413_v21  ;;  %446 = vst.msk [vmem:[#allocation3 + $0x8] sm:$0xff] %vm171_vm0, %v414_v22 }
  0x31   : > { %15209 = vst [vmem:[#allocation15_spill] sm:$0xff] %v10878_v25  ;;  %386 = vst.msk [vmem:[#allocation2 + $0x51] sm:$0xff] %vm171_vm0, %v14911_v18 }
  0x32   : > { %387 = vst.msk [vmem:[#allocation2 + $0x61] sm:$0xff] %vm171_vm0, %v14909_v19  ;;  %388 = vst.msk [vmem:[#allocation2 + $0x69] sm:$0xff] %vm171_vm0, %v14908_v20  ;;  %v863_v28 = vld [vmem:[#allocation2 + $0x18] sm:$0xff] }
  0x33   : > { %389 = vst.msk [vmem:[#allocation2 + $0x79] sm:$0xff] %vm171_vm0, %v14907_v24  ;;  %390 = vst.msk [vmem:[#allocation2 + $0x81] sm:$0xff] %vm171_vm0, %v14906_v26  ;;  %v864_v27 = vld [vmem:[#allocation2 + $0x20] sm:$0xff]  ;;  %927 = vrot.lane.b32.xlu0 %v863_v28, %s10719_s20  ;;  %v1443_v30 = vld [vmem:[#allocation2 + $0x30] sm:$0xff] }
  0x34   : > { %929 = vrot.lane.b32.xlu1 %v864_v27, %s10719_s20  ;;  %447 = vst.msk [vmem:[#allocation3 + $0x10] sm:$0xff] %vm171_vm0, %v863_v28  ;;  %448 = vst.msk [vmem:[#allocation3 + $0x18] sm:$0xff] %vm171_vm0, %v864_v27  ;;  %v1056_v29 = vld [vmem:[#allocation2 + $0x19] sm:$0xff]  ;;  %v1057_v34 = vld [vmem:[#allocation2 + $0x21] sm:$0xff] }
  0x35   : > { %449 = vst.msk [vmem:[#allocation3 + $0x20] sm:$0xff] %vm171_vm0, %v1443_v30  ;;  %v1249_v35 = vld [vmem:[#allocation2 + $0x1a] sm:$0xff]  ;;  %15210 = vst [vmem:[#allocation16_spill] sm:$0xff] %v10933_v40  ;;  %v1250_v42 = vld [vmem:[#allocation2 + $0x22] sm:$0xff] }
  0x36   : > { %v1444_v31 = vld [vmem:[#allocation2 + $0x38] sm:$0xff]  ;;  %v10904_v32 = vld [vmem:[#allocation2 + $0x48] sm:$0xff]  ;;  %391 = vst.msk [vmem:[#allocation2 + $0x91] sm:$0xff] %vm171_vm0, %v14905_v41  ;;  %15211 = vst [vmem:[#allocation17_spill] sm:$0xff] %v10942_v43 }
  0x37   : > { %450 = vst.msk [vmem:[#allocation3 + $0x28] sm:$0xff] %vm171_vm0, %v1444_v31  ;;  %1120 = vrot.lane.b32.xlu0 %v1056_v29, %s10720_s21  ;;  %451 = vst.msk [vmem:[#allocation3 + $0x30] sm:$0xff] %vm171_vm0, %v10904_v32  ;;  %v1636_v46 = vld [vmem:[#allocation2 + $0x31] sm:$0xff]  ;;  %v1637_v48 = vld [vmem:[#allocation2 + $0x39] sm:$0xff] }
  0x38   : > { %v10906_v33 = vld [vmem:[#allocation2 + $0x50] sm:$0xff]  ;;  %545 = vrot.lane.b32.xlu1 %v1056_v29, %s10718_s19  ;;  %392 = vst.msk [vmem:[#allocation2 + $0x99] sm:$0xff] %vm171_vm0, %v14904_v44  ;;  %v1830_v59 = vld [vmem:[#allocation2 + $0x3a] sm:$0xff]  ;;  %15212 = vst [vmem:[#allocation18_spill] sm:$0xff] %v11000_v60 }
  0x39   : > { %452 = vst.msk [vmem:[#allocation3 + $0x38] sm:$0xff] %vm171_vm0, %v10906_v33  ;;  %v10914_v36 = vld [vmem:[#allocation2 + $0x60] sm:$0xff]  ;;  %v10916_v37 = vld [vmem:[#allocation2 + $0x68] sm:$0xff]  ;;  %v1829_v49 = vld [vmem:[#allocation2 + $0x32] sm:$0xff] }
  0x3a   : > { %453 = vst.msk [vmem:[#allocation3 + $0x40] sm:$0xff] %vm171_vm0, %v10914_v36  ;;  %454 = vst.msk [vmem:[#allocation3 + $0x48] sm:$0xff] %vm171_vm0, %v10916_v37  ;;  %v10922_v38 = vld [vmem:[#allocation2 + $0x78] sm:$0xff]  ;;  %v10924_v39 = vld [vmem:[#allocation2 + $0x80] sm:$0xff] }
  0x3b   : > { %1122 = vrot.lane.b32.xlu0 %v1057_v34, %s10720_s21  ;;  %455 = vst.msk [vmem:[#allocation3 + $0x50] sm:$0xff] %vm171_vm0, %v10922_v38  ;;  %456 = vst.msk [vmem:[#allocation3 + $0x58] sm:$0xff] %vm171_vm0, %v10924_v39  ;;  %v1638_v21 = vld [vmem:[#allocation2 + $0x49] sm:$0xff]  ;;  %v1639_v27 = vld [vmem:[#allocation2 + $0x51] sm:$0xff] }
  0x3c   : > { %1313 = vrot.lane.b32.xlu1 %v1249_v35, %s10721_s22  ;;  %393 = vst.msk [vmem:[#allocation2 + $0xa9] sm:$0xff] %vm171_vm0, %v14903_v62  ;;  %15213 = vst [vmem:[#allocation19_spill] sm:$0xff] %v11030_v5  ;;  %v1831_v28 = vld [vmem:[#allocation2 + $0x4a] sm:$0xff]  ;;  %v1832_v29 = vld [vmem:[#allocation2 + $0x52] sm:$0xff] }
  0x3d   : > { %v10950_v45 = vld [vmem:[#allocation2 + $0x90] sm:$0xff]  ;;  %394 = vst.msk [vmem:[#allocation2 + $0xb1] sm:$0xff] %vm171_vm0, %v14902_v6  ;;  %v11231_v26 = vld [vmem:[%s10820_s17 + $0xa0] sm:$0xff]  ;;  %15222 = vst [vmem:[#allocation28_spill] sm:$0xff] %v11309_v8 }
  0x3e   : > { %457 = vst.msk [vmem:[#allocation3 + $0x60] sm:$0xff] %vm171_vm0, %v10950_v45  ;;  %15220 = vst [vmem:[#allocation26_spill] sm:$0xff] %v11231_v26  ;;  %v11621_v5 = vld [vmem:[%s10820_s17 + $0xf0] sm:$0xff] }
  0x3f   : > { %547 = vrot.lane.b32.xlu0 %v1057_v34, %s10718_s19  ;;  %v10956_v47 = vld [vmem:[#allocation2 + $0x98] sm:$0xff]  ;;  %15224 = vst [vmem:[#allocation30_spill] sm:$0xff] %v11387_v53  ;;  %15230 = vst [vmem:[#allocation36_spill] sm:$0xff] %v11621_v5 }
  0x40   : > { %738 = vrot.lane.b32.xlu1 %v1249_v35, %s10717_s18  ;;  %458 = vst.msk [vmem:[#allocation3 + $0x68] sm:$0xff] %vm171_vm0, %v10956_v47  ;;  %v1640_v35 = vld [vmem:[#allocation2 + $0x61] sm:$0xff] }
  0x41   : > { %v1838_v41 = vld [vmem:[#allocation2 + $0x9a] sm:$0xff] }
  0x43   : > { %1315 = vrot.lane.b32.xlu0 %v1250_v42, %s10721_s22  ;;  %v11034_v10 = vld [vmem:[#allocation2 + $0xa8] sm:$0xff] }
  0x44   : > { %1507 = vrot.lane.b32.xlu1 %v1443_v30, %s10722_s23  ;;  %459 = vst.msk [vmem:[#allocation3 + $0x70] sm:$0xff] %vm171_vm0, %v11034_v10  ;;  %v11047_v22 = vld [vmem:[#allocation2 + $0xb0] sm:$0xff] }
  0x45   : > { %460 = vst.msk [vmem:[#allocation3 + $0x78] sm:$0xff] %vm171_vm0, %v11047_v22  ;;  %v1840_v9 = vld [vmem:[#allocation2 + $0xb2] sm:$0xff] }
  0x47   : > { %740 = vrot.lane.b32.xlu0 %v1250_v42, %s10717_s18 }
  0x48   : > { %931 = vrot.lane.b32.xlu1 %v1443_v30, %s10719_s20  ;;  %v11062_v30 = vld [vmem:[%s10820_s17 + $0x70] sm:$0xff] }
  0x49   : > { %15214 = vst [vmem:[#allocation20_spill] sm:$0xff] %v11062_v30 }
  0x4b   : > { %1509 = vrot.lane.b32.xlu0 %v1444_v31, %s10722_s23 }
  0x4c   : > { %1700 = vrot.lane.b32.xlu1 %v1636_v46, %s10723_s24 }
  0x4f   : > { %933 = vrot.lane.b32.xlu0 %v1444_v31, %s10719_s20  ;;  %v14901_v31 = vmax.f32 %v11062_v30, 0.0 }
  0x50   : > { %1124 = vrot.lane.b32.xlu1 %v1636_v46, %s10720_s21 }
  0x51   : > { %395 = vst.msk [vmem:[#allocation2 + $0xc1] sm:$0xff] %vm171_vm0, %v14901_v31 }
  0x53   : > { %1702 = vrot.lane.b32.xlu0 %v1637_v48, %s10723_s24 }
  0x54   : > { %1893 = vrot.lane.b32.xlu1 %v1829_v49, %s10724_s27 }
  0x57   : > { %549 = vrot.lane.b32.xlu0 %v1636_v46, %s10718_s19  ;;  %v1641_v46 = vld [vmem:[#allocation2 + $0x69] sm:$0xff] }
  0x58   : > { %1126 = vrot.lane.b32.xlu1 %v1637_v48, %s10720_s21  ;;  %v11076_v34 = vld [vmem:[#allocation2 + $0xc0] sm:$0xff] }
  0x59   : > { %461 = vst.msk [vmem:[#allocation3 + $0x80] sm:$0xff] %vm171_vm0, %v11076_v34 }
  0x5b   : > { %1317 = vrot.lane.b32.xlu0 %v1829_v49, %s10721_s22 }
  0x5c   : > { %1895 = vrot.lane.b32.xlu1 %v1830_v59, %s10724_s27 }
  0x5f   : > { %551 = vrot.lane.b32.xlu0 %v1637_v48, %s10718_s19  ;;  %v1833_v48 = vld [vmem:[#allocation2 + $0x62] sm:$0xff] }
  0x60   : > { %742 = vrot.lane.b32.xlu1 %v1829_v49, %s10717_s18  ;;  %v11104_v49 = vld [vmem:[%s10820_s17 + $0x80] sm:$0xff] }
  0x61   : > { %15216 = vst [vmem:[#allocation22_spill] sm:$0xff] %v11104_v49 }
  0x63   : > { %1319 = vrot.lane.b32.xlu0 %v1830_v59, %s10721_s22 }
  0x64   : > { %1511 = vrot.lane.b32.xlu1 %v10904_v32, %s10722_s23 }
  0x67   : > { %744 = vrot.lane.b32.xlu0 %v1830_v59, %s10717_s18  ;;  %v14897_v59 = vmax.f32 %v11104_v49, 0.0 }
  0x68   : > { %935 = vrot.lane.b32.xlu1 %v10904_v32, %s10719_s20  ;;  %v11073_v32 = vld [vmem:[%s10820_s17 + $0x78] sm:$0xff] }
  0x69   : > { %15215 = vst [vmem:[#allocation21_spill] sm:$0xff] %v11073_v32  ;;  %397 = vst.msk [vmem:[#allocation2 + $0xd9] sm:$0xff] %vm171_vm0, %v14897_v59 }
  0x6b   : > { %1513 = vrot.lane.b32.xlu0 %v10906_v33, %s10722_s23 }
  0x6c   : > { %1704 = vrot.lane.b32.xlu1 %v1638_v21, %s10723_s24 }
  0x6f   : > { %937 = vrot.lane.b32.xlu0 %v10906_v33, %s10719_s20  ;;  %v14898_v33 = vmax.f32 %v11073_v32, 0.0 }
  0x70   : > { %1128 = vrot.lane.b32.xlu1 %v1638_v21, %s10720_s21 }
  0x71   : > { %396 = vst.msk [vmem:[#allocation2 + $0xc9] sm:$0xff] %vm171_vm0, %v14898_v33 }
  0x73   : > { %1706 = vrot.lane.b32.xlu0 %v1639_v27, %s10723_s24 }
  0x74   : > { %1897 = vrot.lane.b32.xlu1 %v1831_v28, %s10724_s27 }
  0x77   : > { %553 = vrot.lane.b32.xlu0 %v1638_v21, %s10718_s19 }
  0x78   : > { %1130 = vrot.lane.b32.xlu1 %v1639_v27, %s10720_s21  ;;  %v11089_v42 = vld [vmem:[#allocation2 + $0xc8] sm:$0xff] }
  0x79   : > { %462 = vst.msk [vmem:[#allocation3 + $0x88] sm:$0xff] %vm171_vm0, %v11089_v42  ;;  %v1842_v57 = vld [vmem:[#allocation2 + $0xca] sm:$0xff] }
  0x7b   : > { %1321 = vrot.lane.b32.xlu0 %v1831_v28, %s10721_s22 }
  0x7c   : > { %1899 = vrot.lane.b32.xlu1 %v1832_v29, %s10724_s27 }
  0x7f   : > { %555 = vrot.lane.b32.xlu0 %v1639_v27, %s10718_s19 }
  0x80   : > { %746 = vrot.lane.b32.xlu1 %v1831_v28, %s10717_s18  ;;  %v11117_v28 = vld [vmem:[%s10820_s17 + $0x88] sm:$0xff] }
  0x81   : > { %15217 = vst [vmem:[#allocation23_spill] sm:$0xff] %v11117_v28 }
  0x83   : > { %1323 = vrot.lane.b32.xlu0 %v1832_v29, %s10721_s22 }
  0x84   : > { %1515 = vrot.lane.b32.xlu1 %v10914_v36, %s10722_s23 }
  0x87   : > { %748 = vrot.lane.b32.xlu0 %v1832_v29, %s10717_s18  ;;  %v14896_v29 = vmax.f32 %v11117_v28, 0.0  ;;  %v11543_v28 = vld [vmem:[%s10820_s17 + $0xe0] sm:$0xff] }
  0x88   : > { %939 = vrot.lane.b32.xlu1 %v10914_v36, %s10719_s20  ;;  %v1834_v36 = vld [vmem:[#allocation2 + $0x6a] sm:$0xff]  ;;  %15228 = vst [vmem:[#allocation34_spill] sm:$0xff] %v11543_v28 }
  0x89   : > { %v542_v63 = vpop.permute.xlu0 %541  ;;  %398 = vst.msk [vmem:[#allocation2 + $0xe1] sm:$0xff] %vm171_vm0, %v14896_v29  ;;  %v11160_v29 = vld [vmem:[%s10820_s17 + $0x90] sm:$0xff] }
  0x8a   : > { %638 = vst.msk [vmem:[#allocation3] sm:$0xff] %vm637_vm3, %v542_v63  ;;  %15218 = vst [vmem:[#allocation24_spill] sm:$0xff] %v11160_v29  ;;  %v14899_v59 = vmax.f32 %v11160_v29, 0.0 }
  0x8b   : > { %1517 = vrot.lane.b32.xlu0 %v10916_v37, %s10722_s23 }
  0x8c   : > { %1708 = vrot.lane.b32.xlu1 %v1640_v35, %s10723_s24  ;;  %399 = vst.msk [vmem:[#allocation2 + $0xf1] sm:$0xff] %vm171_vm0, %v14899_v59 }
  0x8f   : > { %941 = vrot.lane.b32.xlu0 %v10916_v37, %s10719_s20  ;;  %v735_v37 = vpop.permute.xlu1 %734 }
  0x90   : > { %1132 = vrot.lane.b32.xlu1 %v1640_v35, %s10720_s21  ;;  %831 = vst.msk [vmem:[#allocation3] sm:$0xff] %vm830_vm4, %v735_v37  ;;  %v1642_v37 = vld [vmem:[#allocation2 + $0x79] sm:$0xff] }
  0x93   : > { %1710 = vrot.lane.b32.xlu0 %v1641_v46, %s10723_s24  ;;  %v11180_v59 = vld [vmem:[#allocation2 + $0xf0] sm:$0xff] }
  0x94   : > { %1901 = vrot.lane.b32.xlu1 %v1833_v48, %s10724_s27  ;;  %465 = vst.msk [vmem:[#allocation3 + $0xa0] sm:$0xff] %vm171_vm0, %v11180_v59 }
  0x97   : > { %557 = vrot.lane.b32.xlu0 %v1640_v35, %s10718_s19  ;;  %v11122_v35 = vld [vmem:[#allocation2 + $0xd8] sm:$0xff] }
  0x98   : > { %1134 = vrot.lane.b32.xlu1 %v1641_v46, %s10720_s21  ;;  %463 = vst.msk [vmem:[#allocation3 + $0x90] sm:$0xff] %vm171_vm0, %v11122_v35 }
  0x9a   : > { %v737_v21 = vpop.permute.xlu1 %736 }
  0x9b   : > { %1325 = vrot.lane.b32.xlu0 %v1833_v48, %s10721_s22  ;;  %v544_v27 = vpop.permute.xlu0 %543 }
  0x9c   : > { %1903 = vrot.lane.b32.xlu1 %v1834_v36, %s10724_s27  ;;  %639 = vst.msk [vmem:[#allocation3 + $0x8] sm:$0xff] %vm637_vm3, %v544_v27  ;;  %v11139_v27 = vld [vmem:[#allocation2 + $0xe0] sm:$0xff] }
  0x9d   : > { %832 = vst.msk [vmem:[#allocation3 + $0x8] sm:$0xff] %vm830_vm4, %v737_v21 }
  0x9e   : > { %464 = vst.msk [vmem:[#allocation3 + $0x98] sm:$0xff] %vm171_vm0, %v11139_v27 }
  0x9f   : > { %559 = vrot.lane.b32.xlu0 %v1641_v46, %s10718_s19 }
  0xa0   : > { %750 = vrot.lane.b32.xlu1 %v1833_v48, %s10717_s18 }
  0xa3   : > { %1327 = vrot.lane.b32.xlu0 %v1834_v36, %s10721_s22 }
  0xa4   : > { %1519 = vrot.lane.b32.xlu1 %v10922_v38, %s10722_s23 }
  0xa5   : > { %v928_v48 = vpop.permute.xlu0 %927 }
  0xa6   : > { %v930_v46 = vpop.permute.xlu1 %929  ;;  %1024 = vst.msk [vmem:[#allocation3] sm:$0xff] %vm1023_vm5, %v928_v48  ;;  %v1835_v48 = vld [vmem:[#allocation2 + $0x7a] sm:$0xff] }
  0xa7   : > { %1025 = vst.msk [vmem:[#allocation3 + $0x8] sm:$0xff] %vm1023_vm5, %v930_v46  ;;  %752 = vrot.lane.b32.xlu0 %v1834_v36, %s10717_s18  ;;  %v1643_v46 = vld [vmem:[#allocation2 + $0x81] sm:$0xff] }
  0xa8   : > { %943 = vrot.lane.b32.xlu1 %v10922_v38, %s10719_s20 }
  0xa9   : > { %v1121_v63 = vpop.permute.xlu0 %1120 }
  0xaa   : > { %v546_v21 = vpop.permute.xlu1 %545  ;;  %1217 = vst.msk [vmem:[#allocation3] sm:$0xff] %vm1216_vm6, %v1121_v63 }
  0xab   : > { %640 = vst.msk [vmem:[#allocation3 + $0x10] sm:$0xff] %vm637_vm3, %v546_v21  ;;  %1521 = vrot.lane.b32.xlu0 %v10924_v39, %s10722_s23 }
  0xac   : > { %1712 = vrot.lane.b32.xlu1 %v1642_v37, %s10723_s24 }
  0xad   : > { %v1123_v38 = vpop.permute.xlu0 %1122 }
  0xae   : > { %v1314_v36 = vpop.permute.xlu1 %1313  ;;  %1218 = vst.msk [vmem:[#allocation3 + $0x8] sm:$0xff] %vm1216_vm6, %v1123_v38 }
  0xaf   : > { %1410 = vst.msk [vmem:[#allocation3] sm:$0xff] %vm1409_vm7, %v1314_v36  ;;  %945 = vrot.lane.b32.xlu0 %v10924_v39, %s10719_s20  ;;  %v1836_v39 = vld [vmem:[#allocation2 + $0x82] sm:$0xff] }
  0xb0   : > { %1136 = vrot.lane.b32.xlu1 %v1642_v37, %s10720_s21 }
  0xb1   : > { %v548_v63 = vpop.permute.xlu0 %547 }
  0xb2   : > { %v739_v21 = vpop.permute.xlu1 %738  ;;  %641 = vst.msk [vmem:[#allocation3 + $0x18] sm:$0xff] %vm637_vm3, %v548_v63 }
  0xb3   : > { %833 = vst.msk [vmem:[#allocation3 + $0x10] sm:$0xff] %vm830_vm4, %v739_v21  ;;  %1714 = vrot.lane.b32.xlu0 %v1643_v46, %s10723_s24 }
  0xb4   : > { %1905 = vrot.lane.b32.xlu1 %v1835_v48, %s10724_s27 }
  0xb5   : > { %v1316_v38 = vpop.permute.xlu0 %1315 }
  0xb6   : > { %v1508_v36 = vpop.permute.xlu1 %1507  ;;  %1411 = vst.msk [vmem:[#allocation3 + $0x8] sm:$0xff] %vm1409_vm7, %v1316_v38 }
  0xb7   : > { %1604 = vst.msk [vmem:[#allocation3] sm:$0xff] %vm1603_vm8, %v1508_v36  ;;  %561 = vrot.lane.b32.xlu0 %v1642_v37, %s10718_s19  ;;  %v11175_v36 = vld [vmem:[%s10820_s17 + $0x98] sm:$0xff] }
  0xb8   : > { %1138 = vrot.lane.b32.xlu1 %v1643_v46, %s10720_s21  ;;  %15219 = vst [vmem:[#allocation25_spill] sm:$0xff] %v11175_v36  ;;  %v14900_v33 = vmax.f32 %v11175_v36, 0.0 }
  0xb9   : > { %v741_v63 = vpop.permute.xlu0 %740 }
  0xba   : > { %v932_v21 = vpop.permute.xlu1 %931  ;;  %834 = vst.msk [vmem:[#allocation3 + $0x18] sm:$0xff] %vm830_vm4, %v741_v63 }
  0xbb   : > { %1026 = vst.msk [vmem:[#allocation3 + $0x10] sm:$0xff] %vm1023_vm5, %v932_v21  ;;  %1329 = vrot.lane.b32.xlu0 %v1835_v48, %s10721_s22 }
  0xbc   : > { %1907 = vrot.lane.b32.xlu1 %v1836_v39, %s10724_s27  ;;  %400 = vst.msk [vmem:[#allocation2 + $0xf9] sm:$0xff] %vm171_vm0, %v14900_v33  ;;  %v1837_v33 = vld [vmem:[#allocation2 + $0x92] sm:$0xff] }
  0xbd   : > { %v1510_v37 = vpop.permute.xlu0 %1509 }
  0xbe   : > { %v1701_v38 = vpop.permute.xlu1 %1700  ;;  %1605 = vst.msk [vmem:[#allocation3 + $0x8] sm:$0xff] %vm1603_vm8, %v1510_v37  ;;  %v1644_v37 = vld [vmem:[#allocation2 + $0x91] sm:$0xff] }
  0xbf   : > { %1797 = vst.msk [vmem:[#allocation3] sm:$0xff] %vm1796_vm9, %v1701_v38  ;;  %563 = vrot.lane.b32.xlu0 %v1643_v46, %s10718_s19 }
  0xc0   : > { %754 = vrot.lane.b32.xlu1 %v1835_v48, %s10717_s18 }
  0xc1   : > { %v934_v63 = vpop.permute.xlu0 %933 }
  0xc2   : > { %v1125_v21 = vpop.permute.xlu1 %1124  ;;  %1027 = vst.msk [vmem:[#allocation3 + $0x18] sm:$0xff] %vm1023_vm5, %v934_v63 }
  0xc3   : > { %1219 = vst.msk [vmem:[#allocation3 + $0x10] sm:$0xff] %vm1216_vm6, %v1125_v21  ;;  %1331 = vrot.lane.b32.xlu0 %v1836_v39, %s10721_s22  ;;  %v11197_v21 = vld [vmem:[#allocation2 + $0xf8] sm:$0xff] }
  0xc4   : > { %1523 = vrot.lane.b32.xlu1 %v10950_v45, %s10722_s23  ;;  %466 = vst.msk [vmem:[#allocation3 + $0xa8] sm:$0xff] %vm171_vm0, %v11197_v21  ;;  %v1846_v29 = vld [vmem:[#allocation2 + $0xfa] sm:$0xff] }
  0xc5   : > { %v1703_v46 = vpop.permute.xlu0 %1702 }
  0xc6   : > { %v1894_v48 = vpop.permute.xlu1 %1893  ;;  %1798 = vst.msk [vmem:[#allocation3 + $0x8] sm:$0xff] %vm1796_vm9, %v1703_v46 }
  0xc7   : > { %1990 = vst.msk [vmem:[#allocation3] sm:$0xff] %vm1989_vm10, %v1894_v48  ;;  %756 = vrot.lane.b32.xlu0 %v1836_v39, %s10717_s18 }
  0xc8   : > { %947 = vrot.lane.b32.xlu1 %v10950_v45, %s10719_s20 }
  0xc9   : > { %v550_v38 = vpop.permute.xlu0 %549 }
  0xca   : > { %v1127_v63 = vpop.permute.xlu1 %1126  ;;  %642 = vst.msk [vmem:[#allocation3 + $0x20] sm:$0xff] %vm637_vm3, %v550_v38 }
  0xcb   : > { %1220 = vst.msk [vmem:[#allocation3 + $0x18] sm:$0xff] %vm1216_vm6, %v1127_v63  ;;  %1525 = vrot.lane.b32.xlu0 %v10956_v47, %s10722_s23  ;;  %v1645_v63 = vld [vmem:[#allocation2 + $0x99] sm:$0xff] }
  0xcc   : > { %1716 = vrot.lane.b32.xlu1 %v1644_v37, %s10723_s24 }
  0xcd   : > { %v1318_v39 = vpop.permute.xlu0 %1317 }
  0xce   : > { %v1896_v45 = vpop.permute.xlu1 %1895  ;;  %v2022_v46 = vld [vmem:[#allocation3] sm:$0xff]  ;;  %1412 = vst.msk [vmem:[#allocation3 + $0x10] sm:$0xff] %vm1409_vm7, %v1318_v39 }
  0xcf   : > { %1991 = vst.msk [vmem:[#allocation3 + $0x8] sm:$0xff] %vm1989_vm10, %v1896_v45  ;;  %v2068_v48 = vsel %vm2066_vm11, %v2022_v46, 0  ;;  %949 = vrot.lane.b32.xlu0 %v10956_v47, %s10719_s20 }
  0xd0   : > { %1140 = vrot.lane.b32.xlu1 %v1644_v37, %s10720_s21  ;;  %v11210_v38 = vand.u32 4294901760, %v2068_v48 }
  0xd1   : > { %v552_v31 = vpop.permute.xlu0 %551 }
  0xd2   : > { %v743_v6 = vpop.permute.xlu1 %742  ;;  %v11213_v62 = vsub.f32 %v2068_v48, %v11210_v38  ;;  %643 = vst.msk [vmem:[#allocation3 + $0x28] sm:$0xff] %vm637_vm3, %v552_v31 }
  0xd3   : > { %835 = vst.msk [vmem:[#allocation3 + $0x20] sm:$0xff] %vm830_vm4, %v743_v6  ;;  %1718 = vrot.lane.b32.xlu0 %v1645_v63, %s10723_s24 }
  0xd4   : > { %1909 = vrot.lane.b32.xlu1 %v1837_v33, %s10724_s27  ;;  %v14923_v47 = vand.u32 4294901760, %v11213_v62 }
  0xd5   : > { %v1320_v39 = vpop.permute.xlu0 %1319 }
  0xd6   : > { %v1512_v45 = vpop.permute.xlu1 %1511  ;;  %v2240_v46 = vsub.f32 %v11213_v62, %v14923_v47  ;;  %v2023_v44 = vld [vmem:[#allocation3 + $0x8] sm:$0xff]  ;;  %1413 = vst.msk [vmem:[#allocation3 + $0x18] sm:$0xff] %vm1409_vm7, %v1320_v39  ;;  %v14910_v39 = vmax.f32 %v11231_v26, 0.0 }
  0xd7   : > { %1606 = vst.msk [vmem:[#allocation3 + $0x10] sm:$0xff] %vm1603_vm8, %v1512_v45  ;;  %v2071_v6 = vsel %vm2066_vm11, %v2023_v44, 0  ;;  %565 = vrot.lane.b32.xlu0 %v1644_v37, %s10718_s19 }
  0xd8   : > { %1142 = vrot.lane.b32.xlu1 %v1645_v63, %s10720_s21  ;;  %v2241_v31 = vand.u32 4294901760, %v2240_v46  ;;  %v11228_v48 = vand.u32 4294901760, %v2071_v6  ;;  %401 = vst.msk [vmem:[#allocation2 + $0x109] sm:$0xff] %vm171_vm0, %v14910_v39 }
  0xd9   : > { %v745_v24 = vpop.permute.xlu0 %744 }
  0xda   : > { %9516 = vmatprep.mubr.f32.mxu0 %v2241_v31  ;;  %v936_v20 = vpop.permute.xlu1 %935  ;;  %v11234_v19 = vsub.f32 %v2071_v6, %v11228_v48  ;;  %836 = vst.msk [vmem:[#allocation3 + $0x28] sm:$0xff] %vm830_vm4, %v745_v24  ;;  %v11253_v24 = vld [vmem:[%s10820_s17 + $0xa8] sm:$0xff] }
  0xdb   : > { %1028 = vst.msk [vmem:[#allocation3 + $0x20] sm:$0xff] %vm1023_vm5, %v936_v20  ;;  %1333 = vrot.lane.b32.xlu0 %v1837_v33, %s10721_s22  ;;  %15221 = vst [vmem:[#allocation27_spill] sm:$0xff] %v11253_v24  ;;  %v14912_v39 = vmax.f32 %v11253_v24, 0.0  ;;  %v11465_v24 = vld [vmem:[%s10820_s17 + $0xd0] sm:$0xff] }
  0xdc   : > { %1911 = vrot.lane.b32.xlu1 %v1838_v41, %s10724_s27  ;;  %v14918_v44 = vand.u32 4294901760, %v11234_v19  ;;  %15226 = vst [vmem:[#allocation32_spill] sm:$0xff] %v11465_v24 }
  0xdd   : > { %v1514_v37 = vpop.permute.xlu0 %1513  ;;  %402 = vst.msk [vmem:[#allocation2 + $0x111] sm:$0xff] %vm171_vm0, %v14912_v39 }
  0xde   : > { %v1705_v45 = vpop.permute.xlu1 %1704  ;;  %v2250_v46 = vsub.f32 %v11234_v19, %v14918_v44  ;;  %1607 = vst.msk [vmem:[#allocation3 + $0x18] sm:$0xff] %vm1603_vm8, %v1514_v37  ;;  %v1646_v37 = vld [vmem:[#allocation2 + $0xa9] sm:$0xff] }
  0xdf   : > { %1799 = vst.msk [vmem:[#allocation3 + $0x10] sm:$0xff] %vm1796_vm9, %v1705_v45  ;;  %567 = vrot.lane.b32.xlu0 %v1645_v63, %s10718_s19  ;;  %v11258_v18 = vld [vmem:[#allocation2 + $0x108] sm:$0xff] }
  0xe0   : > { %758 = vrot.lane.b32.xlu1 %v1837_v33, %s10717_s18  ;;  %v2251_v20 = vand.u32 4294901760, %v2250_v46  ;;  %467 = vst.msk [vmem:[#allocation3 + $0xb0] sm:$0xff] %vm171_vm0, %v11258_v18 }
  0xe1   : > { %v938_v6 = vpop.permute.xlu0 %937 }
  0xe2   : > { %9517 = vmatmul.mubr.f32.vlgmr.msra.gmra.mrb[0].mxu0 %v2251_v20  ;;  %v1129_v31 = vpop.permute.xlu1 %1128  ;;  %1029 = vst.msk [vmem:[#allocation3 + $0x28] sm:$0xff] %vm1023_vm5, %v938_v6 }
  0xe3   : > { %1221 = vst.msk [vmem:[#allocation3 + $0x20] sm:$0xff] %vm1216_vm6, %v1129_v31  ;;  %1335 = vrot.lane.b32.xlu0 %v1838_v41, %s10721_s22 }
  0xe4   : > { %1527 = vrot.lane.b32.xlu1 %v11034_v10, %s10722_s23  ;;  %v11275_v20 = vld [vmem:[#allocation2 + $0x110] sm:$0xff] }
  0xe5   : > { %v1707_v33 = vpop.permute.xlu0 %1706  ;;  %468 = vst.msk [vmem:[#allocation3 + $0xb8] sm:$0xff] %vm171_vm0, %v11275_v20  ;;  %v1848_v30 = vld [vmem:[#allocation2 + $0x112] sm:$0xff] }
  0xe6   : > { %v1898_v63 = vpop.permute.xlu1 %1897  ;;  %1800 = vst.msk [vmem:[#allocation3 + $0x18] sm:$0xff] %vm1796_vm9, %v1707_v33 }
  0xe7   : > { %1992 = vst.msk [vmem:[#allocation3 + $0x10] sm:$0xff] %vm1989_vm10, %v1898_v63  ;;  %760 = vrot.lane.b32.xlu0 %v1838_v41, %s10717_s18  ;;  %v1647_v63 = vld [vmem:[#allocation2 + $0xb1] sm:$0xff] }
  0xe8   : > { %951 = vrot.lane.b32.xlu1 %v11034_v10, %s10719_s20 }
  0xe9   : > { %v554_v45 = vpop.permute.xlu0 %553 }
  0xea   : > { %v1131_v46 = vpop.permute.xlu1 %1130  ;;  %644 = vst.msk [vmem:[#allocation3 + $0x30] sm:$0xff] %vm637_vm3, %v554_v45  ;;  %v1839_v45 = vld [vmem:[#allocation2 + $0xaa] sm:$0xff] }
  0xeb   : > { %1222 = vst.msk [vmem:[#allocation3 + $0x28] sm:$0xff] %vm1216_vm6, %v1131_v46  ;;  %1529 = vrot.lane.b32.xlu0 %v11047_v22, %s10722_s23 }
  0xec   : > { %1720 = vrot.lane.b32.xlu1 %v1646_v37, %s10723_s24 }
  0xed   : > { %v1322_v41 = vpop.permute.xlu0 %1321 }
  0xee   : > { %v1900_v6 = vpop.permute.xlu1 %1899  ;;  %v2024_v10 = vld [vmem:[#allocation3 + $0x10] sm:$0xff]  ;;  %1414 = vst.msk [vmem:[#allocation3 + $0x20] sm:$0xff] %vm1409_vm7, %v1322_v41 }
  0xef   : > { %1993 = vst.msk [vmem:[#allocation3 + $0x18] sm:$0xff] %vm1989_vm10, %v1900_v6  ;;  %v2074_v31 = vsel %vm2066_vm11, %v2024_v10, 0  ;;  %953 = vrot.lane.b32.xlu0 %v11047_v22, %s10719_s20 }
  0xf0   : > { %1144 = vrot.lane.b32.xlu1 %v1646_v37, %s10720_s21  ;;  %v11288_v33 = vand.u32 4294901760, %v2074_v31 }
  0xf1   : > { %v556_v46 = vpop.permute.xlu0 %555 }
  0xf2   : > { %v747_v39 = vpop.permute.xlu1 %746  ;;  %v11291_v14 = vsub.f32 %v2074_v31, %v11288_v33  ;;  %645 = vst.msk [vmem:[#allocation3 + $0x38] sm:$0xff] %vm637_vm3, %v556_v46 }
  0xf3   : > { %837 = vst.msk [vmem:[#allocation3 + $0x30] sm:$0xff] %vm830_vm4, %v747_v39  ;;  %1722 = vrot.lane.b32.xlu0 %v1647_v63, %s10723_s24 }
  0xf4   : > { %1913 = vrot.lane.b32.xlu1 %v1839_v45, %s10724_s27  ;;  %v14919_v22 = vand.u32 4294901760, %v11291_v14 }
  0xf5   : > { %v1324_v41 = vpop.permute.xlu0 %1323 }
  0xf6   : > { %v1516_v6 = vpop.permute.xlu1 %1515  ;;  %v2260_v10 = vsub.f32 %v11291_v14, %v14919_v22  ;;  %v2025_v13 = vld [vmem:[#allocation3 + $0x18] sm:$0xff]  ;;  %1415 = vst.msk [vmem:[#allocation3 + $0x28] sm:$0xff] %vm1409_vm7, %v1324_v41  ;;  %v14920_v41 = vmax.f32 %v11309_v8, 0.0 }
  0xf7   : > { %1608 = vst.msk [vmem:[#allocation3 + $0x20] sm:$0xff] %vm1603_vm8, %v1516_v6  ;;  %v2077_v39 = vsel %vm2066_vm11, %v2025_v13, 0  ;;  %569 = vrot.lane.b32.xlu0 %v1646_v37, %s10718_s19  ;;  %v1844_v8 = vld [vmem:[#allocation2 + $0xe2] sm:$0xff] }
  0xf8   : > { %1146 = vrot.lane.b32.xlu1 %v1647_v63, %s10720_s21  ;;  %v2261_v31 = vand.u32 4294901760, %v2260_v10  ;;  %v11306_v46 = vand.u32 4294901760, %v2077_v39  ;;  %403 = vst.msk [vmem:[#allocation2 + $0x121] sm:$0xff] %vm171_vm0, %v14920_v41 }
  0xf9   : > { %v749_v7 = vpop.permute.xlu0 %748 }
  0xfa   : > { %v940_v44 = vpop.permute.xlu1 %939  ;;  %9519 = vmatprep.mubr.f32.mxu0 %v2261_v31  ;;  %v11312_v22 = vsub.f32 %v2077_v39, %v11306_v46  ;;  %838 = vst.msk [vmem:[#allocation3 + $0x38] sm:$0xff] %vm830_vm4, %v749_v7 }
  0xfb   : > { %1030 = vst.msk [vmem:[#allocation3 + $0x30] sm:$0xff] %vm1023_vm5, %v940_v44  ;;  %1337 = vrot.lane.b32.xlu0 %v1839_v45, %s10721_s22  ;;  %v11331_v44 = vld [vmem:[%s10820_s17 + $0xb8] sm:$0xff] }
  0xfc   : > { %1915 = vrot.lane.b32.xlu1 %v1840_v9, %s10724_s27  ;;  %v14921_v13 = vand.u32 4294901760, %v11312_v22  ;;  %15223 = vst [vmem:[#allocation29_spill] sm:$0xff] %v11331_v44  ;;  %v14922_v41 = vmax.f32 %v11331_v44, 0.0 }
  0xfd   : > { %v1518_v37 = vpop.permute.xlu0 %1517 }
  0xfe   : > { %v1709_v6 = vpop.permute.xlu1 %1708  ;;  %v2270_v10 = vsub.f32 %v11312_v22, %v14921_v13  ;;  %1609 = vst.msk [vmem:[#allocation3 + $0x28] sm:$0xff] %vm1603_vm8, %v1518_v37  ;;  %v1648_v37 = vld [vmem:[#allocation2 + $0xc1] sm:$0xff] }
  0xff   : > { %1801 = vst.msk [vmem:[#allocation3 + $0x20] sm:$0xff] %vm1796_vm9, %v1709_v6  ;;  %571 = vrot.lane.b32.xlu0 %v1647_v63, %s10718_s19  ;;  %v11336_v13 = vld [vmem:[#allocation2 + $0x120] sm:$0xff] }
 0x100   : > { %762 = vrot.lane.b32.xlu1 %v1839_v45, %s10717_s18  ;;  %v2271_v7 = vand.u32 4294901760, %v2270_v10  ;;  %404 = vst.msk [vmem:[#allocation2 + $0x129] sm:$0xff] %vm171_vm0, %v14922_v41  ;;  %469 = vst.msk [vmem:[#allocation3 + $0xc0] sm:$0xff] %vm171_vm0, %v11336_v13 }
 0x101   : > { %v942_v39 = vpop.permute.xlu0 %941 }
 0x102   : > { %v1133_v31 = vpop.permute.xlu1 %1132  ;;  %9520 = vmatmul.mubr.f32.gmra.mrb[2].mxu0 %v2271_v7  ;;  %1031 = vst.msk [vmem:[#allocation3 + $0x38] sm:$0xff] %vm1023_vm5, %v942_v39 }
 0x103   : > { %1223 = vst.msk [vmem:[#allocation3 + $0x30] sm:$0xff] %vm1216_vm6, %v1133_v31  ;;  %1339 = vrot.lane.b32.xlu0 %v1840_v9, %s10721_s22 }
 0x104   : > { %1531 = vrot.lane.b32.xlu1 %v11076_v34, %s10722_s23 }
 0x105   : > { %v1711_v63 = vpop.permute.xlu0 %1710 }
 0x106   : > { %v1902_v45 = vpop.permute.xlu1 %1901  ;;  %1802 = vst.msk [vmem:[#allocation3 + $0x28] sm:$0xff] %vm1796_vm9, %v1711_v63 }
 0x107   : > { %1994 = vst.msk [vmem:[#allocation3 + $0x20] sm:$0xff] %vm1989_vm10, %v1902_v45  ;;  %764 = vrot.lane.b32.xlu0 %v1840_v9, %s10717_s18  ;;  %v11353_v7 = vld [vmem:[#allocation2 + $0x128] sm:$0xff] }
 0x108   : > { %955 = vrot.lane.b32.xlu1 %v11076_v34, %s10719_s20  ;;  %470 = vst.msk [vmem:[#allocation3 + $0xc8] sm:$0xff] %vm171_vm0, %v11353_v7  ;;  %v1649_v45 = vld [vmem:[#allocation2 + $0xc9] sm:$0xff] }
 0x109   : > { %v558_v6 = vpop.permute.xlu0 %557 }
 0x10a   : > { %v1135_v10 = vpop.permute.xlu1 %1134  ;;  %646 = vst.msk [vmem:[#allocation3 + $0x40] sm:$0xff] %vm637_vm3, %v558_v6  ;;  %v1841_v6 = vld [vmem:[#allocation2 + $0xc2] sm:$0xff] }
 0x10b   : > { %1224 = vst.msk [vmem:[#allocation3 + $0x38] sm:$0xff] %vm1216_vm6, %v1135_v10  ;;  %1533 = vrot.lane.b32.xlu0 %v11089_v42, %s10722_s23 }
 0x10c   : > { %1724 = vrot.lane.b32.xlu1 %v1648_v37, %s10723_s24 }
 0x10d   : > { %v1326_v9 = vpop.permute.xlu0 %1325 }
 0x10e   : > { %v1904_v39 = vpop.permute.xlu1 %1903  ;;  %v2026_v34 = vld [vmem:[#allocation3 + $0x20] sm:$0xff]  ;;  %1416 = vst.msk [vmem:[#allocation3 + $0x30] sm:$0xff] %vm1409_vm7, %v1326_v9 }
 0x10f   : > { %1995 = vst.msk [vmem:[#allocation3 + $0x28] sm:$0xff] %vm1989_vm10, %v1904_v39  ;;  %v2080_v31 = vsel %vm2066_vm11, %v2026_v34, 0  ;;  %957 = vrot.lane.b32.xlu0 %v11089_v42, %s10719_s20 }
 0x110   : > { %1148 = vrot.lane.b32.xlu1 %v1648_v37, %s10720_s21  ;;  %v11366_v63 = vand.u32 4294901760, %v2080_v31 }
 0x111   : > { %v560_v10 = vpop.permute.xlu0 %559 }
 0x112   : > { %v751_v41 = vpop.permute.xlu1 %750  ;;  %v11369_v47 = vsub.f32 %v2080_v31, %v11366_v63  ;;  %647 = vst.msk [vmem:[#allocation3 + $0x48] sm:$0xff] %vm637_vm3, %v560_v10 }
 0x113   : > { %839 = vst.msk [vmem:[#allocation3 + $0x40] sm:$0xff] %vm830_vm4, %v751_v41  ;;  %1726 = vrot.lane.b32.xlu0 %v1649_v45, %s10723_s24 }
 0x114   : > { %1917 = vrot.lane.b32.xlu1 %v1841_v6, %s10724_s27  ;;  %v14929_v42 = vand.u32 4294901760, %v11369_v47 }
 0x115   : > { %v1328_v9 = vpop.permute.xlu0 %1327 }
 0x116   : > { %v1520_v39 = vpop.permute.xlu1 %1519  ;;  %v2280_v34 = vsub.f32 %v11369_v47, %v14929_v42  ;;  %v2027_v58 = vld [vmem:[#allocation3 + $0x28] sm:$0xff]  ;;  %1417 = vst.msk [vmem:[#allocation3 + $0x38] sm:$0xff] %vm1409_vm7, %v1328_v9  ;;  %v14930_v9 = vmax.f32 %v11387_v53, 0.0 }
 0x117   : > { %1610 = vst.msk [vmem:[#allocation3 + $0x30] sm:$0xff] %vm1603_vm8, %v1520_v39  ;;  %v2083_v41 = vsel %vm2066_vm11, %v2027_v58, 0  ;;  %573 = vrot.lane.b32.xlu0 %v1648_v37, %s10718_s19 }
 0x118   : > { %1150 = vrot.lane.b32.xlu1 %v1649_v45, %s10720_s21  ;;  %v2281_v31 = vand.u32 4294901760, %v2280_v34  ;;  %v11384_v10 = vand.u32 4294901760, %v2083_v41  ;;  %405 = vst.msk [vmem:[#allocation2 + $0x139] sm:$0xff] %vm171_vm0, %v14930_v9 }
 0x119   : > { %v753_v52 = vpop.permute.xlu0 %752 }
 0x11a   : > { %v944_v44 = vpop.permute.xlu1 %943  ;;  %9522 = vmatprep.mubr.f32.mxu0 %v2281_v31  ;;  %v11390_v42 = vsub.f32 %v2083_v41, %v11384_v10  ;;  %840 = vst.msk [vmem:[#allocation3 + $0x48] sm:$0xff] %vm830_vm4, %v753_v52 }
 0x11b   : > { %1032 = vst.msk [vmem:[#allocation3 + $0x40] sm:$0xff] %vm1023_vm5, %v944_v44  ;;  %1341 = vrot.lane.b32.xlu0 %v1841_v6, %s10721_s22  ;;  %v11409_v44 = vld [vmem:[%s10820_s17 + $0xc8] sm:$0xff] }
 0x11c   : > { %1919 = vrot.lane.b32.xlu1 %v1842_v57, %s10724_s27  ;;  %v14931_v58 = vand.u32 4294901760, %v11390_v42  ;;  %15225 = vst [vmem:[#allocation31_spill] sm:$0xff] %v11409_v44  ;;  %v14932_v9 = vmax.f32 %v11409_v44, 0.0 }
 0x11d   : > { %v1522_v37 = vpop.permute.xlu0 %1521 }
 0x11e   : > { %v1713_v39 = vpop.permute.xlu1 %1712  ;;  %v2290_v34 = vsub.f32 %v11390_v42, %v14931_v58  ;;  %1611 = vst.msk [vmem:[#allocation3 + $0x38] sm:$0xff] %vm1603_vm8, %v1522_v37  ;;  %v1650_v37 = vld [vmem:[#allocation2 + $0xd9] sm:$0xff] }
 0x11f   : > { %1803 = vst.msk [vmem:[#allocation3 + $0x30] sm:$0xff] %vm1796_vm9, %v1713_v39  ;;  %575 = vrot.lane.b32.xlu0 %v1649_v45, %s10718_s19  ;;  %v11414_v58 = vld [vmem:[#allocation2 + $0x138] sm:$0xff] }
 0x120   : > { %766 = vrot.lane.b32.xlu1 %v1841_v6, %s10717_s18  ;;  %v2291_v52 = vand.u32 4294901760, %v2290_v34  ;;  %406 = vst.msk [vmem:[#allocation2 + $0x141] sm:$0xff] %vm171_vm0, %v14932_v9  ;;  %471 = vst.msk [vmem:[#allocation3 + $0xd0] sm:$0xff] %vm171_vm0, %v11414_v58 }
 0x121   : > { %v946_v41 = vpop.permute.xlu0 %945 }
 0x122   : > { %v1137_v31 = vpop.permute.xlu1 %1136  ;;  %9523 = vmatmul.mubr.f32.gmra.mrb[4].mxu0 %v2291_v52  ;;  %1033 = vst.msk [vmem:[#allocation3 + $0x48] sm:$0xff] %vm1023_vm5, %v946_v41 }
 0x123   : > { %1225 = vst.msk [vmem:[#allocation3 + $0x40] sm:$0xff] %vm1216_vm6, %v1137_v31  ;;  %1343 = vrot.lane.b32.xlu0 %v1842_v57, %s10721_s22 }
 0x124   : > { %1535 = vrot.lane.b32.xlu1 %v11122_v35, %s10722_s23 }
 0x125   : > { %v1715_v45 = vpop.permute.xlu0 %1714 }
 0x126   : > { %v1906_v6 = vpop.permute.xlu1 %1905  ;;  %1804 = vst.msk [vmem:[#allocation3 + $0x38] sm:$0xff] %vm1796_vm9, %v1715_v45 }
 0x127   : > { %1996 = vst.msk [vmem:[#allocation3 + $0x30] sm:$0xff] %vm1989_vm10, %v1906_v6  ;;  %768 = vrot.lane.b32.xlu0 %v1842_v57, %s10717_s18  ;;  %v11431_v52 = vld [vmem:[#allocation2 + $0x140] sm:$0xff] }
 0x128   : > { %959 = vrot.lane.b32.xlu1 %v11122_v35, %s10719_s20  ;;  %472 = vst.msk [vmem:[#allocation3 + $0xd8] sm:$0xff] %vm171_vm0, %v11431_v52  ;;  %v1651_v6 = vld [vmem:[#allocation2 + $0xe1] sm:$0xff] }
 0x129   : > { %v562_v39 = vpop.permute.xlu0 %561 }
 0x12a   : > { %v1139_v34 = vpop.permute.xlu1 %1138  ;;  %648 = vst.msk [vmem:[#allocation3 + $0x50] sm:$0xff] %vm637_vm3, %v562_v39  ;;  %v1843_v39 = vld [vmem:[#allocation2 + $0xda] sm:$0xff] }
 0x12b   : > { %1226 = vst.msk [vmem:[#allocation3 + $0x48] sm:$0xff] %vm1216_vm6, %v1139_v34  ;;  %1537 = vrot.lane.b32.xlu0 %v11139_v27, %s10722_s23 }
 0x12c   : > { %1728 = vrot.lane.b32.xlu1 %v1650_v37, %s10723_s24 }
 0x12d   : > { %v1330_v57 = vpop.permute.xlu0 %1329 }
 0x12e   : > { %v1908_v41 = vpop.permute.xlu1 %1907  ;;  %v2028_v35 = vld [vmem:[#allocation3 + $0x30] sm:$0xff]  ;;  %1418 = vst.msk [vmem:[#allocation3 + $0x40] sm:$0xff] %vm1409_vm7, %v1330_v57 }
 0x12f   : > { %1997 = vst.msk [vmem:[#allocation3 + $0x38] sm:$0xff] %vm1989_vm10, %v1908_v41  ;;  %v2086_v31 = vsel %vm2066_vm11, %v2028_v35, 0  ;;  %961 = vrot.lane.b32.xlu0 %v11139_v27, %s10719_s20 }
 0x130   : > { %1152 = vrot.lane.b32.xlu1 %v1650_v37, %s10720_s21  ;;  %v11444_v45 = vand.u32 4294901760, %v2086_v31 }
 0x131   : > { %v564_v34 = vpop.permute.xlu0 %563 }
 0x132   : > { %v755_v9 = vpop.permute.xlu1 %754  ;;  %v11447_v44 = vsub.f32 %v2086_v31, %v11444_v45  ;;  %649 = vst.msk [vmem:[#allocation3 + $0x58] sm:$0xff] %vm637_vm3, %v564_v34 }
 0x133   : > { %841 = vst.msk [vmem:[#allocation3 + $0x50] sm:$0xff] %vm830_vm4, %v755_v9  ;;  %1730 = vrot.lane.b32.xlu0 %v1651_v6, %s10723_s24 }
 0x134   : > { %1921 = vrot.lane.b32.xlu1 %v1843_v39, %s10724_s27  ;;  %v14939_v27 = vand.u32 4294901760, %v11447_v44 }
 0x135   : > { %v1332_v57 = vpop.permute.xlu0 %1331 }
 0x136   : > { %v1524_v41 = vpop.permute.xlu1 %1523  ;;  %v2300_v35 = vsub.f32 %v11447_v44, %v14939_v27  ;;  %v2029_v53 = vld [vmem:[#allocation3 + $0x38] sm:$0xff]  ;;  %1419 = vst.msk [vmem:[#allocation3 + $0x48] sm:$0xff] %vm1409_vm7, %v1332_v57  ;;  %v14940_v57 = vmax.f32 %v11465_v24, 0.0 }
 0x137   : > { %1612 = vst.msk [vmem:[#allocation3 + $0x40] sm:$0xff] %vm1603_vm8, %v1524_v41  ;;  %v2089_v9 = vsel %vm2066_vm11, %v2029_v53, 0  ;;  %577 = vrot.lane.b32.xlu0 %v1650_v37, %s10718_s19 }
 0x138   : > { %1154 = vrot.lane.b32.xlu1 %v1651_v6, %s10720_s21  ;;  %v2301_v31 = vand.u32 4294901760, %v2300_v35  ;;  %v11462_v34 = vand.u32 4294901760, %v2089_v9  ;;  %407 = vst.msk [vmem:[#allocation2 + $0x151] sm:$0xff] %vm171_vm0, %v14940_v57 }
 0x139   : > { %v757_v26 = vpop.permute.xlu0 %756 }
 0x13a   : > { %v948_v36 = vpop.permute.xlu1 %947  ;;  %9525 = vmatprep.mubr.f32.mxu0 %v2301_v31  ;;  %v11468_v27 = vsub.f32 %v2089_v9, %v11462_v34  ;;  %842 = vst.msk [vmem:[#allocation3 + $0x58] sm:$0xff] %vm830_vm4, %v757_v26 }
 0x13b   : > { %1034 = vst.msk [vmem:[#allocation3 + $0x50] sm:$0xff] %vm1023_vm5, %v948_v36  ;;  %1345 = vrot.lane.b32.xlu0 %v1843_v39, %s10721_s22  ;;  %v11487_v36 = vld [vmem:[%s10820_s17 + $0xd8] sm:$0xff] }
 0x13c   : > { %1923 = vrot.lane.b32.xlu1 %v1844_v8, %s10724_s27  ;;  %v14941_v53 = vand.u32 4294901760, %v11468_v27  ;;  %15227 = vst [vmem:[#allocation33_spill] sm:$0xff] %v11487_v36  ;;  %v14942_v57 = vmax.f32 %v11487_v36, 0.0 }
 0x13d   : > { %v1526_v37 = vpop.permute.xlu0 %1525 }
 0x13e   : > { %v1717_v41 = vpop.permute.xlu1 %1716  ;;  %v2310_v35 = vsub.f32 %v11468_v27, %v14941_v53  ;;  %1613 = vst.msk [vmem:[#allocation3 + $0x48] sm:$0xff] %vm1603_vm8, %v1526_v37  ;;  %v1652_v37 = vld [vmem:[#allocation2 + $0xf1] sm:$0xff] }
 0x13f   : > { %1805 = vst.msk [vmem:[#allocation3 + $0x40] sm:$0xff] %vm1796_vm9, %v1717_v41  ;;  %579 = vrot.lane.b32.xlu0 %v1651_v6, %s10718_s19  ;;  %v11492_v53 = vld [vmem:[#allocation2 + $0x150] sm:$0xff] }
 0x140   : > { %770 = vrot.lane.b32.xlu1 %v1843_v39, %s10717_s18  ;;  %v2311_v26 = vand.u32 4294901760, %v2310_v35  ;;  %408 = vst.msk [vmem:[#allocation2 + $0x159] sm:$0xff] %vm171_vm0, %v14942_v57  ;;  %473 = vst.msk [vmem:[#allocation3 + $0xe0] sm:$0xff] %vm171_vm0, %v11492_v53 }
 0x141   : > { %v950_v9 = vpop.permute.xlu0 %949 }
 0x142   : > { %v1141_v31 = vpop.permute.xlu1 %1140  ;;  %9526 = vmatmul.mubr.f32.gmra.mrb[6].mxu0 %v2311_v26  ;;  %1035 = vst.msk [vmem:[#allocation3 + $0x58] sm:$0xff] %vm1023_vm5, %v950_v9 }
 0x143   : > { %1227 = vst.msk [vmem:[#allocation3 + $0x50] sm:$0xff] %vm1216_vm6, %v1141_v31  ;;  %1347 = vrot.lane.b32.xlu0 %v1844_v8, %s10721_s22 }
 0x144   : > { %1539 = vrot.lane.b32.xlu1 %v11180_v59, %s10722_s23 }
 0x145   : > { %v1719_v6 = vpop.permute.xlu0 %1718 }
 0x146   : > { %v1910_v39 = vpop.permute.xlu1 %1909  ;;  %1806 = vst.msk [vmem:[#allocation3 + $0x48] sm:$0xff] %vm1796_vm9, %v1719_v6 }
 0x147   : > { %1998 = vst.msk [vmem:[#allocation3 + $0x40] sm:$0xff] %vm1989_vm10, %v1910_v39  ;;  %772 = vrot.lane.b32.xlu0 %v1844_v8, %s10717_s18  ;;  %v11509_v26 = vld [vmem:[#allocation2 + $0x158] sm:$0xff] }
 0x148   : > { %963 = vrot.lane.b32.xlu1 %v11180_v59, %s10719_s20  ;;  %474 = vst.msk [vmem:[#allocation3 + $0xe8] sm:$0xff] %vm171_vm0, %v11509_v26  ;;  %v1653_v39 = vld [vmem:[#allocation2 + $0xf9] sm:$0xff] }
 0x149   : > { %v566_v41 = vpop.permute.xlu0 %565 }
 0x14a   : > { %v1143_v35 = vpop.permute.xlu1 %1142  ;;  %650 = vst.msk [vmem:[#allocation3 + $0x60] sm:$0xff] %vm637_vm3, %v566_v41  ;;  %v1845_v41 = vld [vmem:[#allocation2 + $0xf2] sm:$0xff] }
 0x14b   : > { %1228 = vst.msk [vmem:[#allocation3 + $0x58] sm:$0xff] %vm1216_vm6, %v1143_v35  ;;  %1541 = vrot.lane.b32.xlu0 %v11197_v21, %s10722_s23 }
 0x14c   : > { %1732 = vrot.lane.b32.xlu1 %v1652_v37, %s10723_s24 }
 0x14d   : > { %v1334_v8 = vpop.permute.xlu0 %1333 }
 0x14e   : > { %v1912_v9 = vpop.permute.xlu1 %1911  ;;  %v2030_v59 = vld [vmem:[#allocation3 + $0x40] sm:$0xff]  ;;  %1420 = vst.msk [vmem:[#allocation3 + $0x50] sm:$0xff] %vm1409_vm7, %v1334_v8 }
 0x14f   : > { %1999 = vst.msk [vmem:[#allocation3 + $0x48] sm:$0xff] %vm1989_vm10, %v1912_v9  ;;  %v2092_v31 = vsel %vm2066_vm11, %v2030_v59, 0  ;;  %965 = vrot.lane.b32.xlu0 %v11197_v21, %s10719_s20 }
 0x150   : > { %1156 = vrot.lane.b32.xlu1 %v1652_v37, %s10720_s21  ;;  %v11522_v6 = vand.u32 4294901760, %v2092_v31 }
 0x151   : > { %v568_v35 = vpop.permute.xlu0 %567 }
 0x152   : > { %v759_v57 = vpop.permute.xlu1 %758  ;;  %v11525_v36 = vsub.f32 %v2092_v31, %v11522_v6  ;;  %651 = vst.msk [vmem:[#allocation3 + $0x68] sm:$0xff] %vm637_vm3, %v568_v35 }
 0x153   : > { %843 = vst.msk [vmem:[#allocation3 + $0x60] sm:$0xff] %vm830_vm4, %v759_v57  ;;  %1734 = vrot.lane.b32.xlu0 %v1653_v39, %s10723_s24 }
 0x154   : > { %1925 = vrot.lane.b32.xlu1 %v1845_v41, %s10724_s27  ;;  %v14949_v21 = vand.u32 4294901760, %v11525_v36 }
 0x155   : > { %v1336_v8 = vpop.permute.xlu0 %1335 }
 0x156   : > { %v1528_v9 = vpop.permute.xlu1 %1527  ;;  %v2320_v59 = vsub.f32 %v11525_v36, %v14949_v21  ;;  %v2031_v24 = vld [vmem:[#allocation3 + $0x48] sm:$0xff]  ;;  %1421 = vst.msk [vmem:[#allocation3 + $0x58] sm:$0xff] %vm1409_vm7, %v1336_v8  ;;  %v14950_v8 = vmax.f32 %v11543_v28, 0.0 }
 0x157   : > { %1614 = vst.msk [vmem:[#allocation3 + $0x50] sm:$0xff] %vm1603_vm8, %v1528_v9  ;;  %v2095_v57 = vsel %vm2066_vm11, %v2031_v24, 0  ;;  %581 = vrot.lane.b32.xlu0 %v1652_v37, %s10718_s19 }
 0x158   : > { %1158 = vrot.lane.b32.xlu1 %v1653_v39, %s10720_s21  ;;  %v2321_v31 = vand.u32 4294901760, %v2320_v59  ;;  %v11540_v35 = vand.u32 4294901760, %v2095_v57  ;;  %409 = vst.msk [vmem:[#allocation2 + $0x169] sm:$0xff] %vm171_vm0, %v14950_v8 }
 0x159   : > { %v761_v49 = vpop.permute.xlu0 %760 }
 0x15a   : > { %v952_v32 = vpop.permute.xlu1 %951  ;;  %9528 = vmatprep.mubr.f32.mxu0 %v2321_v31  ;;  %v11546_v21 = vsub.f32 %v2095_v57, %v11540_v35  ;;  %844 = vst.msk [vmem:[#allocation3 + $0x68] sm:$0xff] %vm830_vm4, %v761_v49  ;;  %v11565_v49 = vld [vmem:[%s10820_s17 + $0xe8] sm:$0xff] }
 0x15b   : > { %1036 = vst.msk [vmem:[#allocation3 + $0x60] sm:$0xff] %vm1023_vm5, %v952_v32  ;;  %1349 = vrot.lane.b32.xlu0 %v1845_v41, %s10721_s22  ;;  %15229 = vst [vmem:[#allocation35_spill] sm:$0xff] %v11565_v49  ;;  %v14952_v8 = vmax.f32 %v11565_v49, 0.0 }
 0x15c   : > { %1927 = vrot.lane.b32.xlu1 %v1846_v29, %s10724_s27  ;;  %v14951_v24 = vand.u32 4294901760, %v11546_v21 }
 0x15d   : > { %v1530_v37 = vpop.permute.xlu0 %1529  ;;  %410 = vst.msk [vmem:[#allocation2 + $0x171] sm:$0xff] %vm171_vm0, %v14952_v8 }
 0x15e   : > { %v1721_v9 = vpop.permute.xlu1 %1720  ;;  %v2330_v59 = vsub.f32 %v11546_v21, %v14951_v24  ;;  %1615 = vst.msk [vmem:[#allocation3 + $0x58] sm:$0xff] %vm1603_vm8, %v1530_v37  ;;  %v1654_v37 = vld [vmem:[#allocation2 + $0x109] sm:$0xff] }
 0x15f   : > { %1807 = vst.msk [vmem:[#allocation3 + $0x50] sm:$0xff] %vm1796_vm9, %v1721_v9  ;;  %583 = vrot.lane.b32.xlu0 %v1653_v39, %s10718_s19  ;;  %v11570_v24 = vld [vmem:[#allocation2 + $0x168] sm:$0xff] }
 0x160   : > { %774 = vrot.lane.b32.xlu1 %v1845_v41, %s10717_s18  ;;  %v2331_v32 = vand.u32 4294901760, %v2330_v59  ;;  %475 = vst.msk [vmem:[#allocation3 + $0xf0] sm:$0xff] %vm171_vm0, %v11570_v24 }
 0x161   : > { %v954_v57 = vpop.permute.xlu0 %953 }
 0x162   : > { %v1145_v31 = vpop.permute.xlu1 %1144  ;;  %9529 = vmatmul.mubr.f32.gmra.mrb[8].mxu0 %v2331_v32  ;;  %1037 = vst.msk [vmem:[#allocation3 + $0x68] sm:$0xff] %vm1023_vm5, %v954_v57 }
 0x163   : > { %1229 = vst.msk [vmem:[#allocation3 + $0x60] sm:$0xff] %vm1216_vm6, %v1145_v31  ;;  %1351 = vrot.lane.b32.xlu0 %v1846_v29, %s10721_s22 }
 0x164   : > { %1543 = vrot.lane.b32.xlu1 %v11258_v18, %s10722_s23  ;;  %v11587_v32 = vld [vmem:[#allocation2 + $0x170] sm:$0xff] }
 0x165   : > { %v1723_v39 = vpop.permute.xlu0 %1722  ;;  %476 = vst.msk [vmem:[#allocation3 + $0xf8] sm:$0xff] %vm171_vm0, %v11587_v32  ;;  %v1856_v11 = vld [vmem:[#allocation2 + $0x172] sm:$0xff] }
 0x166   : > { %v1914_v41 = vpop.permute.xlu1 %1913  ;;  %1808 = vst.msk [vmem:[#allocation3 + $0x58] sm:$0xff] %vm1796_vm9, %v1723_v39 }
 0x167   : > { %2000 = vst.msk [vmem:[#allocation3 + $0x50] sm:$0xff] %vm1989_vm10, %v1914_v41  ;;  %776 = vrot.lane.b32.xlu0 %v1846_v29, %s10717_s18  ;;  %v1655_v41 = vld [vmem:[#allocation2 + $0x111] sm:$0xff] }
 0x168   : > { %967 = vrot.lane.b32.xlu1 %v11258_v18, %s10719_s20 }
 0x169   : > { %v570_v9 = vpop.permute.xlu0 %569 }
 0x16a   : > { %v1147_v59 = vpop.permute.xlu1 %1146  ;;  %652 = vst.msk [vmem:[#allocation3 + $0x70] sm:$0xff] %vm637_vm3, %v570_v9  ;;  %v1847_v9 = vld [vmem:[#allocation2 + $0x10a] sm:$0xff] }
 0x16b   : > { %1230 = vst.msk [vmem:[#allocation3 + $0x68] sm:$0xff] %vm1216_vm6, %v1147_v59  ;;  %1545 = vrot.lane.b32.xlu0 %v11275_v20, %s10722_s23 }
 0x16c   : > { %1736 = vrot.lane.b32.xlu1 %v1654_v37, %s10723_s24 }
 0x16d   : > { %v1338_v29 = vpop.permute.xlu0 %1337 }
 0x16e   : > { %v1916_v57 = vpop.permute.xlu1 %1915  ;;  %v2032_v18 = vld [vmem:[#allocation3 + $0x50] sm:$0xff]  ;;  %1422 = vst.msk [vmem:[#allocation3 + $0x60] sm:$0xff] %vm1409_vm7, %v1338_v29 }
 0x16f   : > { %2001 = vst.msk [vmem:[#allocation3 + $0x58] sm:$0xff] %vm1989_vm10, %v1916_v57  ;;  %v2098_v31 = vsel %vm2066_vm11, %v2032_v18, 0  ;;  %969 = vrot.lane.b32.xlu0 %v11275_v20, %s10719_s20 }
 0x170   : > { %1160 = vrot.lane.b32.xlu1 %v1654_v37, %s10720_s21  ;;  %v11600_v39 = vand.u32 4294901760, %v2098_v31 }
 0x171   : > { %v572_v59 = vpop.permute.xlu0 %571 }
 0x172   : > { %v763_v8 = vpop.permute.xlu1 %762  ;;  %v11603_v49 = vsub.f32 %v2098_v31, %v11600_v39  ;;  %653 = vst.msk [vmem:[#allocation3 + $0x78] sm:$0xff] %vm637_vm3, %v572_v59 }
 0x173   : > { %845 = vst.msk [vmem:[#allocation3 + $0x70] sm:$0xff] %vm830_vm4, %v763_v8  ;;  %1738 = vrot.lane.b32.xlu0 %v1655_v41, %s10723_s24 }
 0x174   : > { %1929 = vrot.lane.b32.xlu1 %v1847_v9, %s10724_s27  ;;  %v14959_v20 = vand.u32 4294901760, %v11603_v49 }
 0x175   : > { %v1340_v29 = vpop.permute.xlu0 %1339 }
 0x176   : > { %v1532_v57 = vpop.permute.xlu1 %1531  ;;  %v2340_v18 = vsub.f32 %v11603_v49, %v14959_v20  ;;  %v2033_v28 = vld [vmem:[#allocation3 + $0x58] sm:$0xff]  ;;  %1423 = vst.msk [vmem:[#allocation3 + $0x68] sm:$0xff] %vm1409_vm7, %v1340_v29  ;;  %v14960_v29 = vmax.f32 %v11621_v5, 0.0 }
 0x177   : > { %1616 = vst.msk [vmem:[#allocation3 + $0x60] sm:$0xff] %vm1603_vm8, %v1532_v57  ;;  %v2101_v8 = vsel %vm2066_vm11, %v2033_v28, 0  ;;  %585 = vrot.lane.b32.xlu0 %v1654_v37, %s10718_s19 }
 0x178   : > { %1162 = vrot.lane.b32.xlu1 %v1655_v41, %s10720_s21  ;;  %v2341_v31 = vand.u32 4294901760, %v2340_v18  ;;  %v11618_v59 = vand.u32 4294901760, %v2101_v8  ;;  %411 = vst.msk [vmem:[#allocation2 + $0x181] sm:$0xff] %vm171_vm0, %v14960_v29 }
 0x179   : > { %v765_v60 = vpop.permute.xlu0 %764 }
 0x17a   : > { %v956_v43 = vpop.permute.xlu1 %955  ;;  %9531 = vmatprep.mubr.f32.mxu0 %v2341_v31  ;;  %v11624_v20 = vsub.f32 %v2101_v8, %v11618_v59  ;;  %846 = vst.msk [vmem:[#allocation3 + $0x78] sm:$0xff] %vm830_vm4, %v765_v60  ;;  %v11643_v60 = vld [vmem:[%s10820_s17 + $0xf8] sm:$0xff] }
 0x17b   : > { %1038 = vst.msk [vmem:[#allocation3 + $0x70] sm:$0xff] %vm1023_vm5, %v956_v43  ;;  %1353 = vrot.lane.b32.xlu0 %v1847_v9, %s10721_s22  ;;  %15231 = vst [vmem:[#allocation37_spill] sm:$0xff] %v11643_v60  ;;  %v14961_v29 = vmax.f32 %v11643_v60, 0.0  ;;  %v1850_v60 = vld [vmem:[#allocation2 + $0x12a] sm:$0xff] }
 0x17c   : > { %1931 = vrot.lane.b32.xlu1 %v1848_v30, %s10724_s27  ;;  %v14962_v28 = vand.u32 4294901760, %v11624_v20 }
 0x17d   : > { %v1534_v37 = vpop.permute.xlu0 %1533  ;;  %412 = vst.msk [vmem:[#allocation2 + $0x189] sm:$0xff] %vm171_vm0, %v14961_v29 }
 0x17e   : > { %v1725_v57 = vpop.permute.xlu1 %1724  ;;  %v2350_v18 = vsub.f32 %v11624_v20, %v14962_v28  ;;  %1617 = vst.msk [vmem:[#allocation3 + $0x68] sm:$0xff] %vm1603_vm8, %v1534_v37  ;;  %v1656_v37 = vld [vmem:[#allocation2 + $0x121] sm:$0xff] }
 0x17f   : > { %1809 = vst.msk [vmem:[#allocation3 + $0x60] sm:$0xff] %vm1796_vm9, %v1725_v57  ;;  %587 = vrot.lane.b32.xlu0 %v1655_v41, %s10718_s19 }
 0x180   : > { %778 = vrot.lane.b32.xlu1 %v1847_v9, %s10717_s18  ;;  %v2351_v43 = vand.u32 4294901760, %v2350_v18 }
 0x181   : > { %v958_v8 = vpop.permute.xlu0 %957 }
 0x182   : > { %v1149_v31 = vpop.permute.xlu1 %1148  ;;  %9532 = vmatmul.mubr.f32.gmra.mrb[10].mxu0 %v2351_v43  ;;  %1039 = vst.msk [vmem:[#allocation3 + $0x78] sm:$0xff] %vm1023_vm5, %v958_v8 }
 0x183   : > { %1231 = vst.msk [vmem:[#allocation3 + $0x70] sm:$0xff] %vm1216_vm6, %v1149_v31  ;;  %1355 = vrot.lane.b32.xlu0 %v1848_v30, %s10721_s22 }
 0x184   : > { %1547 = vrot.lane.b32.xlu1 %v11336_v13, %s10722_s23 }
 0x185   : > { %v1727_v41 = vpop.permute.xlu0 %1726 }
 0x186   : > { %v1918_v9 = vpop.permute.xlu1 %1917  ;;  %1810 = vst.msk [vmem:[#allocation3 + $0x68] sm:$0xff] %vm1796_vm9, %v1727_v41  ;;  %v1657_v41 = vld [vmem:[#allocation2 + $0x129] sm:$0xff] }
 0x187   : > { %2002 = vst.msk [vmem:[#allocation3 + $0x60] sm:$0xff] %vm1989_vm10, %v1918_v9  ;;  %780 = vrot.lane.b32.xlu0 %v1848_v30, %s10717_s18  ;;  %v1849_v9 = vld [vmem:[#allocation2 + $0x122] sm:$0xff] }
 0x188   : > { %971 = vrot.lane.b32.xlu1 %v11336_v13, %s10719_s20 }
 0x189   : > { %v574_v57 = vpop.permute.xlu0 %573 }
 0x18a   : > { %v1151_v18 = vpop.permute.xlu1 %1150  ;;  %654 = vst.msk [vmem:[#allocation3 + $0x80] sm:$0xff] %vm637_vm3, %v574_v57 }
 0x18b   : > { %1232 = vst.msk [vmem:[#allocation3 + $0x78] sm:$0xff] %vm1216_vm6, %v1151_v18  ;;  %1549 = vrot.lane.b32.xlu0 %v11353_v7, %s10722_s23 }
 0x18c   : > { %1740 = vrot.lane.b32.xlu1 %v1656_v37, %s10723_s24 }
 0x18d   : > { %v1342_v43 = vpop.permute.xlu0 %1341 }
 0x18e   : > { %v1920_v8 = vpop.permute.xlu1 %1919  ;;  %v2034_v31 = vld [vmem:[#allocation3 + $0x60] sm:$0xff]  ;;  %1424 = vst.msk [vmem:[#allocation3 + $0x70] sm:$0xff] %vm1409_vm7, %v1342_v43 }
 0x18f   : > { %2003 = vst.msk [vmem:[#allocation3 + $0x68] sm:$0xff] %vm1989_vm10, %v1920_v8  ;;  %v2104_v30 = vsel %vm2066_vm11, %v2034_v31, 0  ;;  %973 = vrot.lane.b32.xlu0 %v11353_v7, %s10719_s20 }
 0x190   : > { %1164 = vrot.lane.b32.xlu1 %v1656_v37, %s10720_s21  ;;  %v11670_v13 = vand.u32 4294901760, %v2104_v30 }
 0x191   : > { %v576_v57 = vpop.permute.xlu0 %575 }
 0x192   : > { %v767_v18 = vpop.permute.xlu1 %766  ;;  %v11673_v29 = vsub.f32 %v2104_v30, %v11670_v13  ;;  %655 = vst.msk [vmem:[#allocation3 + $0x88] sm:$0xff] %vm637_vm3, %v576_v57 }
 0x193   : > { %847 = vst.msk [vmem:[#allocation3 + $0x80] sm:$0xff] %vm830_vm4, %v767_v18  ;;  %1742 = vrot.lane.b32.xlu0 %v1657_v41, %s10723_s24 }
 0x194   : > { %1933 = vrot.lane.b32.xlu1 %v1849_v9, %s10724_s27  ;;  %v14966_v7 = vand.u32 4294901760, %v11673_v29 }
 0x195   : > { %v1344_v43 = vpop.permute.xlu0 %1343 }
 0x196   : > { %v1536_v8 = vpop.permute.xlu1 %1535  ;;  %v2360_v31 = vsub.f32 %v11673_v29, %v14966_v7  ;;  %v2035_v28 = vld [vmem:[#allocation3 + $0x68] sm:$0xff]  ;;  %1425 = vst.msk [vmem:[#allocation3 + $0x78] sm:$0xff] %vm1409_vm7, %v1344_v43 }
 0x197   : > { %1618 = vst.msk [vmem:[#allocation3 + $0x70] sm:$0xff] %vm1603_vm8, %v1536_v8  ;;  %v2107_v30 = vsel %vm2066_vm11, %v2035_v28, 0  ;;  %589 = vrot.lane.b32.xlu0 %v1656_v37, %s10718_s19 }
 0x198   : > { %1166 = vrot.lane.b32.xlu1 %v1657_v41, %s10720_s21  ;;  %v2361_v57 = vand.u32 4294901760, %v2360_v31  ;;  %v11688_v18 = vand.u32 4294901760, %v2107_v30 }
 0x199   : > { %v769_v5 = vpop.permute.xlu0 %768 }
 0x19a   : > { %v960_v40 = vpop.permute.xlu1 %959  ;;  %9534 = vmatprep.mubr.f32.mxu0 %v2361_v57  ;;  %v11691_v7 = vsub.f32 %v2107_v30, %v11688_v18  ;;  %848 = vst.msk [vmem:[#allocation3 + $0x88] sm:$0xff] %vm830_vm4, %v769_v5 }
 0x19b   : > { %1040 = vst.msk [vmem:[#allocation3 + $0x80] sm:$0xff] %vm1023_vm5, %v960_v40  ;;  %1357 = vrot.lane.b32.xlu0 %v1849_v9, %s10721_s22 }
 0x19c   : > { %1935 = vrot.lane.b32.xlu1 %v1850_v60, %s10724_s27  ;;  %v14967_v28 = vand.u32 4294901760, %v11691_v7 }
 0x19d   : > { %v1538_v37 = vpop.permute.xlu0 %1537 }
 0x19e   : > { %v1729_v43 = vpop.permute.xlu1 %1728  ;;  %v2370_v8 = vsub.f32 %v11691_v7, %v14967_v28  ;;  %1619 = vst.msk [vmem:[#allocation3 + $0x78] sm:$0xff] %vm1603_vm8, %v1538_v37  ;;  %v1852_v28 = vld [vmem:[#allocation2 + $0x142] sm:$0xff] }
 0x19f   : > { %1811 = vst.msk [vmem:[#allocation3 + $0x70] sm:$0xff] %vm1796_vm9, %v1729_v43  ;;  %591 = vrot.lane.b32.xlu0 %v1657_v41, %s10718_s19  ;;  %v1658_v41 = vld [vmem:[#allocation2 + $0x139] sm:$0xff] }
 0x1a0   : > { %782 = vrot.lane.b32.xlu1 %v1849_v9, %s10717_s18  ;;  %v2371_v40 = vand.u32 4294901760, %v2370_v8 }
 0x1a1   : > { %v962_v5 = vpop.permute.xlu0 %961 }
 0x1a2   : > { %v1153_v31 = vpop.permute.xlu1 %1152  ;;  %9535 = vmatmul.mubr.f32.gmra.mrb[12].mxu0 %v2371_v40  ;;  %1041 = vst.msk [vmem:[#allocation3 + $0x88] sm:$0xff] %vm1023_vm5, %v962_v5  ;;  %v1659_v5 = vld [vmem:[#allocation2 + $0x141] sm:$0xff] }
 0x1a3   : > { %1233 = vst.msk [vmem:[#allocation3 + $0x80] sm:$0xff] %vm1216_vm6, %v1153_v31  ;;  %1359 = vrot.lane.b32.xlu0 %v1850_v60, %s10721_s22  ;;  %v1851_v31 = vld [vmem:[#allocation2 + $0x13a] sm:$0xff] }
 0x1a4   : > { %1551 = vrot.lane.b32.xlu1 %v11414_v58, %s10722_s23 }
 0x1a5   : > { %v1731_v30 = vpop.permute.xlu0 %1730 }
 0x1a6   : > { %v1922_v57 = vpop.permute.xlu1 %1921  ;;  %1812 = vst.msk [vmem:[#allocation3 + $0x78] sm:$0xff] %vm1796_vm9, %v1731_v30 }
 0x1a7   : > { %2004 = vst.msk [vmem:[#allocation3 + $0x70] sm:$0xff] %vm1989_vm10, %v1922_v57  ;;  %784 = vrot.lane.b32.xlu0 %v1850_v60, %s10717_s18 }
 0x1a8   : > { %975 = vrot.lane.b32.xlu1 %v11414_v58, %s10719_s20 }
 0x1a9   : > { %v578_v9 = vpop.permute.xlu0 %577 }
 0x1aa   : > { %v1155_v37 = vpop.permute.xlu1 %1154  ;;  %656 = vst.msk [vmem:[#allocation3 + $0x90] sm:$0xff] %vm637_vm3, %v578_v9 }
 0x1ab   : > { %1234 = vst.msk [vmem:[#allocation3 + $0x88] sm:$0xff] %vm1216_vm6, %v1155_v37  ;;  %1553 = vrot.lane.b32.xlu0 %v11431_v52, %s10722_s23 }
 0x1ac   : > { %1744 = vrot.lane.b32.xlu1 %v1658_v41, %s10723_s24 }
 0x1ad   : > { %v1346_v43 = vpop.permute.xlu0 %1345 }
 0x1ae   : > { %v1924_v8 = vpop.permute.xlu1 %1923  ;;  %v2036_v40 = vld [vmem:[#allocation3 + $0x70] sm:$0xff]  ;;  %1426 = vst.msk [vmem:[#allocation3 + $0x80] sm:$0xff] %vm1409_vm7, %v1346_v43 }
 0x1af   : > { %2005 = vst.msk [vmem:[#allocation3 + $0x78] sm:$0xff] %vm1989_vm10, %v1924_v8  ;;  %v2110_v58 = vsel %vm2066_vm11, %v2036_v40, 0  ;;  %977 = vrot.lane.b32.xlu0 %v11431_v52, %s10719_s20 }
 0x1b0   : > { %1168 = vrot.lane.b32.xlu1 %v1658_v41, %s10720_s21  ;;  %v11726_v60 = vand.u32 4294901760, %v2110_v58 }
 0x1b1   : > { %v580_v30 = vpop.permute.xlu0 %579 }
 0x1b2   : > { %v771_v57 = vpop.permute.xlu1 %770  ;;  %v11729_v9 = vsub.f32 %v2110_v58, %v11726_v60  ;;  %657 = vst.msk [vmem:[#allocation3 + $0x98] sm:$0xff] %vm637_vm3, %v580_v30 }
 0x1b3   : > { %849 = vst.msk [vmem:[#allocation3 + $0x90] sm:$0xff] %vm830_vm4, %v771_v57  ;;  %1746 = vrot.lane.b32.xlu0 %v1659_v5, %s10723_s24 }
 0x1b4   : > { %15232 = vst [vmem:[#allocation38_spill] sm:$0xff] %v11729_v9  ;;  %1937 = vrot.lane.b32.xlu1 %v1851_v31, %s10724_s27  ;;  %v14970_v52 = vand.u32 4294901760, %v11729_v9 }
 0x1b5   : > { %v1348_v37 = vpop.permute.xlu0 %1347 }
 0x1b6   : > { %v1540_v43 = vpop.permute.xlu1 %1539  ;;  %v2380_v8 = vsub.f32 %v11729_v9, %v14970_v52  ;;  %v2037_v40 = vld [vmem:[#allocation3 + $0x78] sm:$0xff]  ;;  %1427 = vst.msk [vmem:[#allocation3 + $0x88] sm:$0xff] %vm1409_vm7, %v1348_v37 }
 0x1b7   : > { %1620 = vst.msk [vmem:[#allocation3 + $0x80] sm:$0xff] %vm1603_vm8, %v1540_v43  ;;  %v2113_v58 = vsel %vm2066_vm11, %v2037_v40, 0  ;;  %593 = vrot.lane.b32.xlu0 %v1658_v41, %s10718_s19 }
 0x1b8   : > { %1170 = vrot.lane.b32.xlu1 %v1659_v5, %s10720_s21  ;;  %v2381_v30 = vand.u32 4294901760, %v2380_v8  ;;  %v11744_v57 = vand.u32 4294901760, %v2113_v58 }
 0x1b9   : > { %v773_v25 = vpop.permute.xlu0 %772 }
 0x1ba   : > { %v964_v23 = vpop.permute.xlu1 %963  ;;  %9537 = vmatprep.mubr.f32.mxu0 %v2381_v30  ;;  %v11747_v52 = vsub.f32 %v2113_v58, %v11744_v57  ;;  %850 = vst.msk [vmem:[#allocation3 + $0x98] sm:$0xff] %vm830_vm4, %v773_v25 }
 0x1bb   : > { %1042 = vst.msk [vmem:[#allocation3 + $0x90] sm:$0xff] %vm1023_vm5, %v964_v23  ;;  %1361 = vrot.lane.b32.xlu0 %v1851_v31, %s10721_s22 }
 0x1bc   : > { %15233 = vst [vmem:[#allocation39_spill] sm:$0xff] %v11747_v52  ;;  %1939 = vrot.lane.b32.xlu1 %v1852_v28, %s10724_s27  ;;  %v14971_v41 = vand.u32 4294901760, %v11747_v52 }
 0x1bd   : > { %v1542_v37 = vpop.permute.xlu0 %1541 }
 0x1be   : > { %v1733_v43 = vpop.permute.xlu1 %1732  ;;  %v2390_v8 = vsub.f32 %v11747_v52, %v14971_v41  ;;  %1621 = vst.msk [vmem:[#allocation3 + $0x88] sm:$0xff] %vm1603_vm8, %v1542_v37  ;;  %v1854_v41 = vld [vmem:[#allocation2 + $0x15a] sm:$0xff] }
 0x1bf   : > { %1813 = vst.msk [vmem:[#allocation3 + $0x80] sm:$0xff] %vm1796_vm9, %v1733_v43  ;;  %595 = vrot.lane.b32.xlu0 %v1659_v5, %s10718_s19  ;;  %v1660_v5 = vld [vmem:[#allocation2 + $0x151] sm:$0xff] }
 0x1c0   : > { %786 = vrot.lane.b32.xlu1 %v1851_v31, %s10717_s18  ;;  %v2391_v23 = vand.u32 4294901760, %v2390_v8 }
 0x1c1   : > { %v966_v25 = vpop.permute.xlu0 %965 }
 0x1c2   : > { %v1157_v40 = vpop.permute.xlu1 %1156  ;;  %9538 = vmatmul.mubr.f32.gmra.mrb[14].mxu0 %v2391_v23  ;;  %1043 = vst.msk [vmem:[#allocation3 + $0x98] sm:$0xff] %vm1023_vm5, %v966_v25  ;;  %v1661_v25 = vld [vmem:[#allocation2 + $0x159] sm:$0xff] }
 0x1c3   : > { %1235 = vst.msk [vmem:[#allocation3 + $0x90] sm:$0xff] %vm1216_vm6, %v1157_v40  ;;  %1363 = vrot.lane.b32.xlu0 %v1852_v28, %s10721_s22  ;;  %v1853_v40 = vld [vmem:[#allocation2 + $0x152] sm:$0xff] }
 0x1c4   : > { %1555 = vrot.lane.b32.xlu1 %v11492_v53, %s10722_s23 }
 0x1c5   : > { %v1735_v58 = vpop.permute.xlu0 %1734 }
 0x1c6   : > { %v1926_v30 = vpop.permute.xlu1 %1925  ;;  %1814 = vst.msk [vmem:[#allocation3 + $0x88] sm:$0xff] %vm1796_vm9, %v1735_v58 }
 0x1c7   : > { %2006 = vst.msk [vmem:[#allocation3 + $0x80] sm:$0xff] %vm1989_vm10, %v1926_v30  ;;  %788 = vrot.lane.b32.xlu0 %v1852_v28, %s10717_s18 }
 0x1c8   : > { %979 = vrot.lane.b32.xlu1 %v11492_v53, %s10719_s20 }
 0x1c9   : > { %v582_v31 = vpop.permute.xlu0 %581 }
 0x1ca   : > { %v1159_v37 = vpop.permute.xlu1 %1158  ;;  %658 = vst.msk [vmem:[#allocation3 + $0xa0] sm:$0xff] %vm637_vm3, %v582_v31 }
 0x1cb   : > { %1236 = vst.msk [vmem:[#allocation3 + $0x98] sm:$0xff] %vm1216_vm6, %v1159_v37  ;;  %1557 = vrot.lane.b32.xlu0 %v11509_v26, %s10722_s23 }
 0x1cc   : > { %1748 = vrot.lane.b32.xlu1 %v1660_v5, %s10723_s24 }
 0x1cd   : > { %v1350_v43 = vpop.permute.xlu0 %1349 }
 0x1ce   : > { %v1928_v8 = vpop.permute.xlu1 %1927  ;;  %v2038_v23 = vld [vmem:[#allocation3 + $0x80] sm:$0xff]  ;;  %1428 = vst.msk [vmem:[#allocation3 + $0x90] sm:$0xff] %vm1409_vm7, %v1350_v43 }
 0x1cf   : > { %2007 = vst.msk [vmem:[#allocation3 + $0x88] sm:$0xff] %vm1989_vm10, %v1928_v8  ;;  %v2116_v53 = vsel %vm2066_vm11, %v2038_v23, 0  ;;  %981 = vrot.lane.b32.xlu0 %v11509_v26, %s10719_s20 }
 0x1d0   : > { %1172 = vrot.lane.b32.xlu1 %v1660_v5, %s10720_s21  ;;  %v11782_v28 = vand.u32 4294901760, %v2116_v53 }
 0x1d1   : > { %v584_v58 = vpop.permute.xlu0 %583 }
 0x1d2   : > { %v775_v30 = vpop.permute.xlu1 %774  ;;  %v11785_v31 = vsub.f32 %v2116_v53, %v11782_v28  ;;  %659 = vst.msk [vmem:[#allocation3 + $0xa8] sm:$0xff] %vm637_vm3, %v584_v58 }
 0x1d3   : > { %851 = vst.msk [vmem:[#allocation3 + $0xa0] sm:$0xff] %vm830_vm4, %v775_v30  ;;  %1750 = vrot.lane.b32.xlu0 %v1661_v25, %s10723_s24 }
 0x1d4   : > { %15234 = vst [vmem:[#allocation40_spill] sm:$0xff] %v11785_v31  ;;  %1941 = vrot.lane.b32.xlu1 %v1853_v40, %s10724_s27  ;;  %v14974_v26 = vand.u32 4294901760, %v11785_v31 }
 0x1d5   : > { %v1352_v37 = vpop.permute.xlu0 %1351 }
 0x1d6   : > { %v1544_v43 = vpop.permute.xlu1 %1543  ;;  %v2400_v8 = vsub.f32 %v11785_v31, %v14974_v26  ;;  %v2039_v23 = vld [vmem:[#allocation3 + $0x88] sm:$0xff]  ;;  %1429 = vst.msk [vmem:[#allocation3 + $0x98] sm:$0xff] %vm1409_vm7, %v1352_v37 }
 0x1d7   : > { %1622 = vst.msk [vmem:[#allocation3 + $0x90] sm:$0xff] %vm1603_vm8, %v1544_v43  ;;  %v2119_v53 = vsel %vm2066_vm11, %v2039_v23, 0  ;;  %597 = vrot.lane.b32.xlu0 %v1660_v5, %s10718_s19 }
 0x1d8   : > { %1174 = vrot.lane.b32.xlu1 %v1661_v25, %s10720_s21  ;;  %v2401_v58 = vand.u32 4294901760, %v2400_v8  ;;  %v11800_v30 = vand.u32 4294901760, %v2119_v53 }
 0x1d9   : > { %v777_v17 = vpop.permute.xlu0 %776 }
 0x1da   : > { %v968_v16 = vpop.permute.xlu1 %967  ;;  %9540 = vmatprep.mubr.f32.mxu0 %v2401_v58  ;;  %v11803_v26 = vsub.f32 %v2119_v53, %v11800_v30  ;;  %852 = vst.msk [vmem:[#allocation3 + $0xa8] sm:$0xff] %vm830_vm4, %v777_v17 }
 0x1db   : > { %1044 = vst.msk [vmem:[#allocation3 + $0xa0] sm:$0xff] %vm1023_vm5, %v968_v16  ;;  %1365 = vrot.lane.b32.xlu0 %v1853_v40, %s10721_s22 }
 0x1dc   : > { %15235 = vst [vmem:[#allocation41_spill] sm:$0xff] %v11803_v26  ;;  %1943 = vrot.lane.b32.xlu1 %v1854_v41, %s10724_s27  ;;  %v14975_v5 = vand.u32 4294901760, %v11803_v26 }
 0x1dd   : > { %v1546_v37 = vpop.permute.xlu0 %1545 }
 0x1de   : > { %v1737_v43 = vpop.permute.xlu1 %1736  ;;  %v2410_v8 = vsub.f32 %v11803_v26, %v14975_v5  ;;  %1623 = vst.msk [vmem:[#allocation3 + $0x98] sm:$0xff] %vm1603_vm8, %v1546_v37 }
 0x1df   : > { %1815 = vst.msk [vmem:[#allocation3 + $0x90] sm:$0xff] %vm1796_vm9, %v1737_v43  ;;  %599 = vrot.lane.b32.xlu0 %v1661_v25, %s10718_s19  ;;  %v1662_v25 = vld [vmem:[#allocation2 + $0x169] sm:$0xff] }
 0x1e0   : > { %790 = vrot.lane.b32.xlu1 %v1853_v40, %s10717_s18  ;;  %v2411_v16 = vand.u32 4294901760, %v2410_v8 }
 0x1e1   : > { %v970_v17 = vpop.permute.xlu0 %969 }
 0x1e2   : > { %v1161_v23 = vpop.permute.xlu1 %1160  ;;  %9541 = vmatmul.mubr.f32.gmra.mrb[16].mxu0 %v2411_v16  ;;  %1045 = vst.msk [vmem:[#allocation3 + $0xa8] sm:$0xff] %vm1023_vm5, %v970_v17  ;;  %v15236_v17 = vand.u32 4294901760, %v10967_v50 }
 0x1e3   : > { %1237 = vst.msk [vmem:[#allocation3 + $0xa0] sm:$0xff] %vm1216_vm6, %v1161_v23  ;;  %1367 = vrot.lane.b32.xlu0 %v1854_v41, %s10721_s22 }
 0x1e4   : > { %1559 = vrot.lane.b32.xlu1 %v11570_v24, %s10722_s23 }
 0x1e5   : > { %v1739_v53 = vpop.permute.xlu0 %1738 }
 0x1e6   : > { %v1930_v58 = vpop.permute.xlu1 %1929  ;;  %1816 = vst.msk [vmem:[#allocation3 + $0x98] sm:$0xff] %vm1796_vm9, %v1739_v53  ;;  %v10701_v53 = vld [vmem:[%s14893_s1 + $0x8] sm:$0xff] }
 0x1e7   : > { %2008 = vst.msk [vmem:[#allocation3 + $0x90] sm:$0xff] %vm1989_vm10, %v1930_v58  ;;  %792 = vrot.lane.b32.xlu0 %v1854_v41, %s10717_s18  ;;  %v10700_v41 = vld [vmem:[%s14893_s1] sm:$0xff]  ;;  %v15237_v58 = vand.u32 4294901760, %v10974_v51 }
 0x1e8   : > { %983 = vrot.lane.b32.xlu1 %v11570_v24, %s10719_s20  ;;  %v11840_v23 = vsub.f32 %v10700_v41, %v15236_v17 }
 0x1e9   : > { %v586_v40 = vpop.permute.xlu0 %585 }
 0x1ea   : > { %v1163_v37 = vpop.permute.xlu1 %1162  ;;  %660 = vst.msk [vmem:[#allocation3 + $0xb0] sm:$0xff] %vm637_vm3, %v586_v40  ;;  %v11847_v40 = vsub.f32 %v10701_v53, %v15237_v58  ;;  %v14979_v50 = vand.u32 4294901760, %v11840_v23 }
 0x1eb   : > { %1238 = vst.msk [vmem:[#allocation3 + $0xa8] sm:$0xff] %vm1216_vm6, %v1163_v37  ;;  %1561 = vrot.lane.b32.xlu0 %v11587_v32, %s10722_s23 }
 0x1ec   : > { %1752 = vrot.lane.b32.xlu1 %v1662_v25, %s10723_s24  ;;  %v2561_v51 = vsub.f32 %v11840_v23, %v14979_v50 }
 0x1ed   : > { %v1354_v43 = vpop.permute.xlu0 %1353 }
 0x1ee   : > { %v1932_v8 = vpop.permute.xlu1 %1931  ;;  %v2040_v16 = vld [vmem:[#allocation3 + $0x90] sm:$0xff]  ;;  %1430 = vst.msk [vmem:[#allocation3 + $0xa0] sm:$0xff] %vm1409_vm7, %v1354_v43  ;;  %v1663_v43 = vld [vmem:[#allocation2 + $0x171] sm:$0xff] }
 0x1ef   : > { %2009 = vst.msk [vmem:[#allocation3 + $0x98] sm:$0xff] %vm1989_vm10, %v1932_v8  ;;  %v2122_v24 = vsel %vm2066_vm11, %v2040_v16, 0  ;;  %985 = vrot.lane.b32.xlu0 %v11587_v32, %s10719_s20  ;;  %v1855_v8 = vld [vmem:[#allocation2 + $0x16a] sm:$0xff]  ;;  %v14978_v16 = vand.u32 4294901760, %v11847_v40 }
 0x1f0   : > { %1176 = vrot.lane.b32.xlu1 %v1662_v25, %s10720_s21  ;;  %v11852_v37 = vand.u32 4294901760, %v2122_v24 }
 0x1f1   : > { %v588_v41 = vpop.permute.xlu0 %587  ;;  %v2568_v32 = vsub.f32 %v11847_v40, %v14978_v16 }
 0x1f2   : > { %15238 = vst [vmem:[#allocation42_spill] sm:$0xff] %v11852_v37  ;;  %v779_v17 = vpop.permute.xlu1 %778  ;;  %v11857_v5 = vsub.f32 %v2122_v24, %v11852_v37  ;;  %661 = vst.msk [vmem:[#allocation3 + $0xb8] sm:$0xff] %vm637_vm3, %v588_v41  ;;  %v2562_v24 = vand.u32 4294901760, %v2561_v51 }
 0x1f3   : > { %853 = vst.msk [vmem:[#allocation3 + $0xb0] sm:$0xff] %vm830_vm4, %v779_v17  ;;  %1754 = vrot.lane.b32.xlu0 %v1663_v43, %s10723_s24  ;;  %v2569_v58 = vand.u32 4294901760, %v2568_v32 }
 0x1f4   : > { %15239 = vst [vmem:[#allocation43_spill] sm:$0xff] %v11857_v5  ;;  %1945 = vrot.lane.b32.xlu1 %v1855_v8, %s10724_s27  ;;  %v14983_v53 = vand.u32 4294901760, %v11857_v5 }
 0x1f5   : > { %v1356_v15 = vpop.permute.xlu0 %1355  ;;  %v10210_v50 = vpack.c.bf16 %v2569_v58, %v2562_v24 }
 0x1f6   : > { %v1548_v41 = vpop.permute.xlu1 %1547  ;;  %v2420_v17 = vsub.f32 %v11857_v5, %v14983_v53  ;;  %v2041_v12 = vld [vmem:[#allocation3 + $0x98] sm:$0xff]  ;;  %1431 = vst.msk [vmem:[#allocation3 + $0xa8] sm:$0xff] %vm1409_vm7, %v1356_v15 }
 0x1f7   : > { %1624 = vst.msk [vmem:[#allocation3 + $0xa0] sm:$0xff] %vm1603_vm8, %v1548_v41  ;;  %v2125_v16 = vsel %vm2066_vm11, %v2041_v12, 0  ;;  %601 = vrot.lane.b32.xlu0 %v1662_v25, %s10718_s19  ;;  %10211 = vmatprep.subr.bf16.mxu0 %v10210_v50 }
 0x1f8   : > { %1178 = vrot.lane.b32.xlu1 %v1663_v43, %s10720_s21  ;;  %v2421_v51 = vand.u32 4294901760, %v2420_v17  ;;  %v11878_v32 = vand.u32 4294901760, %v2125_v16  ;;  %10213 = vmatpush3.bf16.msra.mxu0 %v10210_v50 }
 0x1f9   : > { %v781_v3 = vpop.permute.xlu0 %780 }
 0x1fa   : > { %15240 = vst [vmem:[#allocation44_spill] sm:$0xff] %v11878_v32  ;;  %v972_v2 = vpop.permute.xlu1 %971  ;;  %9543 = vmatprep.mubr.f32.mxu0 %v2421_v51  ;;  %v11881_v53 = vsub.f32 %v2125_v16, %v11878_v32  ;;  %854 = vst.msk [vmem:[#allocation3 + $0xb8] sm:$0xff] %vm830_vm4, %v781_v3  ;;  %v1471_v3 = vld [vmem:[#allocation2 + $0x180] sm:$0xff]  ;;  %v10703_v51 = vld [vmem:[%s14893_s1 + $0x18] sm:$0xff] }
 0x1fb   : > { %1046 = vst.msk [vmem:[#allocation3 + $0xb0] sm:$0xff] %vm1023_vm5, %v972_v2  ;;  %1369 = vrot.lane.b32.xlu0 %v1855_v8, %s10721_s22 }
 0x1fc   : > { %15241 = vst [vmem:[#allocation45_spill] sm:$0xff] %v11881_v53  ;;  %1947 = vrot.lane.b32.xlu1 %v1856_v11, %s10724_s27  ;;  %v14984_v12 = vand.u32 4294901760, %v11881_v53 }
 0x1fd   : > { %v1550_v15 = vpop.permute.xlu0 %1549 }
 0x1fe   : > { %v1741_v25 = vpop.permute.xlu1 %1740  ;;  %v2430_v24 = vsub.f32 %v11881_v53, %v14984_v12  ;;  %1625 = vst.msk [vmem:[#allocation3 + $0xa8] sm:$0xff] %vm1603_vm8, %v1550_v15  ;;  %v15244_v15 = vand.u32 4294901760, %v10992_v56  ;;  %v1665_v12 = vld [vmem:[#allocation2 + $0x189] sm:$0xff] }
 0x1ff   : > { %1817 = vst.msk [vmem:[#allocation3 + $0xa0] sm:$0xff] %vm1796_vm9, %v1741_v25  ;;  %603 = vrot.lane.b32.xlu0 %v1663_v43, %s10718_s19  ;;  %v10702_v43 = vld [vmem:[%s14893_s1 + $0x10] sm:$0xff] }
 0x200   : > { %794 = vrot.lane.b32.xlu1 %v1855_v8, %s10717_s18  ;;  %v2431_v2 = vand.u32 4294901760, %v2430_v24  ;;  %v15242_v8 = vand.u32 4294901760, %v10987_v55  ;;  %v11913_v25 = vsub.f32 %v10703_v51, %v15244_v15  ;;  %v1472_v24 = vld [vmem:[#allocation2 + $0x188] sm:$0xff] }
 0x201   : > { %v974_v50 = vpop.permute.xlu0 %973 }
 0x202   : > { %v1165_v16 = vpop.permute.xlu1 %1164  ;;  %9544 = vmatmul.mubr.f32.gmra.mrb[18].mxu0 %v2431_v2  ;;  %1047 = vst.msk [vmem:[#allocation3 + $0xb8] sm:$0xff] %vm1023_vm5, %v974_v50  ;;  %v11906_v17 = vsub.f32 %v10702_v43, %v15242_v8  ;;  %15245 = vst [vmem:[#allocation47_spill] sm:$0xff] %v11913_v25  ;;  %v1664_v2 = vld [vmem:[#allocation2 + $0x181] sm:$0xff]  ;;  %v14985_v55 = vand.u32 4294901760, %v11913_v25 }
 0x203   : > { %1239 = vst.msk [vmem:[#allocation3 + $0xb0] sm:$0xff] %vm1216_vm6, %v1165_v16  ;;  %1371 = vrot.lane.b32.xlu0 %v1856_v11, %s10721_s22 }
 0x204   : > { %1563 = vrot.lane.b32.xlu1 %v1471_v3, %s10722_s23  ;;  %15243 = vst [vmem:[#allocation46_spill] sm:$0xff] %v11906_v17  ;;  %v14986_v50 = vand.u32 4294901760, %v11906_v17 }
 0x205   : > { %v1743_v58 = vpop.permute.xlu0 %1742 }
 0x206   : > { %v1934_v41 = vpop.permute.xlu1 %1933  ;;  %1818 = vst.msk [vmem:[#allocation3 + $0xa8] sm:$0xff] %vm1796_vm9, %v1743_v58  ;;  %v2575_v56 = vsub.f32 %v11906_v17, %v14986_v50 }
 0x207   : > { %2010 = vst.msk [vmem:[#allocation3 + $0xa0] sm:$0xff] %vm1989_vm10, %v1934_v41  ;;  %796 = vrot.lane.b32.xlu0 %v1856_v11, %s10717_s18  ;;  %v2582_v11 = vsub.f32 %v11913_v25, %v14985_v55  ;;  %v1857_v55 = vld [vmem:[#allocation2 + $0x182] sm:$0xff] }
 0x208   : > { %987 = vrot.lane.b32.xlu1 %v1471_v3, %s10719_s20  ;;  %v2576_v3 = vand.u32 4294901760, %v2575_v56 }
 0x209   : > { %v590_v16 = vpop.permute.xlu0 %589  ;;  %v2583_v41 = vand.u32 4294901760, %v2582_v11 }
 0x20a   : > { %v1167_v58 = vpop.permute.xlu1 %1166  ;;  %662 = vst.msk [vmem:[#allocation3 + $0xc0] sm:$0xff] %vm637_vm3, %v590_v16 }
 0x20b   : > { %1240 = vst.msk [vmem:[#allocation3 + $0xb8] sm:$0xff] %vm1216_vm6, %v1167_v58  ;;  %1565 = vrot.lane.b32.xlu0 %v1472_v24, %s10722_s23  ;;  %v10214_v16 = vpack.c.bf16 %v2583_v41, %v2576_v3 }
 0x20c   : > { %1756 = vrot.lane.b32.xlu1 %v1664_v2, %s10723_s24 }
 0x20d   : > { %v1358_v43 = vpop.permute.xlu0 %1357  ;;  %10215 = vmatprep.subr.bf16.mxu0 %v10214_v16 }
 0x20e   : > { %v1936_v8 = vpop.permute.xlu1 %1935  ;;  %v2042_v51 = vld [vmem:[#allocation3 + $0xa0] sm:$0xff]  ;;  %1432 = vst.msk [vmem:[#allocation3 + $0xb0] sm:$0xff] %vm1409_vm7, %v1358_v43  ;;  %10217 = vmatpush3.bf16.msra.mxu0 %v10214_v16 }
 0x20f   : > { %2011 = vst.msk [vmem:[#allocation3 + $0xa8] sm:$0xff] %vm1989_vm10, %v1936_v8  ;;  %v2128_v15 = vsel %vm2066_vm11, %v2042_v51, 0  ;;  %989 = vrot.lane.b32.xlu0 %v1472_v24, %s10719_s20  ;;  %v1858_v16 = vld [vmem:[#allocation2 + $0x18a] sm:$0xff] }
 0x210   : > { %1180 = vrot.lane.b32.xlu1 %v1664_v2, %s10720_s21  ;;  %v11934_v58 = vand.u32 4294901760, %v2128_v15 }
 0x211   : > { %v592_v56 = vpop.permute.xlu0 %591 }
 0x212   : > { %15246 = vst [vmem:[#allocation48_spill] sm:$0xff] %v11934_v58  ;;  %v783_v11 = vpop.permute.xlu1 %782  ;;  %v11937_v50 = vsub.f32 %v2128_v15, %v11934_v58  ;;  %663 = vst.msk [vmem:[#allocation3 + $0xc8] sm:$0xff] %vm637_vm3, %v592_v56 }
 0x213   : > { %855 = vst.msk [vmem:[#allocation3 + $0xc0] sm:$0xff] %vm830_vm4, %v783_v11  ;;  %1758 = vrot.lane.b32.xlu0 %v1665_v12, %s10723_s24 }
 0x214   : > { %15247 = vst [vmem:[#allocation49_spill] sm:$0xff] %v11937_v50  ;;  %1949 = vrot.lane.b32.xlu1 %v1857_v55, %s10724_s27  ;;  %v14987_v24 = vand.u32 4294901760, %v11937_v50 }
 0x215   : > { %v1360_v2 = vpop.permute.xlu0 %1359 }
 0x216   : > { %v1552_v3 = vpop.permute.xlu1 %1551  ;;  %v2440_v41 = vsub.f32 %v11937_v50, %v14987_v24  ;;  %v2043_v43 = vld [vmem:[#allocation3 + $0xa8] sm:$0xff]  ;;  %1433 = vst.msk [vmem:[#allocation3 + $0xb8] sm:$0xff] %vm1409_vm7, %v1360_v2  ;;  %v11961_v2 = vsub.f32 %v11020_v0, %v11024_v4 }
 0x217   : > { %1626 = vst.msk [vmem:[#allocation3 + $0xb0] sm:$0xff] %vm1603_vm8, %v1552_v3  ;;  %v2131_v8 = vsel %vm2066_vm11, %v2043_v43, 0  ;;  %1182 = vrot.lane.b32.xlu0 %v1665_v12, %s10720_s21  ;;  %v1474_v3 = vld [vmem:[#allocation2 + $0x1a0] sm:$0xff] }
 0x218   : > { %1373 = vrot.lane.b32.xlu1 %v1857_v55, %s10721_s22  ;;  %v2441_v51 = vand.u32 4294901760, %v2440_v41  ;;  %v11952_v15 = vand.u32 4294901760, %v2131_v8  ;;  %v1473_v55 = vld [vmem:[#allocation2 + $0x198] sm:$0xff]  ;;  %v11967_v41 = vand.u32 4294901760, %v11961_v2 }
 0x219   : > { %v785_v56 = vpop.permute.xlu0 %784 }
 0x21a   : > { %15248 = vst [vmem:[#allocation50_spill] sm:$0xff] %v11952_v15  ;;  %v976_v11 = vpop.permute.xlu1 %975  ;;  %9546 = vmatprep.mubr.f32.mxu0 %v2441_v51  ;;  %v11955_v24 = vsub.f32 %v2131_v8, %v11952_v15  ;;  %856 = vst.msk [vmem:[#allocation3 + $0xc8] sm:$0xff] %vm830_vm4, %v785_v56  ;;  %v2589_v0 = vsub.f32 %v11961_v2, %v11967_v41  ;;  %v1666_v56 = vld [vmem:[#allocation2 + $0x199] sm:$0xff] }
 0x21b   : > { %1048 = vst.msk [vmem:[#allocation3 + $0xc0] sm:$0xff] %vm1023_vm5, %v976_v11  ;;  %1951 = vrot.lane.b32.xlu0 %v1858_v16, %s10724_s27  ;;  %15250 = vst [vmem:[#allocation52_spill] sm:$0xff] %v11967_v41  ;;  %v1667_v11 = vld [vmem:[#allocation2 + $0x1a1] sm:$0xff] }
 0x21c   : > { %15249 = vst [vmem:[#allocation51_spill] sm:$0xff] %v11955_v24  ;;  %1375 = vrot.lane.b32.xlu1 %v1858_v16, %s10721_s22  ;;  %v14993_v12 = vand.u32 4294901760, %v11955_v24  ;;  %v2590_v1 = vand.u32 4294901760, %v2589_v0 }
 0x21d   : > { %v1554_v43 = vpop.permute.xlu0 %1553 }
 0x21e   : > { %v1745_v8 = vpop.permute.xlu1 %1744  ;;  %v2450_v51 = vsub.f32 %v11955_v24, %v14993_v12  ;;  %1627 = vst.msk [vmem:[#allocation3 + $0xb8] sm:$0xff] %vm1603_vm8, %v1554_v43  ;;  %9572 = vmatprep.subr.mxu0 %v2590_v1  ;;  %v1859_v43 = vld [vmem:[#allocation2 + $0x19a] sm:$0xff] }
 0x21f   : > { %1819 = vst.msk [vmem:[#allocation3 + $0xb0] sm:$0xff] %vm1796_vm9, %v1745_v8  ;;  %1567 = vrot.lane.b32.xlu0 %v1473_v55, %s10722_s23  ;;  %v1860_v55 = vld [vmem:[#allocation2 + $0x1a2] sm:$0xff]  ;;  %9573 = vmatpush3.msra.mxu0 %v2590_v1 }
 0x220   : > { %1569 = vrot.lane.b32.xlu1 %v1474_v3, %s10722_s23  ;;  %v2451_v16 = vand.u32 4294901760, %v2450_v51 }
 0x221   : > { %v978_v50 = vpop.permute.xlu0 %977 }
 0x222   : > { %v1169_v53 = vpop.permute.xlu1 %1168  ;;  %9547 = vmatmul.mubr.f32.gmra.mrb[20].mxu0 %v2451_v16  ;;  %1049 = vst.msk [vmem:[#allocation3 + $0xc8] sm:$0xff] %vm1023_vm5, %v978_v50 }
 0x223   : > { %1241 = vst.msk [vmem:[#allocation3 + $0xc0] sm:$0xff] %vm1216_vm6, %v1169_v53  ;;  %1760 = vrot.lane.b32.xlu0 %v1666_v56, %s10723_s24 }
 0x224   : > { %1762 = vrot.lane.b32.xlu1 %v1667_v11, %s10723_s24  ;;  %v11995_v11 = vpack.c.bf16 %v11847_v40, %v11840_v23 }
 0x225   : > { %v1747_v3 = vpop.permute.xlu0 %1746 }
 0x226   : > { %v1938_v8 = vpop.permute.xlu1 %1937  ;;  %1820 = vst.msk [vmem:[#allocation3 + $0xb8] sm:$0xff] %vm1796_vm9, %v1747_v3  ;;  %10219 = vmatprep.subr.bf16.mxu0 %v11995_v11 }
 0x227   : > { %2012 = vst.msk [vmem:[#allocation3 + $0xb0] sm:$0xff] %vm1989_vm10, %v1938_v8  ;;  %1953 = vrot.lane.b32.xlu0 %v1859_v43, %s10724_s27 }
 0x228   : > { %1955 = vrot.lane.b32.xlu1 %v1860_v55, %s10724_s27 }
 0x229   : > { %v594_v50 = vpop.permute.xlu0 %593 }
 0x22a   : > { %v1171_v53 = vpop.permute.xlu1 %1170  ;;  %664 = vst.msk [vmem:[#allocation3 + $0xd0] sm:$0xff] %vm637_vm3, %v594_v50 }
 0x22b   : > { %1242 = vst.msk [vmem:[#allocation3 + $0xc8] sm:$0xff] %vm1216_vm6, %v1171_v53 }
 0x22d   : > { %v1362_v51 = vpop.permute.xlu0 %1361 }
 0x22e   : > { %v1940_v0 = vpop.permute.xlu1 %1939  ;;  %v2044_v16 = vld [vmem:[#allocation3 + $0xb0] sm:$0xff]  ;;  %1434 = vst.msk [vmem:[#allocation3 + $0xc0] sm:$0xff] %vm1409_vm7, %v1362_v51 }
 0x22f   : > { %2013 = vst.msk [vmem:[#allocation3 + $0xb8] sm:$0xff] %vm1989_vm10, %v1940_v0  ;;  %v2134_v1 = vsel %vm2066_vm11, %v2044_v16, 0 }
 0x230   : > { %v11991_v56 = vand.u32 4294901760, %v2134_v1 }
 0x231   : > { %v596_v43 = vpop.permute.xlu0 %595 }
 0x232   : > { %15251 = vst [vmem:[#allocation53_spill] sm:$0xff] %v11991_v56  ;;  %v787_v55 = vpop.permute.xlu1 %786  ;;  %v11998_v3 = vsub.f32 %v2134_v1, %v11991_v56  ;;  %665 = vst.msk [vmem:[#allocation3 + $0xd8] sm:$0xff] %vm637_vm3, %v596_v43 }
 0x233   : > { %857 = vst.msk [vmem:[#allocation3 + $0xd0] sm:$0xff] %vm830_vm4, %v787_v55 }
 0x234   : > { %15252 = vst [vmem:[#allocation54_spill] sm:$0xff] %v11998_v3  ;;  %v14996_v8 = vand.u32 4294901760, %v11998_v3 }
 0x235   : > { %v1364_v50 = vpop.permute.xlu0 %1363 }
 0x236   : > { %v1556_v53 = vpop.permute.xlu1 %1555  ;;  %v2460_v51 = vsub.f32 %v11998_v3, %v14996_v8  ;;  %v2045_v0 = vld [vmem:[#allocation3 + $0xb8] sm:$0xff]  ;;  %1435 = vst.msk [vmem:[#allocation3 + $0xc8] sm:$0xff] %vm1409_vm7, %v1364_v50 }
 0x237   : > { %1628 = vst.msk [vmem:[#allocation3 + $0xc0] sm:$0xff] %vm1603_vm8, %v1556_v53  ;;  %v2137_v16 = vsel %vm2066_vm11, %v2045_v0, 0 }
 0x238   : > { %v2461_v1 = vand.u32 4294901760, %v2460_v51  ;;  %v12010_v12 = vand.u32 4294901760, %v2137_v16 }
 0x239   : > { %v789_v43 = vpop.permute.xlu0 %788 }
 0x23a   : > { %15253 = vst [vmem:[#allocation55_spill] sm:$0xff] %v12010_v12  ;;  %v980_v55 = vpop.permute.xlu1 %979  ;;  %9549 = vmatprep.mubr.f32.mxu0 %v2461_v1  ;;  %v12013_v41 = vsub.f32 %v2137_v16, %v12010_v12  ;;  %858 = vst.msk [vmem:[#allocation3 + $0xd8] sm:$0xff] %vm830_vm4, %v789_v43 }
 0x23b   : > { %1050 = vst.msk [vmem:[#allocation3 + $0xd0] sm:$0xff] %vm1023_vm5, %v980_v55  ;;  %v12029_v55 = vpack.c.bf16 %v11913_v25, %v11906_v17 }
 0x23c   : > { %15254 = vst [vmem:[#allocation56_spill] sm:$0xff] %v12013_v41  ;;  %v14999_v8 = vand.u32 4294901760, %v12013_v41 }
 0x23d   : > { %v1558_v50 = vpop.permute.xlu0 %1557 }
 0x23e   : > { %v1749_v3 = vpop.permute.xlu1 %1748  ;;  %v2470_v53 = vsub.f32 %v12013_v41, %v14999_v8  ;;  %1629 = vst.msk [vmem:[#allocation3 + $0xc8] sm:$0xff] %vm1603_vm8, %v1558_v50 }
 0x23f   : > { %1821 = vst.msk [vmem:[#allocation3 + $0xc0] sm:$0xff] %vm1796_vm9, %v1749_v3 }
 0x240   : > { %v2471_v51 = vand.u32 4294901760, %v2470_v53 }
 0x241   : > { %v982_v0 = vpop.permute.xlu0 %981 }
 0x242   : > { %v1173_v16 = vpop.permute.xlu1 %1172  ;;  %9550 = vmatmul.mubr.f32.gmra.mrb[22].mxu0 %v2471_v51  ;;  %1051 = vst.msk [vmem:[#allocation3 + $0xd8] sm:$0xff] %vm1023_vm5, %v982_v0 }
 0x243   : > { %1243 = vst.msk [vmem:[#allocation3 + $0xd0] sm:$0xff] %vm1216_vm6, %v1173_v16 }
 0x245   : > { %v1751_v1 = vpop.permute.xlu0 %1750 }
 0x246   : > { %v1942_v43 = vpop.permute.xlu1 %1941  ;;  %1822 = vst.msk [vmem:[#allocation3 + $0xc8] sm:$0xff] %vm1796_vm9, %v1751_v1 }
 0x247   : > { %2014 = vst.msk [vmem:[#allocation3 + $0xc0] sm:$0xff] %vm1989_vm10, %v1942_v43 }
 0x249   : > { %v598_v50 = vpop.permute.xlu0 %597 }
 0x24a   : > { %v1175_v3 = vpop.permute.xlu1 %1174  ;;  %666 = vst.msk [vmem:[#allocation3 + $0xe0] sm:$0xff] %vm637_vm3, %v598_v50 }
 0x24b   : > { %1244 = vst.msk [vmem:[#allocation3 + $0xd8] sm:$0xff] %vm1216_vm6, %v1175_v3 }
 0x24d   : > { %v1366_v53 = vpop.permute.xlu0 %1365 }
 0x24e   : > { %v1944_v51 = vpop.permute.xlu1 %1943  ;;  %v2046_v0 = vld [vmem:[#allocation3 + $0xc0] sm:$0xff]  ;;  %1436 = vst.msk [vmem:[#allocation3 + $0xd0] sm:$0xff] %vm1409_vm7, %v1366_v53 }
 0x24f   : > { %2015 = vst.msk [vmem:[#allocation3 + $0xc8] sm:$0xff] %vm1989_vm10, %v1944_v51  ;;  %v2140_v16 = vsel %vm2066_vm11, %v2046_v0, 0 }
 0x250   : > { %v12036_v1 = vand.u32 4294901760, %v2140_v16 }
 0x251   : > { %v600_v43 = vpop.permute.xlu0 %599 }
 0x252   : > { %15255 = vst [vmem:[#allocation57_spill] sm:$0xff] %v12036_v1  ;;  %v791_v8 = vpop.permute.xlu1 %790  ;;  %v12039_v25 = vsub.f32 %v2140_v16, %v12036_v1  ;;  %667 = vst.msk [vmem:[#allocation3 + $0xe8] sm:$0xff] %vm637_vm3, %v600_v43 }
 0x253   : > { %859 = vst.msk [vmem:[#allocation3 + $0xe0] sm:$0xff] %vm830_vm4, %v791_v8 }
 0x254   : > { %15256 = vst [vmem:[#allocation58_spill] sm:$0xff] %v12039_v25  ;;  %v15006_v50 = vand.u32 4294901760, %v12039_v25 }
 0x255   : > { %v1368_v3 = vpop.permute.xlu0 %1367 }
 0x256   : > { %v1560_v17 = vpop.permute.xlu1 %1559  ;;  %v2480_v53 = vsub.f32 %v12039_v25, %v15006_v50  ;;  %v2047_v51 = vld [vmem:[#allocation3 + $0xc8] sm:$0xff]  ;;  %1437 = vst.msk [vmem:[#allocation3 + $0xd8] sm:$0xff] %vm1409_vm7, %v1368_v3 }
 0x257   : > { %1630 = vst.msk [vmem:[#allocation3 + $0xd0] sm:$0xff] %vm1603_vm8, %v1560_v17  ;;  %v2143_v0 = vsel %vm2066_vm11, %v2047_v51, 0 }
 0x258   : > { %v2481_v16 = vand.u32 4294901760, %v2480_v53  ;;  %v12050_v41 = vand.u32 4294901760, %v2143_v0 }
 0x259   : > { %v793_v43 = vpop.permute.xlu0 %792 }
 0x25a   : > { %15257 = vst [vmem:[#allocation59_spill] sm:$0xff] %v12050_v41  ;;  %v984_v8 = vpop.permute.xlu1 %983  ;;  %9552 = vmatprep.mubr.f32.mxu0 %v2481_v16  ;;  %v12053_v24 = vsub.f32 %v2143_v0, %v12050_v41  ;;  %860 = vst.msk [vmem:[#allocation3 + $0xe8] sm:$0xff] %vm830_vm4, %v793_v43 }
 0x25b   : > { %1052 = vst.msk [vmem:[#allocation3 + $0xe0] sm:$0xff] %vm1023_vm5, %v984_v8 }
 0x25c   : > { %15258 = vst [vmem:[#allocation60_spill] sm:$0xff] %v12053_v24  ;;  %v15009_v50 = vand.u32 4294901760, %v12053_v24 }
 0x25d   : > { %v1562_v3 = vpop.permute.xlu0 %1561 }
 0x25e   : > { %v1753_v25 = vpop.permute.xlu1 %1752  ;;  %v2490_v17 = vsub.f32 %v12053_v24, %v15009_v50  ;;  %1631 = vst.msk [vmem:[#allocation3 + $0xd8] sm:$0xff] %vm1603_vm8, %v1562_v3 }
 0x25f   : > { %1823 = vst.msk [vmem:[#allocation3 + $0xd0] sm:$0xff] %vm1796_vm9, %v1753_v25 }
 0x260   : > { %v2491_v53 = vand.u32 4294901760, %v2490_v17 }
 0x261   : > { %v986_v51 = vpop.permute.xlu0 %985 }
 0x262   : > { %v1177_v0 = vpop.permute.xlu1 %1176  ;;  %9553 = vmatmul.mubr.f32.gmra.mrb[24].mxu0 %v2491_v53  ;;  %1053 = vst.msk [vmem:[#allocation3 + $0xe8] sm:$0xff] %vm1023_vm5, %v986_v51 }
 0x263   : > { %1245 = vst.msk [vmem:[#allocation3 + $0xe0] sm:$0xff] %vm1216_vm6, %v1177_v0 }
 0x265   : > { %v1755_v16 = vpop.permute.xlu0 %1754 }
 0x266   : > { %v1946_v43 = vpop.permute.xlu1 %1945  ;;  %1824 = vst.msk [vmem:[#allocation3 + $0xd8] sm:$0xff] %vm1796_vm9, %v1755_v16 }
 0x267   : > { %2016 = vst.msk [vmem:[#allocation3 + $0xd0] sm:$0xff] %vm1989_vm10, %v1946_v43 }
 0x269   : > { %v602_v8 = vpop.permute.xlu0 %601 }
 0x26a   : > { %v1179_v50 = vpop.permute.xlu1 %1178  ;;  %668 = vst.msk [vmem:[#allocation3 + $0xf0] sm:$0xff] %vm637_vm3, %v602_v8 }
 0x26b   : > { %1246 = vst.msk [vmem:[#allocation3 + $0xe8] sm:$0xff] %vm1216_vm6, %v1179_v50 }
 0x26d   : > { %v1370_v25 = vpop.permute.xlu0 %1369 }
 0x26e   : > { %v1948_v3 = vpop.permute.xlu1 %1947  ;;  %v2048_v17 = vld [vmem:[#allocation3 + $0xd0] sm:$0xff]  ;;  %1438 = vst.msk [vmem:[#allocation3 + $0xe0] sm:$0xff] %vm1409_vm7, %v1370_v25 }
 0x26f   : > { %2017 = vst.msk [vmem:[#allocation3 + $0xd8] sm:$0xff] %vm1989_vm10, %v1948_v3  ;;  %v2146_v53 = vsel %vm2066_vm11, %v2048_v17, 0 }
 0x270   : > { %v12072_v51 = vand.u32 4294901760, %v2146_v53 }
 0x271   : > { %v604_v0 = vpop.permute.xlu0 %603 }
 0x272   : > { %15259 = vst [vmem:[#allocation61_spill] sm:$0xff] %v12072_v51  ;;  %v795_v16 = vpop.permute.xlu1 %794  ;;  %v12075_v43 = vsub.f32 %v2146_v53, %v12072_v51  ;;  %669 = vst.msk [vmem:[#allocation3 + $0xf8] sm:$0xff] %vm637_vm3, %v604_v0 }
 0x273   : > { %861 = vst.msk [vmem:[#allocation3 + $0xf0] sm:$0xff] %vm830_vm4, %v795_v16 }
 0x274   : > { %15260 = vst [vmem:[#allocation62_spill] sm:$0xff] %v12075_v43  ;;  %v15016_v50 = vand.u32 4294901760, %v12075_v43 }
 0x275   : > { %v1372_v8 = vpop.permute.xlu0 %1371 }
 0x276   : > { %v1564_v24 = vpop.permute.xlu1 %1563  ;;  %v2500_v25 = vsub.f32 %v12075_v43, %v15016_v50  ;;  %v2049_v3 = vld [vmem:[#allocation3 + $0xd8] sm:$0xff]  ;;  %1439 = vst.msk [vmem:[#allocation3 + $0xe8] sm:$0xff] %vm1409_vm7, %v1372_v8 }
 0x277   : > { %1632 = vst.msk [vmem:[#allocation3 + $0xe0] sm:$0xff] %vm1603_vm8, %v1564_v24  ;;  %v2149_v17 = vsel %vm2066_vm11, %v2049_v3, 0 }
 0x278   : > { %v2501_v53 = vand.u32 4294901760, %v2500_v25  ;;  %v12086_v5 = vand.u32 4294901760, %v2149_v17 }
 0x279   : > { %v797_v0 = vpop.permute.xlu0 %796 }
 0x27a   : > { %15261 = vst [vmem:[#allocation63_spill] sm:$0xff] %v12086_v5  ;;  %v988_v16 = vpop.permute.xlu1 %987  ;;  %9555 = vmatprep.mubr.f32.mxu0 %v2501_v53  ;;  %v12089_v26 = vsub.f32 %v2149_v17, %v12086_v5  ;;  %862 = vst.msk [vmem:[#allocation3 + $0xf8] sm:$0xff] %vm830_vm4, %v797_v0 }
 0x27b   : > { %1054 = vst.msk [vmem:[#allocation3 + $0xf0] sm:$0xff] %vm1023_vm5, %v988_v16 }
 0x27c   : > { %15262 = vst [vmem:[#allocation64_spill] sm:$0xff] %v12089_v26  ;;  %v15019_v50 = vand.u32 4294901760, %v12089_v26 }
 0x27d   : > { %v1566_v8 = vpop.permute.xlu0 %1565 }
 0x27e   : > { %v1757_v43 = vpop.permute.xlu1 %1756  ;;  %v2510_v24 = vsub.f32 %v12089_v26, %v15019_v50  ;;  %1633 = vst.msk [vmem:[#allocation3 + $0xe8] sm:$0xff] %vm1603_vm8, %v1566_v8 }
 0x27f   : > { %1825 = vst.msk [vmem:[#allocation3 + $0xe0] sm:$0xff] %vm1796_vm9, %v1757_v43 }
 0x280   : > { %v2511_v25 = vand.u32 4294901760, %v2510_v24 }
 0x281   : > { %v990_v3 = vpop.permute.xlu0 %989 }
 0x282   : > { %v1181_v17 = vpop.permute.xlu1 %1180  ;;  %9556 = vmatmul.mubr.f32.gmra.mrb[26].mxu0 %v2511_v25  ;;  %1055 = vst.msk [vmem:[#allocation3 + $0xf8] sm:$0xff] %vm1023_vm5, %v990_v3 }
 0x283   : > { %1247 = vst.msk [vmem:[#allocation3 + $0xf0] sm:$0xff] %vm1216_vm6, %v1181_v17 }
 0x285   : > { %v1759_v53 = vpop.permute.xlu0 %1758 }
 0x286   : > { %v1950_v0 = vpop.permute.xlu1 %1949  ;;  %1826 = vst.msk [vmem:[#allocation3 + $0xe8] sm:$0xff] %vm1796_vm9, %v1759_v53 }
 0x287   : > { %2018 = vst.msk [vmem:[#allocation3 + $0xe0] sm:$0xff] %vm1989_vm10, %v1950_v0 }
 0x289   : > { %v1183_v16 = vpop.permute.xlu0 %1182 }
 0x28a   : > { %v1374_v50 = vpop.permute.xlu1 %1373  ;;  %1248 = vst.msk [vmem:[#allocation3 + $0xf8] sm:$0xff] %vm1216_vm6, %v1183_v16 }
 0x28b   : > { %1440 = vst.msk [vmem:[#allocation3 + $0xf0] sm:$0xff] %vm1409_vm7, %v1374_v50 }
 0x28d   : > { %v1952_v43 = vpop.permute.xlu0 %1951 }
 0x28e   : > { %v1376_v8 = vpop.permute.xlu1 %1375  ;;  %v2050_v24 = vld [vmem:[#allocation3 + $0xe0] sm:$0xff]  ;;  %2019 = vst.msk [vmem:[#allocation3 + $0xe8] sm:$0xff] %vm1989_vm10, %v1952_v43 }
 0x28f   : > { %1441 = vst.msk [vmem:[#allocation3 + $0xf8] sm:$0xff] %vm1409_vm7, %v1376_v8  ;;  %v2152_v25 = vsel %vm2066_vm11, %v2050_v24, 0 }
 0x290   : > { %v12108_v3 = vand.u32 4294901760, %v2152_v25 }
 0x291   : > { %v1568_v17 = vpop.permute.xlu0 %1567 }
 0x292   : > { %15263 = vst [vmem:[#allocation65_spill] sm:$0xff] %v12108_v3  ;;  %v1570_v53 = vpop.permute.xlu1 %1569  ;;  %v12111_v0 = vsub.f32 %v2152_v25, %v12108_v3  ;;  %1634 = vst.msk [vmem:[#allocation3 + $0xf0] sm:$0xff] %vm1603_vm8, %v1568_v17 }
 0x293   : > { %1635 = vst.msk [vmem:[#allocation3 + $0xf8] sm:$0xff] %vm1603_vm8, %v1570_v53 }
 0x294   : > { %15264 = vst [vmem:[#allocation66_spill] sm:$0xff] %v12111_v0  ;;  %v15026_v50 = vand.u32 4294901760, %v12111_v0 }
 0x295   : > { %v1761_v16 = vpop.permute.xlu0 %1760  ;;  %v2051_v8 = vld [vmem:[#allocation3 + $0xe8] sm:$0xff] }
 0x296   : > { %v1763_v26 = vpop.permute.xlu1 %1762  ;;  %v2520_v43 = vsub.f32 %v12111_v0, %v15026_v50  ;;  %1827 = vst.msk [vmem:[#allocation3 + $0xf0] sm:$0xff] %vm1796_vm9, %v1761_v16  ;;  %v2155_v24 = vsel %vm2066_vm11, %v2051_v8, 0 }
 0x297   : > { %1828 = vst.msk [vmem:[#allocation3 + $0xf8] sm:$0xff] %vm1796_vm9, %v1763_v26  ;;  %v12122_v31 = vand.u32 4294901760, %v2155_v24 }
 0x298   : > { %v2521_v25 = vand.u32 4294901760, %v2520_v43 }
 0x299   : > { %15265 = vst [vmem:[#allocation67_spill] sm:$0xff] %v12122_v31  ;;  %v1954_v17 = vpop.permute.xlu0 %1953  ;;  %v12125_v52 = vsub.f32 %v2155_v24, %v12122_v31 }
 0x29a   : > { %v1956_v53 = vpop.permute.xlu1 %1955  ;;  %9558 = vmatprep.mubr.f32.mxu0 %v2521_v25  ;;  %2020 = vst.msk [vmem:[#allocation3 + $0xf0] sm:$0xff] %vm1989_vm10, %v1954_v17 }
 0x29b   : > { %15266 = vst [vmem:[#allocation68_spill] sm:$0xff] %v12125_v52  ;;  %2021 = vst.msk [vmem:[#allocation3 + $0xf8] sm:$0xff] %vm1989_vm10, %v1956_v53  ;;  %v15031_v50 = vand.u32 4294901760, %v12125_v52 }
 0x29d   : > { %v2530_v26 = vsub.f32 %v12125_v52, %v15031_v50 }
 0x29f   : > { %v2531_v16 = vand.u32 4294901760, %v2530_v26 }
 0x2a1   : > { %9559 = vmatmul.mubr.f32.gmra.mrb[28].mxu0 %v2531_v16  ;;  %v2052_v43 = vld [vmem:[#allocation3 + $0xf0] sm:$0xff] }
 0x2a2   : > { %v2053_v8 = vld [vmem:[#allocation3 + $0xf8] sm:$0xff]  ;;  %v2158_v0 = vsel %vm2066_vm11, %v2052_v43, 0 }
 0x2a3   : > { %v2161_v25 = vsel %vm2066_vm11, %v2053_v8, 0  ;;  %v12135_v24 = vand.u32 4294901760, %v2158_v0 }
 0x2a4   : > { %v12137_v9 = vand.u32 4294901760, %v2161_v25 }
 0x2a5   : > { %15267 = vst [vmem:[#allocation69_spill] sm:$0xff] %v12135_v24  ;;  %v12140_v17 = vsub.f32 %v2158_v0, %v12135_v24  ;;  %v15274_v0 = vld [vmem:[#allocation41_spill] sm:$0xff] }
 0x2a6   : > { %15268 = vst [vmem:[#allocation70_spill] sm:$0xff] %v12137_v9  ;;  %v12143_v53 = vsub.f32 %v2161_v25, %v12137_v9  ;;  %v15275_v25 = vld [vmem:[#allocation43_spill] sm:$0xff] }
 0x2a7   : > { %v15035_v50 = vand.u32 4294901760, %v12140_v17 }
 0x2a8   : > { %v15034_v26 = vand.u32 4294901760, %v12143_v53 }
 0x2a9   : > { %v2540_v16 = vsub.f32 %v12140_v17, %v15035_v50  ;;  %v15282_v50 = vld [vmem:[#allocation60_spill] sm:$0xff] }
 0x2aa   : > { %v2550_v43 = vsub.f32 %v12143_v53, %v15034_v26  ;;  %v15281_v26 = vld [vmem:[#allocation58_spill] sm:$0xff] }
 0x2ab   : > { %v2541_v8 = vand.u32 4294901760, %v2540_v16  ;;  %v15276_v16 = vld [vmem:[#allocation45_spill] sm:$0xff] }
 0x2ac   : > { %v2551_v52 = vand.u32 4294901760, %v2550_v43  ;;  %v15277_v43 = vld [vmem:[#allocation49_spill] sm:$0xff] }
 0x2ad   : > { %9561 = vmatprep.mubr.f32.mxu0 %v2541_v8  ;;  %v15278_v8 = vld [vmem:[#allocation51_spill] sm:$0xff] }
 0x2ae   : > { %9562 = vmatmul.mubr.f32.gmra.mrb[30].mxu0 %v2551_v52  ;;  %v15269_v52 = vand.u32 4294901760, %v11840_v23  ;;  %v15271_v23 = vld [vmem:[#allocation38_spill] sm:$0xff] }
 0x2af   : > { %9574 = vmatprep.mubr.f32.mxu0 %v11210_v38 }
 0x2b2   : > { %9575 = vmatmul.mubr.f32.vlgmr.msra.gmra.mrb[0].mxu0 %v11228_v48 }
 0x2b3   : > { %10221 = vmatpush3.bf16.msra.mxu0 %v11995_v11  ;;  %9577 = vmatprep.mubr.f32.mxu0 %v11288_v33 }
 0x2b4   : > { %10223 = vmatprep.subr.bf16.mxu0 %v12029_v55 }
 0x2b6   : > { %9578 = vmatmul.mubr.f32.gmra.mrb[2].mxu0 %v11306_v46 }
 0x2b7   : > { %9580 = vmatprep.mubr.f32.mxu0 %v11366_v63  ;;  %10225 = vmatpush3.bf16.msra.mxu0 %v12029_v55  ;;  %v15273_v55 = vld [vmem:[#allocation40_spill] sm:$0xff] }
 0x2b8   : > { %9630 = vmatprep.subr.mxu0 %v11961_v2 }
 0x2ba   : > { %9581 = vmatmul.mubr.f32.gmra.mrb[4].mxu0 %v11384_v10 }
 0x2bb   : > { %9583 = vmatprep.mubr.f32.mxu0 %v11444_v45  ;;  %9631 = vmatpush3.msra.mxu0 %v11961_v2  ;;  %v15270_v2 = vand.u32 4294901760, %v11847_v40  ;;  %v15272_v40 = vld [vmem:[#allocation39_spill] sm:$0xff] }
 0x2bc   : > { %10227 = vmatprep.subr.bf16.mxu0 %v10982_v54 }
 0x2bd   : > { %v10234_v11 = vpack.c.bf16 %v15270_v2, %v15269_v52  ;;  %v15279_v52 = vld [vmem:[#allocation54_spill] sm:$0xff]  ;;  %v15280_v2 = vld [vmem:[#allocation56_spill] sm:$0xff] }
 0x2be   : > { %9584 = vmatmul.mubr.f32.gmra.mrb[6].mxu0 %v11462_v34 }
 0x2bf   : > { %9586 = vmatprep.mubr.f32.mxu0 %v11522_v6 }
 0x2c2   : > { %9587 = vmatmul.mubr.f32.gmra.mrb[8].mxu0 %v11540_v35 }
 0x2c3   : > { %9589 = vmatprep.mubr.f32.mxu0 %v11600_v39 }
 0x2c6   : > { %9590 = vmatmul.mubr.f32.gmra.mrb[10].mxu0 %v11618_v59 }
 0x2c7   : > { %9592 = vmatprep.mubr.f32.mxu0 %v11670_v13 }
 0x2ca   : > { %9593 = vmatmul.mubr.f32.gmra.mrb[12].mxu0 %v11688_v18 }
 0x2cb   : > { %9595 = vmatprep.mubr.f32.mxu0 %v11726_v60 }
 0x2ce   : > { %9596 = vmatmul.mubr.f32.gmra.mrb[14].mxu0 %v11744_v57 }
 0x2cf   : > { %9598 = vmatprep.mubr.f32.mxu0 %v11782_v28 }
 0x2d2   : > { %9599 = vmatmul.mubr.f32.gmra.mrb[16].mxu0 %v11800_v30 }
 0x2d3   : > { %9601 = vmatprep.mubr.f32.mxu0 %v11852_v37  ;;  %v15295_v37 = vand.u32 4294901760, %v11369_v47 }
 0x2d6   : > { %9602 = vmatmul.mubr.f32.gmra.mrb[18].mxu0 %v11878_v32  ;;  %v15294_v32 = vand.u32 4294901760, %v11312_v22 }
 0x2d7   : > { %9604 = vmatprep.mubr.f32.mxu0 %v11934_v58  ;;  %v15293_v58 = vand.u32 4294901760, %v11291_v14 }
 0x2da   : > { %9605 = vmatmul.mubr.f32.gmra.mrb[20].mxu0 %v11952_v15  ;;  %v15292_v15 = vand.u32 4294901760, %v11234_v19 }
 0x2db   : > { %9607 = vmatprep.mubr.f32.mxu0 %v11991_v56 }
 0x2de   : > { %9608 = vmatmul.mubr.f32.gmra.mrb[22].mxu0 %v12010_v12 }
 0x2df   : > { %9610 = vmatprep.mubr.f32.mxu0 %v12036_v1  ;;  %v15290_v1 = vld [vmem:[#allocation47_spill] sm:$0xff] }
 0x2e0   : > { %v15291_v12 = vand.u32 4294901760, %v15290_v1 }
 0x2e2   : > { %9611 = vmatmul.mubr.f32.gmra.mrb[24].mxu0 %v12050_v41 }
 0x2e3   : > { %9613 = vmatprep.mubr.f32.mxu0 %v12072_v51  ;;  %v15288_v51 = vld [vmem:[#allocation46_spill] sm:$0xff] }
 0x2e4   : > { %v15289_v41 = vand.u32 4294901760, %v15288_v51 }
 0x2e6   : > { %9614 = vmatmul.mubr.f32.gmra.mrb[26].mxu0 %v12086_v5  ;;  %v15287_v5 = vand.u32 4294901760, %v11213_v62  ;;  %v10238_v56 = vpack.c.bf16 %v15291_v12, %v15289_v41  ;;  %v15315_v12 = vand.u32 4294901760, %v15280_v2  ;;  %v15316_v41 = vand.u32 4294901760, %v15281_v26 }
 0x2e7   : > { %9616 = vmatprep.mubr.f32.mxu0 %v12108_v3  ;;  %v15286_v3 = vld [vmem:[#allocation68_spill] sm:$0xff] }
 0x2ea   : > { %9617 = vmatmul.mubr.f32.gmra.mrb[28].mxu0 %v12122_v31  ;;  %v15285_v31 = vld [vmem:[#allocation66_spill] sm:$0xff] }
 0x2eb   : > { %9619 = vmatprep.mubr.f32.mxu0 %v12135_v24  ;;  %v15284_v24 = vld [vmem:[#allocation64_spill] sm:$0xff] }
 0x2ec   : > { %v15319_v51 = vand.u32 4294901760, %v15284_v24 }
 0x2ee   : > { %9620 = vmatmul.mubr.f32.gmra.mrb[30].mxu0 %v12137_v9  ;;  %v15283_v9 = vld [vmem:[#allocation62_spill] sm:$0xff] }
 0x2ef   : > { %9632 = vmatprep.mubr.f32.mxu0 %v11213_v62  ;;  %v15296_v62 = vld [vmem:[#allocation52_spill] sm:$0xff]  ;;  %v15318_v1 = vand.u32 4294901760, %v15283_v9 }
 0x2f2   : > { %9633 = vmatmul.mubr.f32.vlgmr.msra.gmra.mrb[0].mxu0 %v11234_v19  ;;  %v15298_v19 = vand.u32 4294901760, %v11447_v44 }
 0x2f3   : > { %10229 = vmatpush3.bf16.msra.mxu0 %v10982_v54  ;;  %9635 = vmatprep.mubr.f32.mxu0 %v11291_v14  ;;  %v15299_v14 = vand.u32 4294901760, %v11468_v27 }
 0x2f4   : > { %10231 = vmatprep.subr.bf16.mxu0 %v11007_v61 }
 0x2f6   : > { %9636 = vmatmul.mubr.f32.gmra.mrb[2].mxu0 %v11312_v22  ;;  %v15300_v22 = vand.u32 4294901760, %v11525_v36 }
 0x2f7   : > { %9638 = vmatprep.mubr.f32.mxu0 %v11369_v47  ;;  %10233 = vmatpush3.bf16.msra.mxu0 %v11007_v61  ;;  %v15301_v47 = vand.u32 4294901760, %v11546_v21 }
 0x2f8   : > { %9688 = vmatprep.subr.mxu0 %v11024_v4 }
 0x2fa   : > { %9639 = vmatmul.mubr.f32.gmra.mrb[4].mxu0 %v11390_v42 }
 0x2fb   : > { %9641 = vmatprep.mubr.f32.mxu0 %v11447_v44  ;;  %9689 = vmatpush3.msra.mxu0 %v11024_v4  ;;  %v15304_v44 = vand.u32 4294901760, %v11673_v29 }
 0x2fc   : > { %10235 = vmatprep.subr.bf16.mxu0 %v10234_v11 }
 0x2fe   : > { %9642 = vmatmul.mubr.f32.gmra.mrb[6].mxu0 %v11468_v27  ;;  %v15306_v27 = vand.u32 4294901760, %v15271_v23 }
 0x2ff   : > { %9644 = vmatprep.mubr.f32.mxu0 %v11525_v36  ;;  %v15307_v36 = vand.u32 4294901760, %v15272_v40 }
 0x302   : > { %9645 = vmatmul.mubr.f32.gmra.mrb[8].mxu0 %v11546_v21  ;;  %v15308_v21 = vand.u32 4294901760, %v15273_v55 }
 0x303   : > { %9647 = vmatprep.mubr.f32.mxu0 %v11603_v49 }
 0x306   : > { %9648 = vmatmul.mubr.f32.gmra.mrb[10].mxu0 %v11624_v20 }
 0x307   : > { %9650 = vmatprep.mubr.f32.mxu0 %v11673_v29  ;;  %v15311_v29 = vand.u32 4294901760, %v15276_v16 }
 0x30a   : > { %9651 = vmatmul.mubr.f32.gmra.mrb[12].mxu0 %v11691_v7 }
 0x30b   : > { %9653 = vmatprep.mubr.f32.mxu0 %v15271_v23  ;;  %v15321_v23 = vand.u32 4294901760, %v15286_v3 }
 0x30e   : > { %9654 = vmatmul.mubr.f32.gmra.mrb[14].mxu0 %v15272_v40  ;;  %v15322_v40 = vand.u32 4294901760, %v12140_v17 }
 0x30f   : > { %9656 = vmatprep.mubr.f32.mxu0 %v15273_v55  ;;  %v15333_v55 = vld [vmem:[#allocation63_spill] sm:$0xff] }
 0x312   : > { %9657 = vmatmul.mubr.f32.gmra.mrb[16].mxu0 %v15274_v0 }
 0x313   : > { %9659 = vmatprep.mubr.f32.mxu0 %v15275_v25 }
 0x316   : > { %9660 = vmatmul.mubr.f32.gmra.mrb[18].mxu0 %v15276_v16  ;;  %v15336_v16 = vld [vmem:[#allocation69_spill] sm:$0xff] }
 0x317   : > { %9662 = vmatprep.mubr.f32.mxu0 %v15277_v43 }
 0x31a   : > { %9663 = vmatmul.mubr.f32.gmra.mrb[20].mxu0 %v15278_v8 }
 0x31b   : > { %9665 = vmatprep.mubr.f32.mxu0 %v15279_v52 }
 0x31e   : > { %9666 = vmatmul.mubr.f32.gmra.mrb[22].mxu0 %v15280_v2 }
 0x31f   : > { %9668 = vmatprep.mubr.f32.mxu0 %v15281_v26  ;;  %v15323_v26 = vand.u32 4294901760, %v12143_v53 }
 0x322   : > { %9669 = vmatmul.mubr.f32.gmra.mrb[24].mxu0 %v15282_v50 }
 0x323   : > { %9671 = vmatprep.mubr.f32.mxu0 %v15283_v9  ;;  %v15327_v9 = vld [vmem:[#allocation50_spill] sm:$0xff] }
 0x326   : > { %9672 = vmatmul.mubr.f32.gmra.mrb[26].mxu0 %v15284_v24  ;;  %v15330_v24 = vld [vmem:[#allocation57_spill] sm:$0xff] }
 0x327   : > { %9674 = vmatprep.mubr.f32.mxu0 %v15285_v31 }
 0x32a   : > { %9675 = vmatmul.mubr.f32.gmra.mrb[28].mxu0 %v15286_v3  ;;  %v15329_v3 = vld [vmem:[#allocation55_spill] sm:$0xff] }
 0x32b   : > { %9677 = vmatprep.mubr.f32.mxu0 %v12140_v17  ;;  %v15331_v17 = vld [vmem:[#allocation59_spill] sm:$0xff] }
 0x32e   : > { %9678 = vmatmul.mubr.f32.gmra.mrb[30].mxu0 %v12143_v53  ;;  %v15332_v53 = vld [vmem:[#allocation61_spill] sm:$0xff] }
 0x32f   : > { %9690 = vmatprep.mubr.f32.mxu0 %v15287_v5  ;;  %v15297_v5 = vand.u32 4294901760, %v11390_v42  ;;  %v15303_v42 = vand.u32 4294901760, %v11624_v20  ;;  %v15310_v20 = vand.u32 4294901760, %v15275_v25  ;;  %v15335_v25 = vld [vmem:[#allocation67_spill] sm:$0xff] }
 0x332   : > { %9691 = vmatmul.mubr.f32.vlgmr.msra.gmra.mrb[0].mxu0 %v15292_v15  ;;  %v15314_v15 = vand.u32 4294901760, %v15279_v52 }
 0x333   : > { %10237 = vmatpush3.bf16.msra.mxu0 %v10234_v11  ;;  %9693 = vmatprep.mubr.f32.mxu0 %v15293_v58  ;;  %v15313_v58 = vand.u32 4294901760, %v15278_v8  ;;  %v15320_v11 = vand.u32 4294901760, %v15285_v31  ;;  %v15328_v31 = vld [vmem:[#allocation53_spill] sm:$0xff] }
 0x334   : > { %10239 = vmatprep.subr.bf16.mxu0 %v10238_v56 }
 0x336   : > { %9694 = vmatmul.mubr.f32.gmra.mrb[2].mxu0 %v15294_v32  ;;  %v15305_v32 = vand.u32 4294901760, %v11691_v7  ;;  %v15312_v7 = vand.u32 4294901760, %v15277_v43  ;;  %v15337_v43 = vld [vmem:[#allocation70_spill] sm:$0xff] }
 0x337   : > { %9696 = vmatprep.mubr.f32.mxu0 %v15295_v37  ;;  %10241 = vmatpush3.bf16.msra.mxu0 %v10238_v56  ;;  %v15302_v37 = vand.u32 4294901760, %v11603_v49  ;;  %v15309_v49 = vand.u32 4294901760, %v15274_v0  ;;  %v15317_v56 = vand.u32 4294901760, %v15282_v50  ;;  %v10725_v50 = vmov -inf   ;;  %v15334_v0 = vld [vmem:[#allocation65_spill] sm:$0xff] }
 0x338   : > { %9746 = vmatprep.subr.mxu0 %v15296_v62  ;;  %228 = vst.msk [vmem:[#allocation4 + $0x8] sm:$0xff] %vm171_vm0, %v10725_v50  ;;  %230 = vst.msk [vmem:[#allocation4 + $0x18] sm:$0xff] %vm171_vm0, %v10725_v50 }
 0x339   : > { %232 = vst.msk [vmem:[#allocation4 + $0x28] sm:$0xff] %vm171_vm0, %v10725_v50  ;;  %227 = vst.msk [vmem:[#allocation4] sm:$0xff] %vm171_vm0, %v10725_v50 }
 0x33a   : > { %9697 = vmatmul.mubr.f32.gmra.mrb[4].mxu0 %v15297_v5  ;;  %229 = vst.msk [vmem:[#allocation4 + $0x10] sm:$0xff] %vm171_vm0, %v10725_v50  ;;  %231 = vst.msk [vmem:[#allocation4 + $0x20] sm:$0xff] %vm171_vm0, %v10725_v50 }
 0x33b   : > { %9699 = vmatprep.mubr.f32.mxu0 %v15298_v19  ;;  %9747 = vmatpush3.msra.mxu0 %v15296_v62  ;;  %233 = vst.msk [vmem:[#allocation4 + $0x30] sm:$0xff] %vm171_vm0, %v10725_v50  ;;  %234 = vst.msk [vmem:[#allocation4 + $0x38] sm:$0xff] %vm171_vm0, %v10725_v50 }
 0x33c   : > { %10243 = vmatprep.subr.bf16.mxu0 %v10982_v54  ;;  %235 = vst.msk [vmem:[#allocation4 + $0x40] sm:$0xff] %vm171_vm0, %v10725_v50  ;;  %236 = vst.msk [vmem:[#allocation4 + $0x48] sm:$0xff] %vm171_vm0, %v10725_v50 }
 0x33d   : > { %237 = vst.msk [vmem:[#allocation4 + $0x50] sm:$0xff] %vm171_vm0, %v10725_v50  ;;  %238 = vst.msk [vmem:[#allocation4 + $0x58] sm:$0xff] %vm171_vm0, %v10725_v50 }
 0x33e   : > { %9700 = vmatmul.mubr.f32.gmra.mrb[6].mxu0 %v15299_v14  ;;  %239 = vst.msk [vmem:[#allocation4 + $0x60] sm:$0xff] %vm171_vm0, %v10725_v50  ;;  %240 = vst.msk [vmem:[#allocation4 + $0x68] sm:$0xff] %vm171_vm0, %v10725_v50 }
 0x33f   : > { %9702 = vmatprep.mubr.f32.mxu0 %v15300_v22  ;;  %241 = vst.msk [vmem:[#allocation4 + $0x70] sm:$0xff] %vm171_vm0, %v10725_v50  ;;  %242 = vst.msk [vmem:[#allocation4 + $0x78] sm:$0xff] %vm171_vm0, %v10725_v50 }
 0x340   : > { %243 = vst.msk [vmem:[#allocation4 + $0x80] sm:$0xff] %vm171_vm0, %v10725_v50  ;;  %244 = vst.msk [vmem:[#allocation4 + $0x88] sm:$0xff] %vm171_vm0, %v10725_v50 }
 0x341   : > { %245 = vst.msk [vmem:[#allocation4 + $0x90] sm:$0xff] %vm171_vm0, %v10725_v50  ;;  %246 = vst.msk [vmem:[#allocation4 + $0x98] sm:$0xff] %vm171_vm0, %v10725_v50 }
 0x342   : > { %9703 = vmatmul.mubr.f32.gmra.mrb[8].mxu0 %v15301_v47  ;;  %247 = vst.msk [vmem:[#allocation4 + $0xa0] sm:$0xff] %vm171_vm0, %v10725_v50  ;;  %248 = vst.msk [vmem:[#allocation4 + $0xa8] sm:$0xff] %vm171_vm0, %v10725_v50 }
 0x343   : > { %9705 = vmatprep.mubr.f32.mxu0 %v15302_v37  ;;  %249 = vst.msk [vmem:[#allocation4 + $0xb0] sm:$0xff] %vm171_vm0, %v10725_v50  ;;  %250 = vst.msk [vmem:[#allocation4 + $0xb8] sm:$0xff] %vm171_vm0, %v10725_v50 }
 0x344   : > { %251 = vst.msk [vmem:[#allocation4 + $0xc0] sm:$0xff] %vm171_vm0, %v10725_v50  ;;  %252 = vst.msk [vmem:[#allocation4 + $0xc8] sm:$0xff] %vm171_vm0, %v10725_v50 }
 0x345   : > { %253 = vst.msk [vmem:[#allocation4 + $0xd0] sm:$0xff] %vm171_vm0, %v10725_v50  ;;  %254 = vst.msk [vmem:[#allocation4 + $0xd8] sm:$0xff] %vm171_vm0, %v10725_v50 }
 0x346   : > { %9706 = vmatmul.mubr.f32.gmra.mrb[10].mxu0 %v15303_v42  ;;  %255 = vst.msk [vmem:[#allocation4 + $0xe0] sm:$0xff] %vm171_vm0, %v10725_v50  ;;  %256 = vst.msk [vmem:[#allocation4 + $0xe8] sm:$0xff] %vm171_vm0, %v10725_v50 }
 0x347   : > { %9708 = vmatprep.mubr.f32.mxu0 %v15304_v44  ;;  %257 = vst.msk [vmem:[#allocation4 + $0xf0] sm:$0xff] %vm171_vm0, %v10725_v50  ;;  %258 = vst.msk [vmem:[#allocation4 + $0xf8] sm:$0xff] %vm171_vm0, %v10725_v50 }
 0x348   : > { %259 = vst.msk [vmem:[#allocation4 + $0x100] sm:$0xff] %vm171_vm0, %v10725_v50  ;;  %260 = vst.msk [vmem:[#allocation4 + $0x108] sm:$0xff] %vm171_vm0, %v10725_v50 }
 0x349   : > { %261 = vst.msk [vmem:[#allocation4 + $0x110] sm:$0xff] %vm171_vm0, %v10725_v50  ;;  %262 = vst.msk [vmem:[#allocation4 + $0x118] sm:$0xff] %vm171_vm0, %v10725_v50 }
 0x34a   : > { %9709 = vmatmul.mubr.f32.gmra.mrb[12].mxu0 %v15305_v32  ;;  %263 = vst.msk [vmem:[#allocation4 + $0x120] sm:$0xff] %vm171_vm0, %v10725_v50  ;;  %264 = vst.msk [vmem:[#allocation4 + $0x128] sm:$0xff] %vm171_vm0, %v10725_v50 }
 0x34b   : > { %9711 = vmatprep.mubr.f32.mxu0 %v15306_v27  ;;  %265 = vst.msk [vmem:[#allocation4 + $0x130] sm:$0xff] %vm171_vm0, %v10725_v50  ;;  %266 = vst.msk [vmem:[#allocation4 + $0x138] sm:$0xff] %vm171_vm0, %v10725_v50 }
 0x34c   : > { %267 = vst.msk [vmem:[#allocation5] sm:$0xff] %vm171_vm0, %v10725_v50  ;;  %268 = vst.msk [vmem:[#allocation5 + $0x8] sm:$0xff] %vm171_vm0, %v10725_v50 }
 0x34d   : > { %271 = vst.msk [vmem:[#allocation5 + $0x18] sm:$0xff] %vm171_vm0, %v10725_v50  ;;  %272 = vst.msk [vmem:[#allocation5 + $0x20] sm:$0xff] %vm171_vm0, %v10725_v50 }
 0x34e   : > { %9712 = vmatmul.mubr.f32.gmra.mrb[14].mxu0 %v15307_v36  ;;  %274 = vst.msk [vmem:[#allocation5 + $0x30] sm:$0xff] %vm171_vm0, %v10725_v50  ;;  %275 = vst.msk [vmem:[#allocation5 + $0x38] sm:$0xff] %vm171_vm0, %v10725_v50 }
 0x34f   : > { %9714 = vmatprep.mubr.f32.mxu0 %v15308_v21  ;;  %277 = vst.msk [vmem:[#allocation5 + $0x48] sm:$0xff] %vm171_vm0, %v10725_v50  ;;  %278 = vst.msk [vmem:[#allocation5 + $0x50] sm:$0xff] %vm171_vm0, %v10725_v50 }
 0x350   : > { %280 = vst.msk [vmem:[#allocation5 + $0x60] sm:$0xff] %vm171_vm0, %v10725_v50  ;;  %281 = vst.msk [vmem:[#allocation5 + $0x68] sm:$0xff] %vm171_vm0, %v10725_v50 }
 0x351   : > { %283 = vst.msk [vmem:[#allocation5 + $0x78] sm:$0xff] %vm171_vm0, %v10725_v50  ;;  %284 = vst.msk [vmem:[#allocation5 + $0x80] sm:$0xff] %vm171_vm0, %v10725_v50 }
 0x352   : > { %9715 = vmatmul.mubr.f32.gmra.mrb[16].mxu0 %v15309_v49  ;;  %286 = vst.msk [vmem:[#allocation5 + $0x90] sm:$0xff] %vm171_vm0, %v10725_v50  ;;  %287 = vst.msk [vmem:[#allocation5 + $0x98] sm:$0xff] %vm171_vm0, %v10725_v50 }
 0x353   : > { %9717 = vmatprep.mubr.f32.mxu0 %v15310_v20  ;;  %289 = vst.msk [vmem:[#allocation5 + $0xa8] sm:$0xff] %vm171_vm0, %v10725_v50  ;;  %290 = vst.msk [vmem:[#allocation5 + $0xb0] sm:$0xff] %vm171_vm0, %v10725_v50 }
 0x354   : > { %292 = vst.msk [vmem:[#allocation5 + $0xc0] sm:$0xff] %vm171_vm0, %v10725_v50  ;;  %293 = vst.msk [vmem:[#allocation5 + $0xc8] sm:$0xff] %vm171_vm0, %v10725_v50 }
 0x355   : > { %295 = vst.msk [vmem:[#allocation5 + $0xd8] sm:$0xff] %vm171_vm0, %v10725_v50  ;;  %296 = vst.msk [vmem:[#allocation5 + $0xe0] sm:$0xff] %vm171_vm0, %v10725_v50 }
 0x356   : > { %9718 = vmatmul.mubr.f32.gmra.mrb[18].mxu0 %v15311_v29  ;;  %298 = vst.msk [vmem:[#allocation5 + $0xf0] sm:$0xff] %vm171_vm0, %v10725_v50  ;;  %299 = vst.msk [vmem:[#allocation5 + $0xf8] sm:$0xff] %vm171_vm0, %v10725_v50 }
 0x357   : > { %9720 = vmatprep.mubr.f32.mxu0 %v15312_v7  ;;  %301 = vst.msk [vmem:[#allocation5 + $0x108] sm:$0xff] %vm171_vm0, %v10725_v50  ;;  %302 = vst.msk [vmem:[#allocation5 + $0x110] sm:$0xff] %vm171_vm0, %v10725_v50 }
 0x358   : > { %304 = vst.msk [vmem:[#allocation5 + $0x120] sm:$0xff] %vm171_vm0, %v10725_v50  ;;  %305 = vst.msk [vmem:[#allocation5 + $0x128] sm:$0xff] %vm171_vm0, %v10725_v50 }
 0x359   : > { %307 = vst.msk [vmem:[#allocation5 + $0x138] sm:$0xff] %vm171_vm0, %v10725_v50  ;;  %308 = vst.msk [vmem:[#allocation5 + $0x140] sm:$0xff] %vm171_vm0, %v10725_v50 }
 0x35a   : > { %9721 = vmatmul.mubr.f32.gmra.mrb[20].mxu0 %v15313_v58  ;;  %310 = vst.msk [vmem:[#allocation5 + $0x150] sm:$0xff] %vm171_vm0, %v10725_v50  ;;  %311 = vst.msk [vmem:[#allocation5 + $0x158] sm:$0xff] %vm171_vm0, %v10725_v50 }
 0x35b   : > { %9723 = vmatprep.mubr.f32.mxu0 %v15314_v15  ;;  %313 = vst.msk [vmem:[#allocation5 + $0x168] sm:$0xff] %vm171_vm0, %v10725_v50  ;;  %314 = vst.msk [vmem:[#allocation5 + $0x170] sm:$0xff] %vm171_vm0, %v10725_v50 }
 0x35c   : > { %270 = vst.msk [vmem:[#allocation5 + $0x10] sm:$0xf] %vm269_vm12, %v10725_v50  ;;  %273 = vst.msk [vmem:[#allocation5 + $0x28] sm:$0xf] %vm269_vm12, %v10725_v50 }
 0x35d   : > { %276 = vst.msk [vmem:[#allocation5 + $0x40] sm:$0xf] %vm269_vm12, %v10725_v50  ;;  %279 = vst.msk [vmem:[#allocation5 + $0x58] sm:$0xf] %vm269_vm12, %v10725_v50 }
 0x35e   : > { %9724 = vmatmul.mubr.f32.gmra.mrb[22].mxu0 %v15315_v12  ;;  %282 = vst.msk [vmem:[#allocation5 + $0x70] sm:$0xf] %vm269_vm12, %v10725_v50  ;;  %285 = vst.msk [vmem:[#allocation5 + $0x88] sm:$0xf] %vm269_vm12, %v10725_v50 }
 0x35f   : > { %9726 = vmatprep.mubr.f32.mxu0 %v15316_v41  ;;  %288 = vst.msk [vmem:[#allocation5 + $0xa0] sm:$0xf] %vm269_vm12, %v10725_v50  ;;  %291 = vst.msk [vmem:[#allocation5 + $0xb8] sm:$0xf] %vm269_vm12, %v10725_v50 }
 0x360   : > { %294 = vst.msk [vmem:[#allocation5 + $0xd0] sm:$0xf] %vm269_vm12, %v10725_v50  ;;  %297 = vst.msk [vmem:[#allocation5 + $0xe8] sm:$0xf] %vm269_vm12, %v10725_v50 }
 0x361   : > { %300 = vst.msk [vmem:[#allocation5 + $0x100] sm:$0xf] %vm269_vm12, %v10725_v50  ;;  %303 = vst.msk [vmem:[#allocation5 + $0x118] sm:$0xf] %vm269_vm12, %v10725_v50 }
 0x362   : > { %9727 = vmatmul.mubr.f32.gmra.mrb[24].mxu0 %v15317_v56  ;;  %306 = vst.msk [vmem:[#allocation5 + $0x130] sm:$0xf] %vm269_vm12, %v10725_v50  ;;  %309 = vst.msk [vmem:[#allocation5 + $0x148] sm:$0xf] %vm269_vm12, %v10725_v50 }
 0x363   : > { %9729 = vmatprep.mubr.f32.mxu0 %v15318_v1  ;;  %312 = vst.msk [vmem:[#allocation5 + $0x160] sm:$0xf] %vm269_vm12, %v10725_v50  ;;  %315 = vst.msk [vmem:[#allocation5 + $0x178] sm:$0xf] %vm269_vm12, %v10725_v50 }
 0x366   : > { %9730 = vmatmul.mubr.f32.gmra.mrb[26].mxu0 %v15319_v51 }
 0x367   : > { %9732 = vmatprep.mubr.f32.mxu0 %v15320_v11 }
 0x36a   : > { %9733 = vmatmul.mubr.f32.gmra.mrb[28].mxu0 %v15321_v23 }
 0x36b   : > { %9735 = vmatprep.mubr.f32.mxu0 %v15322_v40 }
 0x36e   : > { %9736 = vmatmul.mubr.f32.gmra.mrb[30].mxu0 %v15323_v26 }
 0x36f   : > { %9748 = vmatprep.mubr.f32.mxu0 %v11210_v38 }
 0x372   : > { %9749 = vmatmul.mubr.f32.vlgmr.msra.gmra.mrb[0].mxu0 %v11228_v48 }
 0x373   : > { %10245 = vmatpush3.bf16.msra.mxu0 %v10982_v54  ;;  %9751 = vmatprep.mubr.f32.mxu0 %v11288_v33  ;;  %v15324_v54 = vld [vmem:[#allocation42_spill] sm:$0xff] }
 0x374   : > { %10247 = vmatprep.subr.bf16.mxu0 %v11007_v61 }
 0x376   : > { %9752 = vmatmul.mubr.f32.gmra.mrb[2].mxu0 %v11306_v46 }
 0x377   : > { %9754 = vmatprep.mubr.f32.mxu0 %v11366_v63  ;;  %10249 = vmatpush3.bf16.msra.mxu0 %v11007_v61  ;;  %v15325_v61 = vld [vmem:[#allocation44_spill] sm:$0xff] }
 0x378   : > { %9804 = vmatprep.subr.mxu0 %v11024_v4 }
 0x37a   : > { %9755 = vmatmul.mubr.f32.gmra.mrb[4].mxu0 %v11384_v10 }
 0x37b   : > { %9757 = vmatprep.mubr.f32.mxu0 %v11444_v45  ;;  %9805 = vmatpush3.msra.mxu0 %v11024_v4  ;;  %v15326_v4 = vld [vmem:[#allocation48_spill] sm:$0xff] }
 0x37e   : > { %9758 = vmatmul.mubr.f32.gmra.mrb[6].mxu0 %v11462_v34 }
 0x37f   : > { %9760 = vmatprep.mubr.f32.mxu0 %v11522_v6 }
 0x382   : > { %9761 = vmatmul.mubr.f32.gmra.mrb[8].mxu0 %v11540_v35 }
 0x383   : > { %9763 = vmatprep.mubr.f32.mxu0 %v11600_v39 }
 0x386   : > { %9764 = vmatmul.mubr.f32.gmra.mrb[10].mxu0 %v11618_v59 }
 0x387   : > { %9766 = vmatprep.mubr.f32.mxu0 %v11670_v13 }
 0x38a   : > { %9767 = vmatmul.mubr.f32.gmra.mrb[12].mxu0 %v11688_v18 }
 0x38b   : > { %9769 = vmatprep.mubr.f32.mxu0 %v11726_v60 }
 0x38e   : > { %9770 = vmatmul.mubr.f32.gmra.mrb[14].mxu0 %v11744_v57 }
 0x38f   : > { %9772 = vmatprep.mubr.f32.mxu0 %v11782_v28 }
 0x392   : > { %9773 = vmatmul.mubr.f32.gmra.mrb[16].mxu0 %v11800_v30 }
 0x393   : > { %9775 = vmatprep.mubr.f32.mxu0 %v15324_v54 }
 0x396   : > { %9776 = vmatmul.mubr.f32.gmra.mrb[18].mxu0 %v15325_v61 }
 0x397   : > { %9778 = vmatprep.mubr.f32.mxu0 %v15326_v4 }
 0x39a   : > { %9779 = vmatmul.mubr.f32.gmra.mrb[20].mxu0 %v15327_v9 }
 0x39b   : > { %9781 = vmatprep.mubr.f32.mxu0 %v15328_v31 }
 0x39e   : > { %9782 = vmatmul.mubr.f32.gmra.mrb[22].mxu0 %v15329_v3 }
 0x39f   : > { %9784 = vmatprep.mubr.f32.mxu0 %v15330_v24 }
 0x3a2   : > { %9785 = vmatmul.mubr.f32.gmra.mrb[24].mxu0 %v15331_v17 }
 0x3a3   : > { %9787 = vmatprep.mubr.f32.mxu0 %v15332_v53 }
 0x3a6   : > { %9788 = vmatmul.mubr.f32.gmra.mrb[26].mxu0 %v15333_v55 }
 0x3a7   : > { %9790 = vmatprep.mubr.f32.mxu0 %v15334_v0 }
 0x3aa   : > { %9791 = vmatmul.mubr.f32.gmra.mrb[28].mxu0 %v15335_v25 }
 0x3ab   : > { %9793 = vmatprep.mubr.f32.mxu0 %v15336_v16 }
 0x3ae   : > { %9794 = vmatmul.mubr.f32.gmra.mrb[30].mxu0 %v15337_v43 }
 0x3af   : > { %9806 = vmatprep.mubr.f32.mxu0 %v11210_v38  ;;  %v4770_v38 = vld [vmem:[#allocation2 + $0x1] sm:$0xff] }
 0x3b0   : > { %4834 = vrot.lane.b32.xlu0 %v4770_v38, %s10718_s19 }
 0x3b2   : > { %9807 = vmatmul.mubr.f32.vlgmr.msra.gmra.mrb[0].mxu0 %v11228_v48  ;;  %v4771_v48 = vld [vmem:[#allocation2 + $0x9] sm:$0xff] }
 0x3b3   : > { %9809 = vmatprep.mubr.f32.mxu0 %v11288_v33  ;;  %4836 = vrot.lane.b32.xlu1 %v4771_v48, %s10718_s19  ;;  %v4962_v33 = vld [vmem:[#allocation2 + $0x2] sm:$0xff] }
 0x3b4   : > { %5026 = vrot.lane.b32.xlu0 %v4962_v33, %s10717_s18  ;;  %v4706_v48 = vld [vmem:[#allocation2] sm:$0xff]  ;;  %v4707_v33 = vld [vmem:[#allocation2 + $0x8] sm:$0xff] }
 0x3b5   : > { %4738 = vst.msk [vmem:[#allocation3] sm:$0xff] %vm171_vm0, %v4706_v48  ;;  %4739 = vst.msk [vmem:[#allocation3 + $0x8] sm:$0xff] %vm171_vm0, %v4707_v33 }
 0x3b6   : > { %9810 = vmatmul.mubr.f32.gmra.mrb[2].mxu0 %v11306_v46  ;;  %v4963_v46 = vld [vmem:[#allocation2 + $0xa] sm:$0xff] }
 0x3b7   : > { %9812 = vmatprep.mubr.f32.mxu0 %v11366_v63  ;;  %5028 = vrot.lane.b32.xlu1 %v4963_v46, %s10717_s18  ;;  %v12555_v63 = vld [vmem:[%s14894_s2] ss:$0 sm:$0xff] }
 0x3ba   : > { %9813 = vmatmul.mubr.f32.gmra.mrb[4].mxu0 %v11384_v10 }
 0x3bb   : > { %9815 = vmatprep.mubr.f32.mxu0 %v11444_v45 }
 0x3be   : > { %9816 = vmatmul.mubr.f32.gmra.mrb[6].mxu0 %v11462_v34 }
 0x3bf   : > { %9818 = vmatprep.mubr.f32.mxu0 %v11522_v6 }
 0x3c2   : > { %9819 = vmatmul.mubr.f32.gmra.mrb[8].mxu0 %v11540_v35 }
 0x3c3   : > { %9821 = vmatprep.mubr.f32.mxu0 %v11600_v39 }
 0x3c6   : > { %9822 = vmatmul.mubr.f32.gmra.mrb[10].mxu0 %v11618_v59 }
 0x3c7   : > { %9824 = vmatprep.mubr.f32.mxu0 %v11670_v13 }
 0x3ca   : > { %9825 = vmatmul.mubr.f32.gmra.mrb[12].mxu0 %v11688_v18  ;;  %v4032_v18 = vld [vmem:[#allocation4 + $0x8] sm:$0xff] }
 0x3cb   : > { %9827 = vmatprep.mubr.f32.mxu0 %v11726_v60  ;;  %v4034_v60 = vld [vmem:[#allocation4 + $0x18] sm:$0xff] }
 0x3cc   : > { %v4097_v62 = vmax.f32 %v4032_v18, %v4034_v60 }
 0x3ce   : > { %9828 = vmatmul.mubr.f32.gmra.mrb[14].mxu0 %v11744_v57 }
 0x3cf   : > { %9830 = vmatprep.mubr.f32.mxu0 %v11782_v28  ;;  %v4031_v28 = vld [vmem:[#allocation4] sm:$0xff] }
 0x3d2   : > { %9831 = vmatmul.mubr.f32.gmra.mrb[16].mxu0 %v11800_v30  ;;  %v4033_v30 = vld [vmem:[#allocation4 + $0x10] sm:$0xff] }
 0x3d3   : > { %9833 = vmatprep.mubr.f32.mxu0 %v15324_v54  ;;  %v4096_v19 = vmax.f32 %v4031_v28, %v4033_v30 }
 0x3d6   : > { %9834 = vmatmul.mubr.f32.gmra.mrb[18].mxu0 %v15325_v61 }
 0x3d7   : > { %9836 = vmatprep.mubr.f32.mxu0 %v15326_v4 }
 0x3da   : > { %9837 = vmatmul.mubr.f32.gmra.mrb[20].mxu0 %v15327_v9 }
 0x3db   : > { %9839 = vmatprep.mubr.f32.mxu0 %v15328_v31 }
 0x3de   : > { %9840 = vmatmul.mubr.f32.gmra.mrb[22].mxu0 %v15329_v3 }
 0x3df   : > { %9842 = vmatprep.mubr.f32.mxu0 %v15330_v24 }
 0x3e2   : > { %9843 = vmatmul.mubr.f32.gmra.mrb[24].mxu0 %v15331_v17 }
 0x3e3   : > { %9845 = vmatprep.mubr.f32.mxu0 %v15332_v53 }
 0x3e6   : > { %9846 = vmatmul.mubr.f32.gmra.mrb[26].mxu0 %v15333_v55 }
 0x3e7   : > { %9848 = vmatprep.mubr.f32.mxu0 %v15334_v0 }
 0x3ea   : > { %9849 = vmatmul.mubr.f32.gmra.mrb[28].mxu0 %v15335_v25 }
 0x3eb   : > { %9851 = vmatprep.mubr.f32.mxu0 %v15336_v16 }
 0x3ee   : > { %9852 = vmatmul.mubr.f32.gmra.mrb[30].mxu0 %v15337_v43 }
 0x485   : > { %v9808_v10 = vpop.f32.mrb[0].mxu0 }
 0x486   : > { %v10298_v45 = vadd.f32 %v9808_v10, %v12555_v63  ;;  %v3808_v34 = vpop.f32.mrb[1].mxu0 }
 0x487   : > { %v10299_v6 = vadd.f32 %v12555_v63, %v3808_v34 }
 0x488   : > { %4000 = vst.msk [vmem:[#allocation4 + $0x28] sm:$0xff] %vm171_vm0, %v10298_v45 }
 0x489   : > { %3999 = vst.msk [vmem:[#allocation4 + $0x20] sm:$0xff] %vm171_vm0, %v10299_v6  ;;  %v9811_v35 = vpop.f32.mrb[2].mxu0 }
 0x48a   : > { %v10300_v39 = vadd.f32 %v9811_v35, %v12555_v63  ;;  %v3820_v59 = vpop.f32.mrb[3].mxu0 }
 0x48b   : > { %v10301_v13 = vadd.f32 %v12555_v63, %v3820_v59 }
 0x48c   : > { %4002 = vst.msk [vmem:[#allocation4 + $0x38] sm:$0xff] %vm171_vm0, %v10300_v39 }
 0x48d   : > { %4001 = vst.msk [vmem:[#allocation4 + $0x30] sm:$0xff] %vm171_vm0, %v10301_v13  ;;  %v9814_v57 = vpop.f32.mrb[4].mxu0 }
 0x48e   : > { %v10302_v8 = vadd.f32 %v9814_v57, %v12555_v63  ;;  %v3832_v52 = vpop.f32.mrb[5].mxu0 }
 0x48f   : > { %v10303_v2 = vadd.f32 %v12555_v63, %v3832_v52  ;;  %v4036_v5 = vld [vmem:[#allocation4 + $0x28] sm:$0xff] }
 0x490   : > { %4004 = vst.msk [vmem:[#allocation4 + $0x48] sm:$0xff] %vm171_vm0, %v10302_v8  ;;  %v4035_v22 = vld [vmem:[#allocation4 + $0x20] sm:$0xff]  ;;  %v4161_v32 = vmax.f32 %v4097_v62, %v4036_v5  ;;  %v4099_v49 = vmax.f32 %v4034_v60, %v4036_v5 }
 0x491   : > { %4003 = vst.msk [vmem:[#allocation4 + $0x40] sm:$0xff] %vm171_vm0, %v10303_v2  ;;  %v9817_v14 = vpop.f32.mrb[6].mxu0  ;;  %v4160_v36 = vmax.f32 %v4096_v19, %v4035_v22  ;;  %v4098_v58 = vmax.f32 %v4033_v30, %v4035_v22 }
 0x492   : > { %v10304_v47 = vadd.f32 %v9817_v14, %v12555_v63  ;;  %v3844_v37 = vpop.f32.mrb[7].mxu0 }
 0x493   : > { %v12570_v42 = vld [vmem:[#allocation4 + $0x38] sm:$0xff]  ;;  %v10305_v44 = vadd.f32 %v12555_v63, %v3844_v37 }
 0x494   : > { %v12573_v27 = vld [vmem:[#allocation4 + $0x30] sm:$0xff]  ;;  %4006 = vst.msk [vmem:[#allocation4 + $0x58] sm:$0xff] %vm171_vm0, %v10304_v47  ;;  %v4226_v20 = vmax.f32 %v4161_v32, %v12570_v42  ;;  %v4163_v56 = vmax.f32 %v4099_v49, %v12570_v42  ;;  %v4101_v26 = vmax.f32 %v4036_v5, %v12570_v42 }
 0x495   : > { %4005 = vst.msk [vmem:[#allocation4 + $0x50] sm:$0xff] %vm171_vm0, %v10305_v44  ;;  %v9820_v21 = vpop.f32.mrb[8].mxu0  ;;  %v4225_v15 = vmax.f32 %v4160_v36, %v12573_v27  ;;  %v4162_v11 = vmax.f32 %v4098_v58, %v12573_v27  ;;  %v4100_v4 = vmax.f32 %v4035_v22, %v12573_v27 }
 0x496   : > { %v10306_v29 = vadd.f32 %v9820_v21, %v12555_v63  ;;  %v3856_v7 = vpop.f32.mrb[9].mxu0 }
 0x497   : > { %v12580_v12 = vld [vmem:[#allocation4 + $0x48] sm:$0xff]  ;;  %v10307_v41 = vadd.f32 %v12555_v63, %v3856_v7 }
 0x498   : > { %v4291_v1 = vmax.f32 %v4226_v20, %v12580_v12  ;;  %v12585_v51 = vld [vmem:[#allocation4 + $0x40] sm:$0xff]  ;;  %4008 = vst.msk [vmem:[#allocation4 + $0x68] sm:$0xff] %vm171_vm0, %v10306_v29  ;;  %v4228_v50 = vmax.f32 %v4163_v56, %v12580_v12  ;;  %v4165_v24 = vmax.f32 %v4101_v26, %v12580_v12  ;;  %v4103_v34 = vmax.f32 %v12570_v42, %v12580_v12 }
 0x499   : > { %v4290_v23 = vmax.f32 %v4225_v15, %v12585_v51  ;;  %4007 = vst.msk [vmem:[#allocation4 + $0x60] sm:$0xff] %vm171_vm0, %v10307_v41  ;;  %v9823_v40 = vpop.f32.mrb[10].mxu0  ;;  %v4227_v9 = vmax.f32 %v4162_v11, %v12585_v51  ;;  %v4164_v55 = vmax.f32 %v4100_v4, %v12585_v51  ;;  %v4102_v39 = vmax.f32 %v12573_v27, %v12585_v51 }
 0x49a   : > { %4323 = vst.msk [vmem:[#allocation5 + $0xa] sm:$0xff] %vm171_vm0, %v4291_v1  ;;  %v10308_v54 = vadd.f32 %v9823_v40, %v12555_v63  ;;  %v3868_v61 = vpop.f32.mrb[11].mxu0 }
 0x49b   : > { %4322 = vst.msk [vmem:[#allocation5 + $0x2] sm:$0xff] %vm171_vm0, %v4290_v23  ;;  %v12598_v31 = vld [vmem:[#allocation4 + $0x58] sm:$0xff]  ;;  %v10309_v3 = vadd.f32 %v12555_v63, %v3868_v61 }
 0x49c   : > { %v4293_v17 = vmax.f32 %v4228_v50, %v12598_v31  ;;  %v12603_v53 = vld [vmem:[#allocation4 + $0x50] sm:$0xff]  ;;  %4010 = vst.msk [vmem:[#allocation4 + $0x78] sm:$0xff] %vm171_vm0, %v10308_v54  ;;  %v4230_v16 = vmax.f32 %v4165_v24, %v12598_v31  ;;  %v4167_v28 = vmax.f32 %v4103_v34, %v12598_v31  ;;  %v4105_v62 = vmax.f32 %v12580_v12, %v12598_v31 }
 0x49d   : > { %v4292_v0 = vmax.f32 %v4227_v9, %v12603_v53  ;;  %4009 = vst.msk [vmem:[#allocation4 + $0x70] sm:$0xff] %vm171_vm0, %v10309_v3  ;;  %v9826_v25 = vpop.f32.mrb[12].mxu0  ;;  %v4229_v46 = vmax.f32 %v4164_v55, %v12603_v53  ;;  %v4166_v5 = vmax.f32 %v4102_v39, %v12603_v53  ;;  %v4104_v29 = vmax.f32 %v12585_v51, %v12603_v53 }
 0x49e   : > { %4325 = vst.msk [vmem:[#allocation5 + $0x22] sm:$0xff] %vm171_vm0, %v4293_v17  ;;  %v10310_v43 = vadd.f32 %v9826_v25, %v12555_v63  ;;  %v3880_v38 = vpop.f32.mrb[13].mxu0 }
 0x49f   : > { %4324 = vst.msk [vmem:[#allocation5 + $0x1a] sm:$0xff] %vm171_vm0, %v4292_v0  ;;  %v12614_v10 = vld [vmem:[#allocation4 + $0x68] sm:$0xff]  ;;  %v10311_v45 = vadd.f32 %v12555_v63, %v3880_v38 }
 0x4a0   : > { %v4295_v6 = vmax.f32 %v4230_v16, %v12614_v10  ;;  %v12622_v35 = vld [vmem:[#allocation4 + $0x60] sm:$0xff]  ;;  %4012 = vst.msk [vmem:[#allocation4 + $0x88] sm:$0xff] %vm171_vm0, %v10310_v43  ;;  %v4232_v47 = vmax.f32 %v4167_v28, %v12614_v10  ;;  %v4169_v36 = vmax.f32 %v4105_v62, %v12614_v10  ;;  %v4107_v16 = vmax.f32 %v12598_v31, %v12614_v10 }
 0x4a1   : > { %v4294_v59 = vmax.f32 %v4229_v46, %v12622_v35  ;;  %4011 = vst.msk [vmem:[#allocation4 + $0x80] sm:$0xff] %vm171_vm0, %v10311_v45  ;;  %v9829_v13 = vpop.f32.mrb[14].mxu0  ;;  %v4451_v44 = vld [vmem:[#allocation5 + $0xa] sm:$0xff]  ;;  %v4231_v21 = vmax.f32 %v4166_v5, %v12622_v35  ;;  %v4168_v43 = vmax.f32 %v4104_v29, %v12622_v35  ;;  %v4106_v45 = vmax.f32 %v12603_v53, %v12622_v35 }
 0x4a2   : > { %v4354_v18 = vld [vmem:[#allocation5] sm:$0xff]  ;;  %v4355_v60 = vld [vmem:[#allocation5 + $0x8] sm:$0xff]  ;;  %4327 = vst.msk [vmem:[#allocation5 + $0x3a] sm:$0xff] %vm171_vm0, %v4295_v6  ;;  %v10312_v30 = vadd.f32 %v9829_v13, %v12555_v63  ;;  %v3892_v8 = vpop.f32.mrb[15].mxu0 }
 0x4a3   : > { %v4386_v57 = vld [vmem:[#allocation5 + $0x1] sm:$0xff]  ;;  %v4387_v52 = vld [vmem:[#allocation5 + $0x9] sm:$0xff]  ;;  %4326 = vst.msk [vmem:[#allocation5 + $0x32] sm:$0xff] %vm171_vm0, %v4294_v59  ;;  %v10313_v19 = vadd.f32 %v12555_v63, %v3892_v8  ;;  %v12638_v37 = vld [vmem:[#allocation4 + $0x78] sm:$0xff]  ;;  %v4837_v8 = vpop.permute.xlu1 %4836 }
 0x4a4   : > { %v4418_v2 = vmax.f32 %v4354_v18, %v4386_v57  ;;  %v4419_v14 = vmax.f32 %v4355_v60, %v4387_v52  ;;  %v4450_v22 = vld [vmem:[#allocation5 + $0x2] sm:$0xff]  ;;  %v12640_v42 = vld [vmem:[#allocation4 + $0x70] sm:$0xff]  ;;  %4014 = vst.msk [vmem:[#allocation4 + $0x98] sm:$0xff] %vm171_vm0, %v10312_v30  ;;  %v4297_v12 = vmax.f32 %v4232_v47, %v12638_v37  ;;  %v4234_v26 = vmax.f32 %v4169_v36, %v12638_v37  ;;  %v4835_v30 = vpop.permute.xlu0 %4834 }
 0x4a5   : > { %v4514_v27 = vld [vmem:[#allocation5 + $0x3] sm:$0xff]  ;;  %4013 = vst.msk [vmem:[#allocation4 + $0x90] sm:$0xff] %vm171_vm0, %v10313_v19  ;;  %v9832_v49 = vpop.f32.mrb[16].mxu0  ;;  %v4515_v56 = vld [vmem:[#allocation5 + $0xb] sm:$0xff]  ;;  %v4296_v50 = vmax.f32 %v4231_v21, %v12640_v42  ;;  %v4171_v53 = vmax.f32 %v4107_v16, %v12638_v37  ;;  %v4233_v28 = vmax.f32 %v4168_v43, %v12640_v42  ;;  %v4109_v19 = vmax.f32 %v12614_v10, %v12638_v37 }
 0x4a6   : > { %v4482_v32 = vmax.f32 %v4418_v2, %v4450_v22  ;;  %v4483_v20 = vmax.f32 %v4419_v14, %v4451_v44  ;;  %v4356_v7 = vld [vmem:[#allocation5 + $0x18] sm:$0xff]  ;;  %v4357_v58 = vld [vmem:[#allocation5 + $0x20] sm:$0xff]  ;;  %v3904_v41 = vpop.f32.mrb[17].mxu0  ;;  %v4579_v1 = vld [vmem:[#allocation5 + $0xc] sm:$0xff]  ;;  %4329 = vst.msk [vmem:[#allocation5 + $0x52] sm:$0xff] %vm171_vm0, %v4297_v12  ;;  %v10314_v3 = vadd.f32 %v9832_v49, %v12555_v63  ;;  %v4170_v14 = vmax.f32 %v4106_v45, %v12640_v42 }
 0x4a7   : > { %v4388_v15 = vld [vmem:[#allocation5 + $0x19] sm:$0xff]  ;;  %v4389_v23 = vld [vmem:[#allocation5 + $0x21] sm:$0xff]  ;;  %v10315_v24 = vadd.f32 %v12555_v63, %v3904_v41  ;;  %4328 = vst.msk [vmem:[#allocation5 + $0x4a] sm:$0xff] %vm171_vm0, %v4296_v50 }
 0x4a8   : > { %v4546_v11 = vmax.f32 %v4482_v32, %v4514_v27  ;;  %v4420_v40 = vmax.f32 %v4356_v7, %v4388_v15  ;;  %v4547_v54 = vmax.f32 %v4483_v20, %v4515_v56  ;;  %v4578_v61 = vld [vmem:[#allocation5 + $0x4] sm:$0xff]  ;;  %v4421_v4 = vmax.f32 %v4357_v58, %v4389_v23  ;;  %v4452_v9 = vld [vmem:[#allocation5 + $0x1a] sm:$0xff]  ;;  %4016 = vst.msk [vmem:[#allocation4 + $0xa8] sm:$0xff] %vm171_vm0, %v10314_v3 }
 0x4a9   : > { %v12652_v51 = vld [vmem:[#allocation4 + $0x88] sm:$0xff]  ;;  %v4516_v25 = vld [vmem:[#allocation5 + $0x1b] sm:$0xff]  ;;  %v12664_v48 = vpop.f32.mrb[18].mxu0  ;;  %4015 = vst.msk [vmem:[#allocation4 + $0xa0] sm:$0xff] %vm171_vm0, %v10315_v24  ;;  %v4108_v7 = vmax.f32 %v12622_v35, %v12640_v42  ;;  %v5029_v35 = vpop.permute.xlu1 %5028 }
 0x4aa   : > { %v12656_v17 = vmax.f32 %v4546_v11, %v4578_v61  ;;  %v4453_v55 = vld [vmem:[#allocation5 + $0x22] sm:$0xff]  ;;  %v4484_v0 = vmax.f32 %v4420_v40, %v4452_v9  ;;  %v12666_v33 = vmax.f32 %v4547_v54, %v4579_v1  ;;  %v4358_v34 = vld [vmem:[#allocation5 + $0x30] sm:$0xff]  ;;  %v4359_v6 = vld [vmem:[#allocation5 + $0x38] sm:$0xff]  ;;  %v4299_v59 = vmax.f32 %v4234_v26, %v12652_v51  ;;  %v12673_v31 = vpop.f32.mrb[19].mxu0  ;;  %4930 = vst.msk [vmem:[#allocation3] sm:$0xff] %vm637_vm3, %v4835_v30  ;;  %v5027_v40 = vpop.permute.xlu0 %5026 }
 0x4ab   : > { %v12662_v38 = vld [vmem:[#allocation4 + $0x80] sm:$0xff]  ;;  %v4485_v46 = vmax.f32 %v4421_v4, %v4453_v55  ;;  %v4390_v39 = vld [vmem:[#allocation5 + $0x31] sm:$0xff]  ;;  %4931 = vst.msk [vmem:[#allocation3 + $0x8] sm:$0xff] %vm637_vm3, %v4837_v8  ;;  %v4236_v36 = vmax.f32 %v4171_v53, %v12652_v51  ;;  %v4173_v1 = vmax.f32 %v4109_v19, %v12652_v51 }
 0x4ac   : > { %15338 = vst [vmem:[#allocation38_spill] sm:$0xff] %v12656_v17  ;;  %15339 = vst [vmem:[#allocation39_spill] sm:$0xff] %v12666_v33  ;;  %v4517_v13 = vld [vmem:[#allocation5 + $0x23] sm:$0xff]  ;;  %v4548_v18 = vmax.f32 %v4484_v0, %v4516_v25  ;;  %v4391_v60 = vld [vmem:[#allocation5 + $0x39] sm:$0xff]  ;;  %v4422_v57 = vmax.f32 %v4358_v34, %v4390_v39  ;;  %v4298_v21 = vmax.f32 %v4233_v28, %v12662_v38 }
 0x4ad   : > { %4674 = vst.msk [vmem:[#allocation2 + $0x19] sm:$0xff] %vm171_vm0, %v12656_v17  ;;  %4675 = vst.msk [vmem:[#allocation2 + $0x21] sm:$0xff] %vm171_vm0, %v12666_v33  ;;  %v4549_v52 = vmax.f32 %v4485_v46, %v4517_v13  ;;  %v4580_v2 = vld [vmem:[#allocation5 + $0x1c] sm:$0xff]  ;;  %v4423_v62 = vmax.f32 %v4359_v6, %v4391_v60  ;;  %v4454_v5 = vld [vmem:[#allocation5 + $0x32] sm:$0xff]  ;;  %v12693_v10 = vpop.f32.mrb[20].mxu0  ;;  %v4235_v11 = vmax.f32 %v4170_v14, %v12662_v38 }
 0x4ae   : > { %4331 = vst.msk [vmem:[#allocation5 + $0x6a] sm:$0xff] %vm171_vm0, %v4299_v59  ;;  %v12685_v22 = vld [vmem:[#allocation4 + $0x98] sm:$0xff]  ;;  %v4581_v47 = vld [vmem:[#allocation5 + $0x24] sm:$0xff]  ;;  %v12689_v44 = vmax.f32 %v4548_v18, %v4580_v2  ;;  %v4486_v27 = vmax.f32 %v4422_v57, %v4454_v5  ;;  %v12699_v58 = vld [vmem:[#allocation4 + $0x90] sm:$0xff]  ;;  %v12701_v15 = vpop.f32.mrb[21].mxu0  ;;  %v4172_v4 = vmax.f32 %v4108_v7, %v12662_v38  ;;  %v10316_v6 = vadd.f32 %v12664_v48, %v12555_v63 }
 0x4af   : > { %v4455_v32 = vld [vmem:[#allocation5 + $0x3a] sm:$0xff]  ;;  %v12695_v49 = vmax.f32 %v4549_v52, %v4581_v47  ;;  %4330 = vst.msk [vmem:[#allocation5 + $0x62] sm:$0xff] %vm171_vm0, %v4298_v21  ;;  %v4301_v23 = vmax.f32 %v4236_v36, %v12685_v22  ;;  %v4360_v50 = vld [vmem:[#allocation5 + $0x48] sm:$0xff]  ;;  %v4361_v54 = vld [vmem:[#allocation5 + $0x50] sm:$0xff]  ;;  %v4238_v0 = vmax.f32 %v4173_v1, %v12685_v22  ;;  %v4300_v25 = vmax.f32 %v4235_v11, %v12699_v58 }
 0x4b0   : > { %15340 = vst [vmem:[#allocation40_spill] sm:$0xff] %v12689_v44  ;;  %v4487_v20 = vmax.f32 %v4423_v62, %v4455_v32  ;;  %v4518_v29 = vld [vmem:[#allocation5 + $0x33] sm:$0xff]  ;;  %4676 = vst.msk [vmem:[#allocation2 + $0x31] sm:$0xff] %vm171_vm0, %v12689_v44  ;;  %v4519_v12 = vld [vmem:[#allocation5 + $0x3b] sm:$0xff]  ;;  %v10317_v39 = vadd.f32 %v12555_v63, %v12673_v31  ;;  %v4237_v48 = vmax.f32 %v4172_v4, %v12699_v58 }
 0x4b1   : > { %15341 = vst [vmem:[#allocation41_spill] sm:$0xff] %v12695_v49  ;;  %v4550_v41 = vmax.f32 %v4486_v27, %v4518_v29  ;;  %v4582_v56 = vld [vmem:[#allocation5 + $0x34] sm:$0xff]  ;;  %4677 = vst.msk [vmem:[#allocation2 + $0x39] sm:$0xff] %vm171_vm0, %v12695_v49  ;;  %v4392_v61 = vld [vmem:[#allocation5 + $0x49] sm:$0xff]  ;;  %v9841_v16 = vpop.f32.mrb[22].mxu0  ;;  %v4111_v62 = vmax.f32 %v12638_v37, %v12652_v51  ;;  %v10318_v36 = vadd.f32 %v12693_v10, %v12555_v63 }
 0x4b2   : > { %v4551_v26 = vmax.f32 %v4487_v20, %v4519_v12  ;;  %5122 = vst.msk [vmem:[#allocation3] sm:$0xff] %vm830_vm4, %v5027_v40  ;;  %5123 = vst.msk [vmem:[#allocation3 + $0x8] sm:$0xff] %vm830_vm4, %v5029_v35  ;;  %v4583_v9 = vld [vmem:[#allocation5 + $0x3c] sm:$0xff]  ;;  %v4393_v24 = vld [vmem:[#allocation5 + $0x51] sm:$0xff]  ;;  %v4424_v55 = vmax.f32 %v4360_v50, %v4392_v61  ;;  %v3940_v59 = vpop.f32.mrb[23].mxu0  ;;  %v10319_v37 = vadd.f32 %v12555_v63, %v12701_v15 }
 0x4b3   : > { %v12714_v3 = vmax.f32 %v4550_v41, %v4582_v56  ;;  %4333 = vst.msk [vmem:[#allocation5 + $0x82] sm:$0xff] %vm171_vm0, %v4301_v23  ;;  %v4425_v46 = vmax.f32 %v4361_v54, %v4393_v24  ;;  %v4456_v45 = vld [vmem:[#allocation5 + $0x4a] sm:$0xff]  ;;  %v4457_v13 = vld [vmem:[#allocation5 + $0x52] sm:$0xff]  ;;  %4332 = vst.msk [vmem:[#allocation5 + $0x7a] sm:$0xff] %vm171_vm0, %v4300_v25  ;;  %v10320_v41 = vadd.f32 %v9841_v16, %v12555_v63 }
 0x4b4   : > { %v12719_v43 = vmax.f32 %v4551_v26, %v4583_v9  ;;  %v12721_v34 = vld [vmem:[#allocation4 + $0xa8] sm:$0xff]  ;;  %v4488_v18 = vmax.f32 %v4424_v55, %v4456_v45  ;;  %v12730_v60 = vld [vmem:[#allocation4 + $0xa0] sm:$0xff]  ;;  %4018 = vst.msk [vmem:[#allocation4 + $0xb8] sm:$0xff] %vm171_vm0, %v10316_v6  ;;  %4017 = vst.msk [vmem:[#allocation4 + $0xb0] sm:$0xff] %vm171_vm0, %v10317_v39  ;;  %v10321_v56 = vadd.f32 %v12555_v63, %v3940_v59 }
 0x4b5   : > { %15342 = vst [vmem:[#allocation43_spill] sm:$0xff] %v12714_v3  ;;  %4678 = vst.msk [vmem:[#allocation2 + $0x49] sm:$0xff] %vm171_vm0, %v12714_v3  ;;  %v4489_v57 = vmax.f32 %v4425_v46, %v4457_v13  ;;  %v4520_v53 = vld [vmem:[#allocation5 + $0x4b] sm:$0xff]  ;;  %v4303_v28 = vmax.f32 %v4238_v0, %v12721_v34  ;;  %v4521_v8 = vld [vmem:[#allocation5 + $0x53] sm:$0xff]  ;;  %v9844_v5 = vpop.f32.mrb[24].mxu0  ;;  %v4302_v27 = vmax.f32 %v4237_v48, %v12730_v60 }
 0x4b6   : > { %15343 = vst [vmem:[#allocation45_spill] sm:$0xff] %v12719_v43  ;;  %4679 = vst.msk [vmem:[#allocation2 + $0x51] sm:$0xff] %vm171_vm0, %v12719_v43  ;;  %v5155_v31 = vld [vmem:[#allocation2 + $0x20] sm:$0xff]  ;;  %v5154_v30 = vld [vmem:[#allocation2 + $0x18] sm:$0xff]  ;;  %v4552_v52 = vmax.f32 %v4488_v18, %v4520_v53  ;;  %v3952_v21 = vpop.f32.mrb[25].mxu0  ;;  %v10322_v15 = vadd.f32 %v9844_v5, %v12555_v63  ;;  %v4175_v24 = vmax.f32 %v4111_v62, %v12685_v22 }
 0x4b7   : > { %v4584_v2 = vld [vmem:[#allocation5 + $0x4c] sm:$0xff]  ;;  %5220 = vrot.lane.b32.xlu1 %v5155_v31, %s10719_s20  ;;  %4740 = vst.msk [vmem:[#allocation3 + $0x10] sm:$0xff] %vm171_vm0, %v5154_v30  ;;  %4741 = vst.msk [vmem:[#allocation3 + $0x18] sm:$0xff] %vm171_vm0, %v5155_v31  ;;  %v4553_v19 = vmax.f32 %v4489_v57, %v4521_v8  ;;  %v4362_v14 = vld [vmem:[#allocation5 + $0x60] sm:$0xff]  ;;  %5218 = vrot.lane.b32.xlu0 %v5154_v30, %s10719_s20  ;;  %v10323_v40 = vadd.f32 %v12555_v63, %v3952_v21 }
 0x4b8   : > { %v4363_v47 = vld [vmem:[#allocation5 + $0x68] sm:$0xff]  ;;  %4335 = vst.msk [vmem:[#allocation5 + $0x9a] sm:$0xff] %vm171_vm0, %v4303_v28  ;;  %v4585_v20 = vld [vmem:[#allocation5 + $0x54] sm:$0xff]  ;;  %v12750_v29 = vmax.f32 %v4552_v52, %v4584_v2  ;;  %4334 = vst.msk [vmem:[#allocation5 + $0x92] sm:$0xff] %vm171_vm0, %v4302_v27  ;;  %v4110_v6 = vmax.f32 %v12640_v42, %v12662_v38  ;;  %v4113_v28 = vmax.f32 %v12652_v51, %v12685_v22 }
 0x4b9   : > { %v4394_v32 = vld [vmem:[#allocation5 + $0x61] sm:$0xff]  ;;  %v4395_v7 = vld [vmem:[#allocation5 + $0x69] sm:$0xff]  ;;  %v12754_v1 = vmax.f32 %v4553_v19, %v4585_v20  ;;  %4020 = vst.msk [vmem:[#allocation4 + $0xc8] sm:$0xff] %vm171_vm0, %v10318_v36  ;;  %4019 = vst.msk [vmem:[#allocation4 + $0xc0] sm:$0xff] %vm171_vm0, %v10319_v37  ;;  %v9847_v54 = vpop.f32.mrb[26].mxu0  ;;  %v4240_v8 = vmax.f32 %v4175_v24, %v12721_v34  ;;  %v4112_v5 = vmax.f32 %v12662_v38, %v12699_v58 }
 0x4ba   : > { %15344 = vst [vmem:[#allocation49_spill] sm:$0xff] %v12750_v29  ;;  %v4426_v12 = vmax.f32 %v4362_v14, %v4394_v32  ;;  %v4459_v11 = vld [vmem:[#allocation5 + $0x6a] sm:$0xff]  ;;  %v4427_v23 = vmax.f32 %v4363_v47, %v4395_v7  ;;  %v4458_v10 = vld [vmem:[#allocation5 + $0x62] sm:$0xff]  ;;  %4680 = vst.msk [vmem:[#allocation2 + $0x61] sm:$0xff] %vm171_vm0, %v12750_v29  ;;  %v10324_v16 = vadd.f32 %v9847_v54, %v12555_v63  ;;  %v3964_v46 = vpop.f32.mrb[27].mxu0 }
 0x4bb   : > { %15345 = vst [vmem:[#allocation51_spill] sm:$0xff] %v12754_v1  ;;  %v5346_v35 = vld [vmem:[#allocation2 + $0x19] sm:$0xff]  ;;  %4022 = vst.msk [vmem:[#allocation4 + $0xd8] sm:$0xff] %vm171_vm0, %v10320_v41  ;;  %v12766_v61 = vld [vmem:[#allocation2 + $0x30] sm:$0xff]  ;;  %v10325_v18 = vadd.f32 %v12555_v63, %v3964_v46  ;;  %v4174_v19 = vmax.f32 %v4110_v6, %v12699_v58  ;;  %v4177_v21 = vmax.f32 %v4113_v28, %v12721_v34 }
 0x4bc   : > { %v4490_v26 = vmax.f32 %v4426_v12, %v4458_v10  ;;  %v4522_v50 = vld [vmem:[#allocation5 + $0x63] sm:$0xff]  ;;  %4021 = vst.msk [vmem:[#allocation4 + $0xd0] sm:$0xff] %vm171_vm0, %v10321_v56  ;;  %4838 = vrot.lane.b32.xlu1 %v5346_v35, %s10718_s19  ;;  %4681 = vst.msk [vmem:[#allocation2 + $0x69] sm:$0xff] %vm171_vm0, %v12754_v1  ;;  %v4491_v9 = vmax.f32 %v4427_v23, %v4459_v11  ;;  %v4364_v55 = vld [vmem:[#allocation5 + $0x78] sm:$0xff]  ;;  %5410 = vrot.lane.b32.xlu0 %v5346_v35, %s10720_s21 }
 0x4bd   : > { %v12768_v4 = vld [vmem:[#allocation2 + $0x38] sm:$0xff]  ;;  %v4365_v0 = vld [vmem:[#allocation5 + $0x80] sm:$0xff]  ;;  %4024 = vst.msk [vmem:[#allocation4 + $0xe8] sm:$0xff] %vm171_vm0, %v10322_v15  ;;  %4023 = vst.msk [vmem:[#allocation4 + $0xe0] sm:$0xff] %vm171_vm0, %v10323_v40  ;;  %v9850_v47 = vpop.f32.mrb[28].mxu0  ;;  %v4115_v41 = vmax.f32 %v12685_v22, %v12721_v34  ;;  %v4239_v56 = vmax.f32 %v4174_v19, %v12730_v60  ;;  %v4176_v35 = vmax.f32 %v4112_v5, %v12730_v60 }
 0x4be   : > { %v4396_v25 = vld [vmem:[#allocation5 + $0x79] sm:$0xff]  ;;  %4742 = vst.msk [vmem:[#allocation3 + $0x20] sm:$0xff] %vm171_vm0, %v12766_v61  ;;  %4743 = vst.msk [vmem:[#allocation3 + $0x28] sm:$0xff] %vm171_vm0, %v12768_v4  ;;  %v4523_v45 = vld [vmem:[#allocation5 + $0x6b] sm:$0xff]  ;;  %v4554_v39 = vmax.f32 %v4490_v26, %v4522_v50  ;;  %v12804_v38 = vpop.f32.mrb[29].mxu0 }
 0x4bf   : > { %v4397_v59 = vld [vmem:[#allocation5 + $0x81] sm:$0xff]  ;;  %v4428_v13 = vmax.f32 %v4364_v55, %v4396_v25  ;;  %v5538_v57 = vld [vmem:[#allocation2 + $0x1a] sm:$0xff]  ;;  %v4555_v53 = vmax.f32 %v4491_v9, %v4523_v45  ;;  %v12787_v52 = vld [vmem:[#allocation4 + $0xb8] sm:$0xff]  ;;  %4026 = vst.msk [vmem:[#allocation4 + $0xf8] sm:$0xff] %vm171_vm0, %v10324_v16  ;;  %v10326_v16 = vadd.f32 %v9850_v47, %v12555_v63 }
 0x4c0   : > { %v4586_v48 = vld [vmem:[#allocation5 + $0x64] sm:$0xff]  ;;  %v4429_v31 = vmax.f32 %v4365_v0, %v4397_v59  ;;  %v4460_v30 = vld [vmem:[#allocation5 + $0x7a] sm:$0xff]  ;;  %v4587_v42 = vld [vmem:[#allocation5 + $0x6c] sm:$0xff]  ;;  %4025 = vst.msk [vmem:[#allocation4 + $0xf0] sm:$0xff] %vm171_vm0, %v10325_v18  ;;  %5602 = vrot.lane.b32.xlu1 %v5538_v57, %s10721_s22  ;;  %v4305_v20 = vmax.f32 %v4240_v8, %v12787_v52  ;;  %v4242_v54 = vmax.f32 %v4177_v21, %v12787_v52 }
 0x4c1   : > { %v12790_v2 = vmax.f32 %v4554_v39, %v4586_v48  ;;  %v4461_v62 = vld [vmem:[#allocation5 + $0x82] sm:$0xff]  ;;  %v4492_v14 = vmax.f32 %v4428_v13, %v4460_v30  ;;  %v5347_v51 = vld [vmem:[#allocation2 + $0x21] sm:$0xff]  ;;  %v12797_v32 = vmax.f32 %v4555_v53, %v4587_v42  ;;  %v4399_v26 = vld [vmem:[#allocation5 + $0x99] sm:$0xff]  ;;  %v12823_v46 = vpop.f32.mrb[30].mxu0  ;;  %v4114_v39 = vmax.f32 %v12699_v58, %v12730_v60  ;;  %4028 = vst.msk [vmem:[#allocation4 + $0x108] sm:$0xff] %vm171_vm0, %v10326_v16 }
 0x4c2   : > { %v4525_v27 = vld [vmem:[#allocation5 + $0x83] sm:$0xff]  ;;  %v4493_v36 = vmax.f32 %v4429_v31, %v4461_v62  ;;  %v4524_v37 = vld [vmem:[#allocation5 + $0x7b] sm:$0xff]  ;;  %v12801_v7 = vld [vmem:[#allocation4 + $0xb0] sm:$0xff]  ;;  %5412 = vrot.lane.b32.xlu0 %v5347_v51, %s10720_s21  ;;  %4337 = vst.msk [vmem:[#allocation5 + $0xb2] sm:$0xff] %vm171_vm0, %v4305_v20  ;;  %v4179_v13 = vmax.f32 %v4115_v41, %v12787_v52  ;;  %v12833_v53 = vpop.f32.mrb[31].mxu0  ;;  %v4117_v28 = vmax.f32 %v12721_v34, %v12787_v52 }
 0x4c3   : > { %15346 = vst [vmem:[#allocation54_spill] sm:$0xff] %v12790_v2  ;;  %15347 = vst [vmem:[#allocation56_spill] sm:$0xff] %v12797_v32  ;;  %v4556_v12 = vmax.f32 %v4492_v14, %v4524_v37  ;;  %v4366_v11 = vld [vmem:[#allocation5 + $0x90] sm:$0xff]  ;;  %v4367_v23 = vld [vmem:[#allocation5 + $0x98] sm:$0xff]  ;;  %v4304_v0 = vmax.f32 %v4239_v56, %v12801_v7  ;;  %v4241_v31 = vmax.f32 %v4176_v35, %v12801_v7 }
 0x4c4   : > { %4682 = vst.msk [vmem:[#allocation2 + $0x79] sm:$0xff] %vm171_vm0, %v12790_v2  ;;  %v4398_v10 = vld [vmem:[#allocation5 + $0x91] sm:$0xff]  ;;  %4683 = vst.msk [vmem:[#allocation2 + $0x81] sm:$0xff] %vm171_vm0, %v12797_v32  ;;  %v4557_v15 = vmax.f32 %v4493_v36, %v4525_v27  ;;  %v4588_v40 = vld [vmem:[#allocation5 + $0x7c] sm:$0xff]  ;;  %v4431_v24 = vmax.f32 %v4367_v23, %v4399_v26  ;;  %5030 = vrot.lane.b32.xlu1 %v5538_v57, %s10717_s18  ;;  %v4116_v62 = vmax.f32 %v12730_v60, %v12801_v7 }
 0x4c5   : > { %v4430_v50 = vmax.f32 %v4366_v11, %v4398_v10  ;;  %v4589_v9 = vld [vmem:[#allocation5 + $0x84] sm:$0xff]  ;;  %v12816_v22 = vmax.f32 %v4556_v12, %v4588_v40  ;;  %v4462_v55 = vld [vmem:[#allocation5 + $0x92] sm:$0xff]  ;;  %v4463_v6 = vld [vmem:[#allocation5 + $0x9a] sm:$0xff]  ;;  %4336 = vst.msk [vmem:[#allocation5 + $0xaa] sm:$0xff] %vm171_vm0, %v4304_v0  ;;  %v4178_v34 = vmax.f32 %v4114_v39, %v12801_v7 }
 0x4c6   : > { %v12819_v25 = vld [vmem:[#allocation4 + $0xc8] sm:$0xff]  ;;  %v12825_v45 = vmax.f32 %v4557_v15, %v4589_v9  ;;  %v12830_v18 = vld [vmem:[#allocation4 + $0xc0] sm:$0xff]  ;;  %4840 = vrot.lane.b32.xlu0 %v5347_v51, %s10718_s19  ;;  %v4495_v57 = vmax.f32 %v4431_v24, %v4463_v6  ;;  %v4526_v48 = vld [vmem:[#allocation5 + $0x93] sm:$0xff] }
 0x4c7   : > { %15348 = vst [vmem:[#allocation58_spill] sm:$0xff] %v12816_v22  ;;  %v4494_v59 = vmax.f32 %v4430_v50, %v4462_v55  ;;  %4684 = vst.msk [vmem:[#allocation2 + $0x91] sm:$0xff] %vm171_vm0, %v12816_v22  ;;  %v4307_v58 = vmax.f32 %v4242_v54, %v12819_v25  ;;  %v12842_v30 = vld [vmem:[#allocation4 + $0xd8] sm:$0xff]  ;;  %v4244_v5 = vmax.f32 %v4179_v13, %v12819_v25  ;;  %v12853_v14 = vld [vmem:[#allocation2 + $0x50] sm:$0xff] }
 0x4c8   : > { %15349 = vst [vmem:[#allocation60_spill] sm:$0xff] %v12825_v45  ;;  %4685 = vst.msk [vmem:[#allocation2 + $0x99] sm:$0xff] %vm171_vm0, %v12825_v45  ;;  %v4527_v8 = vld [vmem:[#allocation5 + $0x9b] sm:$0xff]  ;;  %v4119_v27 = vmax.f32 %v12787_v52, %v12819_v25  ;;  %v4181_v36 = vmax.f32 %v4117_v28, %v12819_v25  ;;  %v4306_v37 = vmax.f32 %v4241_v31, %v12830_v18  ;;  %v12860_v60 = vld [vmem:[#allocation4 + $0xd0] sm:$0xff]  ;;  %5794 = vrot.lane.b32.xlu1 %v12766_v61, %s10722_s23 }
 0x4c9   : > { %v4558_v42 = vmax.f32 %v4494_v59, %v4526_v48  ;;  %v12851_v19 = vld [vmem:[#allocation2 + $0x48] sm:$0xff]  ;;  %v4559_v51 = vmax.f32 %v4495_v57, %v4527_v8  ;;  %4339 = vst.msk [vmem:[#allocation5 + $0xca] sm:$0xff] %vm171_vm0, %v4307_v58  ;;  %4745 = vst.msk [vmem:[#allocation3 + $0x38] sm:$0xff] %vm171_vm0, %v12853_v14  ;;  %v4180_v12 = vmax.f32 %v4116_v62, %v12830_v18  ;;  %v12873_v11 = vld [vmem:[#allocation4 + $0xe8] sm:$0xff] }
 0x4ca   : > { %v4590_v47 = vld [vmem:[#allocation5 + $0x94] sm:$0xff]  ;;  %4744 = vst.msk [vmem:[#allocation3 + $0x30] sm:$0xff] %vm171_vm0, %v12851_v19  ;;  %v4591_v20 = vld [vmem:[#allocation5 + $0x9c] sm:$0xff]  ;;  %v4243_v41 = vmax.f32 %v4178_v34, %v12830_v18  ;;  %v4309_v56 = vmax.f32 %v4244_v5, %v12842_v30  ;;  %v4118_v15 = vmax.f32 %v12801_v7, %v12830_v18  ;;  %4338 = vst.msk [vmem:[#allocation5 + $0xc2] sm:$0xff] %vm171_vm0, %v4306_v37 }
 0x4cb   : > { %v5539_v21 = vld [vmem:[#allocation2 + $0x22] sm:$0xff]  ;;  %v12868_v52 = vmax.f32 %v4558_v42, %v4590_v47  ;;  %v12878_v10 = vmax.f32 %v4559_v51, %v4591_v20  ;;  %v4183_v40 = vmax.f32 %v4119_v27, %v12842_v30  ;;  %v4246_v35 = vmax.f32 %v4181_v36, %v12842_v30  ;;  %v12885_v26 = vld [vmem:[#allocation4 + $0xe0] sm:$0xff]  ;;  %v12909_v6 = vld [vmem:[#allocation2 + $0x78] sm:$0xff] }
 0x4cc   : > { %5604 = vrot.lane.b32.xlu0 %v5539_v21, %s10721_s22  ;;  %v12876_v23 = vld [vmem:[#allocation2 + $0x60] sm:$0xff]  ;;  %v4121_v50 = vmax.f32 %v12819_v25, %v12842_v30  ;;  %4341 = vst.msk [vmem:[#allocation5 + $0xe2] sm:$0xff] %vm171_vm0, %v4309_v56  ;;  %v4245_v7 = vmax.f32 %v4180_v12, %v12860_v60  ;;  %v4308_v54 = vmax.f32 %v4243_v41, %v12860_v60  ;;  %v12896_v9 = vld [vmem:[#allocation4 + $0xf8] sm:$0xff]  ;;  %v4368_v39 = vld [vmem:[#allocation5 + $0xa8] sm:$0xff] }
 0x4cd   : > { %15350 = vst [vmem:[#allocation62_spill] sm:$0xff] %v12868_v52  ;;  %15351 = vst [vmem:[#allocation64_spill] sm:$0xff] %v12878_v10  ;;  %v12898_v24 = vld [vmem:[#allocation2 + $0x68] sm:$0xff]  ;;  %v4182_v55 = vmax.f32 %v4118_v15, %v12860_v60  ;;  %v4248_v0 = vmax.f32 %v4183_v40, %v12873_v11  ;;  %v4311_v16 = vmax.f32 %v4246_v35, %v12873_v11  ;;  %v12905_v25 = vld [vmem:[#allocation4 + $0xf0] sm:$0xff]  ;;  %5222 = vrot.lane.b32.xlu1 %v12766_v61, %s10719_s20 }
 0x4ce   : > { %4746 = vst.msk [vmem:[#allocation3 + $0x40] sm:$0xff] %vm171_vm0, %v12876_v23  ;;  %4686 = vst.msk [vmem:[#allocation2 + $0xa9] sm:$0xff] %vm171_vm0, %v12868_v52  ;;  %v4369_v59 = vld [vmem:[#allocation5 + $0xb0] sm:$0xff]  ;;  %v4185_v57 = vmax.f32 %v4121_v50, %v12873_v11  ;;  %v4310_v48 = vmax.f32 %v4245_v7, %v12885_v26  ;;  %v12924_v5 = vld [vmem:[#allocation2 + $0x31] sm:$0xff]  ;;  %v10327_v37 = vadd.f32 %v12555_v63, %v12804_v38 }
 0x4cf   : > { %4687 = vst.msk [vmem:[#allocation2 + $0xb1] sm:$0xff] %vm171_vm0, %v12878_v10  ;;  %4747 = vst.msk [vmem:[#allocation3 + $0x48] sm:$0xff] %vm171_vm0, %v12898_v24  ;;  %v4400_v13 = vld [vmem:[#allocation5 + $0xa9] sm:$0xff]  ;;  %v4401_v61 = vld [vmem:[#allocation5 + $0xb1] sm:$0xff]  ;;  %v4247_v31 = vmax.f32 %v4182_v55, %v12885_v26  ;;  %v4313_v58 = vmax.f32 %v4248_v0, %v12896_v9  ;;  %v10329_v7 = vadd.f32 %v12555_v63, %v12833_v53 }
 0x4d0   : > { %4340 = vst.msk [vmem:[#allocation5 + $0xda] sm:$0xff] %vm171_vm0, %v4308_v54  ;;  %5032 = vrot.lane.b32.xlu0 %v5539_v21, %s10717_s18  ;;  %4748 = vst.msk [vmem:[#allocation3 + $0x50] sm:$0xff] %vm171_vm0, %v12909_v6  ;;  %v4432_v28 = vmax.f32 %v4368_v39, %v4400_v13  ;;  %v4465_v8 = vld [vmem:[#allocation5 + $0xb2] sm:$0xff]  ;;  %v4433_v42 = vmax.f32 %v4369_v59, %v4401_v61  ;;  %v4464_v62 = vld [vmem:[#allocation5 + $0xaa] sm:$0xff]  ;;  %v4250_v34 = vmax.f32 %v4185_v57, %v12896_v9 }
 0x4d1   : > { %4343 = vst.msk [vmem:[#allocation5 + $0xfa] sm:$0xff] %vm171_vm0, %v4311_v16  ;;  %4342 = vst.msk [vmem:[#allocation5 + $0xf2] sm:$0xff] %vm171_vm0, %v4310_v48  ;;  %v4528_v47 = vld [vmem:[#allocation5 + $0xab] sm:$0xff]  ;;  %v4312_v27 = vmax.f32 %v4247_v31, %v12905_v25  ;;  %v10328_v21 = vadd.f32 %v12823_v46, %v12555_v63  ;;  %5986 = vrot.lane.b32.xlu1 %v12924_v5, %s10723_s24  ;;  %v4370_v41 = vld [vmem:[#allocation5 + $0xc0] sm:$0xff] }
 0x4d2   : > { %v4496_v51 = vmax.f32 %v4432_v28, %v4464_v62  ;;  %4345 = vst.msk [vmem:[#allocation5 + $0x112] sm:$0xff] %vm171_vm0, %v4313_v58  ;;  %v12928_v36 = vld [vmem:[#allocation4 + $0x108] sm:$0xff]  ;;  %v12936_v20 = vld [vmem:[#allocation2 + $0x80] sm:$0xff]  ;;  %v4497_v12 = vmax.f32 %v4433_v42, %v4465_v8  ;;  %4027 = vst.msk [vmem:[#allocation4 + $0x100] sm:$0xff] %vm171_vm0, %v10327_v37 }
 0x4d3   : > { %v4371_v56 = vld [vmem:[#allocation5 + $0xc8] sm:$0xff]  ;;  %4749 = vst.msk [vmem:[#allocation3 + $0x58] sm:$0xff] %vm171_vm0, %v12936_v20  ;;  %v4529_v40 = vld [vmem:[#allocation5 + $0xb3] sm:$0xff]  ;;  %4344 = vst.msk [vmem:[#allocation5 + $0x10a] sm:$0xff] %vm171_vm0, %v4312_v27  ;;  %v4315_v46 = vmax.f32 %v4250_v34, %v12928_v36 }
 0x4d4   : > { %v4402_v15 = vld [vmem:[#allocation5 + $0xc1] sm:$0xff]  ;;  %5796 = vrot.lane.b32.xlu0 %v12768_v4, %s10722_s23  ;;  %v4560_v38 = vmax.f32 %v4496_v51, %v4528_v47  ;;  %v4403_v35 = vld [vmem:[#allocation5 + $0xc9] sm:$0xff]  ;;  %4030 = vst.msk [vmem:[#allocation4 + $0x118] sm:$0xff] %vm171_vm0, %v10328_v21  ;;  %v4593_v54 = vld [vmem:[#allocation5 + $0xb4] sm:$0xff]  ;;  %v4561_v55 = vmax.f32 %v4497_v12, %v4529_v40 }
 0x4d5   : > { %v4434_v50 = vmax.f32 %v4370_v41, %v4402_v15  ;;  %v4592_v0 = vld [vmem:[#allocation5 + $0xac] sm:$0xff]  ;;  %v4435_v16 = vmax.f32 %v4371_v56, %v4403_v35  ;;  %v4466_v39 = vld [vmem:[#allocation5 + $0xc2] sm:$0xff]  ;;  %4347 = vst.msk [vmem:[#allocation5 + $0x12a] sm:$0xff] %vm171_vm0, %v4315_v46  ;;  %4029 = vst.msk [vmem:[#allocation4 + $0x110] sm:$0xff] %vm171_vm0, %v10329_v7  ;;  %5414 = vrot.lane.b32.xlu1 %v12924_v5, %s10720_s21 }
 0x4d6   : > { %v12948_v59 = vmax.f32 %v4560_v38, %v4592_v0  ;;  %v4467_v13 = vld [vmem:[#allocation5 + $0xca] sm:$0xff]  ;;  %v12954_v28 = vmax.f32 %v4561_v55, %v4593_v54  ;;  %v12958_v8 = vld [vmem:[#allocation2 + $0x32] sm:$0xff]  ;;  %v4120_v55 = vmax.f32 %v12830_v18, %v12860_v60 }
 0x4d7   : > { %v4498_v57 = vmax.f32 %v4434_v50, %v4466_v39  ;;  %v4372_v48 = vld [vmem:[#allocation5 + $0xd8] sm:$0xff]  ;;  %v4373_v61 = vld [vmem:[#allocation5 + $0xe0] sm:$0xff]  ;;  %v4499_v63 = vmax.f32 %v4435_v16, %v4467_v13  ;;  %v4531_v42 = vld [vmem:[#allocation5 + $0xcb] sm:$0xff] }
 0x4d8   : > { %15352 = vst [vmem:[#allocation66_spill] sm:$0xff] %v12948_v59  ;;  %15353 = vst [vmem:[#allocation68_spill] sm:$0xff] %v12954_v28  ;;  %v4530_v53 = vld [vmem:[#allocation5 + $0xc3] sm:$0xff]  ;;  %v4404_v31 = vld [vmem:[#allocation5 + $0xd9] sm:$0xff]  ;;  %5224 = vrot.lane.b32.xlu0 %v12768_v4, %s10719_s20 }
 0x4d9   : > { %v4405_v58 = vld [vmem:[#allocation5 + $0xe1] sm:$0xff]  ;;  %4688 = vst.msk [vmem:[#allocation2 + $0xc1] sm:$0xff] %vm171_vm0, %v12948_v59  ;;  %v4595_v62 = vld [vmem:[#allocation5 + $0xcc] sm:$0xff]  ;;  %v4562_v34 = vmax.f32 %v4498_v57, %v4530_v53  ;;  %v4436_v47 = vmax.f32 %v4372_v48, %v4404_v31  ;;  %4689 = vst.msk [vmem:[#allocation2 + $0xc9] sm:$0xff] %vm171_vm0, %v12954_v28  ;;  %v4563_v21 = vmax.f32 %v4499_v63, %v4531_v42  ;;  %6178 = vrot.lane.b32.xlu1 %v12958_v8, %s10724_s27 }
 0x4da   : > { %v4594_v51 = vld [vmem:[#allocation5 + $0xc4] sm:$0xff]  ;;  %v4437_v27 = vmax.f32 %v4373_v61, %v4405_v58  ;;  %v4468_v41 = vld [vmem:[#allocation5 + $0xda] sm:$0xff]  ;;  %v4374_v4 = vld [vmem:[#allocation5 + $0xf0] sm:$0xff]  ;;  %v4123_v61 = vmax.f32 %v12842_v30, %v12873_v11  ;;  %v4122_v53 = vmax.f32 %v12860_v60, %v12885_v26  ;;  %v4184_v31 = vmax.f32 %v4120_v55, %v12885_v26 }
 0x4db   : > { %v12962_v37 = vld [vmem:[#allocation2 + $0x39] sm:$0xff]  ;;  %v12966_v56 = vmax.f32 %v4562_v34, %v4594_v51  ;;  %v4500_v15 = vmax.f32 %v4436_v47, %v4468_v41  ;;  %v4375_v38 = vld [vmem:[#allocation5 + $0xf8] sm:$0xff]  ;;  %v12970_v46 = vmax.f32 %v4563_v21, %v4595_v62  ;;  %v4125_v62 = vmax.f32 %v12873_v11, %v12896_v9 }
 0x4dc   : > { %v4469_v12 = vld [vmem:[#allocation5 + $0xe2] sm:$0xff]  ;;  %v4406_v35 = vld [vmem:[#allocation5 + $0xf1] sm:$0xff]  ;;  %v4407_v50 = vld [vmem:[#allocation5 + $0xf9] sm:$0xff]  ;;  %5988 = vrot.lane.b32.xlu0 %v12962_v37, %s10723_s24  ;;  %v4186_v55 = vmax.f32 %v4122_v53, %v12905_v25 }
 0x4dd   : > { %15354 = vst [vmem:[#allocation46_spill] sm:$0xff] %v12966_v56  ;;  %v4501_v40 = vmax.f32 %v4437_v27, %v4469_v12  ;;  %15355 = vst [vmem:[#allocation47_spill] sm:$0xff] %v12970_v46  ;;  %v4533_v7 = vld [vmem:[#allocation5 + $0xe3] sm:$0xff]  ;;  %v4532_v0 = vld [vmem:[#allocation5 + $0xdb] sm:$0xff]  ;;  %v4438_v16 = vmax.f32 %v4374_v4, %v4406_v35  ;;  %v4439_v39 = vmax.f32 %v4375_v38, %v4407_v50  ;;  %5416 = vrot.lane.b32.xlu1 %v12962_v37, %s10720_s21 }
 0x4de   : > { %v4597_v54 = vld [vmem:[#allocation5 + $0xe4] sm:$0xff]  ;;  %4690 = vst.msk [vmem:[#allocation2 + $0xd9] sm:$0xff] %vm171_vm0, %v12966_v56  ;;  %v4564_v13 = vmax.f32 %v4500_v15, %v4532_v0  ;;  %v4596_v48 = vld [vmem:[#allocation5 + $0xdc] sm:$0xff]  ;;  %v4470_v18 = vld [vmem:[#allocation5 + $0xf2] sm:$0xff]  ;;  %v4187_v12 = vmax.f32 %v4123_v61, %v12896_v9  ;;  %v4124_v35 = vmax.f32 %v12885_v26, %v12905_v25  ;;  %v4249_v0 = vmax.f32 %v4184_v31, %v12905_v25 }
 0x4df   : > { %v4565_v57 = vmax.f32 %v4501_v40, %v4533_v7  ;;  %v4471_v63 = vld [vmem:[#allocation5 + $0xfa] sm:$0xff]  ;;  %4691 = vst.msk [vmem:[#allocation2 + $0xe1] sm:$0xff] %vm171_vm0, %v12970_v46  ;;  %v4502_v58 = vmax.f32 %v4438_v16, %v4470_v18  ;;  %v4376_v34 = vld [vmem:[#allocation5 + $0x108] sm:$0xff]  ;;  %v4377_v51 = vld [vmem:[#allocation5 + $0x110] sm:$0xff]  ;;  %v4127_v26 = vmax.f32 %v12896_v9, %v12928_v36  ;;  %v4189_v18 = vmax.f32 %v4125_v62, %v12928_v36 }
 0x4e0   : > { %v4503_v42 = vmax.f32 %v4439_v39, %v4471_v63  ;;  %v4408_v47 = vld [vmem:[#allocation5 + $0x109] sm:$0xff]  ;;  %v12987_v27 = vmax.f32 %v4564_v13, %v4596_v48  ;;  %v4535_v21 = vld [vmem:[#allocation5 + $0xfb] sm:$0xff]  ;;  %v4534_v60 = vld [vmem:[#allocation5 + $0xf3] sm:$0xff]  ;;  %4842 = vrot.lane.b32.xlu0 %v12924_v5, %s10718_s19 }
 0x4e1   : > { %v12989_v30 = vmax.f32 %v4565_v57, %v4597_v54  ;;  %v4409_v41 = vld [vmem:[#allocation5 + $0x111] sm:$0xff]  ;;  %v4440_v4 = vmax.f32 %v4376_v34, %v4408_v47  ;;  %v4599_v15 = vld [vmem:[#allocation5 + $0xfc] sm:$0xff]  ;;  %v4566_v40 = vmax.f32 %v4502_v58, %v4534_v60  ;;  %v4224_v57 = vld [vmem:[#allocation4 + $0x128] sm:$0xff] }
 0x4e2   : > { %15356 = vst [vmem:[#allocation52_spill] sm:$0xff] %v12987_v27  ;;  %v4567_v38 = vmax.f32 %v4503_v42, %v4535_v21  ;;  %v4598_v11 = vld [vmem:[#allocation5 + $0xf4] sm:$0xff]  ;;  %v4441_v50 = vmax.f32 %v4377_v51, %v4409_v41  ;;  %v4472_v7 = vld [vmem:[#allocation5 + $0x10a] sm:$0xff]  ;;  %4692 = vst.msk [vmem:[#allocation2 + $0xf1] sm:$0xff] %vm171_vm0, %v12987_v27  ;;  %v4252_v51 = vmax.f32 %v4187_v12, %v12928_v36 }
 0x4e3   : > { %15357 = vst [vmem:[#allocation42_spill] sm:$0xff] %v12989_v30  ;;  %4693 = vst.msk [vmem:[#allocation2 + $0xf9] sm:$0xff] %vm171_vm0, %v12989_v30  ;;  %v4473_v54 = vld [vmem:[#allocation5 + $0x112] sm:$0xff]  ;;  %v4504_v16 = vmax.f32 %v4440_v4, %v4472_v7  ;;  %v4094_v39 = vld [vmem:[#allocation4 + $0x100] sm:$0xff]  ;;  %v13006_v48 = vmax.f32 %v4566_v40, %v4598_v11 }
 0x4e4   : > { %v4159_v13 = vld [vmem:[#allocation4 + $0x118] sm:$0xff]  ;;  %v13008_v5 = vmax.f32 %v4567_v38, %v4599_v15  ;;  %v4505_v61 = vmax.f32 %v4441_v50, %v4473_v54  ;;  %v4536_v63 = vld [vmem:[#allocation5 + $0x10b] sm:$0xff]  ;;  %v4223_v42 = vld [vmem:[#allocation4 + $0x120] sm:$0xff]  ;;  %v4126_v9 = vmax.f32 %v12905_v25, %v4094_v39  ;;  %v4314_v47 = vmax.f32 %v4249_v0, %v4094_v39  ;;  %5606 = vrot.lane.b32.xlu0 %v12958_v8, %s10721_s22 }
 0x4e5   : > { %15358 = vst [vmem:[#allocation44_spill] sm:$0xff] %v13006_v48  ;;  %v4158_v58 = vld [vmem:[#allocation4 + $0x110] sm:$0xff]  ;;  %v4568_v34 = vmax.f32 %v4504_v16, %v4536_v63  ;;  %v4289_v21 = vld [vmem:[#allocation4 + $0x138] sm:$0xff]  ;;  %v13017_v60 = vld [vmem:[#allocation2 + $0x90] sm:$0xff]  ;;  %v4188_v4 = vmax.f32 %v4124_v35, %v4094_v39  ;;  %v4251_v15 = vmax.f32 %v4186_v55, %v4094_v39  ;;  %v4191_v36 = vmax.f32 %v4127_v26, %v4159_v13 }
 0x4e6   : > { %15359 = vst [vmem:[#allocation48_spill] sm:$0xff] %v13008_v5  ;;  %v13011_v53 = vld [vmem:[#allocation2 + $0x3a] sm:$0xff]  ;;  %v4537_v31 = vld [vmem:[#allocation5 + $0x113] sm:$0xff]  ;;  %4694 = vst.msk [vmem:[#allocation2 + $0x109] sm:$0xff] %vm171_vm0, %v13006_v48  ;;  %v4254_v11 = vmax.f32 %v4189_v18, %v4159_v13  ;;  %v4317_v50 = vmax.f32 %v4252_v51, %v4159_v13  ;;  %v4190_v7 = vmax.f32 %v4126_v9, %v4158_v58 }
 0x4e7   : > { %6180 = vrot.lane.b32.xlu1 %v13011_v53, %s10724_s27  ;;  %4695 = vst.msk [vmem:[#allocation2 + $0x111] sm:$0xff] %vm171_vm0, %v13008_v5  ;;  %v4569_v62 = vmax.f32 %v4505_v61, %v4537_v31  ;;  %v4600_v41 = vld [vmem:[#allocation5 + $0x10c] sm:$0xff]  ;;  %4750 = vst.msk [vmem:[#allocation3 + $0x60] sm:$0xff] %vm171_vm0, %v13017_v60  ;;  %v4601_v40 = vld [vmem:[#allocation5 + $0x114] sm:$0xff]  ;;  %v4256_v0 = vmax.f32 %v4191_v36, %v4224_v57  ;;  %v4253_v16 = vmax.f32 %v4188_v4, %v4158_v58 }
 0x4e8   : > { %v4288_v12 = vld [vmem:[#allocation4 + $0x130] sm:$0xff]  ;;  %v13025_v25 = vld [vmem:[#allocation2 + $0x98] sm:$0xff]  ;;  %v13029_v38 = vmax.f32 %v4568_v34, %v4600_v41  ;;  %4346 = vst.msk [vmem:[#allocation5 + $0x122] sm:$0xff] %vm171_vm0, %v4314_v47  ;;  %v13035_v35 = vld [vmem:[%s14893_s1 + $0x28] sm:$0xff]  ;;  %v4316_v26 = vmax.f32 %v4251_v15, %v4158_v58  ;;  %v4319_v63 = vmax.f32 %v4254_v11, %v4224_v57  ;;  %v4255_v18 = vmax.f32 %v4190_v7, %v4223_v42 }
 0x4e9   : > { %v13040_v54 = vld [vmem:[%s14893_s1 + $0x30] sm:$0xff]  ;;  %4751 = vst.msk [vmem:[#allocation3 + $0x68] sm:$0xff] %vm171_vm0, %v13025_v25  ;;  %v13044_v55 = vmax.f32 %v4569_v62, %v4601_v40  ;;  %v13049_v39 = vld [vmem:[%s14893_s1 + $0x38] sm:$0xff]  ;;  %v13054_v13 = vld [vmem:[%s14893_s1 + $0x40] sm:$0xff]  ;;  %v15067_v58 = vand.u32 4294901760, %v13035_v35  ;;  %v4321_v34 = vmax.f32 %v4256_v0, %v4289_v21  ;;  %v4318_v51 = vmax.f32 %v4253_v16, %v4223_v42  ;;  %4844 = vrot.lane.b32.xlu0 %v12962_v37, %s10718_s19 }
 0x4ea   : > { %15360 = vst [vmem:[#allocation50_spill] sm:$0xff] %v13029_v38  ;;  %v13056_v61 = vld [vmem:[#allocation2 + $0xa8] sm:$0xff]  ;;  %4696 = vst.msk [vmem:[#allocation2 + $0x121] sm:$0xff] %vm171_vm0, %v13029_v38  ;;  %v13064_v31 = vld [vmem:[#allocation2 + $0xb0] sm:$0xff]  ;;  %v15066_v57 = vand.u32 4294901760, %v13040_v54  ;;  %v4320_v9 = vmax.f32 %v4255_v18, %v4288_v12  ;;  %v15065_v47 = vand.u32 4294901760, %v13049_v39 }
 0x4eb   : > { %15361 = vst [vmem:[#allocation53_spill] sm:$0xff] %v13044_v55  ;;  %4349 = vst.msk [vmem:[#allocation5 + $0x142] sm:$0xff] %vm171_vm0, %v4317_v50  ;;  %5034 = vrot.lane.b32.xlu1 %v12958_v8, %s10717_s18  ;;  %v9055_v8 = vld [vmem:[%s14893_s1 + $0x48] sm:$0xf]  ;;  %v15064_v42 = vand.u32 4294901760, %v13054_v13  ;;  %v13082_v21 = vld [vmem:[#allocation2 + $0xc0] sm:$0xff] }
 0x4ec   : > { %4752 = vst.msk [vmem:[#allocation3 + $0x70] sm:$0xff] %vm171_vm0, %v13056_v61  ;;  %4697 = vst.msk [vmem:[#allocation2 + $0x129] sm:$0xff] %vm171_vm0, %v13044_v55  ;;  %v13084_v62 = vld [vmem:[#allocation2 + $0xc8] sm:$0xff]  ;;  %v13092_v37 = vpack.c.bf16 %v15066_v57, %v15067_v58  ;;  %v13108_v4 = vsel %vm2163_vm2, %v9055_v8, 0  ;;  %v13110_v15 = vld [vmem:[#allocation2 + $0xd8] sm:$0xff] }
 0x4ed   : > { %4348 = vst.msk [vmem:[#allocation5 + $0x13a] sm:$0xff] %vm171_vm0, %v4316_v26  ;;  %4753 = vst.msk [vmem:[#allocation3 + $0x78] sm:$0xff] %vm171_vm0, %v13064_v31  ;;  %v13105_v41 = vpack.c.bf16 %v15064_v42, %v15065_v47  ;;  %v13112_v36 = vld [vmem:[#allocation2 + $0xe0] sm:$0xff]  ;;  %5608 = vrot.lane.b32.xlu0 %v13011_v53, %s10721_s22  ;;  %v13124_v26 = vand.u32 4294901760, %v13108_v4 }
 0x4ee   : > { %4351 = vst.msk [vmem:[#allocation5 + $0x15a] sm:$0xff] %vm171_vm0, %v4319_v63  ;;  %4353 = vst.msk [vmem:[#allocation5 + $0x172] sm:$0xff] %vm171_vm0, %v4321_v34  ;;  %10251 = vmatprep.subr.bf16.mxu1 %v13092_v37  ;;  %v4475_v63 = vld [vmem:[#allocation5 + $0x12a] sm:$0xff] }
 0x4ef   : > { %4350 = vst.msk [vmem:[#allocation5 + $0x152] sm:$0xff] %vm171_vm0, %v4318_v51  ;;  %4754 = vst.msk [vmem:[#allocation3 + $0x80] sm:$0xff] %vm171_vm0, %v13082_v21  ;;  %5798 = vrot.lane.b32.xlu1 %v12851_v19, %s10722_s23  ;;  %v4378_v12 = vld [vmem:[#allocation5 + $0x120] sm:$0xff]  ;;  %v4379_v40 = vld [vmem:[#allocation5 + $0x128] sm:$0xff]  ;;  %10253 = vmatpush3.bf16.msra.mxu1 %v13092_v37 }
 0x4f0   : > { %4755 = vst.msk [vmem:[#allocation3 + $0x88] sm:$0xff] %vm171_vm0, %v13084_v62  ;;  %4352 = vst.msk [vmem:[#allocation5 + $0x16a] sm:$0xff] %vm171_vm0, %v4320_v9  ;;  %v4410_v11 = vld [vmem:[#allocation5 + $0x121] sm:$0xff]  ;;  %v4411_v50 = vld [vmem:[#allocation5 + $0x129] sm:$0xff]  ;;  %10255 = vmatprep.subr.bf16.mxu1 %v13105_v41 }
 0x4f1   : > { %4756 = vst.msk [vmem:[#allocation3 + $0x90] sm:$0xff] %vm171_vm0, %v13110_v15  ;;  %4757 = vst.msk [vmem:[#allocation3 + $0x98] sm:$0xff] %vm171_vm0, %v13112_v36  ;;  %v4442_v7 = vmax.f32 %v4378_v12, %v4410_v11  ;;  %v4443_v0 = vmax.f32 %v4379_v40, %v4411_v50  ;;  %v4474_v16 = vld [vmem:[#allocation5 + $0x122] sm:$0xff]  ;;  %v4539_v34 = vld [vmem:[#allocation5 + $0x12b] sm:$0xff]  ;;  %5036 = vrot.lane.b32.xlu0 %v13011_v53, %s10717_s18 }
 0x4f2   : > { %v4538_v8 = vld [vmem:[#allocation5 + $0x123] sm:$0xff]  ;;  %v13130_v9 = vld [vmem:[#allocation2 + $0x49] sm:$0xff]  ;;  %v4603_v12 = vld [vmem:[#allocation5 + $0x12c] sm:$0xff] }
 0x4f3   : > { %v4506_v18 = vmax.f32 %v4442_v7, %v4474_v16  ;;  %5226 = vrot.lane.b32.xlu1 %v12851_v19, %s10719_s20  ;;  %v4507_v51 = vmax.f32 %v4443_v0, %v4475_v63  ;;  %v4602_v11 = vld [vmem:[#allocation5 + $0x124] sm:$0xff]  ;;  %10257 = vmatpush3.bf16.msra.mxu1 %v13105_v41 }
 0x4f4   : > { %v4380_v50 = vld [vmem:[#allocation5 + $0x138] sm:$0xff]  ;;  %v4381_v42 = vld [vmem:[#allocation5 + $0x140] sm:$0xff]  ;;  %9862 = vmatprep.subr.mxu1 %v13124_v26 }
 0x4f5   : > { %v4570_v40 = vmax.f32 %v4506_v18, %v4538_v8  ;;  %v4571_v47 = vmax.f32 %v4507_v51, %v4539_v34  ;;  %v4477_v0 = vld [vmem:[#allocation5 + $0x142] sm:$0xff]  ;;  %v4412_v53 = vld [vmem:[#allocation5 + $0x139] sm:$0xff]  ;;  %5800 = vrot.lane.b32.xlu0 %v12853_v14, %s10722_s23 }
 0x4f6   : > { %v4382_v7 = vld [vmem:[#allocation5 + $0x150] sm:$0xff]  ;;  %v4383_v16 = vld [vmem:[#allocation5 + $0x158] sm:$0xff]  ;;  %v4413_v58 = vld [vmem:[#allocation5 + $0x141] sm:$0xff]  ;;  %v4444_v34 = vmax.f32 %v4380_v50, %v4412_v53 }
 0x4f7   : > { %v4384_v57 = vld [vmem:[#allocation5 + $0x168] sm:$0xff]  ;;  %v13134_v19 = vmax.f32 %v4570_v40, %v4602_v11  ;;  %v4385_v63 = vld [vmem:[#allocation5 + $0x170] sm:$0xff]  ;;  %5990 = vrot.lane.b32.xlu1 %v13130_v9, %s10723_s24  ;;  %v13138_v18 = vmax.f32 %v4571_v47, %v4603_v12  ;;  %v4415_v55 = vld [vmem:[#allocation5 + $0x159] sm:$0xff]  ;;  %v4445_v51 = vmax.f32 %v4381_v42, %v4413_v58  ;;  %9863 = vmatpush3.msra.mxu1 %v13124_v26 }
 0x4f8   : > { %v4414_v8 = vld [vmem:[#allocation5 + $0x151] sm:$0xff]  ;;  %v4416_v38 = vld [vmem:[#allocation5 + $0x169] sm:$0xff]  ;;  %v4447_v48 = vmax.f32 %v4383_v16, %v4415_v55  ;;  %v4476_v27 = vld [vmem:[#allocation5 + $0x13a] sm:$0xff] }
 0x4f9   : > { %15362 = vst [vmem:[#allocation55_spill] sm:$0xff] %v13134_v19  ;;  %15363 = vst [vmem:[#allocation57_spill] sm:$0xff] %v13138_v18  ;;  %v4541_v40 = vld [vmem:[#allocation5 + $0x143] sm:$0xff]  ;;  %v4417_v11 = vld [vmem:[#allocation5 + $0x171] sm:$0xff]  ;;  %v4446_v5 = vmax.f32 %v4382_v7, %v4414_v8  ;;  %v4448_v30 = vmax.f32 %v4384_v57, %v4416_v38  ;;  %v4508_v50 = vmax.f32 %v4444_v34, %v4476_v27  ;;  %5228 = vrot.lane.b32.xlu0 %v12853_v14, %s10719_s20 }
 0x4fa   : > { %4698 = vst.msk [vmem:[#allocation2 + $0x139] sm:$0xff] %vm171_vm0, %v13134_v19  ;;  %4699 = vst.msk [vmem:[#allocation2 + $0x141] sm:$0xff] %vm171_vm0, %v13138_v18  ;;  %v4479_v47 = vld [vmem:[#allocation5 + $0x15a] sm:$0xff]  ;;  %v4449_v12 = vmax.f32 %v4385_v63, %v4417_v11  ;;  %v4478_v58 = vld [vmem:[#allocation5 + $0x152] sm:$0xff]  ;;  %v4509_v53 = vmax.f32 %v4445_v51, %v4477_v0 }
 0x4fb   : > { %v4480_v42 = vld [vmem:[#allocation5 + $0x16a] sm:$0xff]  ;;  %v4481_v46 = vld [vmem:[#allocation5 + $0x172] sm:$0xff]  ;;  %v4543_v56 = vld [vmem:[#allocation5 + $0x15b] sm:$0xff]  ;;  %v4510_v28 = vmax.f32 %v4446_v5, %v4478_v58  ;;  %v4511_v59 = vmax.f32 %v4447_v48, %v4479_v47  ;;  %5418 = vrot.lane.b32.xlu1 %v13130_v9, %s10720_s21 }
 0x4fc   : > { %v4605_v19 = vld [vmem:[#allocation5 + $0x144] sm:$0xff]  ;;  %v4512_v7 = vmax.f32 %v4448_v30, %v4480_v42  ;;  %v4540_v55 = vld [vmem:[#allocation5 + $0x13b] sm:$0xff]  ;;  %v4513_v57 = vmax.f32 %v4449_v12, %v4481_v46  ;;  %v4542_v16 = vld [vmem:[#allocation5 + $0x153] sm:$0xff]  ;;  %v4573_v63 = vmax.f32 %v4509_v53, %v4541_v40 }
 0x4fd   : > { %v4607_v38 = vld [vmem:[#allocation5 + $0x15c] sm:$0xff]  ;;  %v4544_v8 = vld [vmem:[#allocation5 + $0x16b] sm:$0xff]  ;;  %v4572_v18 = vmax.f32 %v4508_v50, %v4540_v55  ;;  %v4545_v0 = vld [vmem:[#allocation5 + $0x173] sm:$0xff]  ;;  %v4574_v34 = vmax.f32 %v4510_v28, %v4542_v16  ;;  %v4575_v51 = vmax.f32 %v4511_v59, %v4543_v56 }
 0x4fe   : > { %v6116_v27 = vld [vmem:[#allocation2 + $0x4a] sm:$0xff]  ;;  %v4576_v5 = vmax.f32 %v4512_v7, %v4544_v8  ;;  %v4577_v11 = vmax.f32 %v4513_v57, %v4545_v0  ;;  %v4608_v58 = vld [vmem:[#allocation5 + $0x16c] sm:$0xff]  ;;  %v13155_v46 = vmax.f32 %v4573_v63, %v4605_v19  ;;  %v6117_v57 = vld [vmem:[#allocation2 + $0x52] sm:$0xff] }
 0x4ff   : > { %v4604_v48 = vld [vmem:[#allocation5 + $0x13c] sm:$0xff]  ;;  %v4606_v47 = vld [vmem:[#allocation5 + $0x154] sm:$0xff]  ;;  %v13157_v12 = vld [vmem:[#allocation2 + $0xf8] sm:$0xff]  ;;  %v13163_v59 = vmax.f32 %v4575_v51, %v4607_v38  ;;  %6182 = vrot.lane.b32.xlu1 %v6116_v27, %s10724_s27 }
 0x500   : > { %v13151_v30 = vld [vmem:[#allocation2 + $0xf0] sm:$0xff]  ;;  %v13153_v42 = vmax.f32 %v4572_v18, %v4604_v48  ;;  %15365 = vst [vmem:[#allocation61_spill] sm:$0xff] %v13155_v46  ;;  %v4609_v14 = vld [vmem:[#allocation5 + $0x174] sm:$0xff]  ;;  %v13161_v40 = vmax.f32 %v4574_v34, %v4606_v47  ;;  %v13165_v28 = vmax.f32 %v4576_v5, %v4608_v58  ;;  %4759 = vst.msk [vmem:[#allocation3 + $0xa8] sm:$0xff] %vm171_vm0, %v13157_v12 }
 0x501   : > { %4758 = vst.msk [vmem:[#allocation3 + $0xa0] sm:$0xff] %vm171_vm0, %v13151_v30  ;;  %15367 = vst [vmem:[#allocation65_spill] sm:$0xff] %v13163_v59  ;;  %v5925_v56 = vld [vmem:[#allocation2 + $0x51] sm:$0xff]  ;;  %v13168_v50 = vld [vmem:[#allocation2 + $0x108] sm:$0xff]  ;;  %v13172_v19 = vmax.f32 %v4577_v11, %v4609_v14 }
 0x502   : > { %15364 = vst [vmem:[#allocation59_spill] sm:$0xff] %v13153_v42  ;;  %15366 = vst [vmem:[#allocation63_spill] sm:$0xff] %v13161_v40  ;;  %5992 = vrot.lane.b32.xlu0 %v5925_v56, %s10723_s24  ;;  %v13179_v18 = vld [vmem:[#allocation2 + $0x110] sm:$0xff]  ;;  %v13189_v53 = vld [vmem:[#allocation2 + $0x120] sm:$0xff] }
 0x503   : > { %15368 = vst [vmem:[#allocation67_spill] sm:$0xff] %v13165_v28  ;;  %15369 = vst [vmem:[#allocation69_spill] sm:$0xff] %v13172_v19  ;;  %v13195_v7 = vld [vmem:[#allocation2 + $0x128] sm:$0xff]  ;;  %5420 = vrot.lane.b32.xlu1 %v5925_v56, %s10720_s21  ;;  %v13200_v55 = vld [vmem:[#allocation2 + $0x138] sm:$0xff] }
 0x504   : > { %4700 = vst.msk [vmem:[#allocation2 + $0x151] sm:$0xff] %vm171_vm0, %v13153_v42  ;;  %4701 = vst.msk [vmem:[#allocation2 + $0x159] sm:$0xff] %vm171_vm0, %v13155_v46  ;;  %v13206_v38 = vld [vmem:[#allocation2 + $0x140] sm:$0xff]  ;;  %v5927_v34 = vld [vmem:[#allocation2 + $0x69] sm:$0xff] }
 0x505   : > { %4760 = vst.msk [vmem:[#allocation3 + $0xb0] sm:$0xff] %vm171_vm0, %v13168_v50  ;;  %4702 = vst.msk [vmem:[#allocation2 + $0x169] sm:$0xff] %vm171_vm0, %v13161_v40  ;;  %v5926_v0 = vld [vmem:[#allocation2 + $0x61] sm:$0xff]  ;;  %v5928_v11 = vld [vmem:[#allocation2 + $0x79] sm:$0xff] }
 0x506   : > { %4703 = vst.msk [vmem:[#allocation2 + $0x171] sm:$0xff] %vm171_vm0, %v13163_v59  ;;  %4704 = vst.msk [vmem:[#allocation2 + $0x181] sm:$0xff] %vm171_vm0, %v13165_v28  ;;  %4846 = vrot.lane.b32.xlu0 %v13130_v9, %s10718_s19 }
 0x507   : > { %4761 = vst.msk [vmem:[#allocation3 + $0xb8] sm:$0xff] %vm171_vm0, %v13179_v18  ;;  %4705 = vst.msk [vmem:[#allocation2 + $0x189] sm:$0xff] %vm171_vm0, %v13172_v19  ;;  %6184 = vrot.lane.b32.xlu1 %v6117_v57, %s10724_s27 }
 0x508   : > { %4762 = vst.msk [vmem:[#allocation3 + $0xc0] sm:$0xff] %vm171_vm0, %v13189_v53  ;;  %4763 = vst.msk [vmem:[#allocation3 + $0xc8] sm:$0xff] %vm171_vm0, %v13195_v7 }
 0x509   : > { %4764 = vst.msk [vmem:[#allocation3 + $0xd0] sm:$0xff] %vm171_vm0, %v13200_v55  ;;  %4765 = vst.msk [vmem:[#allocation3 + $0xd8] sm:$0xff] %vm171_vm0, %v13206_v38 }
 0x50a   : > { %5610 = vrot.lane.b32.xlu0 %v6116_v27, %s10721_s22 }
 0x50b   : > { %v13213_v16 = vld [vmem:[#allocation2 + $0x150] sm:$0xff]  ;;  %v13215_v8 = vld [vmem:[#allocation2 + $0x158] sm:$0xff]  ;;  %5038 = vrot.lane.b32.xlu1 %v6116_v27, %s10717_s18  ;;  %v6118_v27 = vld [vmem:[#allocation2 + $0x62] sm:$0xff] }
 0x50c   : > { %4766 = vst.msk [vmem:[#allocation3 + $0xe0] sm:$0xff] %vm171_vm0, %v13213_v16  ;;  %4767 = vst.msk [vmem:[#allocation3 + $0xe8] sm:$0xff] %vm171_vm0, %v13215_v8  ;;  %v13222_v9 = vld [vmem:[#allocation2 + $0x168] sm:$0xff] }
 0x50d   : > { %v13224_v63 = vld [vmem:[#allocation2 + $0x170] sm:$0xff]  ;;  %4768 = vst.msk [vmem:[#allocation3 + $0xf0] sm:$0xff] %vm171_vm0, %v13222_v9 }
 0x50e   : > { %4769 = vst.msk [vmem:[#allocation3 + $0xf8] sm:$0xff] %vm171_vm0, %v13224_v63  ;;  %4848 = vrot.lane.b32.xlu0 %v5925_v56, %s10718_s19  ;;  %v6120_v56 = vld [vmem:[#allocation2 + $0x7a] sm:$0xff] }
 0x50f   : > { %5802 = vrot.lane.b32.xlu1 %v12876_v23, %s10722_s23 }
 0x512   : > { %5612 = vrot.lane.b32.xlu0 %v6117_v57, %s10721_s22 }
 0x513   : > { %5230 = vrot.lane.b32.xlu1 %v12876_v23, %s10719_s20  ;;  %v6119_v23 = vld [vmem:[#allocation2 + $0x6a] sm:$0xff] }
 0x516   : > { %5040 = vrot.lane.b32.xlu0 %v6117_v57, %s10717_s18  ;;  %v5929_v57 = vld [vmem:[#allocation2 + $0x81] sm:$0xff] }
 0x517   : > { %5994 = vrot.lane.b32.xlu1 %v5926_v0, %s10723_s24 }
 0x51a   : > { %5804 = vrot.lane.b32.xlu0 %v12898_v24, %s10722_s23 }
 0x51b   : > { %5422 = vrot.lane.b32.xlu1 %v5926_v0, %s10720_s21 }
 0x51e   : > { %5232 = vrot.lane.b32.xlu0 %v12898_v24, %s10719_s20 }
 0x51f   : > { %6186 = vrot.lane.b32.xlu1 %v6118_v27, %s10724_s27 }
 0x522   : > { %5996 = vrot.lane.b32.xlu0 %v5927_v34, %s10723_s24 }
 0x523   : > { %5424 = vrot.lane.b32.xlu1 %v5927_v34, %s10720_s21 }
 0x526   : > { %4850 = vrot.lane.b32.xlu0 %v5926_v0, %s10718_s19 }
 0x527   : > { %6188 = vrot.lane.b32.xlu1 %v6119_v23, %s10724_s27 }
 0x529   : > { %v5221_v24 = vpop.permute.xlu1 %5220  ;;  %v5219_v51 = vpop.permute.xlu0 %5218 }
 0x52a   : > { %5614 = vrot.lane.b32.xlu0 %v6118_v27, %s10721_s22  ;;  %5315 = vst.msk [vmem:[#allocation3 + $0x8] sm:$0xff] %vm1023_vm5, %v5221_v24  ;;  %5314 = vst.msk [vmem:[#allocation3] sm:$0xff] %vm1023_vm5, %v5219_v51 }
 0x52b   : > { %5042 = vrot.lane.b32.xlu1 %v6118_v27, %s10717_s18 }
 0x52e   : > { %4852 = vrot.lane.b32.xlu0 %v5927_v34, %s10718_s19  ;;  %v4839_v5 = vpop.permute.xlu1 %4838  ;;  %v5411_v48 = vpop.permute.xlu0 %5410 }
 0x52f   : > { %5806 = vrot.lane.b32.xlu1 %v12909_v6, %s10722_s23  ;;  %4932 = vst.msk [vmem:[#allocation3 + $0x10] sm:$0xff] %vm637_vm3, %v4839_v5 }
 0x530   : > { %5506 = vst.msk [vmem:[#allocation3] sm:$0xff] %vm1216_vm6, %v5411_v48 }
 0x532   : > { %5616 = vrot.lane.b32.xlu0 %v6119_v23, %s10721_s22  ;;  %v5603_v47 = vpop.permute.xlu1 %5602 }
 0x533   : > { %5234 = vrot.lane.b32.xlu1 %v12909_v6, %s10719_s20  ;;  %5698 = vst.msk [vmem:[#allocation3] sm:$0xff] %vm1409_vm7, %v5603_v47 }
 0x534   : > { %v5413_v58 = vpop.permute.xlu0 %5412 }
 0x535   : > { %5507 = vst.msk [vmem:[#allocation3 + $0x8] sm:$0xff] %vm1216_vm6, %v5413_v58 }
 0x536   : > { %5044 = vrot.lane.b32.xlu0 %v6119_v23, %s10717_s18  ;;  %v5031_v6 = vpop.permute.xlu1 %5030  ;;  %v6121_v23 = vld [vmem:[#allocation2 + $0x82] sm:$0xff] }
 0x537   : > { %5998 = vrot.lane.b32.xlu1 %v5928_v11, %s10723_s24  ;;  %5124 = vst.msk [vmem:[#allocation3 + $0x10] sm:$0xff] %vm830_vm4, %v5031_v6 }
 0x538   : > { %v4841_v14 = vpop.permute.xlu0 %4840 }
 0x539   : > { %4933 = vst.msk [vmem:[#allocation3 + $0x18] sm:$0xff] %vm637_vm3, %v4841_v14  ;;  %v5930_v14 = vld [vmem:[#allocation2 + $0x91] sm:$0xff] }
 0x53a   : > { %5808 = vrot.lane.b32.xlu0 %v12936_v20, %s10722_s23  ;;  %v5795_v0 = vpop.permute.xlu1 %5794 }
 0x53b   : > { %5426 = vrot.lane.b32.xlu1 %v5928_v11, %s10720_s21  ;;  %5890 = vst.msk [vmem:[#allocation3] sm:$0xff] %vm1603_vm8, %v5795_v0 }
 0x53e   : > { %5236 = vrot.lane.b32.xlu0 %v12936_v20, %s10719_s20  ;;  %v5605_v27 = vpop.permute.xlu0 %5604 }
 0x53f   : > { %6190 = vrot.lane.b32.xlu1 %v6120_v56, %s10724_s27  ;;  %5699 = vst.msk [vmem:[#allocation3 + $0x8] sm:$0xff] %vm1409_vm7, %v5605_v27  ;;  %v5223_v20 = vpop.permute.xlu1 %5222 }
 0x540   : > { %5316 = vst.msk [vmem:[#allocation3 + $0x10] sm:$0xff] %vm1023_vm5, %v5223_v20 }
 0x542   : > { %6000 = vrot.lane.b32.xlu0 %v5929_v57, %s10723_s24  ;;  %v5033_v34 = vpop.permute.xlu0 %5032 }
 0x543   : > { %5428 = vrot.lane.b32.xlu1 %v5929_v57, %s10720_s21  ;;  %5125 = vst.msk [vmem:[#allocation3 + $0x18] sm:$0xff] %vm830_vm4, %v5033_v34  ;;  %v5987_v24 = vpop.permute.xlu1 %5986 }
 0x544   : > { %6082 = vst.msk [vmem:[#allocation3] sm:$0xff] %vm1796_vm9, %v5987_v24  ;;  %v6122_v24 = vld [vmem:[#allocation2 + $0x92] sm:$0xff] }
 0x546   : > { %4854 = vrot.lane.b32.xlu0 %v5928_v11, %s10718_s19  ;;  %v5797_v51 = vpop.permute.xlu0 %5796 }
 0x547   : > { %6192 = vrot.lane.b32.xlu1 %v6121_v23, %s10724_s27  ;;  %5891 = vst.msk [vmem:[#allocation3 + $0x8] sm:$0xff] %vm1603_vm8, %v5797_v51  ;;  %v5415_v5 = vpop.permute.xlu1 %5414  ;;  %v5931_v51 = vld [vmem:[#allocation2 + $0x99] sm:$0xff] }
 0x548   : > { %5508 = vst.msk [vmem:[#allocation3 + $0x10] sm:$0xff] %vm1216_vm6, %v5415_v5 }
 0x54a   : > { %5618 = vrot.lane.b32.xlu0 %v6120_v56, %s10721_s22  ;;  %v5225_v48 = vpop.permute.xlu0 %5224 }
 0x54b   : > { %5046 = vrot.lane.b32.xlu1 %v6120_v56, %s10717_s18  ;;  %5317 = vst.msk [vmem:[#allocation3 + $0x18] sm:$0xff] %vm1023_vm5, %v5225_v48  ;;  %v6179_v11 = vpop.permute.xlu1 %6178 }
 0x54c   : > { %6274 = vst.msk [vmem:[#allocation3] sm:$0xff] %vm1989_vm10, %v6179_v11 }
 0x54e   : > { %4856 = vrot.lane.b32.xlu0 %v5929_v57, %s10718_s19  ;;  %v5989_v47 = vpop.permute.xlu0 %5988 }
 0x54f   : > { %5810 = vrot.lane.b32.xlu1 %v13017_v60, %s10722_s23  ;;  %6083 = vst.msk [vmem:[#allocation3 + $0x8] sm:$0xff] %vm1796_vm9, %v5989_v47  ;;  %v5417_v58 = vpop.permute.xlu1 %5416 }
 0x550   : > { %5509 = vst.msk [vmem:[#allocation3 + $0x18] sm:$0xff] %vm1216_vm6, %v5417_v58 }
 0x552   : > { %5620 = vrot.lane.b32.xlu0 %v6121_v23, %s10721_s22  ;;  %v4843_v6 = vpop.permute.xlu0 %4842 }
 0x553   : > { %5238 = vrot.lane.b32.xlu1 %v13017_v60, %s10719_s20  ;;  %4934 = vst.msk [vmem:[#allocation3 + $0x20] sm:$0xff] %vm637_vm3, %v4843_v6  ;;  %v6306_v57 = vld [vmem:[#allocation3] sm:$0xff] }
 0x554   : > { %v6353_v60 = vsel %vm2066_vm11, %v6306_v57, 0 }
 0x555   : > { %v13305_v27 = vand.u32 4294901760, %v6353_v60 }
 0x556   : > { %5048 = vrot.lane.b32.xlu0 %v6121_v23, %s10717_s18  ;;  %v5607_v0 = vpop.permute.xlu0 %5606 }
 0x557   : > { %6002 = vrot.lane.b32.xlu1 %v5930_v14, %s10723_s24  ;;  %5700 = vst.msk [vmem:[#allocation3 + $0x10] sm:$0xff] %vm1409_vm7, %v5607_v0  ;;  %v13310_v34 = vsub.f32 %v6353_v60, %v13305_v27 }
 0x559   : > { %v6181_v56 = vpop.permute.xlu1 %6180  ;;  %v15083_v5 = vand.u32 4294901760, %v13310_v34 }
 0x55a   : > { %5812 = vrot.lane.b32.xlu0 %v13025_v25, %s10722_s23  ;;  %6275 = vst.msk [vmem:[#allocation3 + $0x8] sm:$0xff] %vm1989_vm10, %v6181_v56 }
 0x55b   : > { %5430 = vrot.lane.b32.xlu1 %v5930_v14, %s10720_s21  ;;  %v4845_v23 = vpop.permute.xlu0 %4844 }
 0x55c   : > { %4935 = vst.msk [vmem:[#allocation3 + $0x28] sm:$0xff] %vm637_vm3, %v4845_v23 }
 0x55d   : > { %v5035_v20 = vpop.permute.xlu1 %5034 }
 0x55e   : > { %5240 = vrot.lane.b32.xlu0 %v13025_v25, %s10719_s20  ;;  %5126 = vst.msk [vmem:[#allocation3 + $0x20] sm:$0xff] %vm830_vm4, %v5035_v20  ;;  %v6524_v25 = vsub.f32 %v13310_v34, %v15083_v5  ;;  %v6123_v20 = vld [vmem:[#allocation2 + $0x9a] sm:$0xff] }
 0x55f   : > { %6194 = vrot.lane.b32.xlu1 %v6122_v24, %s10724_s27  ;;  %v5609_v47 = vpop.permute.xlu0 %5608 }
 0x560   : > { %5701 = vst.msk [vmem:[#allocation3 + $0x18] sm:$0xff] %vm1409_vm7, %v5609_v47  ;;  %v6525_v6 = vand.u32 4294901760, %v6524_v25 }
 0x561   : > { %v5799_v48 = vpop.permute.xlu1 %5798  ;;  %v6307_v11 = vld [vmem:[#allocation3 + $0x8] sm:$0xff] }
 0x562   : > { %6004 = vrot.lane.b32.xlu0 %v5931_v51, %s10723_s24  ;;  %5892 = vst.msk [vmem:[#allocation3 + $0x10] sm:$0xff] %vm1603_vm8, %v5799_v48  ;;  %v6356_v58 = vsel %vm2066_vm11, %v6307_v11, 0  ;;  %9864 = vmatprep.mubr.f32.mxu1 %v6525_v6 }
 0x563   : > { %5432 = vrot.lane.b32.xlu1 %v5931_v51, %s10720_s21  ;;  %v13324_v56 = vand.u32 4294901760, %v6356_v58  ;;  %v5037_v60 = vpop.permute.xlu0 %5036 }
 0x564   : > { %5127 = vst.msk [vmem:[#allocation3 + $0x28] sm:$0xff] %vm830_vm4, %v5037_v60  ;;  %v5932_v60 = vld [vmem:[#allocation2 + $0xa9] sm:$0xff] }
 0x565   : > { %v5227_v57 = vpop.permute.xlu1 %5226  ;;  %v13328_v0 = vsub.f32 %v6356_v58, %v13324_v56 }
 0x566   : > { %4858 = vrot.lane.b32.xlu0 %v5930_v14, %s10718_s19  ;;  %5318 = vst.msk [vmem:[#allocation3 + $0x20] sm:$0xff] %vm1023_vm5, %v5227_v57 }
 0x567   : > { %6196 = vrot.lane.b32.xlu1 %v6123_v20, %s10724_s27  ;;  %v15080_v23 = vand.u32 4294901760, %v13328_v0  ;;  %v5801_v25 = vpop.permute.xlu0 %5800 }
 0x568   : > { %5893 = vst.msk [vmem:[#allocation3 + $0x18] sm:$0xff] %vm1603_vm8, %v5801_v25 }
 0x569   : > { %v5991_v48 = vpop.permute.xlu1 %5990  ;;  %v6534_v14 = vsub.f32 %v13328_v0, %v15080_v23 }
 0x56a   : > { %5622 = vrot.lane.b32.xlu0 %v6122_v24, %s10721_s22  ;;  %6084 = vst.msk [vmem:[#allocation3 + $0x10] sm:$0xff] %vm1796_vm9, %v5991_v48 }
 0x56b   : > { %5050 = vrot.lane.b32.xlu1 %v6122_v24, %s10717_s18  ;;  %v6535_v11 = vand.u32 4294901760, %v6534_v14  ;;  %v5229_v58 = vpop.permute.xlu0 %5228 }
 0x56c   : > { %5319 = vst.msk [vmem:[#allocation3 + $0x28] sm:$0xff] %vm1023_vm5, %v5229_v58 }
 0x56d   : > { %9865 = vmatmul.mubr.f32.vlgmr.msra.gmra.mrb[0].mxu1 %v6535_v11  ;;  %v5419_v47 = vpop.permute.xlu1 %5418 }
 0x56e   : > { %4860 = vrot.lane.b32.xlu0 %v5931_v51, %s10718_s19  ;;  %5510 = vst.msk [vmem:[#allocation3 + $0x20] sm:$0xff] %vm1216_vm6, %v5419_v47 }
 0x56f   : > { %5814 = vrot.lane.b32.xlu1 %v13056_v61, %s10722_s23 }
 0x571   : > { %v6183_v6 = vpop.permute.xlu1 %6182 }
 0x572   : > { %5624 = vrot.lane.b32.xlu0 %v6123_v20, %s10721_s22  ;;  %6276 = vst.msk [vmem:[#allocation3 + $0x10] sm:$0xff] %vm1989_vm10, %v6183_v6  ;;  %v6124_v6 = vld [vmem:[#allocation2 + $0xaa] sm:$0xff] }
 0x573   : > { %5242 = vrot.lane.b32.xlu1 %v13056_v61, %s10719_s20 }
 0x574   : > { %v5993_v57 = vpop.permute.xlu0 %5992 }
 0x575   : > { %6085 = vst.msk [vmem:[#allocation3 + $0x18] sm:$0xff] %vm1796_vm9, %v5993_v57  ;;  %v5421_v24 = vpop.permute.xlu1 %5420  ;;  %v5933_v57 = vld [vmem:[#allocation2 + $0xb1] sm:$0xff] }
 0x576   : > { %5052 = vrot.lane.b32.xlu0 %v6123_v20, %s10717_s18  ;;  %5511 = vst.msk [vmem:[#allocation3 + $0x28] sm:$0xff] %vm1216_vm6, %v5421_v24 }
 0x577   : > { %6006 = vrot.lane.b32.xlu1 %v5932_v60, %s10723_s24 }
 0x578   : > { %v4847_v51 = vpop.permute.xlu0 %4846 }
 0x579   : > { %4936 = vst.msk [vmem:[#allocation3 + $0x30] sm:$0xff] %vm637_vm3, %v4847_v51  ;;  %v6185_v48 = vpop.permute.xlu1 %6184  ;;  %v6308_v14 = vld [vmem:[#allocation3 + $0x10] sm:$0xff] }
 0x57a   : > { %5816 = vrot.lane.b32.xlu0 %v13064_v31, %s10722_s23  ;;  %6277 = vst.msk [vmem:[#allocation3 + $0x18] sm:$0xff] %vm1989_vm10, %v6185_v48  ;;  %v6359_v61 = vsel %vm2066_vm11, %v6308_v14, 0 }
 0x57b   : > { %5434 = vrot.lane.b32.xlu1 %v5932_v60, %s10720_s21  ;;  %v13361_v20 = vand.u32 4294901760, %v6359_v61 }
 0x57c   : > { %v5611_v25 = vpop.permute.xlu0 %5610 }
 0x57d   : > { %5702 = vst.msk [vmem:[#allocation3 + $0x20] sm:$0xff] %vm1409_vm7, %v5611_v25  ;;  %v5039_v11 = vpop.permute.xlu1 %5038  ;;  %v13366_v47 = vsub.f32 %v6359_v61, %v13361_v20 }
 0x57e   : > { %5244 = vrot.lane.b32.xlu0 %v13064_v31, %s10719_s20  ;;  %5128 = vst.msk [vmem:[#allocation3 + $0x30] sm:$0xff] %vm830_vm4, %v5039_v11 }
 0x57f   : > { %6198 = vrot.lane.b32.xlu1 %v6124_v6, %s10724_s27  ;;  %v15081_v24 = vand.u32 4294901760, %v13366_v47 }
 0x580   : > { %v4849_v58 = vpop.permute.xlu0 %4848 }
 0x581   : > { %4937 = vst.msk [vmem:[#allocation3 + $0x38] sm:$0xff] %vm637_vm3, %v4849_v58  ;;  %v5803_v51 = vpop.permute.xlu1 %5802  ;;  %v6544_v31 = vsub.f32 %v13366_v47, %v15081_v24  ;;  %v6309_v48 = vld [vmem:[#allocation3 + $0x18] sm:$0xff]  ;;  %v6125_v24 = vld [vmem:[#allocation2 + $0xb2] sm:$0xff] }
 0x582   : > { %6008 = vrot.lane.b32.xlu0 %v5933_v57, %s10723_s24  ;;  %5894 = vst.msk [vmem:[#allocation3 + $0x20] sm:$0xff] %vm1603_vm8, %v5803_v51  ;;  %v6362_v25 = vsel %vm2066_vm11, %v6309_v48, 0 }
 0x583   : > { %5436 = vrot.lane.b32.xlu1 %v5933_v57, %s10720_s21  ;;  %v6545_v61 = vand.u32 4294901760, %v6544_v31  ;;  %v13380_v11 = vand.u32 4294901760, %v6362_v25 }
 0x584   : > { %v5613_v14 = vpop.permute.xlu0 %5612 }
 0x585   : > { %5703 = vst.msk [vmem:[#allocation3 + $0x28] sm:$0xff] %vm1409_vm7, %v5613_v14  ;;  %9867 = vmatprep.mubr.f32.mxu1 %v6545_v61  ;;  %v5231_v58 = vpop.permute.xlu1 %5230  ;;  %v13384_v23 = vsub.f32 %v6362_v25, %v13380_v11 }
 0x586   : > { %4862 = vrot.lane.b32.xlu0 %v5932_v60, %s10718_s19  ;;  %5320 = vst.msk [vmem:[#allocation3 + $0x30] sm:$0xff] %vm1023_vm5, %v5231_v58 }
 0x587   : > { %6200 = vrot.lane.b32.xlu1 %v6125_v24, %s10724_s27  ;;  %v15082_v48 = vand.u32 4294901760, %v13384_v23 }
 0x588   : > { %v5041_v51 = vpop.permute.xlu0 %5040 }
 0x589   : > { %5129 = vst.msk [vmem:[#allocation3 + $0x38] sm:$0xff] %vm830_vm4, %v5041_v51  ;;  %v5995_v31 = vpop.permute.xlu1 %5994  ;;  %v6554_v60 = vsub.f32 %v13384_v23, %v15082_v48 }
 0x58a   : > { %5626 = vrot.lane.b32.xlu0 %v6124_v6, %s10721_s22  ;;  %6086 = vst.msk [vmem:[#allocation3 + $0x20] sm:$0xff] %vm1796_vm9, %v5995_v31 }
 0x58b   : > { %5054 = vrot.lane.b32.xlu1 %v6124_v6, %s10717_s18  ;;  %v6555_v25 = vand.u32 4294901760, %v6554_v60  ;;  %v5934_v60 = vld [vmem:[#allocation2 + $0xc1] sm:$0xff] }
 0x58c   : > { %v5805_v14 = vpop.permute.xlu0 %5804 }
 0x58d   : > { %5895 = vst.msk [vmem:[#allocation3 + $0x28] sm:$0xff] %vm1603_vm8, %v5805_v14  ;;  %9868 = vmatmul.mubr.f32.gmra.mrb[2].mxu1 %v6555_v25  ;;  %v5423_v61 = vpop.permute.xlu1 %5422 }
 0x58e   : > { %4864 = vrot.lane.b32.xlu0 %v5933_v57, %s10718_s19  ;;  %5512 = vst.msk [vmem:[#allocation3 + $0x30] sm:$0xff] %vm1216_vm6, %v5423_v61 }
 0x58f   : > { %5818 = vrot.lane.b32.xlu1 %v13082_v21, %s10722_s23 }
 0x590   : > { %v5233_v58 = vpop.permute.xlu0 %5232 }
 0x591   : > { %5321 = vst.msk [vmem:[#allocation3 + $0x38] sm:$0xff] %vm1023_vm5, %v5233_v58  ;;  %v6187_v51 = vpop.permute.xlu1 %6186 }
 0x592   : > { %5628 = vrot.lane.b32.xlu0 %v6125_v24, %s10721_s22  ;;  %6278 = vst.msk [vmem:[#allocation3 + $0x20] sm:$0xff] %vm1989_vm10, %v6187_v51 }
 0x593   : > { %5246 = vrot.lane.b32.xlu1 %v13082_v21, %s10719_s20 }
 0x594   : > { %v5997_v31 = vpop.permute.xlu0 %5996 }
 0x595   : > { %6087 = vst.msk [vmem:[#allocation3 + $0x28] sm:$0xff] %vm1796_vm9, %v5997_v31  ;;  %v5425_v6 = vpop.permute.xlu1 %5424 }
 0x596   : > { %5056 = vrot.lane.b32.xlu0 %v6125_v24, %s10717_s18  ;;  %5513 = vst.msk [vmem:[#allocation3 + $0x38] sm:$0xff] %vm1216_vm6, %v5425_v6  ;;  %v6126_v6 = vld [vmem:[#allocation2 + $0xc2] sm:$0xff] }
 0x597   : > { %6010 = vrot.lane.b32.xlu1 %v5934_v60, %s10723_s24 }
 0x598   : > { %v4851_v57 = vpop.permute.xlu0 %4850 }
 0x599   : > { %4938 = vst.msk [vmem:[#allocation3 + $0x40] sm:$0xff] %vm637_vm3, %v4851_v57  ;;  %v6189_v14 = vpop.permute.xlu1 %6188  ;;  %v6310_v25 = vld [vmem:[#allocation3 + $0x20] sm:$0xff] }
 0x59a   : > { %5820 = vrot.lane.b32.xlu0 %v13084_v62, %s10722_s23  ;;  %6279 = vst.msk [vmem:[#allocation3 + $0x28] sm:$0xff] %vm1989_vm10, %v6189_v14  ;;  %v6365_v21 = vsel %vm2066_vm11, %v6310_v25, 0  ;;  %v5935_v57 = vld [vmem:[#allocation2 + $0xc9] sm:$0xff] }
 0x59b   : > { %5438 = vrot.lane.b32.xlu1 %v5934_v60, %s10720_s21  ;;  %v13417_v24 = vand.u32 4294901760, %v6365_v21 }
 0x59c   : > { %v5615_v61 = vpop.permute.xlu0 %5614 }
 0x59d   : > { %5704 = vst.msk [vmem:[#allocation3 + $0x30] sm:$0xff] %vm1409_vm7, %v5615_v61  ;;  %v5043_v58 = vpop.permute.xlu1 %5042  ;;  %v13422_v51 = vsub.f32 %v6365_v21, %v13417_v24 }
 0x59e   : > { %5248 = vrot.lane.b32.xlu0 %v13084_v62, %s10719_s20  ;;  %5130 = vst.msk [vmem:[#allocation3 + $0x40] sm:$0xff] %vm830_vm4, %v5043_v58 }
 0x59f   : > { %6202 = vrot.lane.b32.xlu1 %v6126_v6, %s10724_s27  ;;  %v15085_v14 = vand.u32 4294901760, %v13422_v51 }
 0x5a0   : > { %v4853_v31 = vpop.permute.xlu0 %4852 }
 0x5a1   : > { %4939 = vst.msk [vmem:[#allocation3 + $0x48] sm:$0xff] %vm637_vm3, %v4853_v31  ;;  %v5807_v25 = vpop.permute.xlu1 %5806  ;;  %v6564_v62 = vsub.f32 %v13422_v51, %v15085_v14  ;;  %v6311_v61 = vld [vmem:[#allocation3 + $0x28] sm:$0xff]  ;;  %v6127_v14 = vld [vmem:[#allocation2 + $0xca] sm:$0xff] }
 0x5a2   : > { %6012 = vrot.lane.b32.xlu0 %v5935_v57, %s10723_s24  ;;  %5896 = vst.msk [vmem:[#allocation3 + $0x30] sm:$0xff] %vm1603_vm8, %v5807_v25  ;;  %v6368_v58 = vsel %vm2066_vm11, %v6311_v61, 0 }
 0x5a3   : > { %5440 = vrot.lane.b32.xlu1 %v5935_v57, %s10720_s21  ;;  %v6565_v31 = vand.u32 4294901760, %v6564_v62  ;;  %v13436_v48 = vand.u32 4294901760, %v6368_v58 }
 0x5a4   : > { %v5617_v21 = vpop.permute.xlu0 %5616 }
 0x5a5   : > { %5705 = vst.msk [vmem:[#allocation3 + $0x38] sm:$0xff] %vm1409_vm7, %v5617_v21  ;;  %v5235_v5 = vpop.permute.xlu1 %5234  ;;  %9870 = vmatprep.mubr.f32.mxu1 %v6565_v31  ;;  %v13440_v19 = vsub.f32 %v6368_v58, %v13436_v48 }
 0x5a6   : > { %4866 = vrot.lane.b32.xlu0 %v5934_v60, %s10718_s19  ;;  %5322 = vst.msk [vmem:[#allocation3 + $0x40] sm:$0xff] %vm1023_vm5, %v5235_v5 }
 0x5a7   : > { %6204 = vrot.lane.b32.xlu1 %v6127_v14, %s10724_s27  ;;  %v15086_v61 = vand.u32 4294901760, %v13440_v19 }
 0x5a8   : > { %v5045_v25 = vpop.permute.xlu0 %5044 }
 0x5a9   : > { %5131 = vst.msk [vmem:[#allocation3 + $0x48] sm:$0xff] %vm830_vm4, %v5045_v25  ;;  %v5999_v62 = vpop.permute.xlu1 %5998  ;;  %v6574_v60 = vsub.f32 %v13440_v19, %v15086_v61 }
 0x5aa   : > { %5630 = vrot.lane.b32.xlu0 %v6126_v6, %s10721_s22  ;;  %6088 = vst.msk [vmem:[#allocation3 + $0x30] sm:$0xff] %vm1796_vm9, %v5999_v62 }
 0x5ab   : > { %5058 = vrot.lane.b32.xlu1 %v6126_v6, %s10717_s18  ;;  %v6575_v5 = vand.u32 4294901760, %v6574_v60  ;;  %v5936_v60 = vld [vmem:[#allocation2 + $0xd9] sm:$0xff] }
 0x5ac   : > { %v5809_v21 = vpop.permute.xlu0 %5808 }
 0x5ad   : > { %5897 = vst.msk [vmem:[#allocation3 + $0x38] sm:$0xff] %vm1603_vm8, %v5809_v21  ;;  %v5427_v58 = vpop.permute.xlu1 %5426  ;;  %9871 = vmatmul.mubr.f32.gmra.mrb[4].mxu1 %v6575_v5 }
 0x5ae   : > { %4868 = vrot.lane.b32.xlu0 %v5935_v57, %s10718_s19  ;;  %5514 = vst.msk [vmem:[#allocation3 + $0x40] sm:$0xff] %vm1216_vm6, %v5427_v58 }
 0x5af   : > { %5822 = vrot.lane.b32.xlu1 %v13110_v15, %s10722_s23 }
 0x5b0   : > { %v5237_v31 = vpop.permute.xlu0 %5236 }
 0x5b1   : > { %5323 = vst.msk [vmem:[#allocation3 + $0x48] sm:$0xff] %vm1023_vm5, %v5237_v31  ;;  %v6191_v25 = vpop.permute.xlu1 %6190 }
 0x5b2   : > { %5632 = vrot.lane.b32.xlu0 %v6127_v14, %s10721_s22  ;;  %6280 = vst.msk [vmem:[#allocation3 + $0x30] sm:$0xff] %vm1989_vm10, %v6191_v25 }
 0x5b3   : > { %5250 = vrot.lane.b32.xlu1 %v13110_v15, %s10719_s20 }
 0x5b4   : > { %v6001_v62 = vpop.permute.xlu0 %6000 }
 0x5b5   : > { %6089 = vst.msk [vmem:[#allocation3 + $0x38] sm:$0xff] %vm1796_vm9, %v6001_v62  ;;  %v5429_v6 = vpop.permute.xlu1 %5428 }
 0x5b6   : > { %5060 = vrot.lane.b32.xlu0 %v6127_v14, %s10717_s18  ;;  %5515 = vst.msk [vmem:[#allocation3 + $0x48] sm:$0xff] %vm1216_vm6, %v5429_v6  ;;  %v6128_v6 = vld [vmem:[#allocation2 + $0xda] sm:$0xff] }
 0x5b7   : > { %6014 = vrot.lane.b32.xlu1 %v5936_v60, %s10723_s24 }
 0x5b8   : > { %v4855_v57 = vpop.permute.xlu0 %4854 }
 0x5b9   : > { %4940 = vst.msk [vmem:[#allocation3 + $0x50] sm:$0xff] %vm637_vm3, %v4855_v57  ;;  %v6193_v21 = vpop.permute.xlu1 %6192  ;;  %v6312_v5 = vld [vmem:[#allocation3 + $0x30] sm:$0xff] }
 0x5ba   : > { %5824 = vrot.lane.b32.xlu0 %v13112_v36, %s10722_s23  ;;  %6281 = vst.msk [vmem:[#allocation3 + $0x38] sm:$0xff] %vm1989_vm10, %v6193_v21  ;;  %v6371_v15 = vsel %vm2066_vm11, %v6312_v5, 0  ;;  %v5937_v57 = vld [vmem:[#allocation2 + $0xe1] sm:$0xff] }
 0x5bb   : > { %5442 = vrot.lane.b32.xlu1 %v5936_v60, %s10720_s21  ;;  %v13473_v14 = vand.u32 4294901760, %v6371_v15 }
 0x5bc   : > { %v5619_v58 = vpop.permute.xlu0 %5618 }
 0x5bd   : > { %5706 = vst.msk [vmem:[#allocation3 + $0x40] sm:$0xff] %vm1409_vm7, %v5619_v58  ;;  %v5047_v31 = vpop.permute.xlu1 %5046  ;;  %v13478_v25 = vsub.f32 %v6371_v15, %v13473_v14 }
 0x5be   : > { %5252 = vrot.lane.b32.xlu0 %v13112_v36, %s10719_s20  ;;  %5132 = vst.msk [vmem:[#allocation3 + $0x50] sm:$0xff] %vm830_vm4, %v5047_v31 }
 0x5bf   : > { %6206 = vrot.lane.b32.xlu1 %v6128_v6, %s10724_s27  ;;  %v15089_v21 = vand.u32 4294901760, %v13478_v25 }
 0x5c0   : > { %v4857_v62 = vpop.permute.xlu0 %4856 }
 0x5c1   : > { %4941 = vst.msk [vmem:[#allocation3 + $0x58] sm:$0xff] %vm637_vm3, %v4857_v62  ;;  %v5811_v5 = vpop.permute.xlu1 %5810  ;;  %v6584_v36 = vsub.f32 %v13478_v25, %v15089_v21  ;;  %v6313_v58 = vld [vmem:[#allocation3 + $0x38] sm:$0xff] }
 0x5c2   : > { %6016 = vrot.lane.b32.xlu0 %v5937_v57, %s10723_s24  ;;  %5898 = vst.msk [vmem:[#allocation3 + $0x40] sm:$0xff] %vm1603_vm8, %v5811_v5  ;;  %v6374_v31 = vsel %vm2066_vm11, %v6313_v58, 0  ;;  %v6129_v21 = vld [vmem:[#allocation2 + $0xe2] sm:$0xff] }
 0x5c3   : > { %5444 = vrot.lane.b32.xlu1 %v5937_v57, %s10720_s21  ;;  %v6585_v62 = vand.u32 4294901760, %v6584_v36  ;;  %v13492_v61 = vand.u32 4294901760, %v6374_v31 }
 0x5c4   : > { %v5621_v15 = vpop.permute.xlu0 %5620 }
 0x5c5   : > { %5707 = vst.msk [vmem:[#allocation3 + $0x48] sm:$0xff] %vm1409_vm7, %v5621_v15  ;;  %v5239_v28 = vpop.permute.xlu1 %5238  ;;  %9873 = vmatprep.mubr.f32.mxu1 %v6585_v62  ;;  %v13496_v59 = vsub.f32 %v6374_v31, %v13492_v61 }
 0x5c6   : > { %4870 = vrot.lane.b32.xlu0 %v5936_v60, %s10718_s19  ;;  %5324 = vst.msk [vmem:[#allocation3 + $0x50] sm:$0xff] %vm1023_vm5, %v5239_v28 }
 0x5c7   : > { %6208 = vrot.lane.b32.xlu1 %v6129_v21, %s10724_s27  ;;  %v15090_v58 = vand.u32 4294901760, %v13496_v59 }
 0x5c8   : > { %v5049_v5 = vpop.permute.xlu0 %5048 }
 0x5c9   : > { %5133 = vst.msk [vmem:[#allocation3 + $0x58] sm:$0xff] %vm830_vm4, %v5049_v5  ;;  %v6003_v36 = vpop.permute.xlu1 %6002  ;;  %v6594_v60 = vsub.f32 %v13496_v59, %v15090_v58 }
 0x5ca   : > { %5634 = vrot.lane.b32.xlu0 %v6128_v6, %s10721_s22  ;;  %6090 = vst.msk [vmem:[#allocation3 + $0x40] sm:$0xff] %vm1796_vm9, %v6003_v36 }
 0x5cb   : > { %5062 = vrot.lane.b32.xlu1 %v6128_v6, %s10717_s18  ;;  %v6595_v28 = vand.u32 4294901760, %v6594_v60  ;;  %v5938_v60 = vld [vmem:[#allocation2 + $0xf1] sm:$0xff] }
 0x5cc   : > { %v5813_v15 = vpop.permute.xlu0 %5812 }
 0x5cd   : > { %5899 = vst.msk [vmem:[#allocation3 + $0x48] sm:$0xff] %vm1603_vm8, %v5813_v15  ;;  %v5431_v31 = vpop.permute.xlu1 %5430  ;;  %9874 = vmatmul.mubr.f32.gmra.mrb[6].mxu1 %v6595_v28 }
 0x5ce   : > { %4872 = vrot.lane.b32.xlu0 %v5937_v57, %s10718_s19  ;;  %5516 = vst.msk [vmem:[#allocation3 + $0x50] sm:$0xff] %vm1216_vm6, %v5431_v31 }
 0x5cf   : > { %5826 = vrot.lane.b32.xlu1 %v13151_v30, %s10722_s23 }
 0x5d0   : > { %v5241_v62 = vpop.permute.xlu0 %5240 }
 0x5d1   : > { %5325 = vst.msk [vmem:[#allocation3 + $0x58] sm:$0xff] %vm1023_vm5, %v5241_v62  ;;  %v6195_v5 = vpop.permute.xlu1 %6194 }
 0x5d2   : > { %5636 = vrot.lane.b32.xlu0 %v6129_v21, %s10721_s22  ;;  %6282 = vst.msk [vmem:[#allocation3 + $0x40] sm:$0xff] %vm1989_vm10, %v6195_v5 }
 0x5d3   : > { %5254 = vrot.lane.b32.xlu1 %v13151_v30, %s10719_s20 }
 0x5d4   : > { %v6005_v36 = vpop.permute.xlu0 %6004 }
 0x5d5   : > { %6091 = vst.msk [vmem:[#allocation3 + $0x48] sm:$0xff] %vm1796_vm9, %v6005_v36  ;;  %v5433_v6 = vpop.permute.xlu1 %5432 }
 0x5d6   : > { %5064 = vrot.lane.b32.xlu0 %v6129_v21, %s10717_s18  ;;  %5517 = vst.msk [vmem:[#allocation3 + $0x58] sm:$0xff] %vm1216_vm6, %v5433_v6  ;;  %v6130_v6 = vld [vmem:[#allocation2 + $0xf2] sm:$0xff] }
 0x5d7   : > { %6018 = vrot.lane.b32.xlu1 %v5938_v60, %s10723_s24 }
 0x5d8   : > { %v4859_v57 = vpop.permute.xlu0 %4858 }
 0x5d9   : > { %4942 = vst.msk [vmem:[#allocation3 + $0x60] sm:$0xff] %vm637_vm3, %v4859_v57  ;;  %v6197_v15 = vpop.permute.xlu1 %6196  ;;  %v6314_v28 = vld [vmem:[#allocation3 + $0x40] sm:$0xff]  ;;  %v5939_v57 = vld [vmem:[#allocation2 + $0xf9] sm:$0xff] }
 0x5da   : > { %5828 = vrot.lane.b32.xlu0 %v13157_v12, %s10722_s23  ;;  %6283 = vst.msk [vmem:[#allocation3 + $0x48] sm:$0xff] %vm1989_vm10, %v6197_v15  ;;  %v6377_v30 = vsel %vm2066_vm11, %v6314_v28, 0 }
 0x5db   : > { %5446 = vrot.lane.b32.xlu1 %v5938_v60, %s10720_s21  ;;  %v13529_v21 = vand.u32 4294901760, %v6377_v30 }
 0x5dc   : > { %v5623_v31 = vpop.permute.xlu0 %5622 }
 0x5dd   : > { %5708 = vst.msk [vmem:[#allocation3 + $0x50] sm:$0xff] %vm1409_vm7, %v5623_v31  ;;  %v5051_v62 = vpop.permute.xlu1 %5050  ;;  %v13534_v5 = vsub.f32 %v6377_v30, %v13529_v21 }
 0x5de   : > { %5256 = vrot.lane.b32.xlu0 %v13157_v12, %s10719_s20  ;;  %5134 = vst.msk [vmem:[#allocation3 + $0x60] sm:$0xff] %vm830_vm4, %v5051_v62 }
 0x5df   : > { %6210 = vrot.lane.b32.xlu1 %v6130_v6, %s10724_s27  ;;  %v15093_v15 = vand.u32 4294901760, %v13534_v5 }
 0x5e0   : > { %v4861_v36 = vpop.permute.xlu0 %4860 }
 0x5e1   : > { %4943 = vst.msk [vmem:[#allocation3 + $0x68] sm:$0xff] %vm637_vm3, %v4861_v36  ;;  %v5815_v28 = vpop.permute.xlu1 %5814  ;;  %v6604_v12 = vsub.f32 %v13534_v5, %v15093_v15  ;;  %v6315_v31 = vld [vmem:[#allocation3 + $0x48] sm:$0xff] }
 0x5e2   : > { %6020 = vrot.lane.b32.xlu0 %v5939_v57, %s10723_s24  ;;  %5900 = vst.msk [vmem:[#allocation3 + $0x50] sm:$0xff] %vm1603_vm8, %v5815_v28  ;;  %v6380_v62 = vsel %vm2066_vm11, %v6315_v31, 0  ;;  %v6131_v15 = vld [vmem:[#allocation2 + $0xfa] sm:$0xff] }
 0x5e3   : > { %5448 = vrot.lane.b32.xlu1 %v5939_v57, %s10720_s21  ;;  %v6605_v36 = vand.u32 4294901760, %v6604_v12  ;;  %v13548_v58 = vand.u32 4294901760, %v6380_v62 }
 0x5e4   : > { %v5625_v30 = vpop.permute.xlu0 %5624 }
 0x5e5   : > { %5709 = vst.msk [vmem:[#allocation3 + $0x58] sm:$0xff] %vm1409_vm7, %v5625_v30  ;;  %v5243_v40 = vpop.permute.xlu1 %5242  ;;  %9876 = vmatprep.mubr.f32.mxu1 %v6605_v36  ;;  %v13552_v46 = vsub.f32 %v6380_v62, %v13548_v58 }
 0x5e6   : > { %4874 = vrot.lane.b32.xlu0 %v5938_v60, %s10718_s19  ;;  %5326 = vst.msk [vmem:[#allocation3 + $0x60] sm:$0xff] %vm1023_vm5, %v5243_v40 }
 0x5e7   : > { %6212 = vrot.lane.b32.xlu1 %v6131_v15, %s10724_s27  ;;  %v15094_v31 = vand.u32 4294901760, %v13552_v46 }
 0x5e8   : > { %v5053_v28 = vpop.permute.xlu0 %5052 }
 0x5e9   : > { %5135 = vst.msk [vmem:[#allocation3 + $0x68] sm:$0xff] %vm830_vm4, %v5053_v28  ;;  %v6007_v12 = vpop.permute.xlu1 %6006  ;;  %v6614_v60 = vsub.f32 %v13552_v46, %v15094_v31 }
 0x5ea   : > { %5638 = vrot.lane.b32.xlu0 %v6130_v6, %s10721_s22  ;;  %6092 = vst.msk [vmem:[#allocation3 + $0x50] sm:$0xff] %vm1796_vm9, %v6007_v12 }
 0x5eb   : > { %5066 = vrot.lane.b32.xlu1 %v6130_v6, %s10717_s18  ;;  %v6615_v40 = vand.u32 4294901760, %v6614_v60  ;;  %v5940_v60 = vld [vmem:[#allocation2 + $0x109] sm:$0xff] }
 0x5ec   : > { %v5817_v30 = vpop.permute.xlu0 %5816 }
 0x5ed   : > { %5901 = vst.msk [vmem:[#allocation3 + $0x58] sm:$0xff] %vm1603_vm8, %v5817_v30  ;;  %v5435_v62 = vpop.permute.xlu1 %5434  ;;  %9877 = vmatmul.mubr.f32.gmra.mrb[8].mxu1 %v6615_v40 }
 0x5ee   : > { %4876 = vrot.lane.b32.xlu0 %v5939_v57, %s10718_s19  ;;  %5518 = vst.msk [vmem:[#allocation3 + $0x60] sm:$0xff] %vm1216_vm6, %v5435_v62 }
 0x5ef   : > { %5830 = vrot.lane.b32.xlu1 %v13168_v50, %s10722_s23 }
 0x5f0   : > { %v5245_v36 = vpop.permute.xlu0 %5244 }
 0x5f1   : > { %5327 = vst.msk [vmem:[#allocation3 + $0x68] sm:$0xff] %vm1023_vm5, %v5245_v36  ;;  %v6199_v28 = vpop.permute.xlu1 %6198 }
 0x5f2   : > { %5640 = vrot.lane.b32.xlu0 %v6131_v15, %s10721_s22  ;;  %6284 = vst.msk [vmem:[#allocation3 + $0x50] sm:$0xff] %vm1989_vm10, %v6199_v28 }
 0x5f3   : > { %5258 = vrot.lane.b32.xlu1 %v13168_v50, %s10719_s20 }
 0x5f4   : > { %v6009_v12 = vpop.permute.xlu0 %6008 }
 0x5f5   : > { %6093 = vst.msk [vmem:[#allocation3 + $0x58] sm:$0xff] %vm1796_vm9, %v6009_v12  ;;  %v5437_v6 = vpop.permute.xlu1 %5436 }
 0x5f6   : > { %5068 = vrot.lane.b32.xlu0 %v6131_v15, %s10717_s18  ;;  %5519 = vst.msk [vmem:[#allocation3 + $0x68] sm:$0xff] %vm1216_vm6, %v5437_v6  ;;  %v6132_v6 = vld [vmem:[#allocation2 + $0x10a] sm:$0xff] }
 0x5f7   : > { %6022 = vrot.lane.b32.xlu1 %v5940_v60, %s10723_s24 }
 0x5f8   : > { %v4863_v57 = vpop.permute.xlu0 %4862 }
 0x5f9   : > { %4944 = vst.msk [vmem:[#allocation3 + $0x70] sm:$0xff] %vm637_vm3, %v4863_v57  ;;  %v6201_v30 = vpop.permute.xlu1 %6200  ;;  %v6316_v40 = vld [vmem:[#allocation3 + $0x50] sm:$0xff]  ;;  %v5941_v57 = vld [vmem:[#allocation2 + $0x111] sm:$0xff] }
 0x5fa   : > { %5832 = vrot.lane.b32.xlu0 %v13179_v18, %s10722_s23  ;;  %6285 = vst.msk [vmem:[#allocation3 + $0x58] sm:$0xff] %vm1989_vm10, %v6201_v30  ;;  %v6383_v50 = vsel %vm2066_vm11, %v6316_v40, 0 }
 0x5fb   : > { %5450 = vrot.lane.b32.xlu1 %v5940_v60, %s10720_s21  ;;  %v13585_v15 = vand.u32 4294901760, %v6383_v50 }
 0x5fc   : > { %v5627_v62 = vpop.permute.xlu0 %5626 }
 0x5fd   : > { %5710 = vst.msk [vmem:[#allocation3 + $0x60] sm:$0xff] %vm1409_vm7, %v5627_v62  ;;  %v5055_v36 = vpop.permute.xlu1 %5054  ;;  %v13590_v28 = vsub.f32 %v6383_v50, %v13585_v15 }
 0x5fe   : > { %5260 = vrot.lane.b32.xlu0 %v13179_v18, %s10719_s20  ;;  %5136 = vst.msk [vmem:[#allocation3 + $0x70] sm:$0xff] %vm830_vm4, %v5055_v36 }
 0x5ff   : > { %6214 = vrot.lane.b32.xlu1 %v6132_v6, %s10724_s27  ;;  %v15097_v30 = vand.u32 4294901760, %v13590_v28 }
 0x600   : > { %v4865_v12 = vpop.permute.xlu0 %4864 }
 0x601   : > { %4945 = vst.msk [vmem:[#allocation3 + $0x78] sm:$0xff] %vm637_vm3, %v4865_v12  ;;  %v5819_v40 = vpop.permute.xlu1 %5818  ;;  %v6624_v18 = vsub.f32 %v13590_v28, %v15097_v30  ;;  %v6317_v62 = vld [vmem:[#allocation3 + $0x58] sm:$0xff]  ;;  %v6133_v30 = vld [vmem:[#allocation2 + $0x112] sm:$0xff] }
 0x602   : > { %6024 = vrot.lane.b32.xlu0 %v5941_v57, %s10723_s24  ;;  %5902 = vst.msk [vmem:[#allocation3 + $0x60] sm:$0xff] %vm1603_vm8, %v5819_v40  ;;  %v6386_v36 = vsel %vm2066_vm11, %v6317_v62, 0 }
 0x603   : > { %5452 = vrot.lane.b32.xlu1 %v5941_v57, %s10720_s21  ;;  %v6625_v12 = vand.u32 4294901760, %v6624_v18  ;;  %v13604_v31 = vand.u32 4294901760, %v6386_v36 }
 0x604   : > { %v5629_v50 = vpop.permute.xlu0 %5628 }
 0x605   : > { %5711 = vst.msk [vmem:[#allocation3 + $0x68] sm:$0xff] %vm1409_vm7, %v5629_v50  ;;  %v5247_v42 = vpop.permute.xlu1 %5246  ;;  %9879 = vmatprep.mubr.f32.mxu1 %v6625_v12  ;;  %v13608_v10 = vsub.f32 %v6386_v36, %v13604_v31 }
 0x606   : > { %4878 = vrot.lane.b32.xlu0 %v5940_v60, %s10718_s19  ;;  %5328 = vst.msk [vmem:[#allocation3 + $0x70] sm:$0xff] %vm1023_vm5, %v5247_v42 }
 0x607   : > { %6216 = vrot.lane.b32.xlu1 %v6133_v30, %s10724_s27  ;;  %v15098_v62 = vand.u32 4294901760, %v13608_v10 }
 0x608   : > { %v5057_v40 = vpop.permute.xlu0 %5056 }
 0x609   : > { %5137 = vst.msk [vmem:[#allocation3 + $0x78] sm:$0xff] %vm830_vm4, %v5057_v40  ;;  %v6011_v18 = vpop.permute.xlu1 %6010  ;;  %v6634_v60 = vsub.f32 %v13608_v10, %v15098_v62 }
 0x60a   : > { %5642 = vrot.lane.b32.xlu0 %v6132_v6, %s10721_s22  ;;  %6094 = vst.msk [vmem:[#allocation3 + $0x60] sm:$0xff] %vm1796_vm9, %v6011_v18 }
 0x60b   : > { %5070 = vrot.lane.b32.xlu1 %v6132_v6, %s10717_s18  ;;  %v6635_v42 = vand.u32 4294901760, %v6634_v60  ;;  %v5942_v60 = vld [vmem:[#allocation2 + $0x121] sm:$0xff] }
 0x60c   : > { %v5821_v50 = vpop.permute.xlu0 %5820 }
 0x60d   : > { %5903 = vst.msk [vmem:[#allocation3 + $0x68] sm:$0xff] %vm1603_vm8, %v5821_v50  ;;  %v5439_v36 = vpop.permute.xlu1 %5438  ;;  %9880 = vmatmul.mubr.f32.gmra.mrb[10].mxu1 %v6635_v42 }
 0x60e   : > { %4880 = vrot.lane.b32.xlu0 %v5941_v57, %s10718_s19  ;;  %5520 = vst.msk [vmem:[#allocation3 + $0x70] sm:$0xff] %vm1216_vm6, %v5439_v36 }
 0x60f   : > { %5834 = vrot.lane.b32.xlu1 %v13189_v53, %s10722_s23 }
 0x610   : > { %v5249_v12 = vpop.permute.xlu0 %5248 }
 0x611   : > { %5329 = vst.msk [vmem:[#allocation3 + $0x78] sm:$0xff] %vm1023_vm5, %v5249_v12  ;;  %v6203_v40 = vpop.permute.xlu1 %6202 }
 0x612   : > { %5644 = vrot.lane.b32.xlu0 %v6133_v30, %s10721_s22  ;;  %6286 = vst.msk [vmem:[#allocation3 + $0x60] sm:$0xff] %vm1989_vm10, %v6203_v40 }
 0x613   : > { %5262 = vrot.lane.b32.xlu1 %v13189_v53, %s10719_s20 }
 0x614   : > { %v6013_v18 = vpop.permute.xlu0 %6012 }
 0x615   : > { %6095 = vst.msk [vmem:[#allocation3 + $0x68] sm:$0xff] %vm1796_vm9, %v6013_v18  ;;  %v5441_v6 = vpop.permute.xlu1 %5440 }
 0x616   : > { %5072 = vrot.lane.b32.xlu0 %v6133_v30, %s10717_s18  ;;  %5521 = vst.msk [vmem:[#allocation3 + $0x78] sm:$0xff] %vm1216_vm6, %v5441_v6  ;;  %v6134_v6 = vld [vmem:[#allocation2 + $0x122] sm:$0xff] }
 0x617   : > { %6026 = vrot.lane.b32.xlu1 %v5942_v60, %s10723_s24 }
 0x618   : > { %v4867_v57 = vpop.permute.xlu0 %4866 }
 0x619   : > { %4946 = vst.msk [vmem:[#allocation3 + $0x80] sm:$0xff] %vm637_vm3, %v4867_v57  ;;  %v6205_v50 = vpop.permute.xlu1 %6204  ;;  %v6318_v42 = vld [vmem:[#allocation3 + $0x60] sm:$0xff] }
 0x61a   : > { %5836 = vrot.lane.b32.xlu0 %v13195_v7, %s10722_s23  ;;  %6287 = vst.msk [vmem:[#allocation3 + $0x68] sm:$0xff] %vm1989_vm10, %v6205_v50  ;;  %v6389_v53 = vsel %vm2066_vm11, %v6318_v42, 0  ;;  %v5943_v57 = vld [vmem:[#allocation2 + $0x129] sm:$0xff] }
 0x61b   : > { %5454 = vrot.lane.b32.xlu1 %v5942_v60, %s10720_s21  ;;  %v13641_v30 = vand.u32 4294901760, %v6389_v53 }
 0x61c   : > { %v5631_v36 = vpop.permute.xlu0 %5630 }
 0x61d   : > { %5712 = vst.msk [vmem:[#allocation3 + $0x70] sm:$0xff] %vm1409_vm7, %v5631_v36  ;;  %v5059_v12 = vpop.permute.xlu1 %5058  ;;  %v13646_v40 = vsub.f32 %v6389_v53, %v13641_v30 }
 0x61e   : > { %5264 = vrot.lane.b32.xlu0 %v13195_v7, %s10719_s20  ;;  %5138 = vst.msk [vmem:[#allocation3 + $0x80] sm:$0xff] %vm830_vm4, %v5059_v12 }
 0x61f   : > { %6218 = vrot.lane.b32.xlu1 %v6134_v6, %s10724_s27  ;;  %v15101_v50 = vand.u32 4294901760, %v13646_v40 }
 0x620   : > { %v4869_v18 = vpop.permute.xlu0 %4868 }
 0x621   : > { %4947 = vst.msk [vmem:[#allocation3 + $0x88] sm:$0xff] %vm637_vm3, %v4869_v18  ;;  %v5823_v42 = vpop.permute.xlu1 %5822  ;;  %v6644_v7 = vsub.f32 %v13646_v40, %v15101_v50  ;;  %v6319_v36 = vld [vmem:[#allocation3 + $0x68] sm:$0xff]  ;;  %v6135_v50 = vld [vmem:[#allocation2 + $0x12a] sm:$0xff] }
 0x622   : > { %6028 = vrot.lane.b32.xlu0 %v5943_v57, %s10723_s24  ;;  %5904 = vst.msk [vmem:[#allocation3 + $0x70] sm:$0xff] %vm1603_vm8, %v5823_v42  ;;  %v6392_v12 = vsel %vm2066_vm11, %v6319_v36, 0 }
 0x623   : > { %5456 = vrot.lane.b32.xlu1 %v5943_v57, %s10720_s21  ;;  %v6645_v18 = vand.u32 4294901760, %v6644_v7  ;;  %v13660_v62 = vand.u32 4294901760, %v6392_v12 }
 0x624   : > { %v5633_v53 = vpop.permute.xlu0 %5632 }
 0x625   : > { %5713 = vst.msk [vmem:[#allocation3 + $0x78] sm:$0xff] %vm1409_vm7, %v5633_v53  ;;  %v5251_v52 = vpop.permute.xlu1 %5250  ;;  %9882 = vmatprep.mubr.f32.mxu1 %v6645_v18  ;;  %v13664_v45 = vsub.f32 %v6392_v12, %v13660_v62 }
 0x626   : > { %4882 = vrot.lane.b32.xlu0 %v5942_v60, %s10718_s19  ;;  %5330 = vst.msk [vmem:[#allocation3 + $0x80] sm:$0xff] %vm1023_vm5, %v5251_v52 }
 0x627   : > { %6220 = vrot.lane.b32.xlu1 %v6135_v50, %s10724_s27  ;;  %v15102_v36 = vand.u32 4294901760, %v13664_v45 }
 0x628   : > { %v5061_v42 = vpop.permute.xlu0 %5060 }
 0x629   : > { %5139 = vst.msk [vmem:[#allocation3 + $0x88] sm:$0xff] %vm830_vm4, %v5061_v42  ;;  %v6015_v7 = vpop.permute.xlu1 %6014  ;;  %v6654_v60 = vsub.f32 %v13664_v45, %v15102_v36 }
 0x62a   : > { %5646 = vrot.lane.b32.xlu0 %v6134_v6, %s10721_s22  ;;  %6096 = vst.msk [vmem:[#allocation3 + $0x70] sm:$0xff] %vm1796_vm9, %v6015_v7 }
 0x62b   : > { %5074 = vrot.lane.b32.xlu1 %v6134_v6, %s10717_s18  ;;  %v6655_v52 = vand.u32 4294901760, %v6654_v60  ;;  %v5944_v60 = vld [vmem:[#allocation2 + $0x139] sm:$0xff] }
 0x62c   : > { %v5825_v53 = vpop.permute.xlu0 %5824 }
 0x62d   : > { %5905 = vst.msk [vmem:[#allocation3 + $0x78] sm:$0xff] %vm1603_vm8, %v5825_v53  ;;  %v5443_v12 = vpop.permute.xlu1 %5442  ;;  %9883 = vmatmul.mubr.f32.gmra.mrb[12].mxu1 %v6655_v52 }
 0x62e   : > { %4884 = vrot.lane.b32.xlu0 %v5943_v57, %s10718_s19  ;;  %5522 = vst.msk [vmem:[#allocation3 + $0x80] sm:$0xff] %vm1216_vm6, %v5443_v12 }
 0x62f   : > { %5838 = vrot.lane.b32.xlu1 %v13200_v55, %s10722_s23 }
 0x630   : > { %v5253_v18 = vpop.permute.xlu0 %5252 }
 0x631   : > { %5331 = vst.msk [vmem:[#allocation3 + $0x88] sm:$0xff] %vm1023_vm5, %v5253_v18  ;;  %v6207_v42 = vpop.permute.xlu1 %6206 }
 0x632   : > { %5648 = vrot.lane.b32.xlu0 %v6135_v50, %s10721_s22  ;;  %6288 = vst.msk [vmem:[#allocation3 + $0x70] sm:$0xff] %vm1989_vm10, %v6207_v42 }
 0x633   : > { %5266 = vrot.lane.b32.xlu1 %v13200_v55, %s10719_s20 }
 0x634   : > { %v6017_v7 = vpop.permute.xlu0 %6016 }
 0x635   : > { %6097 = vst.msk [vmem:[#allocation3 + $0x78] sm:$0xff] %vm1796_vm9, %v6017_v7  ;;  %v5445_v6 = vpop.permute.xlu1 %5444 }
 0x636   : > { %5076 = vrot.lane.b32.xlu0 %v6135_v50, %s10717_s18  ;;  %5523 = vst.msk [vmem:[#allocation3 + $0x88] sm:$0xff] %vm1216_vm6, %v5445_v6  ;;  %v6136_v6 = vld [vmem:[#allocation2 + $0x13a] sm:$0xff] }
 0x637   : > { %6030 = vrot.lane.b32.xlu1 %v5944_v60, %s10723_s24 }
 0x638   : > { %v4871_v57 = vpop.permute.xlu0 %4870 }
 0x639   : > { %4948 = vst.msk [vmem:[#allocation3 + $0x90] sm:$0xff] %vm637_vm3, %v4871_v57  ;;  %v6209_v53 = vpop.permute.xlu1 %6208  ;;  %v6320_v52 = vld [vmem:[#allocation3 + $0x70] sm:$0xff] }
 0x63a   : > { %5840 = vrot.lane.b32.xlu0 %v13206_v38, %s10722_s23  ;;  %6289 = vst.msk [vmem:[#allocation3 + $0x78] sm:$0xff] %vm1989_vm10, %v6209_v53  ;;  %v6395_v55 = vsel %vm2066_vm11, %v6320_v52, 0  ;;  %v5945_v57 = vld [vmem:[#allocation2 + $0x141] sm:$0xff] }
 0x63b   : > { %5458 = vrot.lane.b32.xlu1 %v5944_v60, %s10720_s21  ;;  %v13697_v50 = vand.u32 4294901760, %v6395_v55 }
 0x63c   : > { %v5635_v12 = vpop.permute.xlu0 %5634 }
 0x63d   : > { %5714 = vst.msk [vmem:[#allocation3 + $0x80] sm:$0xff] %vm1409_vm7, %v5635_v12  ;;  %v5063_v18 = vpop.permute.xlu1 %5062  ;;  %v13702_v42 = vsub.f32 %v6395_v55, %v13697_v50 }
 0x63e   : > { %5268 = vrot.lane.b32.xlu0 %v13206_v38, %s10719_s20  ;;  %5140 = vst.msk [vmem:[#allocation3 + $0x90] sm:$0xff] %vm830_vm4, %v5063_v18 }
 0x63f   : > { %15370 = vst [vmem:[#allocation70_spill] sm:$0xff] %v13702_v42  ;;  %6222 = vrot.lane.b32.xlu1 %v6136_v6, %s10724_s27  ;;  %v15105_v53 = vand.u32 4294901760, %v13702_v42 }
 0x640   : > { %v4873_v7 = vpop.permute.xlu0 %4872 }
 0x641   : > { %4949 = vst.msk [vmem:[#allocation3 + $0x98] sm:$0xff] %vm637_vm3, %v4873_v7  ;;  %v5827_v52 = vpop.permute.xlu1 %5826  ;;  %v6664_v38 = vsub.f32 %v13702_v42, %v15105_v53  ;;  %v6321_v12 = vld [vmem:[#allocation3 + $0x78] sm:$0xff] }
 0x642   : > { %6032 = vrot.lane.b32.xlu0 %v5945_v57, %s10723_s24  ;;  %5906 = vst.msk [vmem:[#allocation3 + $0x80] sm:$0xff] %vm1603_vm8, %v5827_v52  ;;  %v6398_v18 = vsel %vm2066_vm11, %v6321_v12, 0  ;;  %v6137_v53 = vld [vmem:[#allocation2 + $0x142] sm:$0xff] }
 0x643   : > { %5460 = vrot.lane.b32.xlu1 %v5945_v57, %s10720_s21  ;;  %v6665_v7 = vand.u32 4294901760, %v6664_v38  ;;  %v13716_v36 = vand.u32 4294901760, %v6398_v18 }
 0x644   : > { %v5637_v55 = vpop.permute.xlu0 %5636 }
 0x645   : > { %5715 = vst.msk [vmem:[#allocation3 + $0x88] sm:$0xff] %vm1409_vm7, %v5637_v55  ;;  %v5255_v22 = vpop.permute.xlu1 %5254  ;;  %9885 = vmatprep.mubr.f32.mxu1 %v6665_v7  ;;  %v13720_v32 = vsub.f32 %v6398_v18, %v13716_v36 }
 0x646   : > { %4886 = vrot.lane.b32.xlu0 %v5944_v60, %s10718_s19  ;;  %5332 = vst.msk [vmem:[#allocation3 + $0x90] sm:$0xff] %vm1023_vm5, %v5255_v22 }
 0x647   : > { %15371 = vst [vmem:[#allocation71_spill] sm:$0xff] %v13720_v32  ;;  %6224 = vrot.lane.b32.xlu1 %v6137_v53, %s10724_s27  ;;  %v15106_v12 = vand.u32 4294901760, %v13720_v32 }
 0x648   : > { %v5065_v52 = vpop.permute.xlu0 %5064 }
 0x649   : > { %5141 = vst.msk [vmem:[#allocation3 + $0x98] sm:$0xff] %vm830_vm4, %v5065_v52  ;;  %v6019_v38 = vpop.permute.xlu1 %6018  ;;  %v6674_v60 = vsub.f32 %v13720_v32, %v15106_v12 }
 0x64a   : > { %5650 = vrot.lane.b32.xlu0 %v6136_v6, %s10721_s22  ;;  %6098 = vst.msk [vmem:[#allocation3 + $0x80] sm:$0xff] %vm1796_vm9, %v6019_v38 }
 0x64b   : > { %5078 = vrot.lane.b32.xlu1 %v6136_v6, %s10717_s18  ;;  %v6675_v22 = vand.u32 4294901760, %v6674_v60  ;;  %v5946_v60 = vld [vmem:[#allocation2 + $0x151] sm:$0xff] }
 0x64c   : > { %v5829_v55 = vpop.permute.xlu0 %5828 }
 0x64d   : > { %5907 = vst.msk [vmem:[#allocation3 + $0x88] sm:$0xff] %vm1603_vm8, %v5829_v55  ;;  %v5447_v18 = vpop.permute.xlu1 %5446  ;;  %9886 = vmatmul.mubr.f32.gmra.mrb[14].mxu1 %v6675_v22 }
 0x64e   : > { %4888 = vrot.lane.b32.xlu0 %v5945_v57, %s10718_s19  ;;  %5524 = vst.msk [vmem:[#allocation3 + $0x90] sm:$0xff] %vm1216_vm6, %v5447_v18 }
 0x64f   : > { %5842 = vrot.lane.b32.xlu1 %v13213_v16, %s10722_s23 }
 0x650   : > { %v5257_v7 = vpop.permute.xlu0 %5256 }
 0x651   : > { %5333 = vst.msk [vmem:[#allocation3 + $0x98] sm:$0xff] %vm1023_vm5, %v5257_v7  ;;  %v6211_v52 = vpop.permute.xlu1 %6210 }
 0x652   : > { %5652 = vrot.lane.b32.xlu0 %v6137_v53, %s10721_s22  ;;  %6290 = vst.msk [vmem:[#allocation3 + $0x80] sm:$0xff] %vm1989_vm10, %v6211_v52 }
 0x653   : > { %5270 = vrot.lane.b32.xlu1 %v13213_v16, %s10719_s20 }
 0x654   : > { %v6021_v38 = vpop.permute.xlu0 %6020 }
 0x655   : > { %6099 = vst.msk [vmem:[#allocation3 + $0x88] sm:$0xff] %vm1796_vm9, %v6021_v38  ;;  %v5449_v6 = vpop.permute.xlu1 %5448 }
 0x656   : > { %5080 = vrot.lane.b32.xlu0 %v6137_v53, %s10717_s18  ;;  %5525 = vst.msk [vmem:[#allocation3 + $0x98] sm:$0xff] %vm1216_vm6, %v5449_v6  ;;  %v6138_v6 = vld [vmem:[#allocation2 + $0x152] sm:$0xff] }
 0x657   : > { %6034 = vrot.lane.b32.xlu1 %v5946_v60, %s10723_s24 }
 0x658   : > { %v4875_v57 = vpop.permute.xlu0 %4874 }
 0x659   : > { %4950 = vst.msk [vmem:[#allocation3 + $0xa0] sm:$0xff] %vm637_vm3, %v4875_v57  ;;  %v6213_v55 = vpop.permute.xlu1 %6212  ;;  %v6322_v22 = vld [vmem:[#allocation3 + $0x80] sm:$0xff]  ;;  %v5947_v57 = vld [vmem:[#allocation2 + $0x159] sm:$0xff] }
 0x65a   : > { %5844 = vrot.lane.b32.xlu0 %v13215_v8, %s10722_s23  ;;  %6291 = vst.msk [vmem:[#allocation3 + $0x88] sm:$0xff] %vm1989_vm10, %v6213_v55  ;;  %v6401_v16 = vsel %vm2066_vm11, %v6322_v22, 0 }
 0x65b   : > { %5462 = vrot.lane.b32.xlu1 %v5946_v60, %s10720_s21  ;;  %v13753_v53 = vand.u32 4294901760, %v6401_v16 }
 0x65c   : > { %v5639_v18 = vpop.permute.xlu0 %5638 }
 0x65d   : > { %5716 = vst.msk [vmem:[#allocation3 + $0x90] sm:$0xff] %vm1409_vm7, %v5639_v18  ;;  %v5067_v7 = vpop.permute.xlu1 %5066  ;;  %v13758_v52 = vsub.f32 %v6401_v16, %v13753_v53 }
 0x65e   : > { %5272 = vrot.lane.b32.xlu0 %v13215_v8, %s10719_s20  ;;  %5142 = vst.msk [vmem:[#allocation3 + $0xa0] sm:$0xff] %vm830_vm4, %v5067_v7 }
 0x65f   : > { %15372 = vst [vmem:[#allocation72_spill] sm:$0xff] %v13758_v52  ;;  %6226 = vrot.lane.b32.xlu1 %v6138_v6, %s10724_s27  ;;  %v15109_v55 = vand.u32 4294901760, %v13758_v52 }
 0x660   : > { %v4877_v38 = vpop.permute.xlu0 %4876 }
 0x661   : > { %4951 = vst.msk [vmem:[#allocation3 + $0xa8] sm:$0xff] %vm637_vm3, %v4877_v38  ;;  %v5831_v22 = vpop.permute.xlu1 %5830  ;;  %v6684_v8 = vsub.f32 %v13758_v52, %v15109_v55  ;;  %v6323_v18 = vld [vmem:[#allocation3 + $0x88] sm:$0xff] }
 0x662   : > { %6036 = vrot.lane.b32.xlu0 %v5947_v57, %s10723_s24  ;;  %5908 = vst.msk [vmem:[#allocation3 + $0x90] sm:$0xff] %vm1603_vm8, %v5831_v22  ;;  %v6404_v7 = vsel %vm2066_vm11, %v6323_v18, 0  ;;  %v6139_v55 = vld [vmem:[#allocation2 + $0x15a] sm:$0xff] }
 0x663   : > { %5464 = vrot.lane.b32.xlu1 %v5947_v57, %s10720_s21  ;;  %v6685_v38 = vand.u32 4294901760, %v6684_v8  ;;  %v13772_v12 = vand.u32 4294901760, %v6404_v7 }
 0x664   : > { %v5641_v16 = vpop.permute.xlu0 %5640 }
 0x665   : > { %5717 = vst.msk [vmem:[#allocation3 + $0x98] sm:$0xff] %vm1409_vm7, %v5641_v16  ;;  %v5259_v2 = vpop.permute.xlu1 %5258  ;;  %9888 = vmatprep.mubr.f32.mxu1 %v6685_v38  ;;  %v13776_v1 = vsub.f32 %v6404_v7, %v13772_v12 }
 0x666   : > { %4890 = vrot.lane.b32.xlu0 %v5946_v60, %s10718_s19  ;;  %5334 = vst.msk [vmem:[#allocation3 + $0xa0] sm:$0xff] %vm1023_vm5, %v5259_v2 }
 0x667   : > { %15373 = vst [vmem:[#allocation73_spill] sm:$0xff] %v13776_v1  ;;  %6228 = vrot.lane.b32.xlu1 %v6139_v55, %s10724_s27  ;;  %v15110_v18 = vand.u32 4294901760, %v13776_v1 }
 0x668   : > { %v5069_v22 = vpop.permute.xlu0 %5068 }
 0x669   : > { %5143 = vst.msk [vmem:[#allocation3 + $0xa8] sm:$0xff] %vm830_vm4, %v5069_v22  ;;  %v6023_v8 = vpop.permute.xlu1 %6022  ;;  %v6694_v60 = vsub.f32 %v13776_v1, %v15110_v18 }
 0x66a   : > { %5654 = vrot.lane.b32.xlu0 %v6138_v6, %s10721_s22  ;;  %6100 = vst.msk [vmem:[#allocation3 + $0x90] sm:$0xff] %vm1796_vm9, %v6023_v8 }
 0x66b   : > { %5082 = vrot.lane.b32.xlu1 %v6138_v6, %s10717_s18  ;;  %v6695_v2 = vand.u32 4294901760, %v6694_v60  ;;  %v5948_v60 = vld [vmem:[#allocation2 + $0x169] sm:$0xff] }
 0x66c   : > { %v5833_v16 = vpop.permute.xlu0 %5832 }
 0x66d   : > { %5909 = vst.msk [vmem:[#allocation3 + $0x98] sm:$0xff] %vm1603_vm8, %v5833_v16  ;;  %v5451_v7 = vpop.permute.xlu1 %5450  ;;  %9889 = vmatmul.mubr.f32.gmra.mrb[16].mxu1 %v6695_v2 }
 0x66e   : > { %4892 = vrot.lane.b32.xlu0 %v5947_v57, %s10718_s19  ;;  %5526 = vst.msk [vmem:[#allocation3 + $0xa0] sm:$0xff] %vm1216_vm6, %v5451_v7 }
 0x66f   : > { %5846 = vrot.lane.b32.xlu1 %v13222_v9, %s10722_s23 }
 0x670   : > { %v5261_v38 = vpop.permute.xlu0 %5260 }
 0x671   : > { %5335 = vst.msk [vmem:[#allocation3 + $0xa8] sm:$0xff] %vm1023_vm5, %v5261_v38  ;;  %v6215_v22 = vpop.permute.xlu1 %6214  ;;  %v10704_v38 = vld [vmem:[%s14893_s1 + $0x28] sm:$0xff] }
 0x672   : > { %5656 = vrot.lane.b32.xlu0 %v6139_v55, %s10721_s22  ;;  %6292 = vst.msk [vmem:[#allocation3 + $0x90] sm:$0xff] %vm1989_vm10, %v6215_v22  ;;  %v15375_v22 = vand.u32 4294901760, %v13035_v35 }
 0x673   : > { %5274 = vrot.lane.b32.xlu1 %v13222_v9, %s10719_s20 }
 0x674   : > { %v6025_v8 = vpop.permute.xlu0 %6024 }
 0x675   : > { %6101 = vst.msk [vmem:[#allocation3 + $0x98] sm:$0xff] %vm1796_vm9, %v6025_v8  ;;  %v5453_v6 = vpop.permute.xlu1 %5452  ;;  %v13816_v8 = vsub.f32 %v10704_v38, %v15375_v22  ;;  %v6140_v22 = vld [vmem:[#allocation2 + $0x16a] sm:$0xff] }
 0x676   : > { %5084 = vrot.lane.b32.xlu0 %v6139_v55, %s10717_s18  ;;  %5527 = vst.msk [vmem:[#allocation3 + $0xa8] sm:$0xff] %vm1216_vm6, %v5453_v6  ;;  %v10705_v6 = vld [vmem:[%s14893_s1 + $0x30] sm:$0xff] }
 0x677   : > { %6038 = vrot.lane.b32.xlu1 %v5948_v60, %s10723_s24  ;;  %v15116_v18 = vand.u32 4294901760, %v13816_v8 }
 0x678   : > { %v4879_v57 = vpop.permute.xlu0 %4878 }
 0x679   : > { %4952 = vst.msk [vmem:[#allocation3 + $0xb0] sm:$0xff] %vm637_vm3, %v4879_v57  ;;  %v6217_v16 = vpop.permute.xlu1 %6216  ;;  %v6324_v2 = vld [vmem:[#allocation3 + $0x90] sm:$0xff]  ;;  %v15376_v57 = vand.u32 4294901760, %v13040_v54  ;;  %v5949_v54 = vld [vmem:[#allocation2 + $0x171] sm:$0xff] }
 0x67a   : > { %5848 = vrot.lane.b32.xlu0 %v13224_v63, %s10722_s23  ;;  %6293 = vst.msk [vmem:[#allocation3 + $0x98] sm:$0xff] %vm1989_vm10, %v6217_v16  ;;  %v6407_v9 = vsel %vm2066_vm11, %v6324_v2, 0 }
 0x67b   : > { %5466 = vrot.lane.b32.xlu1 %v5948_v60, %s10720_s21  ;;  %v13809_v55 = vand.u32 4294901760, %v6407_v9  ;;  %v13823_v16 = vsub.f32 %v10705_v6, %v15376_v57 }
 0x67c   : > { %v5643_v7 = vpop.permute.xlu0 %5642 }
 0x67d   : > { %5718 = vst.msk [vmem:[#allocation3 + $0xa0] sm:$0xff] %vm1409_vm7, %v5643_v7  ;;  %15374 = vst [vmem:[#allocation74_spill] sm:$0xff] %v13809_v55  ;;  %v5071_v2 = vpop.permute.xlu1 %5070  ;;  %v13828_v7 = vsub.f32 %v6407_v9, %v13809_v55  ;;  %v15115_v35 = vand.u32 4294901760, %v13823_v16 }
 0x67e   : > { %5276 = vrot.lane.b32.xlu0 %v13224_v63, %s10719_s20  ;;  %5144 = vst.msk [vmem:[#allocation3 + $0xb0] sm:$0xff] %vm830_vm4, %v5071_v2  ;;  %v6845_v63 = vsub.f32 %v13816_v8, %v15116_v18 }
 0x67f   : > { %15377 = vst [vmem:[#allocation75_spill] sm:$0xff] %v13828_v7  ;;  %6230 = vrot.lane.b32.xlu1 %v6140_v22, %s10724_s27  ;;  %v15120_v6 = vand.u32 4294901760, %v13828_v7  ;;  %v6852_v9 = vsub.f32 %v13823_v16, %v15115_v35 }
 0x680   : > { %v4881_v38 = vpop.permute.xlu0 %4880  ;;  %v6846_v29 = vand.u32 4294901760, %v6845_v63 }
 0x681   : > { %4953 = vst.msk [vmem:[#allocation3 + $0xb8] sm:$0xff] %vm637_vm3, %v4881_v38  ;;  %v5835_v57 = vpop.permute.xlu1 %5834  ;;  %v6704_v2 = vsub.f32 %v13828_v7, %v15120_v6  ;;  %v6325_v38 = vld [vmem:[#allocation3 + $0x98] sm:$0xff]  ;;  %v6853_v43 = vand.u32 4294901760, %v6852_v9 }
 0x682   : > { %6040 = vrot.lane.b32.xlu0 %v5949_v54, %s10723_s24  ;;  %5910 = vst.msk [vmem:[#allocation3 + $0xa0] sm:$0xff] %vm1603_vm8, %v5835_v57  ;;  %v6410_v49 = vsel %vm2066_vm11, %v6325_v38, 0  ;;  %v6141_v57 = vld [vmem:[#allocation2 + $0x172] sm:$0xff] }
 0x683   : > { %5468 = vrot.lane.b32.xlu1 %v5949_v54, %s10720_s21  ;;  %v6705_v35 = vand.u32 4294901760, %v6704_v2  ;;  %v13850_v18 = vand.u32 4294901760, %v6410_v49  ;;  %v10258_v44 = vpack.c.bf16 %v6853_v43, %v6846_v29 }
 0x684   : > { %v5645_v3 = vpop.permute.xlu0 %5644 }
 0x685   : > { %5719 = vst.msk [vmem:[#allocation3 + $0xa8] sm:$0xff] %vm1409_vm7, %v5645_v3  ;;  %15378 = vst [vmem:[#allocation76_spill] sm:$0xff] %v13850_v18  ;;  %v5263_v33 = vpop.permute.xlu1 %5262  ;;  %9891 = vmatprep.mubr.f32.mxu1 %v6705_v35  ;;  %v13854_v63 = vsub.f32 %v6410_v49, %v13850_v18  ;;  %10259 = vmatprep.subr.bf16.mxu1 %v10258_v44  ;;  %v5758_v35 = vld [vmem:[#allocation2 + $0x180] sm:$0xff] }
 0x686   : > { %4894 = vrot.lane.b32.xlu0 %v5948_v60, %s10718_s19  ;;  %5336 = vst.msk [vmem:[#allocation3 + $0xb0] sm:$0xff] %vm1023_vm5, %v5263_v33  ;;  %10261 = vmatpush3.bf16.msra.mxu1 %v10258_v44 }
 0x687   : > { %15379 = vst [vmem:[#allocation77_spill] sm:$0xff] %v13854_v63  ;;  %6232 = vrot.lane.b32.xlu1 %v6141_v57, %s10724_s27  ;;  %v15119_v3 = vand.u32 4294901760, %v13854_v63 }
 0x688   : > { %v5073_v9 = vpop.permute.xlu0 %5072 }
 0x689   : > { %5145 = vst.msk [vmem:[#allocation3 + $0xb8] sm:$0xff] %vm830_vm4, %v5073_v9  ;;  %v6027_v43 = vpop.permute.xlu1 %6026  ;;  %v6714_v49 = vsub.f32 %v13854_v63, %v15119_v3 }
 0x68a   : > { %5658 = vrot.lane.b32.xlu0 %v6140_v22, %s10721_s22  ;;  %6102 = vst.msk [vmem:[#allocation3 + $0xa0] sm:$0xff] %vm1796_vm9, %v6027_v43  ;;  %v10707_v43 = vld [vmem:[%s14893_s1 + $0x40] sm:$0xff] }
 0x68b   : > { %5086 = vrot.lane.b32.xlu1 %v6140_v22, %s10717_s18  ;;  %v6715_v33 = vand.u32 4294901760, %v6714_v49  ;;  %v10706_v22 = vld [vmem:[%s14893_s1 + $0x38] sm:$0xff]  ;;  %v15382_v49 = vand.u32 4294901760, %v13054_v13 }
 0x68c   : > { %v5837_v29 = vpop.permute.xlu0 %5836 }
 0x68d   : > { %5911 = vst.msk [vmem:[#allocation3 + $0xa8] sm:$0xff] %vm1603_vm8, %v5837_v29  ;;  %v5455_v44 = vpop.permute.xlu1 %5454  ;;  %9892 = vmatmul.mubr.f32.gmra.mrb[18].mxu1 %v6715_v33  ;;  %v13887_v29 = vsub.f32 %v10707_v43, %v15382_v49 }
 0x68e   : > { %4896 = vrot.lane.b32.xlu0 %v5949_v54, %s10718_s19  ;;  %5528 = vst.msk [vmem:[#allocation3 + $0xb0] sm:$0xff] %vm1216_vm6, %v5455_v44  ;;  %v15380_v54 = vand.u32 4294901760, %v13049_v39 }
 0x68f   : > { %5850 = vrot.lane.b32.xlu1 %v5758_v35, %s10722_s23  ;;  %15383 = vst [vmem:[#allocation79_spill] sm:$0xff] %v13887_v29 }
 0x690   : > { %v5265_v60 = vpop.permute.xlu0 %5264  ;;  %v13880_v9 = vsub.f32 %v10706_v22, %v15380_v54 }
 0x691   : > { %5337 = vst.msk [vmem:[#allocation3 + $0xb8] sm:$0xff] %vm1023_vm5, %v5265_v60  ;;  %v6219_v2 = vpop.permute.xlu1 %6218  ;;  %v15121_v60 = vand.u32 4294901760, %v13887_v29 }
 0x692   : > { %5660 = vrot.lane.b32.xlu0 %v6141_v57, %s10721_s22  ;;  %6294 = vst.msk [vmem:[#allocation3 + $0xa0] sm:$0xff] %vm1989_vm10, %v6219_v2  ;;  %15381 = vst [vmem:[#allocation78_spill] sm:$0xff] %v13880_v9  ;;  %v15123_v44 = vand.u32 4294901760, %v13880_v9  ;;  %v5759_v2 = vld [vmem:[#allocation2 + $0x188] sm:$0xff] }
 0x693   : > { %5278 = vrot.lane.b32.xlu1 %v5758_v35, %s10719_s20  ;;  %v5950_v35 = vld [vmem:[#allocation2 + $0x181] sm:$0xff] }
 0x694   : > { %v6029_v38 = vpop.permute.xlu0 %6028  ;;  %v6859_v13 = vsub.f32 %v13880_v9, %v15123_v44 }
 0x695   : > { %6103 = vst.msk [vmem:[#allocation3 + $0xa8] sm:$0xff] %vm1796_vm9, %v6029_v38  ;;  %v5457_v33 = vpop.permute.xlu1 %5456 }
 0x696   : > { %5088 = vrot.lane.b32.xlu0 %v6141_v57, %s10717_s18  ;;  %5529 = vst.msk [vmem:[#allocation3 + $0xb8] sm:$0xff] %vm1216_vm6, %v5457_v33  ;;  %v6866_v57 = vsub.f32 %v13887_v29, %v15121_v60  ;;  %v6860_v54 = vand.u32 4294901760, %v6859_v13 }
 0x697   : > { %6042 = vrot.lane.b32.xlu1 %v5950_v35, %s10723_s24 }
 0x698   : > { %v4883_v39 = vpop.permute.xlu0 %4882  ;;  %v6867_v43 = vand.u32 4294901760, %v6866_v57  ;;  %v6142_v57 = vld [vmem:[#allocation2 + $0x182] sm:$0xff] }
 0x699   : > { %4954 = vst.msk [vmem:[#allocation3 + $0xc0] sm:$0xff] %vm637_vm3, %v4883_v39  ;;  %v6221_v38 = vpop.permute.xlu1 %6220  ;;  %v6326_v22 = vld [vmem:[#allocation3 + $0xa0] sm:$0xff] }
 0x69a   : > { %5852 = vrot.lane.b32.xlu0 %v5759_v2, %s10722_s23  ;;  %6295 = vst.msk [vmem:[#allocation3 + $0xa8] sm:$0xff] %vm1989_vm10, %v6221_v38  ;;  %v6413_v33 = vsel %vm2066_vm11, %v6326_v22, 0  ;;  %v10262_v3 = vpack.c.bf16 %v6867_v43, %v6860_v54 }
 0x69b   : > { %5470 = vrot.lane.b32.xlu1 %v5950_v35, %s10720_s21  ;;  %v13906_v39 = vand.u32 4294901760, %v6413_v33  ;;  %v5951_v35 = vld [vmem:[#allocation2 + $0x189] sm:$0xff] }
 0x69c   : > { %v5647_v49 = vpop.permute.xlu0 %5646  ;;  %10263 = vmatprep.subr.bf16.mxu1 %v10262_v3 }
 0x69d   : > { %5720 = vst.msk [vmem:[#allocation3 + $0xb0] sm:$0xff] %vm1409_vm7, %v5647_v49  ;;  %15384 = vst [vmem:[#allocation80_spill] sm:$0xff] %v13906_v39  ;;  %v5075_v6 = vpop.permute.xlu1 %5074  ;;  %v13910_v60 = vsub.f32 %v6413_v33, %v13906_v39  ;;  %10265 = vmatpush3.bf16.msra.mxu1 %v10262_v3 }
 0x69e   : > { %5280 = vrot.lane.b32.xlu0 %v5759_v2, %s10719_s20  ;;  %5146 = vst.msk [vmem:[#allocation3 + $0xc0] sm:$0xff] %vm830_vm4, %v5075_v6 }
 0x69f   : > { %15385 = vst [vmem:[#allocation81_spill] sm:$0xff] %v13910_v60  ;;  %6234 = vrot.lane.b32.xlu1 %v6142_v57, %s10724_s27  ;;  %v15122_v38 = vand.u32 4294901760, %v13910_v60 }
 0x6a0   : > { %v4885_v13 = vpop.permute.xlu0 %4884 }
 0x6a1   : > { %4955 = vst.msk [vmem:[#allocation3 + $0xc8] sm:$0xff] %vm637_vm3, %v4885_v13  ;;  %v5839_v2 = vpop.permute.xlu1 %5838  ;;  %v6724_v22 = vsub.f32 %v13910_v60, %v15122_v38  ;;  %v6327_v54 = vld [vmem:[#allocation3 + $0xa8] sm:$0xff]  ;;  %v5569_v38 = vld [vmem:[#allocation2 + $0x18a] sm:$0xff] }
 0x6a2   : > { %6044 = vrot.lane.b32.xlu0 %v5951_v35, %s10723_s24  ;;  %5912 = vst.msk [vmem:[#allocation3 + $0xb0] sm:$0xff] %vm1603_vm8, %v5839_v2  ;;  %v6416_v3 = vsel %vm2066_vm11, %v6327_v54, 0 }
 0x6a3   : > { %5662 = vrot.lane.b32.xlu1 %v6142_v57, %s10721_s22  ;;  %v6725_v43 = vand.u32 4294901760, %v6724_v22  ;;  %v13924_v49 = vand.u32 4294901760, %v6416_v3  ;;  %v13936_v22 = vsub.f32 %v13108_v4, %v13124_v26 }
 0x6a4   : > { %v5649_v6 = vpop.permute.xlu0 %5648 }
 0x6a5   : > { %5721 = vst.msk [vmem:[#allocation3 + $0xb8] sm:$0xff] %vm1409_vm7, %v5649_v6  ;;  %15386 = vst [vmem:[#allocation82_spill] sm:$0xff] %v13924_v49  ;;  %v5267_v33 = vpop.permute.xlu1 %5266  ;;  %9894 = vmatprep.mubr.f32.mxu1 %v6725_v43  ;;  %v13928_v13 = vsub.f32 %v6416_v3, %v13924_v49  ;;  %v5760_v6 = vld [vmem:[#allocation2 + $0x198] sm:$0xff]  ;;  %v13943_v43 = vand.u32 4294901760, %v13936_v22 }
 0x6a6   : > { %5472 = vrot.lane.b32.xlu0 %v5951_v35, %s10720_s21  ;;  %5338 = vst.msk [vmem:[#allocation3 + $0xc0] sm:$0xff] %vm1023_vm5, %v5267_v33  ;;  %v5761_v35 = vld [vmem:[#allocation2 + $0x1a0] sm:$0xff] }
 0x6a7   : > { %15387 = vst [vmem:[#allocation83_spill] sm:$0xff] %v13928_v13  ;;  %5664 = vrot.lane.b32.xlu1 %v5569_v38, %s10721_s22  ;;  %v15124_v57 = vand.u32 4294901760, %v13928_v13  ;;  %15388 = vst [vmem:[#allocation84_spill] sm:$0xff] %v13943_v43 }
 0x6a8   : > { %v5077_v2 = vpop.permute.xlu0 %5076 }
 0x6a9   : > { %5147 = vst.msk [vmem:[#allocation3 + $0xc8] sm:$0xff] %vm830_vm4, %v5077_v2  ;;  %v6031_v54 = vpop.permute.xlu1 %6030  ;;  %v6734_v3 = vsub.f32 %v13928_v13, %v15124_v57  ;;  %v5953_v2 = vld [vmem:[#allocation2 + $0x1a1] sm:$0xff]  ;;  %v5952_v57 = vld [vmem:[#allocation2 + $0x199] sm:$0xff] }
 0x6aa   : > { %6236 = vrot.lane.b32.xlu0 %v5569_v38, %s10724_s27  ;;  %6104 = vst.msk [vmem:[#allocation3 + $0xb0] sm:$0xff] %vm1796_vm9, %v6031_v54  ;;  %v6873_v38 = vsub.f32 %v13936_v22, %v13943_v43 }
 0x6ab   : > { %5856 = vrot.lane.b32.xlu1 %v5761_v35, %s10722_s23  ;;  %v6735_v4 = vand.u32 4294901760, %v6734_v3  ;;  %v6145_v35 = vld [vmem:[#allocation2 + $0x1a2] sm:$0xff]  ;;  %v6144_v3 = vld [vmem:[#allocation2 + $0x19a] sm:$0xff] }
 0x6ac   : > { %v5841_v33 = vpop.permute.xlu0 %5840  ;;  %v6874_v17 = vand.u32 4294901760, %v6873_v38 }
 0x6ad   : > { %5913 = vst.msk [vmem:[#allocation3 + $0xb8] sm:$0xff] %vm1603_vm8, %v5841_v33  ;;  %v5459_v44 = vpop.permute.xlu1 %5458  ;;  %9895 = vmatmul.mubr.f32.gmra.mrb[20].mxu1 %v6735_v4 }
 0x6ae   : > { %5854 = vrot.lane.b32.xlu0 %v5760_v6, %s10722_s23  ;;  %5530 = vst.msk [vmem:[#allocation3 + $0xc0] sm:$0xff] %vm1216_vm6, %v5459_v44  ;;  %9920 = vmatprep.subr.mxu1 %v6874_v17  ;;  %s14534_s23 = scalar_lea.vmem %s14895_s3, %s9060_s14 }
 0x6af   : > { %6048 = vrot.lane.b32.xlu1 %v5953_v2, %s10723_s24  ;;  %9921 = vmatpush3.msra.mxu1 %v6874_v17  ;;  %v13968_v2 = vpack.c.bf16 %v13823_v16, %v13816_v8 }
 0x6b0   : > { %v5269_v13 = vpop.permute.xlu0 %5268 }
 0x6b1   : > { %5339 = vst.msk [vmem:[#allocation3 + $0xc8] sm:$0xff] %vm1023_vm5, %v5269_v13  ;;  %v6223_v54 = vpop.permute.xlu1 %6222  ;;  %10267 = vmatprep.subr.bf16.mxu1 %v13968_v2 }
 0x6b2   : > { %6046 = vrot.lane.b32.xlu0 %v5952_v57, %s10723_s24  ;;  %6296 = vst.msk [vmem:[#allocation3 + $0xb0] sm:$0xff] %vm1989_vm10, %v6223_v54 }
 0x6b3   : > { %6240 = vrot.lane.b32.xlu1 %v6145_v35, %s10724_s27 }
 0x6b4   : > { %v6033_v6 = vpop.permute.xlu0 %6032 }
 0x6b5   : > { %6105 = vst.msk [vmem:[#allocation3 + $0xb8] sm:$0xff] %vm1796_vm9, %v6033_v6  ;;  %v5461_v44 = vpop.permute.xlu1 %5460 }
 0x6b6   : > { %6238 = vrot.lane.b32.xlu0 %v6144_v3, %s10724_s27  ;;  %5531 = vst.msk [vmem:[#allocation3 + $0xc8] sm:$0xff] %vm1216_vm6, %v5461_v44 }
 0x6b8   : > { %v4887_v13 = vpop.permute.xlu0 %4886 }
 0x6b9   : > { %4956 = vst.msk [vmem:[#allocation3 + $0xd0] sm:$0xff] %vm637_vm3, %v4887_v13  ;;  %v6225_v57 = vpop.permute.xlu1 %6224  ;;  %v6328_v33 = vld [vmem:[#allocation3 + $0xb0] sm:$0xff] }
 0x6ba   : > { %6297 = vst.msk [vmem:[#allocation3 + $0xb8] sm:$0xff] %vm1989_vm10, %v6225_v57  ;;  %v6419_v4 = vsel %vm2066_vm11, %v6328_v33, 0 }
 0x6bb   : > { %v13964_v38 = vand.u32 4294901760, %v6419_v4 }
 0x6bc   : > { %v5651_v17 = vpop.permute.xlu0 %5650 }
 0x6bd   : > { %5722 = vst.msk [vmem:[#allocation3 + $0xc0] sm:$0xff] %vm1409_vm7, %v5651_v17  ;;  %15389 = vst [vmem:[#allocation85_spill] sm:$0xff] %v13964_v38  ;;  %v5079_v35 = vpop.permute.xlu1 %5078  ;;  %v13971_v54 = vsub.f32 %v6419_v4, %v13964_v38 }
 0x6be   : > { %5148 = vst.msk [vmem:[#allocation3 + $0xd0] sm:$0xff] %vm830_vm4, %v5079_v35 }
 0x6bf   : > { %15390 = vst [vmem:[#allocation86_spill] sm:$0xff] %v13971_v54  ;;  %v15132_v6 = vand.u32 4294901760, %v13971_v54 }
 0x6c0   : > { %v4889_v3 = vpop.permute.xlu0 %4888 }
 0x6c1   : > { %4957 = vst.msk [vmem:[#allocation3 + $0xd8] sm:$0xff] %vm637_vm3, %v4889_v3  ;;  %v5843_v44 = vpop.permute.xlu1 %5842  ;;  %v6744_v13 = vsub.f32 %v13971_v54, %v15132_v6  ;;  %v6329_v57 = vld [vmem:[#allocation3 + $0xb8] sm:$0xff] }
 0x6c2   : > { %5914 = vst.msk [vmem:[#allocation3 + $0xc0] sm:$0xff] %vm1603_vm8, %v5843_v44  ;;  %v6422_v17 = vsel %vm2066_vm11, %v6329_v57, 0 }
 0x6c3   : > { %v6745_v4 = vand.u32 4294901760, %v6744_v13  ;;  %v13983_v35 = vand.u32 4294901760, %v6422_v17 }
 0x6c4   : > { %v5653_v33 = vpop.permute.xlu0 %5652 }
 0x6c5   : > { %5723 = vst.msk [vmem:[#allocation3 + $0xc8] sm:$0xff] %vm1409_vm7, %v5653_v33  ;;  %15391 = vst [vmem:[#allocation87_spill] sm:$0xff] %v13983_v35  ;;  %v5271_v43 = vpop.permute.xlu1 %5270  ;;  %9897 = vmatprep.mubr.f32.mxu1 %v6745_v4  ;;  %v13986_v3 = vsub.f32 %v6422_v17, %v13983_v35 }
 0x6c6   : > { %5340 = vst.msk [vmem:[#allocation3 + $0xd0] sm:$0xff] %vm1023_vm5, %v5271_v43 }
 0x6c7   : > { %15392 = vst [vmem:[#allocation88_spill] sm:$0xff] %v13986_v3  ;;  %v15133_v44 = vand.u32 4294901760, %v13986_v3 }
 0x6c8   : > { %v5081_v60 = vpop.permute.xlu0 %5080 }
 0x6c9   : > { %5149 = vst.msk [vmem:[#allocation3 + $0xd8] sm:$0xff] %vm830_vm4, %v5081_v60  ;;  %v6035_v6 = vpop.permute.xlu1 %6034  ;;  %v6754_v57 = vsub.f32 %v13986_v3, %v15133_v44 }
 0x6ca   : > { %6106 = vst.msk [vmem:[#allocation3 + $0xc0] sm:$0xff] %vm1796_vm9, %v6035_v6  ;;  %v14002_v6 = vpack.c.bf16 %v13887_v29, %v13880_v9 }
 0x6cb   : > { %v6755_v33 = vand.u32 4294901760, %v6754_v57 }
 0x6cc   : > { %v5845_v13 = vpop.permute.xlu0 %5844 }
 0x6cd   : > { %5915 = vst.msk [vmem:[#allocation3 + $0xc8] sm:$0xff] %vm1603_vm8, %v5845_v13  ;;  %v5463_v17 = vpop.permute.xlu1 %5462  ;;  %9898 = vmatmul.mubr.f32.gmra.mrb[22].mxu1 %v6755_v33 }
 0x6ce   : > { %5532 = vst.msk [vmem:[#allocation3 + $0xd0] sm:$0xff] %vm1216_vm6, %v5463_v17 }
 0x6d0   : > { %v5273_v43 = vpop.permute.xlu0 %5272 }
 0x6d1   : > { %5341 = vst.msk [vmem:[#allocation3 + $0xd8] sm:$0xff] %vm1023_vm5, %v5273_v43  ;;  %v6227_v60 = vpop.permute.xlu1 %6226 }
 0x6d2   : > { %6298 = vst.msk [vmem:[#allocation3 + $0xc0] sm:$0xff] %vm1989_vm10, %v6227_v60 }
 0x6d4   : > { %v6037_v4 = vpop.permute.xlu0 %6036 }
 0x6d5   : > { %6107 = vst.msk [vmem:[#allocation3 + $0xc8] sm:$0xff] %vm1796_vm9, %v6037_v4  ;;  %v5465_v44 = vpop.permute.xlu1 %5464 }
 0x6d6   : > { %5533 = vst.msk [vmem:[#allocation3 + $0xd8] sm:$0xff] %vm1216_vm6, %v5465_v44 }
 0x6d8   : > { %v4891_v57 = vpop.permute.xlu0 %4890 }
 0x6d9   : > { %4958 = vst.msk [vmem:[#allocation3 + $0xe0] sm:$0xff] %vm637_vm3, %v4891_v57  ;;  %v6229_v13 = vpop.permute.xlu1 %6228  ;;  %v6330_v33 = vld [vmem:[#allocation3 + $0xc0] sm:$0xff] }
 0x6da   : > { %6299 = vst.msk [vmem:[#allocation3 + $0xc8] sm:$0xff] %vm1989_vm10, %v6229_v13  ;;  %v6425_v43 = vsel %vm2066_vm11, %v6330_v33, 0 }
 0x6db   : > { %v14009_v60 = vand.u32 4294901760, %v6425_v43 }
 0x6dc   : > { %v5655_v17 = vpop.permute.xlu0 %5654 }
 0x6dd   : > { %5724 = vst.msk [vmem:[#allocation3 + $0xd0] sm:$0xff] %vm1409_vm7, %v5655_v17  ;;  %15393 = vst [vmem:[#allocation89_spill] sm:$0xff] %v14009_v60  ;;  %v5083_v4 = vpop.permute.xlu1 %5082  ;;  %v14012_v29 = vsub.f32 %v6425_v43, %v14009_v60 }
 0x6de   : > { %5150 = vst.msk [vmem:[#allocation3 + $0xe0] sm:$0xff] %vm830_vm4, %v5083_v4 }
 0x6df   : > { %15394 = vst [vmem:[#allocation90_spill] sm:$0xff] %v14012_v29  ;;  %v15142_v57 = vand.u32 4294901760, %v14012_v29 }
 0x6e0   : > { %v4893_v44 = vpop.permute.xlu0 %4892 }
 0x6e1   : > { %4959 = vst.msk [vmem:[#allocation3 + $0xe8] sm:$0xff] %vm637_vm3, %v4893_v44  ;;  %v5847_v9 = vpop.permute.xlu1 %5846  ;;  %v6764_v13 = vsub.f32 %v14012_v29, %v15142_v57  ;;  %v6331_v33 = vld [vmem:[#allocation3 + $0xc8] sm:$0xff] }
 0x6e2   : > { %5916 = vst.msk [vmem:[#allocation3 + $0xd0] sm:$0xff] %vm1603_vm8, %v5847_v9  ;;  %v6428_v3 = vsel %vm2066_vm11, %v6331_v33, 0 }
 0x6e3   : > { %v6765_v43 = vand.u32 4294901760, %v6764_v13  ;;  %v14023_v4 = vand.u32 4294901760, %v6428_v3 }
 0x6e4   : > { %v5657_v17 = vpop.permute.xlu0 %5656 }
 0x6e5   : > { %5725 = vst.msk [vmem:[#allocation3 + $0xd8] sm:$0xff] %vm1409_vm7, %v5657_v17  ;;  %15395 = vst [vmem:[#allocation91_spill] sm:$0xff] %v14023_v4  ;;  %v5275_v54 = vpop.permute.xlu1 %5274  ;;  %9900 = vmatprep.mubr.f32.mxu1 %v6765_v43  ;;  %v14026_v44 = vsub.f32 %v6428_v3, %v14023_v4 }
 0x6e6   : > { %5342 = vst.msk [vmem:[#allocation3 + $0xe0] sm:$0xff] %vm1023_vm5, %v5275_v54 }
 0x6e7   : > { %15396 = vst [vmem:[#allocation92_spill] sm:$0xff] %v14026_v44  ;;  %v15143_v9 = vand.u32 4294901760, %v14026_v44 }
 0x6e8   : > { %v5085_v63 = vpop.permute.xlu0 %5084 }
 0x6e9   : > { %5151 = vst.msk [vmem:[#allocation3 + $0xe8] sm:$0xff] %vm830_vm4, %v5085_v63  ;;  %v6039_v57 = vpop.permute.xlu1 %6038  ;;  %v6774_v33 = vsub.f32 %v14026_v44, %v15143_v9 }
 0x6ea   : > { %6108 = vst.msk [vmem:[#allocation3 + $0xd0] sm:$0xff] %vm1796_vm9, %v6039_v57 }
 0x6eb   : > { %v6775_v17 = vand.u32 4294901760, %v6774_v33 }
 0x6ec   : > { %v5849_v13 = vpop.permute.xlu0 %5848 }
 0x6ed   : > { %5917 = vst.msk [vmem:[#allocation3 + $0xd8] sm:$0xff] %vm1603_vm8, %v5849_v13  ;;  %v5467_v3 = vpop.permute.xlu1 %5466  ;;  %9901 = vmatmul.mubr.f32.gmra.mrb[24].mxu1 %v6775_v17 }
 0x6ee   : > { %5534 = vst.msk [vmem:[#allocation3 + $0xe0] sm:$0xff] %vm1216_vm6, %v5467_v3 }
 0x6f0   : > { %v5277_v54 = vpop.permute.xlu0 %5276 }
 0x6f1   : > { %5343 = vst.msk [vmem:[#allocation3 + $0xe8] sm:$0xff] %vm1023_vm5, %v5277_v54  ;;  %v6231_v63 = vpop.permute.xlu1 %6230 }
 0x6f2   : > { %6300 = vst.msk [vmem:[#allocation3 + $0xd0] sm:$0xff] %vm1989_vm10, %v6231_v63 }
 0x6f4   : > { %v6041_v43 = vpop.permute.xlu0 %6040 }
 0x6f5   : > { %6109 = vst.msk [vmem:[#allocation3 + $0xd8] sm:$0xff] %vm1796_vm9, %v6041_v43  ;;  %v5469_v9 = vpop.permute.xlu1 %5468 }
 0x6f6   : > { %5535 = vst.msk [vmem:[#allocation3 + $0xe8] sm:$0xff] %vm1216_vm6, %v5469_v9 }
 0x6f8   : > { %v4895_v57 = vpop.permute.xlu0 %4894 }
 0x6f9   : > { %4960 = vst.msk [vmem:[#allocation3 + $0xf0] sm:$0xff] %vm637_vm3, %v4895_v57  ;;  %v6233_v33 = vpop.permute.xlu1 %6232  ;;  %v6332_v13 = vld [vmem:[#allocation3 + $0xd0] sm:$0xff] }
 0x6fa   : > { %6301 = vst.msk [vmem:[#allocation3 + $0xd8] sm:$0xff] %vm1989_vm10, %v6233_v33  ;;  %v6431_v3 = vsel %vm2066_vm11, %v6332_v13, 0 }
 0x6fb   : > { %v14045_v54 = vand.u32 4294901760, %v6431_v3 }
 0x6fc   : > { %v5659_v17 = vpop.permute.xlu0 %5658 }
 0x6fd   : > { %5726 = vst.msk [vmem:[#allocation3 + $0xe0] sm:$0xff] %vm1409_vm7, %v5659_v17  ;;  %15397 = vst [vmem:[#allocation93_spill] sm:$0xff] %v14045_v54  ;;  %v5087_v63 = vpop.permute.xlu1 %5086  ;;  %v14048_v43 = vsub.f32 %v6431_v3, %v14045_v54 }
 0x6fe   : > { %5152 = vst.msk [vmem:[#allocation3 + $0xf0] sm:$0xff] %vm830_vm4, %v5087_v63 }
 0x6ff   : > { %15398 = vst [vmem:[#allocation94_spill] sm:$0xff] %v14048_v43  ;;  %v15152_v57 = vand.u32 4294901760, %v14048_v43 }
 0x700   : > { %v4897_v9 = vpop.permute.xlu0 %4896 }
 0x701   : > { %4961 = vst.msk [vmem:[#allocation3 + $0xf8] sm:$0xff] %vm637_vm3, %v4897_v9  ;;  %v5851_v44 = vpop.permute.xlu1 %5850  ;;  %v6784_v33 = vsub.f32 %v14048_v43, %v15152_v57  ;;  %v6333_v13 = vld [vmem:[#allocation3 + $0xd8] sm:$0xff] }
 0x702   : > { %5918 = vst.msk [vmem:[#allocation3 + $0xe0] sm:$0xff] %vm1603_vm8, %v5851_v44  ;;  %v6434_v29 = vsel %vm2066_vm11, %v6333_v13, 0 }
 0x703   : > { %v6785_v3 = vand.u32 4294901760, %v6784_v33  ;;  %v14059_v63 = vand.u32 4294901760, %v6434_v29 }
 0x704   : > { %v5661_v17 = vpop.permute.xlu0 %5660 }
 0x705   : > { %5727 = vst.msk [vmem:[#allocation3 + $0xe8] sm:$0xff] %vm1409_vm7, %v5661_v17  ;;  %15399 = vst [vmem:[#allocation95_spill] sm:$0xff] %v14059_v63  ;;  %v5279_v7 = vpop.permute.xlu1 %5278  ;;  %9903 = vmatprep.mubr.f32.mxu1 %v6785_v3  ;;  %v14062_v9 = vsub.f32 %v6434_v29, %v14059_v63 }
 0x706   : > { %5344 = vst.msk [vmem:[#allocation3 + $0xf0] sm:$0xff] %vm1023_vm5, %v5279_v7 }
 0x707   : > { %15400 = vst [vmem:[#allocation96_spill] sm:$0xff] %v14062_v9  ;;  %v15153_v44 = vand.u32 4294901760, %v14062_v9 }
 0x708   : > { %v5089_v1 = vpop.permute.xlu0 %5088 }
 0x709   : > { %5153 = vst.msk [vmem:[#allocation3 + $0xf8] sm:$0xff] %vm830_vm4, %v5089_v1  ;;  %v6043_v57 = vpop.permute.xlu1 %6042  ;;  %v6794_v13 = vsub.f32 %v14062_v9, %v15153_v44 }
 0x70a   : > { %6110 = vst.msk [vmem:[#allocation3 + $0xe0] sm:$0xff] %vm1796_vm9, %v6043_v57 }
 0x70b   : > { %v6795_v17 = vand.u32 4294901760, %v6794_v13 }
 0x70c   : > { %v5853_v33 = vpop.permute.xlu0 %5852 }
 0x70d   : > { %5919 = vst.msk [vmem:[#allocation3 + $0xe8] sm:$0xff] %vm1603_vm8, %v5853_v33  ;;  %v5471_v29 = vpop.permute.xlu1 %5470  ;;  %9904 = vmatmul.mubr.f32.gmra.mrb[26].mxu1 %v6795_v17 }
 0x70e   : > { %5536 = vst.msk [vmem:[#allocation3 + $0xf0] sm:$0xff] %vm1216_vm6, %v5471_v29 }
 0x710   : > { %v5281_v7 = vpop.permute.xlu0 %5280 }
 0x711   : > { %5345 = vst.msk [vmem:[#allocation3 + $0xf8] sm:$0xff] %vm1023_vm5, %v5281_v7  ;;  %v6235_v1 = vpop.permute.xlu1 %6234 }
 0x712   : > { %6302 = vst.msk [vmem:[#allocation3 + $0xe0] sm:$0xff] %vm1989_vm10, %v6235_v1 }
 0x714   : > { %v6045_v3 = vpop.permute.xlu0 %6044 }
 0x715   : > { %6111 = vst.msk [vmem:[#allocation3 + $0xe8] sm:$0xff] %vm1796_vm9, %v6045_v3  ;;  %v5663_v44 = vpop.permute.xlu1 %5662 }
 0x716   : > { %5728 = vst.msk [vmem:[#allocation3 + $0xf0] sm:$0xff] %vm1409_vm7, %v5663_v44 }
 0x718   : > { %v5473_v57 = vpop.permute.xlu0 %5472 }
 0x719   : > { %5537 = vst.msk [vmem:[#allocation3 + $0xf8] sm:$0xff] %vm1216_vm6, %v5473_v57  ;;  %v5665_v13 = vpop.permute.xlu1 %5664  ;;  %v6334_v33 = vld [vmem:[#allocation3 + $0xe0] sm:$0xff] }
 0x71a   : > { %5729 = vst.msk [vmem:[#allocation3 + $0xf8] sm:$0xff] %vm1409_vm7, %v5665_v13  ;;  %v6437_v29 = vsel %vm2066_vm11, %v6334_v33, 0 }
 0x71b   : > { %v14081_v7 = vand.u32 4294901760, %v6437_v29 }
 0x71c   : > { %v6237_v17 = vpop.permute.xlu0 %6236 }
 0x71d   : > { %6303 = vst.msk [vmem:[#allocation3 + $0xe8] sm:$0xff] %vm1989_vm10, %v6237_v17  ;;  %15401 = vst [vmem:[#allocation97_spill] sm:$0xff] %v14081_v7  ;;  %v5857_v1 = vpop.permute.xlu1 %5856  ;;  %v14084_v3 = vsub.f32 %v6437_v29, %v14081_v7 }
 0x71e   : > { %5921 = vst.msk [vmem:[#allocation3 + $0xf8] sm:$0xff] %vm1603_vm8, %v5857_v1 }
 0x71f   : > { %15402 = vst [vmem:[#allocation98_spill] sm:$0xff] %v14084_v3  ;;  %v15162_v57 = vand.u32 4294901760, %v14084_v3 }
 0x720   : > { %v5855_v44 = vpop.permute.xlu0 %5854 }
 0x721   : > { %5920 = vst.msk [vmem:[#allocation3 + $0xf0] sm:$0xff] %vm1603_vm8, %v5855_v44  ;;  %v6049_v9 = vpop.permute.xlu1 %6048  ;;  %v6804_v13 = vsub.f32 %v14084_v3, %v15162_v57 }
 0x722   : > { %6113 = vst.msk [vmem:[#allocation3 + $0xf8] sm:$0xff] %vm1796_vm9, %v6049_v9 }
 0x723   : > { %v6805_v29 = vand.u32 4294901760, %v6804_v13 }
 0x724   : > { %v6047_v33 = vpop.permute.xlu0 %6046  ;;  %v6335_v17 = vld [vmem:[#allocation3 + $0xe8] sm:$0xff] }
 0x725   : > { %6112 = vst.msk [vmem:[#allocation3 + $0xf0] sm:$0xff] %vm1796_vm9, %v6047_v33  ;;  %v6440_v43 = vsel %vm2066_vm11, %v6335_v17, 0  ;;  %v6241_v52 = vpop.permute.xlu1 %6240  ;;  %9906 = vmatprep.mubr.f32.mxu1 %v6805_v29 }
 0x726   : > { %v14095_v1 = vand.u32 4294901760, %v6440_v43  ;;  %6305 = vst.msk [vmem:[#allocation3 + $0xf8] sm:$0xff] %vm1989_vm10, %v6241_v52 }
 0x728   : > { %15403 = vst [vmem:[#allocation99_spill] sm:$0xff] %v14095_v1  ;;  %v6239_v44 = vpop.permute.xlu0 %6238  ;;  %v14099_v32 = vsub.f32 %v6440_v43, %v14095_v1 }
 0x729   : > { %6304 = vst.msk [vmem:[#allocation3 + $0xf0] sm:$0xff] %vm1989_vm10, %v6239_v44 }
 0x72a   : > { %15404 = vst [vmem:[#allocation100_spill] sm:$0xff] %v14099_v32  ;;  %v15167_v9 = vand.u32 4294901760, %v14099_v32 }
 0x72c   : > { %v6814_v13 = vsub.f32 %v14099_v32, %v15167_v9 }
 0x72d   : > { %v6337_v17 = vld [vmem:[#allocation3 + $0xf8] sm:$0xff] }
 0x72e   : > { %v6815_v33 = vand.u32 4294901760, %v6814_v13  ;;  %v6446_v29 = vsel %vm2066_vm11, %v6337_v17, 0 }
 0x72f   : > { %v14108_v3 = vand.u32 4294901760, %v6446_v29 }
 0x730   : > { %9907 = vmatmul.mubr.f32.gmra.mrb[28].mxu1 %v6815_v33  ;;  %v6336_v57 = vld [vmem:[#allocation3 + $0xf0] sm:$0xff] }
 0x731   : > { %v6443_v52 = vsel %vm2066_vm11, %v6336_v57, 0  ;;  %15405 = vst [vmem:[#allocation101_spill] sm:$0xff] %v14108_v3  ;;  %v14113_v44 = vsub.f32 %v6446_v29, %v14108_v3  ;;  %v15412_v29 = vld [vmem:[#allocation73_spill] sm:$0xff] }
 0x732   : > { %v14110_v43 = vand.u32 4294901760, %v6443_v52 }
 0x733   : > { %v15170_v9 = vand.u32 4294901760, %v14113_v44 }
 0x734   : > { %15406 = vst [vmem:[#allocation102_spill] sm:$0xff] %v14110_v43  ;;  %v14116_v42 = vsub.f32 %v6443_v52, %v14110_v43  ;;  %v15413_v52 = vld [vmem:[#allocation75_spill] sm:$0xff] }
 0x735   : > { %v6834_v33 = vsub.f32 %v14113_v44, %v15170_v9  ;;  %v15419_v9 = vld [vmem:[#allocation90_spill] sm:$0xff] }
 0x736   : > { %v15171_v13 = vand.u32 4294901760, %v14116_v42 }
 0x737   : > { %v6835_v17 = vand.u32 4294901760, %v6834_v33  ;;  %v15414_v33 = vld [vmem:[#allocation77_spill] sm:$0xff] }
 0x738   : > { %v6824_v57 = vsub.f32 %v14116_v42, %v15171_v13  ;;  %v15420_v13 = vld [vmem:[#allocation92_spill] sm:$0xff] }
 0x73a   : > { %v6825_v32 = vand.u32 4294901760, %v6824_v57  ;;  %v15415_v57 = vld [vmem:[#allocation81_spill] sm:$0xff] }
 0x73c   : > { %9909 = vmatprep.mubr.f32.mxu1 %v6825_v32  ;;  %v15407_v32 = vand.u32 4294901760, %v13816_v8  ;;  %v15409_v8 = vld [vmem:[#allocation70_spill] sm:$0xff] }
 0x73d   : > { %9910 = vmatmul.mubr.f32.gmra.mrb[30].mxu1 %v6835_v17  ;;  %v15416_v17 = vld [vmem:[#allocation83_spill] sm:$0xff] }
 0x73e   : > { %9922 = vmatprep.mubr.f32.mxu1 %v13305_v27 }
 0x741   : > { %9923 = vmatmul.mubr.f32.vlgmr.msra.gmra.mrb[0].mxu1 %v13324_v56 }
 0x742   : > { %10269 = vmatpush3.bf16.msra.mxu1 %v13968_v2  ;;  %9925 = vmatprep.mubr.f32.mxu1 %v13361_v20 }
 0x743   : > { %10271 = vmatprep.subr.bf16.mxu1 %v14002_v6 }
 0x745   : > { %9926 = vmatmul.mubr.f32.gmra.mrb[2].mxu1 %v13380_v11 }
 0x746   : > { %9928 = vmatprep.mubr.f32.mxu1 %v13417_v24  ;;  %10273 = vmatpush3.bf16.msra.mxu1 %v14002_v6  ;;  %v15411_v6 = vld [vmem:[#allocation72_spill] sm:$0xff] }
 0x747   : > { %9978 = vmatprep.subr.mxu1 %v13936_v22 }
 0x749   : > { %9929 = vmatmul.mubr.f32.gmra.mrb[4].mxu1 %v13436_v48 }
 0x74a   : > { %9931 = vmatprep.mubr.f32.mxu1 %v13473_v14  ;;  %9979 = vmatpush3.msra.mxu1 %v13936_v22  ;;  %v15408_v22 = vand.u32 4294901760, %v13823_v16  ;;  %v15410_v16 = vld [vmem:[#allocation71_spill] sm:$0xff] }
 0x74b   : > { %10275 = vmatprep.subr.bf16.mxu1 %v13092_v37 }
 0x74c   : > { %v10282_v2 = vpack.c.bf16 %v15408_v22, %v15407_v32  ;;  %v15417_v32 = vld [vmem:[#allocation86_spill] sm:$0xff]  ;;  %v15418_v22 = vld [vmem:[#allocation88_spill] sm:$0xff] }
 0x74d   : > { %9932 = vmatmul.mubr.f32.gmra.mrb[6].mxu1 %v13492_v61 }
 0x74e   : > { %9934 = vmatprep.mubr.f32.mxu1 %v13529_v21 }
 0x751   : > { %9935 = vmatmul.mubr.f32.gmra.mrb[8].mxu1 %v13548_v58 }
 0x752   : > { %9937 = vmatprep.mubr.f32.mxu1 %v13585_v15 }
 0x755   : > { %9938 = vmatmul.mubr.f32.gmra.mrb[10].mxu1 %v13604_v31 }
 0x756   : > { %9940 = vmatprep.mubr.f32.mxu1 %v13641_v30 }
 0x759   : > { %9941 = vmatmul.mubr.f32.gmra.mrb[12].mxu1 %v13660_v62 }
 0x75a   : > { %9943 = vmatprep.mubr.f32.mxu1 %v13697_v50 }
 0x75d   : > { %9944 = vmatmul.mubr.f32.gmra.mrb[14].mxu1 %v13716_v36 }
 0x75e   : > { %9946 = vmatprep.mubr.f32.mxu1 %v13753_v53 }
 0x761   : > { %9947 = vmatmul.mubr.f32.gmra.mrb[16].mxu1 %v13772_v12 }
 0x762   : > { %9949 = vmatprep.mubr.f32.mxu1 %v13809_v55  ;;  %v15433_v55 = vand.u32 4294901760, %v13422_v51 }
 0x765   : > { %9950 = vmatmul.mubr.f32.gmra.mrb[18].mxu1 %v13850_v18  ;;  %v15432_v18 = vand.u32 4294901760, %v13384_v23 }
 0x766   : > { %9952 = vmatprep.mubr.f32.mxu1 %v13906_v39  ;;  %v15431_v39 = vand.u32 4294901760, %v13366_v47 }
 0x769   : > { %9953 = vmatmul.mubr.f32.gmra.mrb[20].mxu1 %v13924_v49  ;;  %v15430_v49 = vand.u32 4294901760, %v13328_v0 }
 0x76a   : > { %9955 = vmatprep.mubr.f32.mxu1 %v13964_v38 }
 0x76d   : > { %9956 = vmatmul.mubr.f32.gmra.mrb[22].mxu1 %v13983_v35 }
 0x76e   : > { %9958 = vmatprep.mubr.f32.mxu1 %v14009_v60  ;;  %v15428_v60 = vld [vmem:[#allocation79_spill] sm:$0xff] }
 0x76f   : > { %v15429_v35 = vand.u32 4294901760, %v15428_v60  ;;  %v15435_v60 = vand.u32 4294901760, %v13440_v19 }
 0x771   : > { %9959 = vmatmul.mubr.f32.gmra.mrb[24].mxu1 %v14023_v4 }
 0x772   : > { %9961 = vmatprep.mubr.f32.mxu1 %v14045_v54  ;;  %v15426_v54 = vld [vmem:[#allocation78_spill] sm:$0xff] }
 0x773   : > { %v15427_v4 = vand.u32 4294901760, %v15426_v54 }
 0x775   : > { %9962 = vmatmul.mubr.f32.gmra.mrb[26].mxu1 %v14059_v63  ;;  %v15425_v63 = vand.u32 4294901760, %v13310_v34  ;;  %v10286_v38 = vpack.c.bf16 %v15429_v35, %v15427_v4  ;;  %v15454_v35 = vand.u32 4294901760, %v15419_v9  ;;  %v15455_v4 = vand.u32 4294901760, %v15420_v13 }
 0x776   : > { %9964 = vmatprep.mubr.f32.mxu1 %v14081_v7  ;;  %v15424_v7 = vld [vmem:[#allocation100_spill] sm:$0xff] }
 0x779   : > { %9965 = vmatmul.mubr.f32.gmra.mrb[28].mxu1 %v14095_v1  ;;  %v15423_v1 = vld [vmem:[#allocation98_spill] sm:$0xff] }
 0x77a   : > { %9967 = vmatprep.mubr.f32.mxu1 %v14110_v43  ;;  %v15422_v43 = vld [vmem:[#allocation96_spill] sm:$0xff] }
 0x77d   : > { %9968 = vmatmul.mubr.f32.gmra.mrb[30].mxu1 %v14108_v3  ;;  %v15421_v3 = vld [vmem:[#allocation94_spill] sm:$0xff] }
 0x77e   : > { %9980 = vmatprep.mubr.f32.mxu1 %v13310_v34  ;;  %v15434_v34 = vld [vmem:[#allocation84_spill] sm:$0xff]  ;;  %v15456_v54 = vand.u32 4294901760, %v15421_v3 }
 0x781   : > { %9981 = vmatmul.mubr.f32.vlgmr.msra.gmra.mrb[0].mxu1 %v13328_v0  ;;  %v15436_v0 = vand.u32 4294901760, %v13478_v25 }
 0x782   : > { %10277 = vmatpush3.bf16.msra.mxu1 %v13092_v37  ;;  %9983 = vmatprep.mubr.f32.mxu1 %v13366_v47  ;;  %v15437_v47 = vand.u32 4294901760, %v13496_v59 }
 0x783   : > { %10279 = vmatprep.subr.bf16.mxu1 %v13105_v41 }
 0x785   : > { %9984 = vmatmul.mubr.f32.gmra.mrb[2].mxu1 %v13384_v23  ;;  %v15438_v23 = vand.u32 4294901760, %v13534_v5 }
 0x786   : > { %9986 = vmatprep.mubr.f32.mxu1 %v13422_v51  ;;  %10281 = vmatpush3.bf16.msra.mxu1 %v13105_v41  ;;  %v15439_v51 = vand.u32 4294901760, %v13552_v46 }
 0x787   : > { %10036 = vmatprep.subr.mxu1 %v13124_v26 }
 0x789   : > { %9987 = vmatmul.mubr.f32.gmra.mrb[4].mxu1 %v13440_v19  ;;  %v15441_v19 = vand.u32 4294901760, %v13608_v10 }
 0x78a   : > { %9989 = vmatprep.mubr.f32.mxu1 %v13478_v25  ;;  %10037 = vmatpush3.msra.mxu1 %v13124_v26  ;;  %v15442_v25 = vand.u32 4294901760, %v13646_v40 }
 0x78b   : > { %10283 = vmatprep.subr.bf16.mxu1 %v10282_v2 }
 0x78d   : > { %9990 = vmatmul.mubr.f32.gmra.mrb[6].mxu1 %v13496_v59  ;;  %v15444_v59 = vand.u32 4294901760, %v15409_v8 }
 0x78e   : > { %9992 = vmatprep.mubr.f32.mxu1 %v13534_v5  ;;  %v15445_v5 = vand.u32 4294901760, %v15410_v16 }
 0x791   : > { %9993 = vmatmul.mubr.f32.gmra.mrb[8].mxu1 %v13552_v46  ;;  %v15446_v46 = vand.u32 4294901760, %v15411_v6 }
 0x792   : > { %9995 = vmatprep.mubr.f32.mxu1 %v13590_v28 }
 0x795   : > { %9996 = vmatmul.mubr.f32.gmra.mrb[10].mxu1 %v13608_v10  ;;  %v15448_v10 = vand.u32 4294901760, %v15413_v52 }
 0x796   : > { %9998 = vmatprep.mubr.f32.mxu1 %v13646_v40  ;;  %v15449_v40 = vand.u32 4294901760, %v15414_v33 }
 0x799   : > { %9999 = vmatmul.mubr.f32.gmra.mrb[12].mxu1 %v13664_v45 }
 0x79a   : > { %10001 = vmatprep.mubr.f32.mxu1 %v15409_v8  ;;  %v15459_v8 = vand.u32 4294901760, %v15424_v7 }
 0x79d   : > { %10002 = vmatmul.mubr.f32.gmra.mrb[14].mxu1 %v15410_v16  ;;  %v15460_v16 = vand.u32 4294901760, %v14116_v42 }
 0x79e   : > { %10004 = vmatprep.mubr.f32.mxu1 %v15411_v6  ;;  %v15472_v6 = vld [vmem:[#allocation97_spill] sm:$0xff] }
 0x7a1   : > { %10005 = vmatmul.mubr.f32.gmra.mrb[16].mxu1 %v15412_v29 }
 0x7a2   : > { %10007 = vmatprep.mubr.f32.mxu1 %v15413_v52  ;;  %v15474_v52 = vld [vmem:[#allocation102_spill] sm:$0xff] }
 0x7a5   : > { %10008 = vmatmul.mubr.f32.gmra.mrb[18].mxu1 %v15414_v33  ;;  %v15475_v33 = vld [vmem:[#allocation101_spill] sm:$0xff] }
 0x7a6   : > { %10010 = vmatprep.mubr.f32.mxu1 %v15415_v57 }
 0x7a9   : > { %10011 = vmatmul.mubr.f32.gmra.mrb[20].mxu1 %v15416_v17 }
 0x7aa   : > { %10013 = vmatprep.mubr.f32.mxu1 %v15417_v32 }
 0x7ad   : > { %10014 = vmatmul.mubr.f32.gmra.mrb[22].mxu1 %v15418_v22 }
 0x7ae   : > { %10016 = vmatprep.mubr.f32.mxu1 %v15419_v9  ;;  %v15461_v9 = vand.u32 4294901760, %v14113_v44 }
 0x7b1   : > { %10017 = vmatmul.mubr.f32.gmra.mrb[24].mxu1 %v15420_v13  ;;  %v15471_v13 = vld [vmem:[#allocation95_spill] sm:$0xff] }
 0x7b2   : > { %10019 = vmatprep.mubr.f32.mxu1 %v15421_v3  ;;  %v15467_v3 = vld [vmem:[#allocation87_spill] sm:$0xff] }
 0x7b5   : > { %10020 = vmatmul.mubr.f32.gmra.mrb[26].mxu1 %v15422_v43 }
 0x7b6   : > { %10022 = vmatprep.mubr.f32.mxu1 %v15423_v1 }
 0x7b9   : > { %10023 = vmatmul.mubr.f32.gmra.mrb[28].mxu1 %v15424_v7  ;;  %v15466_v7 = vld [vmem:[#allocation85_spill] sm:$0xff] }
 0x7ba   : > { %10025 = vmatprep.mubr.f32.mxu1 %v14116_v42  ;;  %v15465_v42 = vld [vmem:[#allocation82_spill] sm:$0xff] }
 0x7bd   : > { %10026 = vmatmul.mubr.f32.gmra.mrb[30].mxu1 %v14113_v44  ;;  %v15470_v44 = vld [vmem:[#allocation93_spill] sm:$0xff] }
 0x7be   : > { %10038 = vmatprep.mubr.f32.mxu1 %v15425_v63  ;;  %v15457_v63 = vand.u32 4294901760, %v15422_v43  ;;  %v15469_v43 = vld [vmem:[#allocation91_spill] sm:$0xff] }
 0x7c1   : > { %10039 = vmatmul.mubr.f32.vlgmr.msra.gmra.mrb[0].mxu1 %v15430_v49  ;;  %v15452_v49 = vand.u32 4294901760, %v15417_v32 }
 0x7c2   : > { %10285 = vmatpush3.bf16.msra.mxu1 %v10282_v2  ;;  %10041 = vmatprep.mubr.f32.mxu1 %v15431_v39  ;;  %v15451_v39 = vand.u32 4294901760, %v15416_v17  ;;  %v15458_v2 = vand.u32 4294901760, %v15423_v1  ;;  %v15468_v1 = vld [vmem:[#allocation89_spill] sm:$0xff] }
 0x7c3   : > { %10287 = vmatprep.subr.bf16.mxu1 %v10286_v38 }
 0x7c5   : > { %10042 = vmatmul.mubr.f32.gmra.mrb[2].mxu1 %v15432_v18  ;;  %v15440_v18 = vand.u32 4294901760, %v13590_v28  ;;  %v15447_v28 = vand.u32 4294901760, %v15412_v29  ;;  %v15473_v29 = vld [vmem:[#allocation99_spill] sm:$0xff] }
 0x7c6   : > { %10044 = vmatprep.mubr.f32.mxu1 %v15433_v55  ;;  %10289 = vmatpush3.bf16.msra.mxu1 %v10286_v38  ;;  %v15443_v55 = vand.u32 4294901760, %v13664_v45  ;;  %v15450_v45 = vand.u32 4294901760, %v15415_v57  ;;  %v15453_v38 = vand.u32 4294901760, %v15418_v22 }
 0x7c7   : > { %10094 = vmatprep.subr.mxu1 %v15434_v34 }
 0x7c9   : > { %10045 = vmatmul.mubr.f32.gmra.mrb[4].mxu1 %v15435_v60 }
 0x7ca   : > { %10047 = vmatprep.mubr.f32.mxu1 %v15436_v0  ;;  %10095 = vmatpush3.msra.mxu1 %v15434_v34 }
 0x7cb   : > { %10291 = vmatprep.subr.bf16.mxu1 %v13092_v37 }
 0x7cd   : > { %10048 = vmatmul.mubr.f32.gmra.mrb[6].mxu1 %v15437_v47 }
 0x7ce   : > { %10050 = vmatprep.mubr.f32.mxu1 %v15438_v23 }
 0x7d1   : > { %10051 = vmatmul.mubr.f32.gmra.mrb[8].mxu1 %v15439_v51 }
 0x7d2   : > { %10053 = vmatprep.mubr.f32.mxu1 %v15440_v18 }
 0x7d5   : > { %10054 = vmatmul.mubr.f32.gmra.mrb[10].mxu1 %v15441_v19 }
 0x7d6   : > { %10056 = vmatprep.mubr.f32.mxu1 %v15442_v25 }
 0x7d9   : > { %10057 = vmatmul.mubr.f32.gmra.mrb[12].mxu1 %v15443_v55 }
 0x7da   : > { %10059 = vmatprep.mubr.f32.mxu1 %v15444_v59 }
 0x7dd   : > { %10060 = vmatmul.mubr.f32.gmra.mrb[14].mxu1 %v15445_v5 }
 0x7de   : > { %10062 = vmatprep.mubr.f32.mxu1 %v15446_v46 }
 0x7e1   : > { %10063 = vmatmul.mubr.f32.gmra.mrb[16].mxu1 %v15447_v28 }
 0x7e2   : > { %10065 = vmatprep.mubr.f32.mxu1 %v15448_v10 }
 0x7e5   : > { %10066 = vmatmul.mubr.f32.gmra.mrb[18].mxu1 %v15449_v40 }
 0x7e6   : > { %10068 = vmatprep.mubr.f32.mxu1 %v15450_v45 }
 0x7e9   : > { %10069 = vmatmul.mubr.f32.gmra.mrb[20].mxu1 %v15451_v39 }
 0x7ea   : > { %10071 = vmatprep.mubr.f32.mxu1 %v15452_v49 }
 0x7ed   : > { %10072 = vmatmul.mubr.f32.gmra.mrb[22].mxu1 %v15453_v38 }
 0x7ee   : > { %10074 = vmatprep.mubr.f32.mxu1 %v15454_v35 }
 0x7f1   : > { %10075 = vmatmul.mubr.f32.gmra.mrb[24].mxu1 %v15455_v4 }
 0x7f2   : > { %10077 = vmatprep.mubr.f32.mxu1 %v15456_v54 }
 0x7f5   : > { %10078 = vmatmul.mubr.f32.gmra.mrb[26].mxu1 %v15457_v63 }
 0x7f6   : > { %10080 = vmatprep.mubr.f32.mxu1 %v15458_v2 }
 0x7f9   : > { %10081 = vmatmul.mubr.f32.gmra.mrb[28].mxu1 %v15459_v8 }
 0x7fa   : > { %10083 = vmatprep.mubr.f32.mxu1 %v15460_v16 }
 0x7fd   : > { %10084 = vmatmul.mubr.f32.gmra.mrb[30].mxu1 %v15461_v9 }
 0x7fe   : > { %10096 = vmatprep.mubr.f32.mxu1 %v13305_v27 }
 0x801   : > { %10097 = vmatmul.mubr.f32.vlgmr.msra.gmra.mrb[0].mxu1 %v13324_v56 }
 0x802   : > { %10293 = vmatpush3.bf16.msra.mxu1 %v13092_v37  ;;  %10099 = vmatprep.mubr.f32.mxu1 %v13361_v20  ;;  %v15462_v37 = vld [vmem:[#allocation74_spill] sm:$0xff] }
 0x803   : > { %10295 = vmatprep.subr.bf16.mxu1 %v13105_v41 }
 0x805   : > { %10100 = vmatmul.mubr.f32.gmra.mrb[2].mxu1 %v13380_v11 }
 0x806   : > { %10102 = vmatprep.mubr.f32.mxu1 %v13417_v24  ;;  %10297 = vmatpush3.bf16.msra.mxu1 %v13105_v41  ;;  %v15463_v41 = vld [vmem:[#allocation76_spill] sm:$0xff] }
 0x807   : > { %10152 = vmatprep.subr.mxu1 %v13124_v26 }
 0x809   : > { %10103 = vmatmul.mubr.f32.gmra.mrb[4].mxu1 %v13436_v48 }
 0x80a   : > { %10105 = vmatprep.mubr.f32.mxu1 %v13473_v14  ;;  %10153 = vmatpush3.msra.mxu1 %v13124_v26  ;;  %v15464_v26 = vld [vmem:[#allocation80_spill] sm:$0xff] }
 0x80d   : > { %10106 = vmatmul.mubr.f32.gmra.mrb[6].mxu1 %v13492_v61 }
 0x80e   : > { %10108 = vmatprep.mubr.f32.mxu1 %v13529_v21 }
 0x811   : > { %10109 = vmatmul.mubr.f32.gmra.mrb[8].mxu1 %v13548_v58 }
 0x812   : > { %10111 = vmatprep.mubr.f32.mxu1 %v13585_v15 }
 0x815   : > { %10112 = vmatmul.mubr.f32.gmra.mrb[10].mxu1 %v13604_v31 }
 0x816   : > { %10114 = vmatprep.mubr.f32.mxu1 %v13641_v30 }
 0x819   : > { %10115 = vmatmul.mubr.f32.gmra.mrb[12].mxu1 %v13660_v62 }
 0x81a   : > { %10117 = vmatprep.mubr.f32.mxu1 %v13697_v50 }
 0x81d   : > { %10118 = vmatmul.mubr.f32.gmra.mrb[14].mxu1 %v13716_v36 }
 0x81e   : > { %10120 = vmatprep.mubr.f32.mxu1 %v13753_v53 }
 0x821   : > { %10121 = vmatmul.mubr.f32.gmra.mrb[16].mxu1 %v13772_v12 }
 0x822   : > { %10123 = vmatprep.mubr.f32.mxu1 %v15462_v37 }
 0x825   : > { %10124 = vmatmul.mubr.f32.gmra.mrb[18].mxu1 %v15463_v41 }
 0x826   : > { %10126 = vmatprep.mubr.f32.mxu1 %v15464_v26 }
 0x829   : > { %10127 = vmatmul.mubr.f32.gmra.mrb[20].mxu1 %v15465_v42 }
 0x82a   : > { %10129 = vmatprep.mubr.f32.mxu1 %v15466_v7 }
 0x82d   : > { %10130 = vmatmul.mubr.f32.gmra.mrb[22].mxu1 %v15467_v3 }
 0x82e   : > { %10132 = vmatprep.mubr.f32.mxu1 %v15468_v1 }
 0x831   : > { %10133 = vmatmul.mubr.f32.gmra.mrb[24].mxu1 %v15469_v43 }
 0x832   : > { %10135 = vmatprep.mubr.f32.mxu1 %v15470_v44 }
 0x835   : > { %10136 = vmatmul.mubr.f32.gmra.mrb[26].mxu1 %v15471_v13 }
 0x836   : > { %10138 = vmatprep.mubr.f32.mxu1 %v15472_v6 }
 0x839   : > { %10139 = vmatmul.mubr.f32.gmra.mrb[28].mxu1 %v15473_v29 }
 0x83a   : > { %10141 = vmatprep.mubr.f32.mxu1 %v15474_v52 }
 0x83d   : > { %10142 = vmatmul.mubr.f32.gmra.mrb[30].mxu1 %v15475_v33 }
 0x83e   : > { %10154 = vmatprep.mubr.f32.mxu1 %v13305_v27  ;;  %v14348_v27 = vld [vmem:[%s14894_s2 + $0x1] ss:$0 sm:$0xff] }
 0x841   : > { %10155 = vmatmul.mubr.f32.vlgmr.msra.gmra.mrb[0].mxu1 %v13324_v56 }
 0x842   : > { %10157 = vmatprep.mubr.f32.mxu1 %v13361_v20 }
 0x845   : > { %10158 = vmatmul.mubr.f32.gmra.mrb[2].mxu1 %v13380_v11 }
 0x846   : > { %10160 = vmatprep.mubr.f32.mxu1 %v13417_v24 }
 0x849   : > { %10161 = vmatmul.mubr.f32.gmra.mrb[4].mxu1 %v13436_v48 }
 0x84a   : > { %10163 = vmatprep.mubr.f32.mxu1 %v13473_v14 }
 0x84d   : > { %10164 = vmatmul.mubr.f32.gmra.mrb[6].mxu1 %v13492_v61 }
 0x84e   : > { %10166 = vmatprep.mubr.f32.mxu1 %v13529_v21  ;;  %v8315_v21 = vld [vmem:[#allocation4 + $0x8] sm:$0xff] }
 0x851   : > { %10167 = vmatmul.mubr.f32.gmra.mrb[8].mxu1 %v13548_v58 }
 0x852   : > { %10169 = vmatprep.mubr.f32.mxu1 %v13585_v15 }
 0x855   : > { %10170 = vmatmul.mubr.f32.gmra.mrb[10].mxu1 %v13604_v31  ;;  %v8317_v31 = vld [vmem:[#allocation4 + $0x18] sm:$0xff] }
 0x856   : > { %10172 = vmatprep.mubr.f32.mxu1 %v13641_v30  ;;  %v8316_v30 = vld [vmem:[#allocation4 + $0x10] sm:$0xff] }
 0x859   : > { %10173 = vmatmul.mubr.f32.gmra.mrb[12].mxu1 %v13660_v62  ;;  %v8314_v62 = vld [vmem:[#allocation4] sm:$0xff] }
 0x85a   : > { %10175 = vmatprep.mubr.f32.mxu1 %v13697_v50  ;;  %v8378_v17 = vmax.f32 %v8314_v62, %v8316_v30 }
 0x85d   : > { %10176 = vmatmul.mubr.f32.gmra.mrb[14].mxu1 %v13716_v36 }
 0x85e   : > { %10178 = vmatprep.mubr.f32.mxu1 %v13753_v53  ;;  %v8379_v53 = vmax.f32 %v8315_v21, %v8317_v31  ;;  %v15487_v21 = vld [vmem:[#allocation41_spill] sm:$0xff] }
 0x861   : > { %10179 = vmatmul.mubr.f32.gmra.mrb[16].mxu1 %v13772_v12 }
 0x862   : > { %10181 = vmatprep.mubr.f32.mxu1 %v15462_v37 }
 0x865   : > { %10182 = vmatmul.mubr.f32.gmra.mrb[18].mxu1 %v15463_v41 }
 0x866   : > { %10184 = vmatprep.mubr.f32.mxu1 %v15464_v26 }
 0x869   : > { %10185 = vmatmul.mubr.f32.gmra.mrb[20].mxu1 %v15465_v42 }
 0x86a   : > { %10187 = vmatprep.mubr.f32.mxu1 %v15466_v7 }
 0x86d   : > { %10188 = vmatmul.mubr.f32.gmra.mrb[22].mxu1 %v15467_v3  ;;  %v15476_v3 = vld [vmem:[#allocation6_spill] sm:$0xff] }
 0x86e   : > { %10190 = vmatprep.mubr.f32.mxu1 %v15468_v1  ;;  %v15477_v1 = vmax.f32 %v15476_v3, 0.0 }
 0x871   : > { %10191 = vmatmul.mubr.f32.gmra.mrb[24].mxu1 %v15469_v43  ;;  %v15478_v43 = vld [vmem:[#allocation38_spill] sm:$0xff] }
 0x872   : > { %10193 = vmatprep.mubr.f32.mxu1 %v15470_v44  ;;  %v14402_v44 = vadd.f32 %v15478_v43, %v15477_v1  ;;  %v15509_v1 = vld [vmem:[#allocation17_spill] sm:$0xff] }
 0x873   : > { %v15510_v43 = vmax.f32 %v15509_v1, 0.0 }
 0x875   : > { %10194 = vmatmul.mubr.f32.gmra.mrb[26].mxu1 %v15471_v13  ;;  %v15479_v13 = vld [vmem:[#allocation7_spill] sm:$0xff] }
 0x876   : > { %10196 = vmatprep.mubr.f32.mxu1 %v15472_v6  ;;  %v15480_v6 = vmax.f32 %v15479_v13, 0.0  ;;  %v15511_v13 = vld [vmem:[#allocation60_spill] sm:$0xff] }
 0x879   : > { %10197 = vmatmul.mubr.f32.gmra.mrb[28].mxu1 %v15473_v29  ;;  %v15481_v29 = vld [vmem:[#allocation39_spill] sm:$0xff] }
 0x87a   : > { %10199 = vmatprep.mubr.f32.mxu1 %v15474_v52  ;;  %v14407_v52 = vadd.f32 %v15481_v29, %v15480_v6  ;;  %v14478_v6 = vadd.f32 %v15511_v13, %v15510_v43 }
 0x87d   : > { %10200 = vmatmul.mubr.f32.gmra.mrb[30].mxu1 %v15475_v33 }
 0x914   : > { %v10156_v56 = vpop.f32.mrb[0].mxu1 }
 0x915   : > { %v10330_v20 = vadd.f32 %v10156_v56, %v14348_v27  ;;  %v8092_v11 = vpop.f32.mrb[1].mxu1 }
 0x916   : > { %v10331_v48 = vadd.f32 %v14348_v27, %v8092_v11  ;;  %v15482_v11 = vld [vmem:[#allocation8_spill] sm:$0xff] }
 0x917   : > { %8283 = vst.msk [vmem:[#allocation4 + $0x28] sm:$0xff] %vm171_vm0, %v10330_v20 }
 0x918   : > { %8282 = vst.msk [vmem:[#allocation4 + $0x20] sm:$0xff] %vm171_vm0, %v10331_v48  ;;  %v10159_v24 = vpop.f32.mrb[2].mxu1  ;;  %v15483_v48 = vmax.f32 %v15482_v11, 0.0 }
 0x919   : > { %v10332_v61 = vadd.f32 %v10159_v24, %v14348_v27  ;;  %v8104_v14 = vpop.f32.mrb[3].mxu1  ;;  %v15484_v24 = vld [vmem:[#allocation40_spill] sm:$0xff] }
 0x91a   : > { %v10333_v58 = vadd.f32 %v14348_v27, %v8104_v14  ;;  %v15485_v14 = vld [vmem:[#allocation9_spill] sm:$0xff] }
 0x91b   : > { %8285 = vst.msk [vmem:[#allocation4 + $0x38] sm:$0xff] %vm171_vm0, %v10332_v61  ;;  %v14415_v61 = vadd.f32 %v15484_v24, %v15483_v48 }
 0x91c   : > { %8284 = vst.msk [vmem:[#allocation4 + $0x30] sm:$0xff] %vm171_vm0, %v10333_v58  ;;  %v10162_v15 = vpop.f32.mrb[4].mxu1  ;;  %v15486_v58 = vmax.f32 %v15485_v14, 0.0 }
 0x91d   : > { %v10334_v36 = vadd.f32 %v10162_v15, %v14348_v27  ;;  %v8116_v50 = vpop.f32.mrb[5].mxu1 }
 0x91e   : > { %v10335_v12 = vadd.f32 %v14348_v27, %v8116_v50  ;;  %v8319_v57 = vld [vmem:[#allocation4 + $0x28] sm:$0xff] }
 0x91f   : > { %8287 = vst.msk [vmem:[#allocation4 + $0x48] sm:$0xff] %vm171_vm0, %v10334_v36  ;;  %v8318_v22 = vld [vmem:[#allocation4 + $0x20] sm:$0xff]  ;;  %v8443_v23 = vmax.f32 %v8379_v53, %v8319_v57  ;;  %v8381_v25 = vmax.f32 %v8317_v31, %v8319_v57  ;;  %v14420_v31 = vadd.f32 %v15487_v21, %v15486_v58 }
 0x920   : > { %8286 = vst.msk [vmem:[#allocation4 + $0x40] sm:$0xff] %vm171_vm0, %v10335_v12  ;;  %v10165_v32 = vpop.f32.mrb[6].mxu1  ;;  %v8442_v18 = vmax.f32 %v8378_v17, %v8318_v22  ;;  %v8380_v46 = vmax.f32 %v8316_v30, %v8318_v22  ;;  %v15488_v36 = vld [vmem:[#allocation10_spill] sm:$0xff]  ;;  %v15490_v12 = vld [vmem:[#allocation43_spill] sm:$0xff] }
 0x921   : > { %v10336_v34 = vadd.f32 %v10165_v32, %v14348_v27  ;;  %v8128_v60 = vpop.f32.mrb[7].mxu1  ;;  %v15489_v50 = vmax.f32 %v15488_v36, 0.0  ;;  %v15493_v32 = vld [vmem:[#allocation45_spill] sm:$0xff] }
 0x922   : > { %v14363_v0 = vld [vmem:[#allocation4 + $0x38] sm:$0xff]  ;;  %v10337_v47 = vadd.f32 %v14348_v27, %v8128_v60 }
 0x923   : > { %v14366_v51 = vld [vmem:[#allocation4 + $0x30] sm:$0xff]  ;;  %8289 = vst.msk [vmem:[#allocation4 + $0x58] sm:$0xff] %vm171_vm0, %v10336_v34  ;;  %v8507_v55 = vmax.f32 %v8443_v23, %v14363_v0  ;;  %v8445_v45 = vmax.f32 %v8381_v25, %v14363_v0  ;;  %v8383_v54 = vmax.f32 %v8319_v57, %v14363_v0  ;;  %v14428_v53 = vadd.f32 %v15490_v12, %v15489_v50  ;;  %v15491_v57 = vld [vmem:[#allocation11_spill] sm:$0xff] }
 0x924   : > { %8288 = vst.msk [vmem:[#allocation4 + $0x50] sm:$0xff] %vm171_vm0, %v10337_v47  ;;  %v10168_v19 = vpop.f32.mrb[8].mxu1  ;;  %v8506_v28 = vmax.f32 %v8442_v18, %v14366_v51  ;;  %v8444_v38 = vmax.f32 %v8380_v46, %v14366_v51  ;;  %v8382_v16 = vmax.f32 %v8318_v22, %v14366_v51  ;;  %v15492_v17 = vmax.f32 %v15491_v57, 0.0  ;;  %v15494_v23 = vld [vmem:[#allocation12_spill] sm:$0xff]  ;;  %v15515_v50 = vld [vmem:[#allocation19_spill] sm:$0xff] }
 0x925   : > { %v10338_v59 = vadd.f32 %v10168_v19, %v14348_v27  ;;  %v8140_v5 = vpop.f32.mrb[9].mxu1  ;;  %v15495_v18 = vmax.f32 %v15494_v23, 0.0  ;;  %v15496_v19 = vld [vmem:[#allocation49_spill] sm:$0xff]  ;;  %v15516_v12 = vmax.f32 %v15515_v50, 0.0  ;;  %v15517_v57 = vld [vmem:[#allocation64_spill] sm:$0xff] }
 0x926   : > { %v14373_v10 = vld [vmem:[#allocation4 + $0x48] sm:$0xff]  ;;  %v10339_v40 = vadd.f32 %v14348_v27, %v8140_v5  ;;  %v14433_v22 = vadd.f32 %v15493_v32, %v15492_v17 }
 0x927   : > { %v8571_v39 = vmax.f32 %v8507_v55, %v14373_v10  ;;  %v14378_v49 = vld [vmem:[#allocation4 + $0x40] sm:$0xff]  ;;  %8291 = vst.msk [vmem:[#allocation4 + $0x68] sm:$0xff] %vm171_vm0, %v10338_v59  ;;  %v8509_v63 = vmax.f32 %v8445_v45, %v14373_v10  ;;  %v8447_v26 = vmax.f32 %v8383_v54, %v14373_v10  ;;  %v14443_v25 = vadd.f32 %v15496_v19, %v15495_v18  ;;  %v15497_v55 = vld [vmem:[#allocation13_spill] sm:$0xff]  ;;  %v15499_v5 = vld [vmem:[#allocation51_spill] sm:$0xff] }
 0x928   : > { %v8570_v35 = vmax.f32 %v8506_v28, %v14378_v49  ;;  %8290 = vst.msk [vmem:[#allocation4 + $0x60] sm:$0xff] %vm171_vm0, %v10339_v40  ;;  %v10171_v4 = vpop.f32.mrb[10].mxu1  ;;  %v8508_v9 = vmax.f32 %v8444_v38, %v14378_v49  ;;  %v8446_v33 = vmax.f32 %v8382_v16, %v14378_v49  ;;  %v15498_v59 = vmax.f32 %v15497_v55, 0.0  ;;  %v15503_v54 = vld [vmem:[#allocation15_spill] sm:$0xff] }
 0x929   : > { %8603 = vst.msk [vmem:[#allocation5 + $0xa] sm:$0xff] %vm171_vm0, %v8571_v39  ;;  %v10340_v2 = vadd.f32 %v10171_v4, %v14348_v27  ;;  %v8152_v8 = vpop.f32.mrb[11].mxu1  ;;  %v8385_v28 = vmax.f32 %v14363_v0, %v14373_v10  ;;  %v15500_v39 = vld [vmem:[#allocation14_spill] sm:$0xff]  ;;  %v8384_v16 = vmax.f32 %v14366_v51, %v14378_v49  ;;  %v14496_v17 = vadd.f32 %v15517_v57, %v15516_v12 }
 0x92a   : > { %8602 = vst.msk [vmem:[#allocation5 + $0x2] sm:$0xff] %vm171_vm0, %v8570_v35  ;;  %v14391_v37 = vld [vmem:[#allocation4 + $0x58] sm:$0xff]  ;;  %v10341_v41 = vadd.f32 %v14348_v27, %v8152_v8  ;;  %v14448_v46 = vadd.f32 %v15499_v5, %v15498_v59  ;;  %v15501_v38 = vmax.f32 %v15500_v39, 0.0  ;;  %v15502_v35 = vld [vmem:[#allocation54_spill] sm:$0xff] }
 0x92b   : > { %v8573_v42 = vmax.f32 %v8509_v63, %v14391_v37  ;;  %v14396_v7 = vld [vmem:[#allocation4 + $0x50] sm:$0xff]  ;;  %8293 = vst.msk [vmem:[#allocation4 + $0x78] sm:$0xff] %vm171_vm0, %v10340_v2  ;;  %v8511_v15 = vmax.f32 %v8447_v26, %v14391_v37  ;;  %v15504_v63 = vmax.f32 %v15503_v54, 0.0  ;;  %v8449_v51 = vmax.f32 %v8385_v28, %v14391_v37 }
 0x92c   : > { %v8572_v56 = vmax.f32 %v8508_v9, %v14396_v7  ;;  %8292 = vst.msk [vmem:[#allocation4 + $0x70] sm:$0xff] %vm171_vm0, %v10341_v41  ;;  %v10174_v20 = vpop.f32.mrb[12].mxu1  ;;  %v8510_v34 = vmax.f32 %v8446_v33, %v14396_v7  ;;  %v14459_v4 = vadd.f32 %v15502_v35, %v15501_v38  ;;  %v15505_v2 = vld [vmem:[#allocation56_spill] sm:$0xff]  ;;  %v8387_v14 = vmax.f32 %v14373_v10, %v14391_v37 }
 0x92d   : > { %8605 = vst.msk [vmem:[#allocation5 + $0x22] sm:$0xff] %vm171_vm0, %v8573_v42  ;;  %v10342_v62 = vadd.f32 %v10174_v20, %v14348_v27  ;;  %v8164_v30 = vpop.f32.mrb[13].mxu1  ;;  %v14464_v8 = vadd.f32 %v15505_v2, %v15504_v63  ;;  %v15506_v41 = vld [vmem:[#allocation16_spill] sm:$0xff]  ;;  %v15508_v42 = vld [vmem:[#allocation58_spill] sm:$0xff]  ;;  %v8448_v58 = vmax.f32 %v8384_v16, %v14396_v7  ;;  %v8386_v59 = vmax.f32 %v14378_v49, %v14396_v7 }
 0x92e   : > { %8604 = vst.msk [vmem:[#allocation5 + $0x1a] sm:$0xff] %vm171_vm0, %v8572_v56  ;;  %v14437_v60 = vld [vmem:[#allocation4 + $0x68] sm:$0xff]  ;;  %v10343_v47 = vadd.f32 %v14348_v27, %v8164_v30  ;;  %v15507_v26 = vmax.f32 %v15506_v41, 0.0  ;;  %v15514_v30 = vld [vmem:[#allocation62_spill] sm:$0xff] }
 0x92f   : > { %v8575_v40 = vmax.f32 %v8511_v15, %v14437_v60  ;;  %v14453_v45 = vld [vmem:[#allocation4 + $0x60] sm:$0xff]  ;;  %8295 = vst.msk [vmem:[#allocation4 + $0x88] sm:$0xff] %vm171_vm0, %v10342_v62  ;;  %v8513_v10 = vmax.f32 %v8449_v51, %v14437_v60  ;;  %v8451_v5 = vmax.f32 %v8387_v14, %v14437_v60  ;;  %v8389_v63 = vmax.f32 %v14391_v37, %v14437_v60 }
 0x930   : > { %v8574_v0 = vmax.f32 %v8510_v34, %v14453_v45  ;;  %8294 = vst.msk [vmem:[#allocation4 + $0x80] sm:$0xff] %vm171_vm0, %v10343_v47  ;;  %v10177_v9 = vpop.f32.mrb[14].mxu1  ;;  %v14473_v3 = vadd.f32 %v15508_v42, %v15507_v26  ;;  %v15512_v15 = vld [vmem:[#allocation18_spill] sm:$0xff]  ;;  %v8731_v18 = vld [vmem:[#allocation5 + $0xa] sm:$0xff]  ;;  %v8512_v28 = vmax.f32 %v8448_v58, %v14453_v45  ;;  %v8388_v2 = vmax.f32 %v14396_v7, %v14453_v45 }
 0x931   : > { %v8634_v29 = vld [vmem:[#allocation5] sm:$0xff]  ;;  %v8635_v33 = vld [vmem:[#allocation5 + $0x8] sm:$0xff]  ;;  %8607 = vst.msk [vmem:[#allocation5 + $0x3a] sm:$0xff] %vm171_vm0, %v8575_v40  ;;  %v10344_v20 = vadd.f32 %v10177_v9, %v14348_v27  ;;  %v8176_v11 = vpop.f32.mrb[15].mxu1  ;;  %v15513_v62 = vmax.f32 %v15512_v15, 0.0  ;;  %v8450_v14 = vmax.f32 %v8386_v59, %v14453_v45 }
 0x932   : > { %v8666_v56 = vld [vmem:[#allocation5 + $0x1] sm:$0xff]  ;;  %v8667_v48 = vld [vmem:[#allocation5 + $0x9] sm:$0xff]  ;;  %8606 = vst.msk [vmem:[#allocation5 + $0x32] sm:$0xff] %vm171_vm0, %v8574_v0  ;;  %v10345_v21 = vadd.f32 %v14348_v27, %v8176_v11  ;;  %v14499_v47 = vld [vmem:[#allocation4 + $0x78] sm:$0xff] }
 0x933   : > { %v8698_v24 = vmax.f32 %v8634_v29, %v8666_v56  ;;  %v14491_v36 = vadd.f32 %v15514_v30, %v15513_v62  ;;  %v8699_v32 = vmax.f32 %v8635_v33, %v8667_v48  ;;  %v8730_v34 = vld [vmem:[#allocation5 + $0x2] sm:$0xff]  ;;  %v14501_v23 = vld [vmem:[#allocation4 + $0x70] sm:$0xff]  ;;  %8297 = vst.msk [vmem:[#allocation4 + $0x98] sm:$0xff] %vm171_vm0, %v10344_v20  ;;  %v8577_v16 = vmax.f32 %v8513_v10, %v14499_v47 }
 0x934   : > { %v8794_v55 = vld [vmem:[#allocation5 + $0x3] sm:$0xff]  ;;  %8296 = vst.msk [vmem:[#allocation4 + $0x90] sm:$0xff] %vm171_vm0, %v10345_v21  ;;  %v10180_v40 = vpop.f32.mrb[16].mxu1  ;;  %v8795_v0 = vld [vmem:[#allocation5 + $0xb] sm:$0xff]  ;;  %v8515_v1 = vmax.f32 %v8451_v5, %v14499_v47  ;;  %v8576_v43 = vmax.f32 %v8512_v28, %v14501_v23  ;;  %v8391_v58 = vmax.f32 %v14437_v60, %v14499_v47  ;;  %v8514_v5 = vmax.f32 %v8450_v14, %v14501_v23 }
 0x935   : > { %v8762_v19 = vmax.f32 %v8698_v24, %v8730_v34  ;;  %v8763_v39 = vmax.f32 %v8699_v32, %v8731_v18  ;;  %v8636_v38 = vld [vmem:[#allocation5 + $0x18] sm:$0xff]  ;;  %v8637_v35 = vld [vmem:[#allocation5 + $0x20] sm:$0xff]  ;;  %v8188_v49 = vpop.f32.mrb[17].mxu1  ;;  %v8859_v9 = vld [vmem:[#allocation5 + $0xc] sm:$0xff]  ;;  %8609 = vst.msk [vmem:[#allocation5 + $0x52] sm:$0xff] %vm171_vm0, %v8577_v16  ;;  %v10346_v56 = vadd.f32 %v10180_v40, %v14348_v27  ;;  %v8453_v32 = vmax.f32 %v8389_v63, %v14499_v47 }
 0x936   : > { %v8668_v54 = vld [vmem:[#allocation5 + $0x19] sm:$0xff]  ;;  %v8669_v26 = vld [vmem:[#allocation5 + $0x21] sm:$0xff]  ;;  %v10347_v51 = vadd.f32 %v14348_v27, %v8188_v49  ;;  %8608 = vst.msk [vmem:[#allocation5 + $0x4a] sm:$0xff] %vm171_vm0, %v8576_v43 }
 0x937   : > { %v8826_v41 = vmax.f32 %v8762_v19, %v8794_v55  ;;  %v8700_v42 = vmax.f32 %v8636_v38, %v8668_v54  ;;  %v8827_v13 = vmax.f32 %v8763_v39, %v8795_v0  ;;  %v8858_v29 = vld [vmem:[#allocation5 + $0x4] sm:$0xff]  ;;  %v8701_v33 = vmax.f32 %v8637_v35, %v8669_v26  ;;  %v8732_v37 = vld [vmem:[#allocation5 + $0x1a] sm:$0xff]  ;;  %8299 = vst.msk [vmem:[#allocation4 + $0xa8] sm:$0xff] %vm171_vm0, %v10346_v56 }
 0x938   : > { %v14517_v7 = vld [vmem:[#allocation4 + $0x88] sm:$0xff]  ;;  %v8796_v24 = vld [vmem:[#allocation5 + $0x1b] sm:$0xff]  ;;  %v14527_v15 = vpop.f32.mrb[18].mxu1  ;;  %8298 = vst.msk [vmem:[#allocation4 + $0xa0] sm:$0xff] %vm171_vm0, %v10347_v51  ;;  %v8452_v54 = vmax.f32 %v8388_v2, %v14501_v23 }
 0x939   : > { %v8890_v20 = vmax.f32 %v8826_v41, %v8858_v29  ;;  %v8733_v11 = vld [vmem:[#allocation5 + $0x22] sm:$0xff]  ;;  %v8764_v48 = vmax.f32 %v8700_v42, %v8732_v37  ;;  %v8891_v62 = vmax.f32 %v8827_v13, %v8859_v9  ;;  %v8638_v50 = vld [vmem:[#allocation5 + $0x30] sm:$0xff]  ;;  %v8639_v12 = vld [vmem:[#allocation5 + $0x38] sm:$0xff]  ;;  %v8579_v60 = vmax.f32 %v8515_v1, %v14517_v7  ;;  %v8200_v34 = vpop.f32.mrb[19].mxu1 }
 0x93a   : > { %v14525_v21 = vld [vmem:[#allocation4 + $0x80] sm:$0xff]  ;;  %v8765_v30 = vmax.f32 %v8701_v33, %v8733_v11  ;;  %v8670_v57 = vld [vmem:[#allocation5 + $0x31] sm:$0xff]  ;;  %v8517_v9 = vmax.f32 %v8453_v32, %v14517_v7  ;;  %v8390_v1 = vmax.f32 %v14453_v45, %v14501_v23  ;;  %v8455_v43 = vmax.f32 %v8391_v58, %v14517_v7 }
 0x93b   : > { %v8922_v10 = vadd.f32 %v8890_v20, %v14402_v44  ;;  %v8797_v18 = vld [vmem:[#allocation5 + $0x23] sm:$0xff]  ;;  %v8828_v19 = vmax.f32 %v8764_v48, %v8796_v24  ;;  %v8671_v55 = vld [vmem:[#allocation5 + $0x39] sm:$0xff]  ;;  %v8702_v59 = vmax.f32 %v8638_v50, %v8670_v57  ;;  %v8923_v28 = vadd.f32 %v8891_v62, %v14407_v52  ;;  %8611 = vst.msk [vmem:[#allocation5 + $0x6a] sm:$0xff] %vm171_vm0, %v8579_v60  ;;  %v14558_v13 = vld [vmem:[#allocation4 + $0x90] sm:$0xff] }
 0x93c   : > { %v8829_v40 = vmax.f32 %v8765_v30, %v8797_v18  ;;  %v8860_v39 = vld [vmem:[#allocation5 + $0x1c] sm:$0xff]  ;;  %v8703_v38 = vmax.f32 %v8639_v12, %v8671_v55  ;;  %v8734_v35 = vld [vmem:[#allocation5 + $0x32] sm:$0xff]  ;;  %v8861_v44 = vld [vmem:[#allocation5 + $0x24] sm:$0xff]  ;;  %v8578_v52 = vmax.f32 %v8514_v5, %v14525_v21  ;;  %v14551_v41 = vpop.f32.mrb[20].mxu1  ;;  %v8516_v20 = vmax.f32 %v8452_v54, %v14525_v21 }
 0x93d   : > { %v14545_v63 = vld [vmem:[#allocation4 + $0x98] sm:$0xff]  ;;  %8954 = vst.msk [vmem:[%s14534_s23] sm:$0xff] %vm171_vm0, %v8922_v10  ;;  %v8892_v16 = vmax.f32 %v8828_v19, %v8860_v39  ;;  %v8766_v0 = vmax.f32 %v8702_v59, %v8734_v35  ;;  %8955 = vst.msk [vmem:[%s14534_s23 + $0x8] sm:$0xff] %vm171_vm0, %v8923_v28  ;;  %v8212_v29 = vpop.f32.mrb[21].mxu1  ;;  %v8640_v24 = vld [vmem:[#allocation5 + $0x48] sm:$0xff]  ;;  %v8393_v62 = vmax.f32 %v14499_v47, %v14517_v7 }
 0x93e   : > { %v8735_v49 = vld [vmem:[#allocation5 + $0x3a] sm:$0xff]  ;;  %v8893_v26 = vmax.f32 %v8829_v40, %v8861_v44  ;;  %8610 = vst.msk [vmem:[#allocation5 + $0x62] sm:$0xff] %vm171_vm0, %v8578_v52  ;;  %v8581_v11 = vmax.f32 %v8517_v9, %v14545_v63  ;;  %v8641_v14 = vld [vmem:[#allocation5 + $0x50] sm:$0xff]  ;;  %v8519_v32 = vmax.f32 %v8455_v43, %v14545_v63  ;;  %v14575_v19 = vld [vmem:[#allocation4 + $0xa8] sm:$0xff]  ;;  %v10348_v55 = vadd.f32 %v14527_v15, %v14348_v27 }
 0x93f   : > { %v8767_v2 = vmax.f32 %v8703_v38, %v8735_v49  ;;  %v8798_v42 = vld [vmem:[#allocation5 + $0x33] sm:$0xff]  ;;  %v8924_v33 = vadd.f32 %v8892_v16, %v14415_v61  ;;  %v8799_v37 = vld [vmem:[#allocation5 + $0x3b] sm:$0xff]  ;;  %v8672_v58 = vld [vmem:[#allocation5 + $0x49] sm:$0xff]  ;;  %v8454_v61 = vmax.f32 %v8390_v1, %v14525_v21  ;;  %v10349_v59 = vadd.f32 %v14348_v27, %v8200_v34 }
 0x940   : > { %v8830_v56 = vmax.f32 %v8766_v0, %v8798_v42  ;;  %v8862_v51 = vld [vmem:[#allocation5 + $0x34] sm:$0xff]  ;;  %v8925_v48 = vadd.f32 %v8893_v26, %v14420_v31  ;;  %v8863_v30 = vld [vmem:[#allocation5 + $0x3c] sm:$0xff]  ;;  %v8704_v57 = vmax.f32 %v8640_v24, %v8672_v58  ;;  %8613 = vst.msk [vmem:[#allocation5 + $0x82] sm:$0xff] %vm171_vm0, %v8581_v11  ;;  %v8580_v31 = vmax.f32 %v8516_v20, %v14558_v13  ;;  %v10189_v60 = vpop.f32.mrb[22].mxu1  ;;  %v8736_v47 = vld [vmem:[#allocation5 + $0x4a] sm:$0xff] }
 0x941   : > { %v8831_v45 = vmax.f32 %v8767_v2, %v8799_v37  ;;  %8956 = vst.msk [vmem:[%s14534_s23 + $0x10] sm:$0xff] %vm171_vm0, %v8924_v33  ;;  %v8673_v12 = vld [vmem:[#allocation5 + $0x51] sm:$0xff]  ;;  %v8224_v5 = vpop.f32.mrb[23].mxu1  ;;  %v8392_v38 = vmax.f32 %v14501_v23, %v14525_v21  ;;  %v8395_v35 = vmax.f32 %v14517_v7, %v14545_v63  ;;  %v14586_v54 = vld [vmem:[#allocation4 + $0xa0] sm:$0xff]  ;;  %v8518_v16 = vmax.f32 %v8454_v61, %v14558_v13 }
 0x942   : > { %v8894_v50 = vmax.f32 %v8830_v56, %v8862_v51  ;;  %8957 = vst.msk [vmem:[%s14534_s23 + $0x18] sm:$0xff] %vm171_vm0, %v8925_v48  ;;  %v8705_v18 = vmax.f32 %v8641_v14, %v8673_v12  ;;  %v8737_v40 = vld [vmem:[#allocation5 + $0x52] sm:$0xff]  ;;  %v8768_v39 = vmax.f32 %v8704_v57, %v8736_v47  ;;  %8612 = vst.msk [vmem:[#allocation5 + $0x7a] sm:$0xff] %vm171_vm0, %v8580_v31  ;;  %v8739_v61 = vld [vmem:[#allocation5 + $0x6a] sm:$0xff] }
 0x943   : > { %v8895_v10 = vmax.f32 %v8831_v45, %v8863_v30  ;;  %v8800_v44 = vld [vmem:[#allocation5 + $0x4b] sm:$0xff]  ;;  %8301 = vst.msk [vmem:[#allocation4 + $0xb8] sm:$0xff] %vm171_vm0, %v10348_v55  ;;  %8300 = vst.msk [vmem:[#allocation4 + $0xb0] sm:$0xff] %vm171_vm0, %v10349_v59  ;;  %v8801_v23 = vld [vmem:[#allocation5 + $0x53] sm:$0xff]  ;;  %v14596_v0 = vmax.f32 %v8393_v62, %v14545_v63  ;;  %v14601_v9 = vmax.f32 %v8392_v38, %v14558_v13 }
 0x944   : > { %v8926_v28 = vadd.f32 %v8894_v50, %v14428_v53  ;;  %v8769_v34 = vmax.f32 %v8705_v18, %v8737_v40  ;;  %v8583_v53 = vmax.f32 %v8519_v32, %v14575_v19  ;;  %v8832_v7 = vmax.f32 %v8768_v39, %v8800_v44  ;;  %v8864_v49 = vld [vmem:[#allocation5 + $0x4c] sm:$0xff]  ;;  %v10192_v52 = vpop.f32.mrb[24].mxu1  ;;  %v8865_v56 = vld [vmem:[#allocation5 + $0x54] sm:$0xff] }
 0x945   : > { %v8927_v15 = vadd.f32 %v8895_v10, %v14433_v22  ;;  %v8394_v22 = vmax.f32 %v14525_v21, %v14558_v13  ;;  %v8642_v2 = vld [vmem:[#allocation5 + $0x60] sm:$0xff]  ;;  %v8643_v42 = vld [vmem:[#allocation5 + $0x68] sm:$0xff]  ;;  %v8582_v43 = vmax.f32 %v8518_v16, %v14586_v54  ;;  %v10350_v33 = vadd.f32 %v14551_v41, %v14348_v27  ;;  %v8236_v21 = vpop.f32.mrb[25].mxu1 }
 0x946   : > { %8958 = vst.msk [vmem:[%s14534_s23 + $0x20] sm:$0xff] %vm171_vm0, %v8926_v28  ;;  %v8833_v26 = vmax.f32 %v8769_v34, %v8801_v23  ;;  %v8674_v1 = vld [vmem:[#allocation5 + $0x61] sm:$0xff]  ;;  %8615 = vst.msk [vmem:[#allocation5 + $0x9a] sm:$0xff] %vm171_vm0, %v8583_v53  ;;  %v10351_v37 = vadd.f32 %v14348_v27, %v8212_v29  ;;  %v8896_v51 = vmax.f32 %v8832_v7, %v8864_v49  ;;  %v8675_v20 = vld [vmem:[#allocation5 + $0x69] sm:$0xff] }
 0x947   : > { %8959 = vst.msk [vmem:[%s14534_s23 + $0x28] sm:$0xff] %vm171_vm0, %v8927_v15  ;;  %v8706_v11 = vmax.f32 %v8642_v2, %v8674_v1  ;;  %v10352_v48 = vadd.f32 %v10189_v60, %v14348_v27  ;;  %v10353_v45 = vadd.f32 %v14348_v27, %v8224_v5  ;;  %v8707_v14 = vmax.f32 %v8643_v42, %v8675_v20  ;;  %v8738_v58 = vld [vmem:[#allocation5 + $0x62] sm:$0xff]  ;;  %v8803_v59 = vld [vmem:[#allocation5 + $0x6b] sm:$0xff] }
 0x948   : > { %v8897_v24 = vmax.f32 %v8833_v26, %v8865_v56  ;;  %8614 = vst.msk [vmem:[#allocation5 + $0x92] sm:$0xff] %vm171_vm0, %v8582_v43  ;;  %8303 = vst.msk [vmem:[#allocation4 + $0xc8] sm:$0xff] %vm171_vm0, %v10350_v33  ;;  %v10354_v41 = vadd.f32 %v10192_v52, %v14348_v27  ;;  %v10355_v29 = vadd.f32 %v14348_v27, %v8236_v21  ;;  %v8802_v50 = vld [vmem:[#allocation5 + $0x63] sm:$0xff]  ;;  %v10195_v32 = vpop.f32.mrb[26].mxu1 }
 0x949   : > { %8302 = vst.msk [vmem:[#allocation4 + $0xc0] sm:$0xff] %vm171_vm0, %v10351_v37  ;;  %v8928_v62 = vadd.f32 %v8896_v51, %v14443_v25  ;;  %v8770_v30 = vmax.f32 %v8706_v11, %v8738_v58  ;;  %v8397_v12 = vmax.f32 %v14545_v63, %v14575_v19  ;;  %v14621_v57 = vmax.f32 %v8395_v35, %v14575_v19  ;;  %v8644_v10 = vld [vmem:[#allocation5 + $0x78] sm:$0xff]  ;;  %v8645_v25 = vld [vmem:[#allocation5 + $0x80] sm:$0xff]  ;;  %v8248_v55 = vpop.f32.mrb[27].mxu1 }
 0x94a   : > { %8305 = vst.msk [vmem:[#allocation4 + $0xd8] sm:$0xff] %vm171_vm0, %v10352_v48  ;;  %8304 = vst.msk [vmem:[#allocation4 + $0xd0] sm:$0xff] %vm171_vm0, %v10353_v45  ;;  %v8929_v31 = vadd.f32 %v8897_v24, %v14448_v46  ;;  %v8771_v60 = vmax.f32 %v8707_v14, %v8739_v61  ;;  %v8676_v18 = vld [vmem:[#allocation5 + $0x79] sm:$0xff]  ;;  %v8521_v47 = vmax.f32 %v14596_v0, %v14575_v19  ;;  %v8866_v46 = vld [vmem:[#allocation5 + $0x64] sm:$0xff] }
 0x94b   : > { %8307 = vst.msk [vmem:[#allocation4 + $0xe8] sm:$0xff] %vm171_vm0, %v10354_v41  ;;  %8306 = vst.msk [vmem:[#allocation4 + $0xe0] sm:$0xff] %vm171_vm0, %v10355_v29  ;;  %v10356_v63 = vadd.f32 %v10195_v32, %v14348_v27  ;;  %v8834_v5 = vmax.f32 %v8770_v30, %v8802_v50  ;;  %v8677_v28 = vld [vmem:[#allocation5 + $0x81] sm:$0xff]  ;;  %v8708_v40 = vmax.f32 %v8644_v10, %v8676_v18  ;;  %v14643_v53 = vld [vmem:[#allocation4 + $0xb8] sm:$0xff] }
 0x94c   : > { %8960 = vst.msk [vmem:[%s14534_s23 + $0x30] sm:$0xff] %vm171_vm0, %v8928_v62  ;;  %v8396_v39 = vmax.f32 %v14558_v13, %v14586_v54  ;;  %v10357_v38 = vadd.f32 %v14348_v27, %v8248_v55  ;;  %8961 = vst.msk [vmem:[%s14534_s23 + $0x38] sm:$0xff] %vm171_vm0, %v8929_v31  ;;  %v8835_v35 = vmax.f32 %v8771_v60, %v8803_v59  ;;  %v8740_v34 = vld [vmem:[#allocation5 + $0x7a] sm:$0xff]  ;;  %v14645_v23 = vld [vmem:[#allocation4 + $0xb0] sm:$0xff] }
 0x94d   : > { %v8709_v15 = vmax.f32 %v8645_v25, %v8677_v28  ;;  %v14639_v44 = vmax.f32 %v8394_v22, %v14586_v54  ;;  %v8520_v16 = vmax.f32 %v14601_v9, %v14586_v54  ;;  %8309 = vst.msk [vmem:[#allocation4 + $0xf8] sm:$0xff] %vm171_vm0, %v10356_v63  ;;  %v8867_v13 = vld [vmem:[#allocation5 + $0x6c] sm:$0xff]  ;;  %v8898_v7 = vmax.f32 %v8834_v5, %v8866_v46  ;;  %v8741_v49 = vld [vmem:[#allocation5 + $0x82] sm:$0xff]  ;;  %v10198_v22 = vpop.f32.mrb[28].mxu1  ;;  %v8743_v31 = vld [vmem:[#allocation5 + $0x9a] sm:$0xff] }
 0x94e   : > { %v8772_v0 = vmax.f32 %v8708_v40, %v8740_v34  ;;  %v8399_v52 = vmax.f32 %v14575_v19, %v14643_v53  ;;  %v14651_v26 = vmax.f32 %v8397_v12, %v14643_v53  ;;  %8308 = vst.msk [vmem:[#allocation4 + $0xf0] sm:$0xff] %vm171_vm0, %v10357_v38  ;;  %v8899_v9 = vmax.f32 %v8835_v35, %v8867_v13  ;;  %v8805_v2 = vld [vmem:[#allocation5 + $0x83] sm:$0xff]  ;;  %v8804_v1 = vld [vmem:[#allocation5 + $0x7b] sm:$0xff]  ;;  %v14657_v37 = vpop.f32.mrb[29].mxu1 }
 0x94f   : > { %v8773_v42 = vmax.f32 %v8709_v15, %v8741_v49  ;;  %v8523_v43 = vmax.f32 %v14621_v57, %v14643_v53  ;;  %v8585_v33 = vmax.f32 %v8521_v47, %v14643_v53  ;;  %v8930_v19 = vadd.f32 %v8898_v7, %v14459_v4  ;;  %v8646_v56 = vld [vmem:[#allocation5 + $0x90] sm:$0xff]  ;;  %v8647_v51 = vld [vmem:[#allocation5 + $0x98] sm:$0xff]  ;;  %v8869_v24 = vld [vmem:[#allocation5 + $0x84] sm:$0xff] }
 0x950   : > { %v8836_v21 = vmax.f32 %v8772_v0, %v8804_v1  ;;  %v8678_v20 = vld [vmem:[#allocation5 + $0x91] sm:$0xff]  ;;  %v8398_v11 = vmax.f32 %v14586_v54, %v14645_v23  ;;  %v8460_v48 = vmax.f32 %v8396_v39, %v14645_v23  ;;  %v8931_v45 = vadd.f32 %v8899_v9, %v14464_v8  ;;  %v8868_v58 = vld [vmem:[#allocation5 + $0x7c] sm:$0xff]  ;;  %v14670_v50 = vld [vmem:[#allocation4 + $0xc8] sm:$0xff]  ;;  %v10201_v57 = vpop.f32.mrb[30].mxu1 }
 0x951   : > { %v8837_v14 = vmax.f32 %v8773_v42, %v8805_v2  ;;  %v8679_v41 = vld [vmem:[#allocation5 + $0x99] sm:$0xff]  ;;  %v8710_v29 = vmax.f32 %v8646_v56, %v8678_v20  ;;  %8617 = vst.msk [vmem:[#allocation5 + $0xb2] sm:$0xff] %vm171_vm0, %v8585_v33  ;;  %v8522_v4 = vmax.f32 %v14639_v44, %v14645_v23  ;;  %8962 = vst.msk [vmem:[%s14534_s23 + $0x40] sm:$0xff] %vm171_vm0, %v8930_v19  ;;  %v8272_v47 = vpop.f32.mrb[31].mxu1  ;;  %v14687_v28 = vld [vmem:[#allocation4 + $0xd0] sm:$0xff] }
 0x952   : > { %v8900_v62 = vmax.f32 %v8836_v21, %v8868_v58  ;;  %v8711_v61 = vmax.f32 %v8647_v51, %v8679_v41  ;;  %v8742_v54 = vld [vmem:[#allocation5 + $0x92] sm:$0xff]  ;;  %v8584_v30 = vmax.f32 %v8520_v16, %v14645_v23  ;;  %v14672_v8 = vld [vmem:[#allocation4 + $0xc0] sm:$0xff]  ;;  %v10358_v12 = vadd.f32 %v10198_v22, %v14348_v27  ;;  %8963 = vst.msk [vmem:[%s14534_s23 + $0x48] sm:$0xff] %vm171_vm0, %v8931_v45  ;;  %v14694_v15 = vld [vmem:[#allocation4 + $0xe8] sm:$0xff] }
 0x953   : > { %v8901_v32 = vmax.f32 %v8837_v14, %v8869_v24  ;;  %v8774_v60 = vmax.f32 %v8710_v29, %v8742_v54  ;;  %v8401_v10 = vmax.f32 %v14643_v53, %v14670_v50  ;;  %v8463_v25 = vmax.f32 %v8399_v52, %v14670_v50  ;;  %v14680_v18 = vld [vmem:[#allocation4 + $0xd8] sm:$0xff]  ;;  %v14702_v13 = vld [vmem:[#allocation4 + $0xe0] sm:$0xff] }
 0x954   : > { %v8932_v63 = vadd.f32 %v8900_v62, %v14473_v3  ;;  %v8775_v55 = vmax.f32 %v8711_v61, %v8743_v31  ;;  %v8806_v59 = vld [vmem:[#allocation5 + $0x93] sm:$0xff]  ;;  %8616 = vst.msk [vmem:[#allocation5 + $0xaa] sm:$0xff] %vm171_vm0, %v8584_v30  ;;  %v8525_v5 = vmax.f32 %v14651_v26, %v14670_v50  ;;  %v8587_v46 = vmax.f32 %v8523_v43, %v14670_v50  ;;  %v8807_v39 = vld [vmem:[#allocation5 + $0x9b] sm:$0xff] }
 0x955   : > { %8311 = vst.msk [vmem:[#allocation4 + $0x108] sm:$0xff] %vm171_vm0, %v10358_v12  ;;  %v8933_v40 = vadd.f32 %v8901_v32, %v14478_v6  ;;  %v8838_v38 = vmax.f32 %v8774_v60, %v8806_v59  ;;  %v8400_v3 = vmax.f32 %v14645_v23, %v14672_v8  ;;  %v8462_v35 = vmax.f32 %v8398_v11, %v14672_v8  ;;  %v8870_v44 = vld [vmem:[#allocation5 + $0x94] sm:$0xff]  ;;  %v8871_v23 = vld [vmem:[#allocation5 + $0x9c] sm:$0xff] }
 0x956   : > { %8964 = vst.msk [vmem:[%s14534_s23 + $0x50] sm:$0xff] %vm171_vm0, %v8932_v63  ;;  %v8839_v34 = vmax.f32 %v8775_v55, %v8807_v39  ;;  %8619 = vst.msk [vmem:[#allocation5 + $0xca] sm:$0xff] %vm171_vm0, %v8587_v46  ;;  %v8524_v16 = vmax.f32 %v8460_v48, %v14672_v8  ;;  %v8586_v53 = vmax.f32 %v8522_v4, %v14672_v8  ;;  %v14709_v26 = vld [vmem:[#allocation4 + $0xf8] sm:$0xff]  ;;  %v14715_v1 = vld [vmem:[#allocation4 + $0xf0] sm:$0xff] }
 0x957   : > { %v8465_v6 = vmax.f32 %v8401_v10, %v14680_v18  ;;  %8965 = vst.msk [vmem:[%s14534_s23 + $0x58] sm:$0xff] %vm171_vm0, %v8933_v40  ;;  %v8902_v7 = vmax.f32 %v8838_v38, %v8870_v44  ;;  %v8527_v49 = vmax.f32 %v8463_v25, %v14680_v18  ;;  %v8589_v0 = vmax.f32 %v8525_v5, %v14680_v18  ;;  %v15518_v61 = vld [vmem:[#allocation20_spill] sm:$0xff]  ;;  %v15520_v30 = vld [vmem:[#allocation66_spill] sm:$0xff]  ;;  %v15521_v12 = vld [vmem:[#allocation21_spill] sm:$0xff] }
 0x958   : > { %v8464_v52 = vmax.f32 %v8400_v3, %v14687_v28  ;;  %v8903_v22 = vmax.f32 %v8839_v34, %v8871_v23  ;;  %8618 = vst.msk [vmem:[#allocation5 + $0xc2] sm:$0xff] %vm171_vm0, %v8586_v53  ;;  %v8526_v9 = vmax.f32 %v8462_v35, %v14687_v28  ;;  %v8588_v2 = vmax.f32 %v8524_v16, %v14687_v28  ;;  %v15523_v32 = vld [vmem:[#allocation68_spill] sm:$0xff]  ;;  %v15526_v55 = vld [vmem:[#allocation46_spill] sm:$0xff]  ;;  %v15527_v5 = vld [vmem:[#allocation23_spill] sm:$0xff] }
 0x959   : > { %v8529_v42 = vmax.f32 %v8465_v6, %v14694_v15  ;;  %v8934_v43 = vadd.f32 %v8902_v7, %v14491_v36  ;;  %8621 = vst.msk [vmem:[#allocation5 + $0xe2] sm:$0xff] %vm171_vm0, %v8589_v0  ;;  %v8591_v33 = vmax.f32 %v8527_v49, %v14694_v15  ;;  %v8403_v21 = vmax.f32 %v14670_v50, %v14680_v18  ;;  %v8745_v60 = vld [vmem:[#allocation5 + $0xb2] sm:$0xff]  ;;  %v15529_v40 = vld [vmem:[#allocation47_spill] sm:$0xff]  ;;  %v15535_v0 = vld [vmem:[#allocation42_spill] sm:$0xff] }
 0x95a   : > { %v8528_v19 = vmax.f32 %v8464_v52, %v14702_v13  ;;  %v8935_v56 = vadd.f32 %v8903_v22, %v14496_v17  ;;  %8620 = vst.msk [vmem:[#allocation5 + $0xda] sm:$0xff] %vm171_vm0, %v8588_v2  ;;  %v8590_v51 = vmax.f32 %v8526_v9, %v14702_v13  ;;  %v10359_v36 = vadd.f32 %v14348_v27, %v14657_v37  ;;  %v15530_v16 = vld [vmem:[#allocation24_spill] sm:$0xff]  ;;  %v15533_v7 = vld [vmem:[#allocation25_spill] sm:$0xff] }
 0x95b   : > { %v8593_v20 = vmax.f32 %v8529_v42, %v14709_v26  ;;  %8966 = vst.msk [vmem:[%s14534_s23 + $0x60] sm:$0xff] %vm171_vm0, %v8934_v43  ;;  %v8648_v11 = vld [vmem:[#allocation5 + $0xa8] sm:$0xff]  ;;  %v8649_v48 = vld [vmem:[#allocation5 + $0xb0] sm:$0xff]  ;;  %8623 = vst.msk [vmem:[#allocation5 + $0xfa] sm:$0xff] %vm171_vm0, %v8591_v33  ;;  %v8467_v17 = vmax.f32 %v8403_v21, %v14694_v15  ;;  %v10360_v14 = vadd.f32 %v10201_v57, %v14348_v27  ;;  %v15519_v54 = vmax.f32 %v15518_v61, 0.0 }
 0x95c   : > { %v8680_v45 = vld [vmem:[#allocation5 + $0xa9] sm:$0xff]  ;;  %v8592_v24 = vmax.f32 %v8528_v19, %v14715_v1  ;;  %8967 = vst.msk [vmem:[%s14534_s23 + $0x68] sm:$0xff] %vm171_vm0, %v8935_v56  ;;  %v8681_v58 = vld [vmem:[#allocation5 + $0xb1] sm:$0xff]  ;;  %8622 = vst.msk [vmem:[#allocation5 + $0xf2] sm:$0xff] %vm171_vm0, %v8590_v51  ;;  %v10361_v37 = vadd.f32 %v14348_v27, %v8272_v47  ;;  %v15522_v57 = vmax.f32 %v15521_v12, 0.0  ;;  %v15528_v46 = vmax.f32 %v15527_v5, 0.0 }
 0x95d   : > { %v8712_v41 = vmax.f32 %v8648_v11, %v8680_v45  ;;  %8625 = vst.msk [vmem:[#allocation5 + $0x112] sm:$0xff] %vm171_vm0, %v8593_v20  ;;  %8310 = vst.msk [vmem:[#allocation4 + $0x100] sm:$0xff] %vm171_vm0, %v10359_v36  ;;  %v8713_v29 = vmax.f32 %v8649_v48, %v8681_v58  ;;  %v8744_v4 = vld [vmem:[#allocation5 + $0xaa] sm:$0xff]  ;;  %v8531_v62 = vmax.f32 %v8467_v17, %v14709_v26  ;;  %v15524_v47 = vld [vmem:[#allocation22_spill] sm:$0xff]  ;;  %v15531_v53 = vmax.f32 %v15530_v16, 0.0 }
 0x95e   : > { %8624 = vst.msk [vmem:[#allocation5 + $0x10a] sm:$0xff] %vm171_vm0, %v8592_v24  ;;  %8313 = vst.msk [vmem:[#allocation4 + $0x118] sm:$0xff] %vm171_vm0, %v10360_v14  ;;  %v4656_v50 = vadd.f32 %v15520_v30, %v15519_v54  ;;  %v4657_v31 = vadd.f32 %v15523_v32, %v15522_v57  ;;  %v8808_v25 = vld [vmem:[#allocation5 + $0xab] sm:$0xff]  ;;  %v15525_v63 = vmax.f32 %v15524_v47, 0.0  ;;  %v14761_v39 = vadd.f32 %v15529_v40, %v15528_v46  ;;  %v8809_v22 = vld [vmem:[#allocation5 + $0xb3] sm:$0xff] }
 0x95f   : > { %v8776_v10 = vmax.f32 %v8712_v41, %v8744_v4  ;;  %v14750_v27 = vld [vmem:[#allocation4 + $0x108] sm:$0xff]  ;;  %8312 = vst.msk [vmem:[#allocation4 + $0x110] sm:$0xff] %vm171_vm0, %v10361_v37  ;;  %v8777_v38 = vmax.f32 %v8713_v29, %v8745_v60  ;;  %v8650_v3 = vld [vmem:[#allocation5 + $0xc0] sm:$0xff]  ;;  %v15532_v6 = vld [vmem:[#allocation52_spill] sm:$0xff]  ;;  %v15534_v49 = vmax.f32 %v15533_v7, 0.0  ;;  %v8402_v30 = vmax.f32 %v14672_v8, %v14687_v28 }
 0x960   : > { %v14756_v59 = vadd.f32 %v15526_v55, %v15525_v63  ;;  %v8651_v35 = vld [vmem:[#allocation5 + $0xc8] sm:$0xff]  ;;  %v8595_v44 = vmax.f32 %v8531_v62, %v14750_v27  ;;  %v14767_v23 = vadd.f32 %v15532_v6, %v15531_v53  ;;  %v15536_v43 = vld [vmem:[#allocation26_spill] sm:$0xff]  ;;  %v15538_v19 = vld [vmem:[#allocation44_spill] sm:$0xff]  ;;  %v8407_v47 = vmax.f32 %v14694_v15, %v14709_v26 }
 0x961   : > { %v8682_v34 = vld [vmem:[#allocation5 + $0xc1] sm:$0xff]  ;;  %v14772_v52 = vadd.f32 %v15535_v0, %v15534_v49  ;;  %v8840_v9 = vmax.f32 %v8776_v10, %v8808_v25  ;;  %v8683_v2 = vld [vmem:[#allocation5 + $0xc9] sm:$0xff]  ;;  %v15537_v33 = vmax.f32 %v15536_v43, 0.0  ;;  %v8873_v11 = vld [vmem:[#allocation5 + $0xb4] sm:$0xff]  ;;  %v8841_v48 = vmax.f32 %v8777_v38, %v8809_v22 }
 0x962   : > { %v8714_v42 = vmax.f32 %v8650_v3, %v8682_v34  ;;  %v15539_v56 = vld [vmem:[#allocation27_spill] sm:$0xff]  ;;  %v15541_v20 = vld [vmem:[#allocation48_spill] sm:$0xff]  ;;  %v8715_v24 = vmax.f32 %v8651_v35, %v8683_v2  ;;  %8627 = vst.msk [vmem:[#allocation5 + $0x12a] sm:$0xff] %vm171_vm0, %v8595_v44  ;;  %v15544_v41 = vld [vmem:[#allocation50_spill] sm:$0xff]  ;;  %v8405_v25 = vmax.f32 %v14680_v18, %v14694_v15  ;;  %v8466_v53 = vmax.f32 %v8402_v30, %v14702_v13 }
 0x963   : > { %v14777_v21 = vadd.f32 %v15538_v19, %v15537_v33  ;;  %v15540_v51 = vmax.f32 %v15539_v56, 0.0  ;;  %v8872_v45 = vld [vmem:[#allocation5 + $0xac] sm:$0xff]  ;;  %v8746_v17 = vld [vmem:[#allocation5 + $0xc2] sm:$0xff]  ;;  %v8652_v61 = vld [vmem:[#allocation5 + $0xd8] sm:$0xff]  ;;  %v8905_v12 = vmax.f32 %v8841_v48, %v8873_v11  ;;  %v8404_v18 = vmax.f32 %v14687_v28, %v14702_v13 }
 0x964   : > { %v15542_v14 = vld [vmem:[#allocation28_spill] sm:$0xff]  ;;  %v8904_v29 = vmax.f32 %v8840_v9, %v8872_v45  ;;  %v8778_v62 = vmax.f32 %v8714_v42, %v8746_v17  ;;  %v8653_v54 = vld [vmem:[#allocation5 + $0xe0] sm:$0xff]  ;;  %v8655_v7 = vld [vmem:[#allocation5 + $0xf8] sm:$0xff]  ;;  %v8469_v22 = vmax.f32 %v8405_v25, %v14709_v26  ;;  %v8406_v28 = vmax.f32 %v14702_v13, %v14715_v1 }
 0x965   : > { %v14782_v36 = vadd.f32 %v15541_v20, %v15540_v51  ;;  %v15543_v58 = vmax.f32 %v15542_v14, 0.0  ;;  %v8747_v4 = vld [vmem:[#allocation5 + $0xca] sm:$0xff]  ;;  %v8684_v60 = vld [vmem:[#allocation5 + $0xd9] sm:$0xff]  ;;  %v8685_v10 = vld [vmem:[#allocation5 + $0xe1] sm:$0xff]  ;;  %v8937_v8 = vadd.f32 %v8905_v12, %v4657_v31  ;;  %v8530_v45 = vmax.f32 %v8466_v53, %v14715_v1 }
 0x966   : > { %v8779_v57 = vmax.f32 %v8715_v24, %v8747_v4  ;;  %v8810_v32 = vld [vmem:[#allocation5 + $0xc3] sm:$0xff]  ;;  %v8936_v63 = vadd.f32 %v8904_v29, %v4656_v50  ;;  %v8811_v55 = vld [vmem:[#allocation5 + $0xcb] sm:$0xff]  ;;  %v8716_v38 = vmax.f32 %v8652_v61, %v8684_v60  ;;  %v8717_v3 = vmax.f32 %v8653_v54, %v8685_v10  ;;  %v8748_v44 = vld [vmem:[#allocation5 + $0xda] sm:$0xff] }
 0x967   : > { %v14788_v37 = vadd.f32 %v15544_v41, %v15543_v58  ;;  %v8875_v5 = vld [vmem:[#allocation5 + $0xcc] sm:$0xff]  ;;  %v8842_v46 = vmax.f32 %v8778_v62, %v8810_v32  ;;  %v8874_v40 = vld [vmem:[#allocation5 + $0xc4] sm:$0xff]  ;;  %v8687_v0 = vld [vmem:[#allocation5 + $0xf9] sm:$0xff]  ;;  %8969 = vst.msk [vmem:[%s14534_s23 + $0x78] sm:$0xff] %vm171_vm0, %v8937_v8  ;;  %v8409_v4 = vmax.f32 %v14709_v26, %v14750_v27  ;;  %v8533_v26 = vmax.f32 %v8469_v22, %v14750_v27 }
 0x968   : > { %v8843_v35 = vmax.f32 %v8779_v57, %v8811_v55  ;;  %v8749_v34 = vld [vmem:[#allocation5 + $0xe2] sm:$0xff]  ;;  %v8654_v16 = vld [vmem:[#allocation5 + $0xf0] sm:$0xff]  ;;  %8968 = vst.msk [vmem:[%s14534_s23 + $0x70] sm:$0xff] %vm171_vm0, %v8936_v63  ;;  %v8780_v50 = vmax.f32 %v8716_v38, %v8748_v44  ;;  %v8719_v33 = vmax.f32 %v8655_v7, %v8687_v0  ;;  %v8751_v11 = vld [vmem:[#allocation5 + $0xfa] sm:$0xff]  ;;  %v8471_v57 = vmax.f32 %v8407_v47, %v14750_v27 }
 0x969   : > { %v8906_v15 = vmax.f32 %v8842_v46, %v8874_v40  ;;  %v8781_v6 = vmax.f32 %v8717_v3, %v8749_v34  ;;  %v8686_v49 = vld [vmem:[#allocation5 + $0xf1] sm:$0xff]  ;;  %v8813_v9 = vld [vmem:[#allocation5 + $0xe3] sm:$0xff]  ;;  %v8812_v42 = vld [vmem:[#allocation5 + $0xdb] sm:$0xff]  ;;  %v8468_v3 = vmax.f32 %v8404_v18, %v14715_v1 }
 0x96a   : > { %v8907_v31 = vmax.f32 %v8843_v35, %v8875_v5  ;;  %v8877_v2 = vld [vmem:[#allocation5 + $0xe4] sm:$0xff]  ;;  %v8718_v43 = vmax.f32 %v8654_v16, %v8686_v49  ;;  %v8844_v56 = vmax.f32 %v8780_v50, %v8812_v42  ;;  %v8876_v20 = vld [vmem:[#allocation5 + $0xdc] sm:$0xff]  ;;  %v8750_v48 = vld [vmem:[#allocation5 + $0xf2] sm:$0xff]  ;;  %v8783_v14 = vmax.f32 %v8719_v33, %v8751_v11 }
 0x96b   : > { %v8938_v19 = vadd.f32 %v8906_v15, %v14756_v59  ;;  %v8845_v51 = vmax.f32 %v8781_v6, %v8813_v9  ;;  %v8656_v58 = vld [vmem:[#allocation5 + $0x108] sm:$0xff]  ;;  %v8657_v41 = vld [vmem:[#allocation5 + $0x110] sm:$0xff]  ;;  %v8815_v61 = vld [vmem:[#allocation5 + $0xfb] sm:$0xff] }
 0x96c   : > { %v8939_v24 = vadd.f32 %v8907_v31, %v14761_v39  ;;  %v8782_v17 = vmax.f32 %v8718_v43, %v8750_v48  ;;  %v8688_v29 = vld [vmem:[#allocation5 + $0x109] sm:$0xff]  ;;  %v8908_v59 = vmax.f32 %v8844_v56, %v8876_v20  ;;  %v8814_v54 = vld [vmem:[#allocation5 + $0xf3] sm:$0xff]  ;;  %v8879_v39 = vld [vmem:[#allocation5 + $0xfc] sm:$0xff]  ;;  %v8847_v60 = vmax.f32 %v8783_v14, %v8815_v61 }
 0x96d   : > { %8970 = vst.msk [vmem:[%s14534_s23 + $0x80] sm:$0xff] %vm171_vm0, %v8938_v19  ;;  %v8909_v62 = vmax.f32 %v8845_v51, %v8877_v2  ;;  %v8689_v30 = vld [vmem:[#allocation5 + $0x111] sm:$0xff]  ;;  %v8720_v12 = vmax.f32 %v8656_v58, %v8688_v29  ;;  %v8562_v38 = vld [vmem:[#allocation4 + $0x100] sm:$0xff]  ;;  %v8505_v53 = vld [vmem:[#allocation4 + $0x128] sm:$0xff] }
 0x96e   : > { %8971 = vst.msk [vmem:[%s14534_s23 + $0x88] sm:$0xff] %vm171_vm0, %v8939_v24  ;;  %v8846_v32 = vmax.f32 %v8782_v17, %v8814_v54  ;;  %v8878_v10 = vld [vmem:[#allocation5 + $0xf4] sm:$0xff]  ;;  %v8721_v25 = vmax.f32 %v8657_v41, %v8689_v30  ;;  %v8752_v63 = vld [vmem:[#allocation5 + $0x10a] sm:$0xff]  ;;  %v8940_v55 = vadd.f32 %v8908_v59, %v14767_v23  ;;  %v8911_v35 = vmax.f32 %v8847_v60, %v8879_v39  ;;  %v8504_v33 = vld [vmem:[#allocation4 + $0x120] sm:$0xff] }
 0x96f   : > { %v8941_v5 = vadd.f32 %v8909_v62, %v14772_v52  ;;  %v8753_v46 = vld [vmem:[#allocation5 + $0x112] sm:$0xff]  ;;  %v8784_v40 = vmax.f32 %v8720_v12, %v8752_v63  ;;  %v8594_v16 = vmax.f32 %v8530_v45, %v8562_v38  ;;  %v8408_v31 = vmax.f32 %v14715_v1, %v8562_v38  ;;  %v8755_v30 = vld [vmem:[#allocation5 + $0x12a] sm:$0xff] }
 0x970   : > { %v8441_v47 = vld [vmem:[#allocation4 + $0x118] sm:$0xff]  ;;  %v8910_v8 = vmax.f32 %v8846_v32, %v8878_v10  ;;  %v8785_v34 = vmax.f32 %v8721_v25, %v8753_v46  ;;  %v8816_v44 = vld [vmem:[#allocation5 + $0x10b] sm:$0xff]  ;;  %8972 = vst.msk [vmem:[%s14534_s23 + $0x90] sm:$0xff] %vm171_vm0, %v8940_v55  ;;  %v8943_v18 = vadd.f32 %v8911_v35, %v14782_v36  ;;  %v8532_v48 = vmax.f32 %v8468_v3, %v8562_v38  ;;  %v15548_v46 = vld [vmem:[#allocation30_spill] sm:$0xff] }
 0x971   : > { %8973 = vst.msk [vmem:[%s14534_s23 + $0x98] sm:$0xff] %vm171_vm0, %v8941_v5  ;;  %v8817_v27 = vld [vmem:[#allocation5 + $0x113] sm:$0xff]  ;;  %v8848_v23 = vmax.f32 %v8784_v40, %v8816_v44  ;;  %v8473_v15 = vmax.f32 %v8409_v4, %v8441_v47  ;;  %v8535_v52 = vmax.f32 %v8471_v57, %v8441_v47  ;;  %v8597_v50 = vmax.f32 %v8533_v26, %v8441_v47  ;;  %v8819_v32 = vld [vmem:[#allocation5 + $0x12b] sm:$0xff] }
 0x972   : > { %v8440_v6 = vld [vmem:[#allocation4 + $0x110] sm:$0xff]  ;;  %v8942_v7 = vadd.f32 %v8910_v8, %v14777_v21  ;;  %v8849_v49 = vmax.f32 %v8785_v34, %v8817_v27  ;;  %8626 = vst.msk [vmem:[#allocation5 + $0x122] sm:$0xff] %vm171_vm0, %v8594_v16  ;;  %v8569_v22 = vld [vmem:[#allocation4 + $0x138] sm:$0xff]  ;;  %v8470_v21 = vmax.f32 %v8406_v28, %v8562_v38  ;;  %8975 = vst.msk [vmem:[%s14534_s23 + $0xa8] sm:$0xff] %vm171_vm0, %v8943_v18  ;;  %v15549_v40 = vmax.f32 %v15548_v46, 0.0 }
 0x973   : > { %v8880_v0 = vld [vmem:[#allocation5 + $0x10c] sm:$0xff]  ;;  %v8881_v9 = vld [vmem:[#allocation5 + $0x114] sm:$0xff]  ;;  %v8537_v42 = vmax.f32 %v8473_v15, %v8505_v53  ;;  %v8599_v43 = vmax.f32 %v8535_v52, %v8505_v53  ;;  %8629 = vst.msk [vmem:[#allocation5 + $0x142] sm:$0xff] %vm171_vm0, %v8597_v50  ;;  %v8472_v11 = vmax.f32 %v8408_v31, %v8440_v6  ;;  %v8596_v14 = vmax.f32 %v8532_v48, %v8440_v6 }
 0x974   : > { %v8912_v2 = vmax.f32 %v8848_v23, %v8880_v0  ;;  %v15545_v36 = vld [vmem:[#allocation29_spill] sm:$0xff]  ;;  %8974 = vst.msk [vmem:[%s14534_s23 + $0xa0] sm:$0xff] %vm171_vm0, %v8942_v7  ;;  %v8913_v20 = vmax.f32 %v8849_v49, %v8881_v9  ;;  %v8534_v13 = vmax.f32 %v8470_v21, %v8440_v6  ;;  %v8568_v1 = vld [vmem:[#allocation4 + $0x130] sm:$0xff]  ;;  %v15550_v38 = vld [vmem:[#allocation55_spill] sm:$0xff] }
 0x975   : > { %v15546_v19 = vmax.f32 %v15545_v36, 0.0  ;;  %v15547_v56 = vld [vmem:[#allocation53_spill] sm:$0xff]  ;;  %v8601_v24 = vmax.f32 %v8537_v42, %v8569_v22  ;;  %8631 = vst.msk [vmem:[#allocation5 + $0x15a] sm:$0xff] %vm171_vm0, %v8599_v43  ;;  %v8536_v17 = vmax.f32 %v8472_v11, %v8504_v33  ;;  %8628 = vst.msk [vmem:[#allocation5 + $0x13a] sm:$0xff] %vm171_vm0, %v8596_v14  ;;  %v8883_v60 = vld [vmem:[#allocation5 + $0x12c] sm:$0xff]  ;;  %v4666_v47 = vadd.f32 %v15550_v38, %v15549_v40 }
 0x976   : > { %v8944_v45 = vadd.f32 %v8912_v2, %v14788_v37  ;;  %v8598_v58 = vmax.f32 %v8534_v13, %v8504_v33  ;;  %v15551_v16 = vld [vmem:[#allocation31_spill] sm:$0xff]  ;;  %v15553_v27 = vld [vmem:[#allocation57_spill] sm:$0xff] }
 0x977   : > { %v4665_v51 = vadd.f32 %v15547_v56, %v15546_v19  ;;  %8633 = vst.msk [vmem:[#allocation5 + $0x172] sm:$0xff] %vm171_vm0, %v8601_v24  ;;  %v8600_v41 = vmax.f32 %v8536_v17, %v8568_v1  ;;  %v15552_v53 = vmax.f32 %v15551_v16, 0.0  ;;  %v15554_v19 = vld [vmem:[#allocation32_spill] sm:$0xff]  ;;  %v15559_v14 = vld [vmem:[#allocation61_spill] sm:$0xff] }
 0x978   : > { %8976 = vst.msk [vmem:[%s14534_s23 + $0xb0] sm:$0xff] %vm171_vm0, %v8944_v45  ;;  %8630 = vst.msk [vmem:[#allocation5 + $0x152] sm:$0xff] %vm171_vm0, %v8598_v58  ;;  %v15555_v56 = vmax.f32 %v15554_v19, 0.0 }
 0x979   : > { %v8945_v28 = vadd.f32 %v8913_v20, %v4665_v51  ;;  %v8658_v29 = vld [vmem:[#allocation5 + $0x120] sm:$0xff]  ;;  %v8659_v37 = vld [vmem:[#allocation5 + $0x128] sm:$0xff]  ;;  %8632 = vst.msk [vmem:[#allocation5 + $0x16a] sm:$0xff] %vm171_vm0, %v8600_v41  ;;  %v4667_v23 = vadd.f32 %v15553_v27, %v15552_v53 }
 0x97a   : > { %v8690_v4 = vld [vmem:[#allocation5 + $0x121] sm:$0xff]  ;;  %v8691_v59 = vld [vmem:[#allocation5 + $0x129] sm:$0xff] }
 0x97b   : > { %8977 = vst.msk [vmem:[%s14534_s23 + $0xb8] sm:$0xff] %vm171_vm0, %v8945_v28  ;;  %v8722_v62 = vmax.f32 %v8658_v29, %v8690_v4  ;;  %v8723_v61 = vmax.f32 %v8659_v37, %v8691_v59  ;;  %v8754_v54 = vld [vmem:[#allocation5 + $0x122] sm:$0xff]  ;;  %v15557_v28 = vld [vmem:[#allocation33_spill] sm:$0xff] }
 0x97c   : > { %v8818_v39 = vld [vmem:[#allocation5 + $0x123] sm:$0xff]  ;;  %v8660_v26 = vld [vmem:[#allocation5 + $0x138] sm:$0xff]  ;;  %v15558_v17 = vmax.f32 %v15557_v28, 0.0 }
 0x97d   : > { %v8786_v12 = vmax.f32 %v8722_v62, %v8754_v54  ;;  %v8787_v57 = vmax.f32 %v8723_v61, %v8755_v30  ;;  %v8882_v25 = vld [vmem:[#allocation5 + $0x124] sm:$0xff]  ;;  %v8692_v5 = vld [vmem:[#allocation5 + $0x139] sm:$0xff] }
 0x97e   : > { %v8661_v55 = vld [vmem:[#allocation5 + $0x140] sm:$0xff]  ;;  %v8724_v44 = vmax.f32 %v8660_v26, %v8692_v5  ;;  %v15556_v51 = vld [vmem:[#allocation59_spill] sm:$0xff]  ;;  %v8761_v48 = vld [vmem:[#allocation5 + $0x172] sm:$0xff]  ;;  %v4669_v58 = vadd.f32 %v15559_v14, %v15558_v17 }
 0x97f   : > { %v8850_v10 = vmax.f32 %v8786_v12, %v8818_v39  ;;  %v8851_v63 = vmax.f32 %v8787_v57, %v8819_v32  ;;  %v8662_v8 = vld [vmem:[#allocation5 + $0x150] sm:$0xff]  ;;  %v8663_v35 = vld [vmem:[#allocation5 + $0x158] sm:$0xff]  ;;  %v8693_v34 = vld [vmem:[#allocation5 + $0x141] sm:$0xff]  ;;  %v4668_v20 = vadd.f32 %v15556_v51, %v15555_v56 }
 0x980   : > { %v8664_v52 = vld [vmem:[#allocation5 + $0x168] sm:$0xff]  ;;  %v8665_v50 = vld [vmem:[#allocation5 + $0x170] sm:$0xff]  ;;  %v8725_v7 = vmax.f32 %v8661_v55, %v8693_v34  ;;  %v8695_v49 = vld [vmem:[#allocation5 + $0x159] sm:$0xff] }
 0x981   : > { %v8914_v3 = vmax.f32 %v8850_v10, %v8882_v25  ;;  %v8915_v15 = vmax.f32 %v8851_v63, %v8883_v60  ;;  %v8694_v6 = vld [vmem:[#allocation5 + $0x151] sm:$0xff]  ;;  %v8696_v0 = vld [vmem:[#allocation5 + $0x169] sm:$0xff]  ;;  %v8727_v42 = vmax.f32 %v8663_v35, %v8695_v49  ;;  %v8756_v33 = vld [vmem:[#allocation5 + $0x13a] sm:$0xff] }
 0x982   : > { %v8697_v22 = vld [vmem:[#allocation5 + $0x171] sm:$0xff]  ;;  %v8726_v31 = vmax.f32 %v8662_v8, %v8694_v6  ;;  %v8757_v2 = vld [vmem:[#allocation5 + $0x142] sm:$0xff]  ;;  %v8728_v43 = vmax.f32 %v8664_v52, %v8696_v0  ;;  %v8759_v11 = vld [vmem:[#allocation5 + $0x15a] sm:$0xff]  ;;  %v8788_v24 = vmax.f32 %v8724_v44, %v8756_v33 }
 0x983   : > { %v8946_v18 = vadd.f32 %v8914_v3, %v4666_v47  ;;  %v8947_v9 = vadd.f32 %v8915_v15, %v4667_v23  ;;  %v8729_v21 = vmax.f32 %v8665_v50, %v8697_v22  ;;  %v8758_v36 = vld [vmem:[#allocation5 + $0x152] sm:$0xff]  ;;  %v8760_v45 = vld [vmem:[#allocation5 + $0x16a] sm:$0xff]  ;;  %v8789_v13 = vmax.f32 %v8725_v7, %v8757_v2  ;;  %v8820_v59 = vld [vmem:[#allocation5 + $0x13b] sm:$0xff] }
 0x984   : > { %v8790_v1 = vmax.f32 %v8726_v31, %v8758_v36  ;;  %v8821_v41 = vld [vmem:[#allocation5 + $0x143] sm:$0xff]  ;;  %v8791_v29 = vmax.f32 %v8727_v42, %v8759_v11  ;;  %v8792_v37 = vmax.f32 %v8728_v43, %v8760_v45  ;;  %v8822_v62 = vld [vmem:[#allocation5 + $0x153] sm:$0xff]  ;;  %v8823_v57 = vld [vmem:[#allocation5 + $0x15b] sm:$0xff]  ;;  %v8852_v60 = vmax.f32 %v8788_v24, %v8820_v59 }
 0x985   : > { %8978 = vst.msk [vmem:[%s14534_s23 + $0xc0] sm:$0xff] %vm171_vm0, %v8946_v18  ;;  %8979 = vst.msk [vmem:[%s14534_s23 + $0xc8] sm:$0xff] %vm171_vm0, %v8947_v9  ;;  %v8793_v4 = vmax.f32 %v8729_v21, %v8761_v48  ;;  %v15560_v61 = vld [vmem:[#allocation34_spill] sm:$0xff]  ;;  %v15562_v30 = vld [vmem:[#allocation63_spill] sm:$0xff]  ;;  %v8853_v10 = vmax.f32 %v8789_v13, %v8821_v41 }
 0x986   : > { %v15561_v54 = vmax.f32 %v15560_v61, 0.0  ;;  %v8825_v39 = vld [vmem:[#allocation5 + $0x173] sm:$0xff]  ;;  %v8824_v32 = vld [vmem:[#allocation5 + $0x16b] sm:$0xff]  ;;  %v8854_v25 = vmax.f32 %v8790_v1, %v8822_v62  ;;  %v8855_v40 = vmax.f32 %v8791_v29, %v8823_v57  ;;  %v8884_v3 = vld [vmem:[#allocation5 + $0x13c] sm:$0xff] }
 0x987   : > { %v15563_v63 = vld [vmem:[#allocation35_spill] sm:$0xff]  ;;  %v15565_v55 = vld [vmem:[#allocation65_spill] sm:$0xff]  ;;  %v8856_v38 = vmax.f32 %v8792_v37, %v8824_v32  ;;  %v8857_v47 = vmax.f32 %v8793_v4, %v8825_v39  ;;  %v15566_v35 = vld [vmem:[#allocation36_spill] sm:$0xff]  ;;  %v8916_v15 = vmax.f32 %v8852_v60, %v8884_v3 }
 0x988   : > { %v4670_v12 = vadd.f32 %v15562_v30, %v15561_v54  ;;  %v15564_v26 = vmax.f32 %v15563_v63, 0.0  ;;  %v8885_v46 = vld [vmem:[#allocation5 + $0x144] sm:$0xff]  ;;  %v8886_v8 = vld [vmem:[#allocation5 + $0x154] sm:$0xff]  ;;  %v15567_v34 = vmax.f32 %v15566_v35, 0.0  ;;  %v8887_v53 = vld [vmem:[#allocation5 + $0x15c] sm:$0xff] }
 0x989   : > { %v15568_v44 = vld [vmem:[#allocation67_spill] sm:$0xff]  ;;  %v8889_v27 = vld [vmem:[#allocation5 + $0x174] sm:$0xff]  ;;  %v8917_v52 = vmax.f32 %v8853_v10, %v8885_v46  ;;  %v8918_v50 = vmax.f32 %v8854_v25, %v8886_v8  ;;  %v8919_v0 = vmax.f32 %v8855_v40, %v8887_v53  ;;  %v8948_v9 = vadd.f32 %v8916_v15, %v4668_v20 }
 0x98a   : > { %v4671_v5 = vadd.f32 %v15565_v55, %v15564_v26  ;;  %v4672_v16 = vadd.f32 %v15568_v44, %v15567_v34  ;;  %v8888_v23 = vld [vmem:[#allocation5 + $0x16c] sm:$0xff]  ;;  %v15569_v6 = vld [vmem:[#allocation37_spill] sm:$0xff]  ;;  %v8921_v31 = vmax.f32 %v8857_v47, %v8889_v27 }
 0x98b   : > { %v15570_v7 = vmax.f32 %v15569_v6, 0.0  ;;  %v15571_v18 = vld [vmem:[#allocation69_spill] sm:$0xff]  ;;  %v8920_v22 = vmax.f32 %v8856_v38, %v8888_v23  ;;  %v8949_v2 = vadd.f32 %v8917_v52, %v4669_v58  ;;  %v8950_v42 = vadd.f32 %v8918_v50, %v4670_v12  ;;  %8980 = vst.msk [vmem:[%s14534_s23 + $0xd0] sm:$0xff] %vm171_vm0, %v8948_v9 }
 0x98c   : > { %v8951_v43 = vadd.f32 %v8919_v0, %v4671_v5 }
 0x98d   : > { %v4673_v49 = vadd.f32 %v15571_v18, %v15570_v7  ;;  %v8952_v21 = vadd.f32 %v8920_v22, %v4672_v16  ;;  %8981 = vst.msk [vmem:[%s14534_s23 + $0xd8] sm:$0xff] %vm171_vm0, %v8949_v2  ;;  %8982 = vst.msk [vmem:[%s14534_s23 + $0xe0] sm:$0xff] %vm171_vm0, %v8950_v42 }
 0x98e   : > { %8983 = vst.msk [vmem:[%s14534_s23 + $0xe8] sm:$0xff] %vm171_vm0, %v8951_v43 }
 0x98f   : > { %v8953_v33 = vadd.f32 %v8921_v31, %v4673_v49  ;;  %8984 = vst.msk [vmem:[%s14534_s23 + $0xf0] sm:$0xff] %vm171_vm0, %v8952_v21 }
 0x991   : > { %8985 = vst.msk [vmem:[%s14534_s23 + $0xf8] sm:$0xff] %vm171_vm0, %v8953_v33 }
 0x992 PF: > { %s13_s12 = sadd.s32 1, %s10714_s12  }
 0x993   : > { %p10_p4 = scmp.ge.s32.totalorder %s13_s12, 4  }
 0x995   :  { %12 = sbr.rel (!%p10_p4) target bundleno = 1 (0x1), region = 70 }

</bundles_post_ra>
